<compile_context>
chip_gen: v7x
topology: tpu7x:2x2x1
jax: 0.10.0
libtpu: 0.0.40
codegen_flags: <defaults>
</compile_context>

<pallas_src>
import functools

import jax
import jax.numpy as jnp
from jax.experimental import pallas as pl
from jax.experimental.pallas import tpu as pltpu

EPS = 1e-5
LANE = 128   # TPU lane width: channels are zero-padded to a multiple of this.


# ----------------------------------------------------------------------------
# Kernels
# ----------------------------------------------------------------------------
def _make_conv_kernel(tile_n, H, W, Cp, compute_dtype, fused_bn_relu):
    """3x3 'SAME' conv for `tile_n` images via ky-split im2col matmuls, also
    emitting per-channel [sum, sumsq] (f32) for the following BatchNorm.

    fused_bn_relu=False: input ref is the raw x tile (f32, channel-padded).
    fused_bn_relu=True : input ref is the previous conv's stored output tile;
                         the kernel applies y*scale+shift, ReLU, then pads."""
    Mt = tile_n * H * W

    def _pad_conv_stats(h, w_ref, y_ref, stats_ref, pad_ref, patch_ref):
        # h: (tile_n, H, W, Cp) in compute_dtype.
        # Zero only the 1-pixel border of the pad scratch (done every step so
        # the kernel stays correct if the parallel grid axis is split across
        # cores), then overwrite the interior.
        zr = jnp.zeros((tile_n, 1, W + 2, Cp), compute_dtype)
        zc = jnp.zeros((tile_n, H + 2, 1, Cp), compute_dtype)
        pad_ref[:, 0:1, :, :] = zr
        pad_ref[:, H + 1:H + 2, :, :] = zr
        pad_ref[:, :, 0:1, :] = zc
        pad_ref[:, :, W + 1:W + 2, :] = zc
        pad_ref[:, 1:H + 1, 1:W + 1, :] = h

        # ky-split im2col: 3 matmuls of K = 3*Cp, f32 accumulation across
        # groups.  Patch columns are ordered (kx, cin) to match the reshaped
        # HWIO weight rows (ky, kx, cin).
        acc = None
        for ky in range(3):
            for kx in range(3):
                patch_ref[:, kx * Cp:(kx + 1) * Cp] = (
                    pad_ref[:, ky:ky + H, kx:kx + W, :].reshape(Mt, Cp))
            part = jnp.dot(patch_ref[...],
                           w_ref[ky * 3 * Cp:(ky + 1) * 3 * Cp, :],
                           preferred_element_type=jnp.float32)
            acc = part if acc is None else acc + part

        # Store in the (possibly bf16) inter-pass dtype; stats from f32 acc.
        y_ref[...] = acc.astype(y_ref.dtype)
        # NOTE: E[x^2] - E[x]^2 in f32 (clamped on host); acceptable for the
        # forward pass, Welford-style merging would be safer for training.
        ssum = jnp.sum(acc, axis=0, keepdims=True)        # (1, Cp)
        ssq = jnp.sum(acc * acc, axis=0, keepdims=True)   # (1, Cp)
        stats_ref[0:1, 0:1, :] = ssum[None]
        stats_ref[0:1, 1:2, :] = ssq[None]

    if not fused_bn_relu:
        def kernel(x_ref, w_ref, y_ref, stats_ref, pad_ref, patch_ref):
            _pad_conv_stats(x_ref[...].astype(compute_dtype),
                            w_ref, y_ref, stats_ref, pad_ref, patch_ref)
    else:
        def kernel(yin_ref, scale_ref, shift_ref, w_ref, y_ref, stats_ref,
                   pad_ref, patch_ref):
            # BN1 affine + ReLU in f32 (upcast the stored bf16), then cast for
            # the MXU and re-pad.
            h = jnp.maximum(
                yin_ref[...].astype(jnp.float32) * scale_ref[...]
                + shift_ref[...], 0.0)
            _pad_conv_stats(h.astype(compute_dtype).reshape(tile_n, H, W, Cp),
                            w_ref, y_ref, stats_ref, pad_ref, patch_ref)

    return kernel


def _bn_add_relu_kernel(y_ref, xid_ref, scale_ref, shift_ref, out_ref):
    # BN2 affine + residual add + ReLU, f32 math, lane-dense 2D tiles.
    out_ref[...] = jnp.maximum(
        y_ref[...].astype(jnp.float32) * scale_ref[...] + shift_ref[...]
        + xid_ref[...], 0.0)


# ----------------------------------------------------------------------------
# Host-side helpers
# ----------------------------------------------------------------------------
def _bn_scale_shift(stats, gamma, beta, count, eps):
    # stats: (G, 2, Cp) per-tile [sum, sumsq]; tiny per-channel math.
    s = jnp.sum(stats[:, 0, :], axis=0)
    sq = jnp.sum(stats[:, 1, :], axis=0)
    mean = s / count
    var = jnp.maximum(sq / count - mean * mean, 0.0)
    scale = gamma * jax.lax.rsqrt(var + eps)
    shift = beta - mean * scale
    return scale.reshape(1, -1), shift.reshape(1, -1)


def _workset_bytes(tile_n, H, W, Cp, cbytes, sbytes):
    """Rough per-grid-step VMEM working set for the conv passes."""
    Mt = tile_n * H * W
    return (2 * Mt * Cp * 4                              # f32 x tile, 2 bufs
            + 2 * Mt * Cp * sbytes                       # conv out tile, 2 bufs
            + Mt * Cp * 4                                # f32 accumulator temp
            + 2 * 9 * Cp * Cp * cbytes                   # weights (worst case)
            + tile_n * (H + 2) * (W + 2) * Cp * cbytes   # in-kernel pad scratch
            + Mt * 3 * Cp * cbytes)                      # ky-split im2col patch


def _choose_tile_n(N, H, W, Cp, cbytes, sbytes, budget):
    """Largest batch divisor whose working set fits `budget`; prefer G >= 2
    so the parallel grid axis can shard across v7x's two TensorCores."""
    HW = H * W
    feasible = []
    for t in range(1, N + 1):
        if N % t:
            continue
        if (t * HW) % 8 and t != N:          # sublane-aligned row blocks
            continue
        if _workset_bytes(t, H, W, Cp, cbytes, sbytes) > budget:
            continue
        feasible.append(t)
    if not feasible:
        for t in range(1, N + 1):
            if N % t == 0 and ((t * HW) % 8 == 0 or t == N):
                return t
        return N
    pref = [t for t in feasible if N // t >= 2]
    return max(pref) if pref else max(feasible)


def _choose_rows3(N, H, W, cap_rows=4096):
    """Lane-dense row-block size for the elementwise pass 3 (decoupled from
    tile_n); large blocks, but keep >= 2 grid steps when possible."""
    HW = H * W
    feasible = [k for k in range(1, N + 1)
                if N % k == 0 and ((k * HW) % 8 == 0 or k == N)]
    cap = [k for k in feasible if k * HW <= cap_rows] or feasible[:1]
    pref = [k for k in cap if N // k >= 2]
    k = max(pref) if pref else max(cap)
    return k * HW


# ----------------------------------------------------------------------------
# Wrapper
# ----------------------------------------------------------------------------
@functools.partial(jax.jit, static_argnames=("tile_n", "compute_dtype",
                                              "store_dtype", "eps",
                                              "vmem_budget_mb"))
def basic_block(x, w1, g1, b1, w2, g2, b2, *, tile_n=None,
                compute_dtype=jnp.bfloat16, store_dtype=jnp.bfloat16,
                eps=EPS, vmem_budget_mb=40):
    """x: (N,H,W,C) f32 NHWC; w*: (3,3,C,C) HWIO; g*/b*: (C,) f32."""
    N, H, W, C = x.shape
    assert w1.shape == (3, 3, C, C) and w2.shape == (3, 3, C, C), \
        "identity residual requires inplanes == planes and 3x3 kernels"

    f32 = jnp.float32
    Cp = ((C + LANE - 1) // LANE) * LANE          # lane-dense channel padding
    cpad = Cp - C
    M = N * H * W                                  # total rows / BN count
    cbytes = jnp.dtype(compute_dtype).itemsize
    sbytes = jnp.dtype(store_dtype).itemsize

    if tile_n is None:
        tile_n = _choose_tile_n(N, H, W, Cp, cbytes, sbytes,
                                vmem_budget_mb << 20)
    assert N % tile_n == 0, "tile_n must divide the batch"
    G = N // tile_n
    Mt = tile_n * H * W

    # Channel padding only when needed (C % 128 != 0); the pad cost for the
    # C < 128 first stage is accepted deliberately (lane-dense kernels).
    xc = x.astype(f32)
    if cpad:
        xc = jnp.pad(xc, ((0, 0), (0, 0), (0, 0), (0, cpad)))
    xc2d = xc.reshape(M, Cp)                       # residual, f32 (exact add)

    def prep_w(w):     # HWIO -> (9*Cp, Cp); rows ordered (ky, kx, cin)
        w = w.astype(f32)
        if cpad:
            w = jnp.pad(w, ((0, 0), (0, 0), (0, cpad), (0, cpad)))
        return w.reshape(9 * Cp, Cp).astype(compute_dtype)

    def prep_vec(v, fill):
        v = jnp.asarray(v, f32).reshape(-1)
        if cpad:
            v = jnp.pad(v, (0, cpad), constant_values=fill)
        return v

    w1r, w2r = prep_w(w1), prep_w(w2)
    g1p, b1p = prep_vec(g1, 1.0), prep_vec(b1, 0.0)
    g2p, b2p = prep_vec(g2, 1.0), prep_vec(b2, 0.0)

    # Explicit scoped-VMEM limit (v5e default is only 16 MiB; v7x physical is
    # 64 MiB per core, so clamp there).
    ws = _workset_bytes(tile_n, H, W, Cp, cbytes, sbytes)
    vlb = int(min(64 << 20, max(32 << 20, ws + ws // 2)))
    cparams = pltpu.CompilerParams(dimension_semantics=("parallel",),
                                   vmem_limit_bytes=vlb)

    # Conv weights: constant index_map -> DMA'd once, resident across steps.
    # Single-buffer them when large (C >= 256 stages) to reclaim VMEM on v7x.
    w_idx = lambda n: (0, 0)
    if hasattr(pl, "Buffered") and 9 * Cp * Cp * cbytes >= (1 << 20):
        w_spec = pl.BlockSpec((9 * Cp, Cp), w_idx,
                              pipeline_mode=pl.Buffered(1))
    else:
        w_spec = pl.BlockSpec((9 * Cp, Cp), w_idx)

    x_spec = pl.BlockSpec((tile_n, H, W, Cp), lambda n: (n, 0, 0, 0))
    row_spec = pl.BlockSpec((Mt, Cp), lambda n: (n, 0))
    vec_spec = pl.BlockSpec((1, Cp), lambda n: (0, 0))
    stats_spec = pl.BlockSpec((1, 2, Cp), lambda n: (n, 0, 0))
    y_shape = jax.ShapeDtypeStruct((M, Cp), store_dtype)      # bf16 inter-pass
    stats_shape = jax.ShapeDtypeStruct((G, 2, Cp), f32)
    conv_scratch = [pltpu.VMEM((tile_n, H + 2, W + 2, Cp), compute_dtype),
                    pltpu.VMEM((Mt, 3 * Cp), compute_dtype)]

    # ---- pass 1: conv1 (in-kernel pad) + BN1 partial stats -----------------
    y1, st1 = pl.pallas_call(
        _make_conv_kernel(tile_n, H, W, Cp, compute_dtype, fused_bn_relu=False),
        out_shape=(y_shape, stats_shape),
        grid_spec=pltpu.PrefetchScalarGridSpec(
            num_scalar_prefetch=0, grid=(G,),
            in_specs=[x_spec, w_spec],
            out_specs=[row_spec, stats_spec],
            scratch_shapes=list(conv_scratch)),
        compiler_params=cparams,
    )(xc, w1r)
    scale1, shift1 = _bn_scale_shift(st1, g1p, b1p, M, eps)

    # ---- pass 2: BN1 affine + ReLU + conv2 + BN2 partial stats -------------
    y2, st2 = pl.pallas_call(
        _make_conv_kernel(tile_n, H, W, Cp, compute_dtype, fused_bn_relu=True),
        out_shape=(y_shape, stats_shape),
        grid_spec=pltpu.PrefetchScalarGridSpec(
            num_scalar_prefetch=0, grid=(G,),
            in_specs=[row_spec, vec_spec, vec_spec, w_spec],
            out_specs=[row_spec, stats_spec],
            scratch_shapes=list(conv_scratch)),
        compiler_params=cparams,
    )(y1, scale1, shift1, w2r)
    scale2, shift2 = _bn_scale_shift(st2, g2p, b2p, M, eps)

    # ---- pass 3: BN2 affine + residual add + ReLU (big lane-dense blocks) --
    rows3 = _choose_rows3(N, H, W)
    G3 = M // rows3
    row3_spec = pl.BlockSpec((rows3, Cp), lambda n: (n, 0))
    vec3_spec = pl.BlockSpec((1, Cp), lambda n: (0, 0))
    out2d = pl.pallas_call(
        _bn_add_relu_kernel,
        out_shape=jax.ShapeDtypeStruct((M, Cp), f32),
        grid_spec=pltpu.PrefetchScalarGridSpec(
            num_scalar_prefetch=0, grid=(G3,),
            in_specs=[row3_spec, row3_spec, vec3_spec, vec3_spec],
            out_specs=row3_spec),
        compiler_params=cparams,
    )(y2, xc2d, scale2, shift2)

    out = out2d.reshape(N, H, W, Cp)
    if cpad:
        out = out[..., :C]
    return out.astype(x.dtype)


# ----------------------------------------------------------------------------
# References
# ----------------------------------------------------------------------------
def reference(x, w1, g1, b1, w2, g2, b2, *, eps=EPS):
    """Pure-JAX full-f32 BasicBlock forward (training-mode BatchNorm)."""
    def conv(y, w):
        return jax.lax.conv_general_dilated(
            y, w, (1, 1), "SAME",
            dimension_numbers=("NHWC", "HWIO", "NHWC"),
            precision=jax.lax.Precision.HIGHEST)

    def bn(y, g, b):
        mean = y.mean(axis=(0, 1, 2), keepdims=True)
        var = ((y - mean) ** 2).mean(axis=(0, 1, 2), keepdims=True)
        return ((y - mean) * jax.lax.rsqrt(var + eps)
                * g.reshape(1, 1, 1, -1) + b.reshape(1, 1, 1, -1))

    out = jax.nn.relu(bn(conv(x, w1), g1, b1))
    out = bn(conv(out, w2), g2, b2)
    return jax.nn.relu(out + x)


def reference_matched(x, w1, g1, b1, w2, g2, b2, *,
                      compute_dtype=jnp.bfloat16, store_dtype=jnp.bfloat16,
                      eps=EPS):
    """Reference replicating the kernel's precision policy: bf16 conv operands
    with f32 accumulation, bf16 inter-pass storage, BN stats from f32."""
    f32 = jnp.float32

    def conv(h, w):
        return jax.lax.conv_general_dilated(
            h.astype(compute_dtype), w.astype(compute_dtype), (1, 1), "SAME",
            dimension_numbers=("NHWC", "HWIO", "NHWC"),
            preferred_element_type=f32)

    def bn_affine(y, g, b):
        mean = y.mean(axis=(0, 1, 2))
        var = jnp.maximum((y * y).mean(axis=(0, 1, 2)) - mean * mean, 0.0)
        scale = g * jax.lax.rsqrt(var + eps)
        return scale, b - mean * scale

    x32 = x.astype(f32)
    y1 = conv(x32, w1)
    s1, t1 = bn_affine(y1, g1, b1)
    h = jnp.maximum(y1.astype(store_dtype).astype(f32) * s1 + t1, 0.0)
    y2 = conv(h, w2)
    s2, t2 = bn_affine(y2, g2, b2)
    return jnp.maximum(y2.astype(store_dtype).astype(f32) * s2 + t2 + x32, 0.0)


# ----------------------------------------------------------------------------
if __name__ == "__main__":
    N, H, W, C = 2, 16, 16, 8        # inplanes == planes == 8, stride=1

    key = jax.random.PRNGKey(0)
    kx_, kw1, kw2 = jax.random.split(key, 3)
    x = jax.random.normal(kx_, (N, H, W, C), dtype=jnp.float32)
    w1 = 0.1 * jax.random.normal(kw1, (3, 3, C, C), dtype=jnp.float32)
    w2 = 0.1 * jax.random.normal(kw2, (3, 3, C, C), dtype=jnp.float32)
    # BatchNorm2d default init: weight=1, bias=0
    g1 = jnp.ones((C,), jnp.float32)
    b1 = jnp.zeros((C,), jnp.float32)
    g2 = jnp.ones((C,), jnp.float32)
    b2 = jnp.zeros((C,), jnp.float32)

    out = jax.block_until_ready(basic_block(x, w1, g1, b1, w2, g2, b2))

    # Check vs. a reference that mirrors the kernel's precision policy
    # (bf16 conv operands + bf16 inter-pass storage, f32 acc/BN/residual).
    ref_m = jax.block_until_ready(reference_matched(x, w1, g1, b1, w2, g2, b2))
    if not jnp.allclose(out, ref_m, atol=2.5e-2, rtol=2.5e-2):
        err = float(jnp.max(jnp.abs(out - ref_m)))
        raise AssertionError(
            f"Pallas BasicBlock != matched-precision reference (max err {err})")

    # Sanity check vs. the full-f32 reference; the residual gap is the
    # intentional bf16 rounding of matmul operands / inter-pass storage.
    ref_f = jax.block_until_ready(reference(x, w1, g1, b1, w2, g2, b2))
    if not jnp.allclose(out, ref_f, atol=6e-2, rtol=6e-2):
        err = float(jnp.max(jnp.abs(out - ref_f)))
        raise AssertionError(
            f"Pallas BasicBlock != f32 reference (max err {err})")

    print("KERNEL_OK")
</pallas_src>

<mosaic_0001>
module attributes {stable_mosaic.version = 11 : i64} {
  func.func @kernel(%arg0: i32, %arg1: memref<1x16x16x128xf32, #tpu.memory_space<vmem>>, %arg2: memref<1152x128xbf16, #tpu.memory_space<vmem>>, %arg3: memref<256x128xbf16, #tpu.memory_space<vmem>>, %arg4: memref<1x2x128xf32, #tpu.memory_space<vmem>>, %arg5: memref<1x18x18x128xbf16, #tpu.memory_space<vmem>>, %arg6: memref<256x384xbf16, #tpu.memory_space<vmem>>) attributes {dimension_semantics = [#tpu.dimension_semantics<parallel>], iteration_bounds = array<i64: 2>, scalar_prefetch = 0 : i64, scratch_operands = 2 : i64, tpu.core_type = #tpu.core_type<tc>, window_params = [{transform_indices = @transform_0, window_bounds = array<i64: 1, 16, 16, 128>}, {pipeline_mode = #tpu.pipeline_mode<synchronous>, transform_indices = @transform_1, window_bounds = array<i64: 1152, 128>}, {transform_indices = @transform_2, window_bounds = array<i64: 256, 128>}, {transform_indices = @transform_3, window_bounds = array<i64: 1, 2, 128>}]} {
    %c0 = arith.constant 0 : index
    %c0_0 = arith.constant 0 : index
    %c0_1 = arith.constant 0 : index
    %c0_2 = arith.constant 0 : index
    %0 = vector.load %arg1[%c0, %c0_0, %c0_1, %c0_2] : memref<1x16x16x128xf32, #tpu.memory_space<vmem>>, vector<1x16x16x128xf32>
    %1 = arith.truncf %0 : vector<1x16x16x128xf32> to vector<1x16x16x128xbf16>
    %cst = arith.constant 0.000000e+00 : bf16
    %2 = vector.broadcast %cst : bf16 to vector<1x1x18x128xbf16>
    %cst_3 = arith.constant 0.000000e+00 : bf16
    %3 = vector.broadcast %cst_3 : bf16 to vector<1x18x1x128xbf16>
    %c0_4 = arith.constant 0 : index
    %c0_5 = arith.constant 0 : index
    %c0_6 = arith.constant 0 : index
    %c0_7 = arith.constant 0 : index
    %4 = vector.load %arg5[%c0_4, %c0_5, %c0_6, %c0_7] : memref<1x18x18x128xbf16, #tpu.memory_space<vmem>>, vector<1x1x18x128xbf16>
    tpu.vector_store %arg5[%c0_4, %c0_5, %c0_6, %c0_7], %2 {strides = array<i32>} : memref<1x18x18x128xbf16, #tpu.memory_space<vmem>>, vector<1x1x18x128xbf16>,
    %c0_8 = arith.constant 0 : index
    %c17 = arith.constant 17 : index
    %c0_9 = arith.constant 0 : index
    %c0_10 = arith.constant 0 : index
    %5 = vector.load %arg5[%c0_8, %c17, %c0_9, %c0_10] : memref<1x18x18x128xbf16, #tpu.memory_space<vmem>>, vector<1x1x18x128xbf16>
    tpu.vector_store %arg5[%c0_8, %c17, %c0_9, %c0_10], %2 {strides = array<i32>} : memref<1x18x18x128xbf16, #tpu.memory_space<vmem>>, vector<1x1x18x128xbf16>,
    %c0_11 = arith.constant 0 : index
    %c0_12 = arith.constant 0 : index
    %c0_13 = arith.constant 0 : index
    %c0_14 = arith.constant 0 : index
    %6 = vector.load %arg5[%c0_11, %c0_12, %c0_13, %c0_14] : memref<1x18x18x128xbf16, #tpu.memory_space<vmem>>, vector<1x18x1x128xbf16>
    tpu.vector_store %arg5[%c0_11, %c0_12, %c0_13, %c0_14], %3 {strides = array<i32>} : memref<1x18x18x128xbf16, #tpu.memory_space<vmem>>, vector<1x18x1x128xbf16>,
    %c0_15 = arith.constant 0 : index
    %c0_16 = arith.constant 0 : index
    %c17_17 = arith.constant 17 : index
    %c0_18 = arith.constant 0 : index
    %7 = vector.load %arg5[%c0_15, %c0_16, %c17_17, %c0_18] : memref<1x18x18x128xbf16, #tpu.memory_space<vmem>>, vector<1x18x1x128xbf16>
    tpu.vector_store %arg5[%c0_15, %c0_16, %c17_17, %c0_18], %3 {strides = array<i32>} : memref<1x18x18x128xbf16, #tpu.memory_space<vmem>>, vector<1x18x1x128xbf16>,
    %c0_19 = arith.constant 0 : index
    %c1 = arith.constant 1 : index
    %c1_20 = arith.constant 1 : index
    %c0_21 = arith.constant 0 : index
    %8 = vector.load %arg5[%c0_19, %c1, %c1_20, %c0_21] : memref<1x18x18x128xbf16, #tpu.memory_space<vmem>>, vector<1x16x16x128xbf16>
    tpu.vector_store %arg5[%c0_19, %c1, %c1_20, %c0_21], %1 {strides = array<i32>} : memref<1x18x18x128xbf16, #tpu.memory_space<vmem>>, vector<1x16x16x128xbf16>,
    %c0_22 = arith.constant 0 : index
    %c0_23 = arith.constant 0 : index
    %c0_24 = arith.constant 0 : index
    %c0_25 = arith.constant 0 : index
    %9 = vector.load %arg5[%c0_22, %c0_23, %c0_24, %c0_25] : memref<1x18x18x128xbf16, #tpu.memory_space<vmem>>, vector<1x16x16x128xbf16>
    %10 = vector.shape_cast %9 : vector<1x16x16x128xbf16> to vector<256x128xbf16>
    %c0_26 = arith.constant 0 : index
    %c0_27 = arith.constant 0 : index
    %11 = vector.load %arg6[%c0_26, %c0_27] : memref<256x384xbf16, #tpu.memory_space<vmem>>, vector<256x128xbf16>
    tpu.vector_store %arg6[%c0_26, %c0_27], %10 {strides = array<i32>} : memref<256x384xbf16, #tpu.memory_space<vmem>>, vector<256x128xbf16>,
    %c0_28 = arith.constant 0 : index
    %c0_29 = arith.constant 0 : index
    %c1_30 = arith.constant 1 : index
    %c0_31 = arith.constant 0 : index
    %12 = vector.load %arg5[%c0_28, %c0_29, %c1_30, %c0_31] : memref<1x18x18x128xbf16, #tpu.memory_space<vmem>>, vector<1x16x16x128xbf16>
    %13 = vector.shape_cast %12 : vector<1x16x16x128xbf16> to vector<256x128xbf16>
    %c0_32 = arith.constant 0 : index
    %c128 = arith.constant 128 : index
    %14 = vector.load %arg6[%c0_32, %c128] : memref<256x384xbf16, #tpu.memory_space<vmem>>, vector<256x128xbf16>
    tpu.vector_store %arg6[%c0_32, %c128], %13 {strides = array<i32>} : memref<256x384xbf16, #tpu.memory_space<vmem>>, vector<256x128xbf16>,
    %c0_33 = arith.constant 0 : index
    %c0_34 = arith.constant 0 : index
    %c2 = arith.constant 2 : index
    %c0_35 = arith.constant 0 : index
    %15 = vector.load %arg5[%c0_33, %c0_34, %c2, %c0_35] : memref<1x18x18x128xbf16, #tpu.memory_space<vmem>>, vector<1x16x16x128xbf16>
    %16 = vector.shape_cast %15 : vector<1x16x16x128xbf16> to vector<256x128xbf16>
    %c0_36 = arith.constant 0 : index
    %c256 = arith.constant 256 : index
    %17 = vector.load %arg6[%c0_36, %c256] : memref<256x384xbf16, #tpu.memory_space<vmem>>, vector<256x128xbf16>
    tpu.vector_store %arg6[%c0_36, %c256], %16 {strides = array<i32>} : memref<256x384xbf16, #tpu.memory_space<vmem>>, vector<256x128xbf16>,
    %c0_37 = arith.constant 0 : index
    %c0_38 = arith.constant 0 : index
    %18 = vector.load %arg6[%c0_37, %c0_38] : memref<256x384xbf16, #tpu.memory_space<vmem>>, vector<256x384xbf16>
    %c0_39 = arith.constant 0 : index
    %c0_40 = arith.constant 0 : index
    %19 = vector.load %arg2[%c0_39, %c0_40] : memref<1152x128xbf16, #tpu.memory_space<vmem>>, vector<384x128xbf16>
    %cst_41 = arith.constant dense<0.000000e+00> : vector<256x128xf32>
    %20 = tpu.matmul %18, %19, %cst_41 {dimension_numbers = #tpu.dot_dimension_numbers<[1], [0], [0], [1], [0, 0, 1, 1], [], []>} : vector<256x384xbf16>, vector<384x128xbf16>, vector<256x128xf32> -> vector<256x128xf32>
    %c0_42 = arith.constant 0 : index
    %c1_43 = arith.constant 1 : index
    %c0_44 = arith.constant 0 : index
    %c0_45 = arith.constant 0 : index
    %21 = vector.load %arg5[%c0_42, %c1_43, %c0_44, %c0_45] : memref<1x18x18x128xbf16, #tpu.memory_space<vmem>>, vector<1x16x16x128xbf16>
    %22 = vector.shape_cast %21 : vector<1x16x16x128xbf16> to vector<256x128xbf16>
    %c0_46 = arith.constant 0 : index
    %c0_47 = arith.constant 0 : index
    %23 = vector.load %arg6[%c0_46, %c0_47] : memref<256x384xbf16, #tpu.memory_space<vmem>>, vector<256x128xbf16>
    tpu.vector_store %arg6[%c0_46, %c0_47], %22 {strides = array<i32>} : memref<256x384xbf16, #tpu.memory_space<vmem>>, vector<256x128xbf16>,
    %c0_48 = arith.constant 0 : index
    %c1_49 = arith.constant 1 : index
    %c1_50 = arith.constant 1 : index
    %c0_51 = arith.constant 0 : index
    %24 = vector.load %arg5[%c0_48, %c1_49, %c1_50, %c0_51] : memref<1x18x18x128xbf16, #tpu.memory_space<vmem>>, vector<1x16x16x128xbf16>
    %25 = vector.shape_cast %24 : vector<1x16x16x128xbf16> to vector<256x128xbf16>
    %c0_52 = arith.constant 0 : index
    %c128_53 = arith.constant 128 : index
    %26 = vector.load %arg6[%c0_52, %c128_53] : memref<256x384xbf16, #tpu.memory_space<vmem>>, vector<256x128xbf16>
    tpu.vector_store %arg6[%c0_52, %c128_53], %25 {strides = array<i32>} : memref<256x384xbf16, #tpu.memory_space<vmem>>, vector<256x128xbf16>,
    %c0_54 = arith.constant 0 : index
    %c1_55 = arith.constant 1 : index
    %c2_56 = arith.constant 2 : index
    %c0_57 = arith.constant 0 : index
    %27 = vector.load %arg5[%c0_54, %c1_55, %c2_56, %c0_57] : memref<1x18x18x128xbf16, #tpu.memory_space<vmem>>, vector<1x16x16x128xbf16>
    %28 = vector.shape_cast %27 : vector<1x16x16x128xbf16> to vector<256x128xbf16>
    %c0_58 = arith.constant 0 : index
    %c256_59 = arith.constant 256 : index
    %29 = vector.load %arg6[%c0_58, %c256_59] : memref<256x384xbf16, #tpu.memory_space<vmem>>, vector<256x128xbf16>
    tpu.vector_store %arg6[%c0_58, %c256_59], %28 {strides = array<i32>} : memref<256x384xbf16, #tpu.memory_space<vmem>>, vector<256x128xbf16>,
    %c0_60 = arith.constant 0 : index
    %c0_61 = arith.constant 0 : index
    %30 = vector.load %arg6[%c0_60, %c0_61] : memref<256x384xbf16, #tpu.memory_space<vmem>>, vector<256x384xbf16>
    %c384 = arith.constant 384 : index
    %c0_62 = arith.constant 0 : index
    %31 = vector.load %arg2[%c384, %c0_62] : memref<1152x128xbf16, #tpu.memory_space<vmem>>, vector<384x128xbf16>
    %cst_63 = arith.constant dense<0.000000e+00> : vector<256x128xf32>
    %32 = tpu.matmul %30, %31, %cst_63 {dimension_numbers = #tpu.dot_dimension_numbers<[1], [0], [0], [1], [0, 0, 1, 1], [], []>} : vector<256x384xbf16>, vector<384x128xbf16>, vector<256x128xf32> -> vector<256x128xf32>
    %33 = arith.addf %20, %32 : vector<256x128xf32>
    %c0_64 = arith.constant 0 : index
    %c2_65 = arith.constant 2 : index
    %c0_66 = arith.constant 0 : index
    %c0_67 = arith.constant 0 : index
    %34 = vector.load %arg5[%c0_64, %c2_65, %c0_66, %c0_67] : memref<1x18x18x128xbf16, #tpu.memory_space<vmem>>, vector<1x16x16x128xbf16>
    %35 = vector.shape_cast %34 : vector<1x16x16x128xbf16> to vector<256x128xbf16>
    %c0_68 = arith.constant 0 : index
    %c0_69 = arith.constant 0 : index
    %36 = vector.load %arg6[%c0_68, %c0_69] : memref<256x384xbf16, #tpu.memory_space<vmem>>, vector<256x128xbf16>
    tpu.vector_store %arg6[%c0_68, %c0_69], %35 {strides = array<i32>} : memref<256x384xbf16, #tpu.memory_space<vmem>>, vector<256x128xbf16>,
    %c0_70 = arith.constant 0 : index
    %c2_71 = arith.constant 2 : index
    %c1_72 = arith.constant 1 : index
    %c0_73 = arith.constant 0 : index
    %37 = vector.load %arg5[%c0_70, %c2_71, %c1_72, %c0_73] : memref<1x18x18x128xbf16, #tpu.memory_space<vmem>>, vector<1x16x16x128xbf16>
    %38 = vector.shape_cast %37 : vector<1x16x16x128xbf16> to vector<256x128xbf16>
    %c0_74 = arith.constant 0 : index
    %c128_75 = arith.constant 128 : index
    %39 = vector.load %arg6[%c0_74, %c128_75] : memref<256x384xbf16, #tpu.memory_space<vmem>>, vector<256x128xbf16>
    tpu.vector_store %arg6[%c0_74, %c128_75], %38 {strides = array<i32>} : memref<256x384xbf16, #tpu.memory_space<vmem>>, vector<256x128xbf16>,
    %c0_76 = arith.constant 0 : index
    %c2_77 = arith.constant 2 : index
    %c2_78 = arith.constant 2 : index
    %c0_79 = arith.constant 0 : index
    %40 = vector.load %arg5[%c0_76, %c2_77, %c2_78, %c0_79] : memref<1x18x18x128xbf16, #tpu.memory_space<vmem>>, vector<1x16x16x128xbf16>
    %41 = vector.shape_cast %40 : vector<1x16x16x128xbf16> to vector<256x128xbf16>
    %c0_80 = arith.constant 0 : index
    %c256_81 = arith.constant 256 : index
    %42 = vector.load %arg6[%c0_80, %c256_81] : memref<256x384xbf16, #tpu.memory_space<vmem>>, vector<256x128xbf16>
    tpu.vector_store %arg6[%c0_80, %c256_81], %41 {strides = array<i32>} : memref<256x384xbf16, #tpu.memory_space<vmem>>, vector<256x128xbf16>,
    %c0_82 = arith.constant 0 : index
    %c0_83 = arith.constant 0 : index
    %43 = vector.load %arg6[%c0_82, %c0_83] : memref<256x384xbf16, #tpu.memory_space<vmem>>, vector<256x384xbf16>
    %c768 = arith.constant 768 : index
    %c0_84 = arith.constant 0 : index
    %44 = vector.load %arg2[%c768, %c0_84] : memref<1152x128xbf16, #tpu.memory_space<vmem>>, vector<384x128xbf16>
    %cst_85 = arith.constant dense<0.000000e+00> : vector<256x128xf32>
    %45 = tpu.matmul %43, %44, %cst_85 {dimension_numbers = #tpu.dot_dimension_numbers<[1], [0], [0], [1], [0, 0, 1, 1], [], []>} : vector<256x384xbf16>, vector<384x128xbf16>, vector<256x128xf32> -> vector<256x128xf32>
    %46 = arith.addf %33, %45 : vector<256x128xf32>
    %47 = arith.truncf %46 : vector<256x128xf32> to vector<256x128xbf16>
    %c0_86 = arith.constant 0 : index
    %c0_87 = arith.constant 0 : index
    %48 = vector.load %arg3[%c0_86, %c0_87] : memref<256x128xbf16, #tpu.memory_space<vmem>>, vector<256x128xbf16>
    tpu.vector_store %arg3[%c0_86, %c0_87], %47 {strides = array<i32>} : memref<256x128xbf16, #tpu.memory_space<vmem>>, vector<256x128xbf16>,
    %cst_88 = arith.constant dense<0.000000e+00> : vector<128xf32>
    %49 = vector.multi_reduction <add>, %46, %cst_88 [0] : vector<256x128xf32> to vector<128xf32>
    %50 = vector.shape_cast %49 : vector<128xf32> to vector<1x128xf32>
    %51 = arith.mulf %46, %46 : vector<256x128xf32>
    %cst_89 = arith.constant dense<0.000000e+00> : vector<128xf32>
    %52 = vector.multi_reduction <add>, %51, %cst_89 [0] : vector<256x128xf32> to vector<128xf32>
    %53 = vector.shape_cast %52 : vector<128xf32> to vector<1x128xf32>
    %54 = vector.shape_cast %50 : vector<1x128xf32> to vector<1x1x128xf32>
    %c0_90 = arith.constant 0 : index
    %c0_91 = arith.constant 0 : index
    %c0_92 = arith.constant 0 : index
    %55 = vector.load %arg4[%c0_90, %c0_91, %c0_92] : memref<1x2x128xf32, #tpu.memory_space<vmem>>, vector<1x1x128xf32>
    tpu.vector_store %arg4[%c0_90, %c0_91, %c0_92], %54 {strides = array<i32>} : memref<1x2x128xf32, #tpu.memory_space<vmem>>, vector<1x1x128xf32>,
    %56 = vector.shape_cast %53 : vector<1x128xf32> to vector<1x1x128xf32>
    %c0_93 = arith.constant 0 : index
    %c1_94 = arith.constant 1 : index
    %c0_95 = arith.constant 0 : index
    %57 = vector.load %arg4[%c0_93, %c1_94, %c0_95] : memref<1x2x128xf32, #tpu.memory_space<vmem>>, vector<1x1x128xf32>
    tpu.vector_store %arg4[%c0_93, %c1_94, %c0_95], %56 {strides = array<i32>} : memref<1x2x128xf32, #tpu.memory_space<vmem>>, vector<1x1x128xf32>,
    return
  }
  func.func @transform_0(%arg0: i32) -> (i32, i32, i32, i32) {
    %c0_i32 = arith.constant 0 : i32
    %c0_i32_0 = arith.constant 0 : i32
    %c0_i32_1 = arith.constant 0 : i32
    %c0_i32_2 = arith.constant 0 : i32
    return %arg0, %c0_i32, %c0_i32_0, %c0_i32_1 : i32, i32, i32, i32
  }
  func.func @transform_1(%arg0: i32) -> (i32, i32) {
    %c0_i32 = arith.constant 0 : i32
    %c0_i32_0 = arith.constant 0 : i32
    %c0_i32_1 = arith.constant 0 : i32
    return %c0_i32, %c0_i32_0 : i32, i32
  }
  func.func @transform_2(%arg0: i32) -> (i32, i32) {
    %c0_i32 = arith.constant 0 : i32
    %c0_i32_0 = arith.constant 0 : i32
    return %arg0, %c0_i32 : i32, i32
  }
  func.func @transform_3(%arg0: i32) -> (i32, i32, i32) {
    %c0_i32 = arith.constant 0 : i32
    %c0_i32_0 = arith.constant 0 : i32
    %c0_i32_1 = arith.constant 0 : i32
    return %arg0, %c0_i32, %c0_i32_0 : i32, i32, i32
  }
}

module attributes {stable_mosaic.version = 11 : i64} {
  func.func @_bn_add_relu_kernel(%arg0: i32, %arg1: memref<256x128xbf16, #tpu.memory_space<vmem>>, %arg2: memref<256x128xf32, #tpu.memory_space<vmem>>, %arg3: memref<1x128xf32, #tpu.memory_space<vmem>>, %arg4: memref<1x128xf32, #tpu.memory_space<vmem>>, %arg5: memref<256x128xf32, #tpu.memory_space<vmem>>) attributes {dimension_semantics = [#tpu.dimension_semantics<parallel>], iteration_bounds = array<i64: 2>, scalar_prefetch = 0 : i64, scratch_operands = 0 : i64, tpu.core_type = #tpu.core_type<tc>, window_params = [{transform_indices = @transform_0, window_bounds = array<i64: 256, 128>}, {transform_indices = @transform_1, window_bounds = array<i64: 256, 128>}, {pipeline_mode = #tpu.pipeline_mode<synchronous>, transform_indices = @transform_2, window_bounds = array<i64: 1, 128>}, {pipeline_mode = #tpu.pipeline_mode<synchronous>, transform_indices = @transform_3, window_bounds = array<i64: 1, 128>}, {transform_indices = @transform_4, window_bounds = array<i64: 256, 128>}]} {
    %c0 = arith.constant 0 : index
    %c0_0 = arith.constant 0 : index
    %0 = vector.load %arg1[%c0, %c0_0] : memref<256x128xbf16, #tpu.memory_space<vmem>>, vector<256x128xbf16>
    %1 = arith.extf %0 : vector<256x128xbf16> to vector<256x128xf32>
    %c0_1 = arith.constant 0 : index
    %c0_2 = arith.constant 0 : index
    %2 = vector.load %arg3[%c0_1, %c0_2] : memref<1x128xf32, #tpu.memory_space<vmem>>, vector<1x128xf32>
    %3 = vector.broadcast %2 : vector<1x128xf32> to vector<256x128xf32>
    %4 = arith.mulf %1, %3 : vector<256x128xf32>
    %c0_3 = arith.constant 0 : index
    %c0_4 = arith.constant 0 : index
    %5 = vector.load %arg4[%c0_3, %c0_4] : memref<1x128xf32, #tpu.memory_space<vmem>>, vector<1x128xf32>
    %6 = vector.broadcast %5 : vector<1x128xf32> to vector<256x128xf32>
    %7 = arith.addf %4, %6 : vector<256x128xf32>
    %c0_5 = arith.constant 0 : index
    %c0_6 = arith.constant 0 : index
    %8 = vector.load %arg2[%c0_5, %c0_6] : memref<256x128xf32, #tpu.memory_space<vmem>>, vector<256x128xf32>
    %9 = arith.addf %7, %8 : vector<256x128xf32>
    %cst = arith.constant 0.000000e+00 : f32
    %10 = vector.broadcast %cst : f32 to vector<256x128xf32>
    %11 = arith.maximumf %9, %10 : vector<256x128xf32>
    %c0_7 = arith.constant 0 : index
    %c0_8 = arith.constant 0 : index
    %12 = vector.load %arg5[%c0_7, %c0_8] : memref<256x128xf32, #tpu.memory_space<vmem>>, vector<256x128xf32>
    tpu.vector_store %arg5[%c0_7, %c0_8], %11 {strides = array<i32>} : memref<256x128xf32, #tpu.memory_space<vmem>>, vector<256x128xf32>,
    return
  }
  func.func @transform_0(%arg0: i32) -> (i32, i32) {
    %c0_i32 = arith.constant 0 : i32
    %c0_i32_0 = arith.constant 0 : i32
    return %arg0, %c0_i32 : i32, i32
  }
  func.func @transform_1(%arg0: i32) -> (i32, i32) {
    %c0_i32 = arith.constant 0 : i32
    %c0_i32_0 = arith.constant 0 : i32
    return %arg0, %c0_i32 : i32, i32
  }
  func.func @transform_2(%arg0: i32) -> (i32, i32) {
    %c0_i32 = arith.constant 0 : i32
    %c0_i32_0 = arith.constant 0 : i32
    %c0_i32_1 = arith.constant 0 : i32
    return %c0_i32, %c0_i32_0 : i32, i32
  }
  func.func @transform_3(%arg0: i32) -> (i32, i32) {
    %c0_i32 = arith.constant 0 : i32
    %c0_i32_0 = arith.constant 0 : i32
    %c0_i32_1 = arith.constant 0 : i32
    return %c0_i32, %c0_i32_0 : i32, i32
  }
  func.func @transform_4(%arg0: i32) -> (i32, i32) {
    %c0_i32 = arith.constant 0 : i32
    %c0_i32_0 = arith.constant 0 : i32
    return %arg0, %c0_i32 : i32, i32
  }
}

module attributes {stable_mosaic.version = 11 : i64} {
  func.func @kernel(%arg0: i32, %arg1: memref<256x128xbf16, #tpu.memory_space<vmem>>, %arg2: memref<1x128xf32, #tpu.memory_space<vmem>>, %arg3: memref<1x128xf32, #tpu.memory_space<vmem>>, %arg4: memref<1152x128xbf16, #tpu.memory_space<vmem>>, %arg5: memref<256x128xbf16, #tpu.memory_space<vmem>>, %arg6: memref<1x2x128xf32, #tpu.memory_space<vmem>>, %arg7: memref<1x18x18x128xbf16, #tpu.memory_space<vmem>>, %arg8: memref<256x384xbf16, #tpu.memory_space<vmem>>) attributes {dimension_semantics = [#tpu.dimension_semantics<parallel>], iteration_bounds = array<i64: 2>, scalar_prefetch = 0 : i64, scratch_operands = 2 : i64, tpu.core_type = #tpu.core_type<tc>, window_params = [{transform_indices = @transform_0, window_bounds = array<i64: 256, 128>}, {pipeline_mode = #tpu.pipeline_mode<synchronous>, transform_indices = @transform_1, window_bounds = array<i64: 1, 128>}, {pipeline_mode = #tpu.pipeline_mode<synchronous>, transform_indices = @transform_2, window_bounds = array<i64: 1, 128>}, {pipeline_mode = #tpu.pipeline_mode<synchronous>, transform_indices = @transform_3, window_bounds = array<i64: 1152, 128>}, {transform_indices = @transform_4, window_bounds = array<i64: 256, 128>}, {transform_indices = @transform_5, window_bounds = array<i64: 1, 2, 128>}]} {
    %c0 = arith.constant 0 : index
    %c0_0 = arith.constant 0 : index
    %0 = vector.load %arg1[%c0, %c0_0] : memref<256x128xbf16, #tpu.memory_space<vmem>>, vector<256x128xbf16>
    %1 = arith.extf %0 : vector<256x128xbf16> to vector<256x128xf32>
    %c0_1 = arith.constant 0 : index
    %c0_2 = arith.constant 0 : index
    %2 = vector.load %arg2[%c0_1, %c0_2] : memref<1x128xf32, #tpu.memory_space<vmem>>, vector<1x128xf32>
    %3 = vector.broadcast %2 : vector<1x128xf32> to vector<256x128xf32>
    %4 = arith.mulf %1, %3 : vector<256x128xf32>
    %c0_3 = arith.constant 0 : index
    %c0_4 = arith.constant 0 : index
    %5 = vector.load %arg3[%c0_3, %c0_4] : memref<1x128xf32, #tpu.memory_space<vmem>>, vector<1x128xf32>
    %6 = vector.broadcast %5 : vector<1x128xf32> to vector<256x128xf32>
    %7 = arith.addf %4, %6 : vector<256x128xf32>
    %cst = arith.constant 0.000000e+00 : f32
    %8 = vector.broadcast %cst : f32 to vector<256x128xf32>
    %9 = arith.maximumf %7, %8 : vector<256x128xf32>
    %10 = arith.truncf %9 : vector<256x128xf32> to vector<256x128xbf16>
    %11 = vector.shape_cast %10 : vector<256x128xbf16> to vector<1x16x16x128xbf16>
    %cst_5 = arith.constant 0.000000e+00 : bf16
    %12 = vector.broadcast %cst_5 : bf16 to vector<1x1x18x128xbf16>
    %cst_6 = arith.constant 0.000000e+00 : bf16
    %13 = vector.broadcast %cst_6 : bf16 to vector<1x18x1x128xbf16>
    %c0_7 = arith.constant 0 : index
    %c0_8 = arith.constant 0 : index
    %c0_9 = arith.constant 0 : index
    %c0_10 = arith.constant 0 : index
    %14 = vector.load %arg7[%c0_7, %c0_8, %c0_9, %c0_10] : memref<1x18x18x128xbf16, #tpu.memory_space<vmem>>, vector<1x1x18x128xbf16>
    tpu.vector_store %arg7[%c0_7, %c0_8, %c0_9, %c0_10], %12 {strides = array<i32>} : memref<1x18x18x128xbf16, #tpu.memory_space<vmem>>, vector<1x1x18x128xbf16>,
    %c0_11 = arith.constant 0 : index
    %c17 = arith.constant 17 : index
    %c0_12 = arith.constant 0 : index
    %c0_13 = arith.constant 0 : index
    %15 = vector.load %arg7[%c0_11, %c17, %c0_12, %c0_13] : memref<1x18x18x128xbf16, #tpu.memory_space<vmem>>, vector<1x1x18x128xbf16>
    tpu.vector_store %arg7[%c0_11, %c17, %c0_12, %c0_13], %12 {strides = array<i32>} : memref<1x18x18x128xbf16, #tpu.memory_space<vmem>>, vector<1x1x18x128xbf16>,
    %c0_14 = arith.constant 0 : index
    %c0_15 = arith.constant 0 : index
    %c0_16 = arith.constant 0 : index
    %c0_17 = arith.constant 0 : index
    %16 = vector.load %arg7[%c0_14, %c0_15, %c0_16, %c0_17] : memref<1x18x18x128xbf16, #tpu.memory_space<vmem>>, vector<1x18x1x128xbf16>
    tpu.vector_store %arg7[%c0_14, %c0_15, %c0_16, %c0_17], %13 {strides = array<i32>} : memref<1x18x18x128xbf16, #tpu.memory_space<vmem>>, vector<1x18x1x128xbf16>,
    %c0_18 = arith.constant 0 : index
    %c0_19 = arith.constant 0 : index
    %c17_20 = arith.constant 17 : index
    %c0_21 = arith.constant 0 : index
    %17 = vector.load %arg7[%c0_18, %c0_19, %c17_20, %c0_21] : memref<1x18x18x128xbf16, #tpu.memory_space<vmem>>, vector<1x18x1x128xbf16>
    tpu.vector_store %arg7[%c0_18, %c0_19, %c17_20, %c0_21], %13 {strides = array<i32>} : memref<1x18x18x128xbf16, #tpu.memory_space<vmem>>, vector<1x18x1x128xbf16>,
    %c0_22 = arith.constant 0 : index
    %c1 = arith.constant 1 : index
    %c1_23 = arith.constant 1 : index
    %c0_24 = arith.constant 0 : index
    %18 = vector.load %arg7[%c0_22, %c1, %c1_23, %c0_24] : memref<1x18x18x128xbf16, #tpu.memory_space<vmem>>, vector<1x16x16x128xbf16>
    tpu.vector_store %arg7[%c0_22, %c1, %c1_23, %c0_24], %11 {strides = array<i32>} : memref<1x18x18x128xbf16, #tpu.memory_space<vmem>>, vector<1x16x16x128xbf16>,
    %c0_25 = arith.constant 0 : index
    %c0_26 = arith.constant 0 : index
    %c0_27 = arith.constant 0 : index
    %c0_28 = arith.constant 0 : index
    %19 = vector.load %arg7[%c0_25, %c0_26, %c0_27, %c0_28] : memref<1x18x18x128xbf16, #tpu.memory_space<vmem>>, vector<1x16x16x128xbf16>
    %20 = vector.shape_cast %19 : vector<1x16x16x128xbf16> to vector<256x128xbf16>
    %c0_29 = arith.constant 0 : index
    %c0_30 = arith.constant 0 : index
    %21 = vector.load %arg8[%c0_29, %c0_30] : memref<256x384xbf16, #tpu.memory_space<vmem>>, vector<256x128xbf16>
    tpu.vector_store %arg8[%c0_29, %c0_30], %20 {strides = array<i32>} : memref<256x384xbf16, #tpu.memory_space<vmem>>, vector<256x128xbf16>,
    %c0_31 = arith.constant 0 : index
    %c0_32 = arith.constant 0 : index
    %c1_33 = arith.constant 1 : index
    %c0_34 = arith.constant 0 : index
    %22 = vector.load %arg7[%c0_31, %c0_32, %c1_33, %c0_34] : memref<1x18x18x128xbf16, #tpu.memory_space<vmem>>, vector<1x16x16x128xbf16>
    %23 = vector.shape_cast %22 : vector<1x16x16x128xbf16> to vector<256x128xbf16>
    %c0_35 = arith.constant 0 : index
    %c128 = arith.constant 128 : index
    %24 = vector.load %arg8[%c0_35, %c128] : memref<256x384xbf16, #tpu.memory_space<vmem>>, vector<256x128xbf16>
    tpu.vector_store %arg8[%c0_35, %c128], %23 {strides = array<i32>} : memref<256x384xbf16, #tpu.memory_space<vmem>>, vector<256x128xbf16>,
    %c0_36 = arith.constant 0 : index
    %c0_37 = arith.constant 0 : index
    %c2 = arith.constant 2 : index
    %c0_38 = arith.constant 0 : index
    %25 = vector.load %arg7[%c0_36, %c0_37, %c2, %c0_38] : memref<1x18x18x128xbf16, #tpu.memory_space<vmem>>, vector<1x16x16x128xbf16>
    %26 = vector.shape_cast %25 : vector<1x16x16x128xbf16> to vector<256x128xbf16>
    %c0_39 = arith.constant 0 : index
    %c256 = arith.constant 256 : index
    %27 = vector.load %arg8[%c0_39, %c256] : memref<256x384xbf16, #tpu.memory_space<vmem>>, vector<256x128xbf16>
    tpu.vector_store %arg8[%c0_39, %c256], %26 {strides = array<i32>} : memref<256x384xbf16, #tpu.memory_space<vmem>>, vector<256x128xbf16>,
    %c0_40 = arith.constant 0 : index
    %c0_41 = arith.constant 0 : index
    %28 = vector.load %arg8[%c0_40, %c0_41] : memref<256x384xbf16, #tpu.memory_space<vmem>>, vector<256x384xbf16>
    %c0_42 = arith.constant 0 : index
    %c0_43 = arith.constant 0 : index
    %29 = vector.load %arg4[%c0_42, %c0_43] : memref<1152x128xbf16, #tpu.memory_space<vmem>>, vector<384x128xbf16>
    %cst_44 = arith.constant dense<0.000000e+00> : vector<256x128xf32>
    %30 = tpu.matmul %28, %29, %cst_44 {dimension_numbers = #tpu.dot_dimension_numbers<[1], [0], [0], [1], [0, 0, 1, 1], [], []>} : vector<256x384xbf16>, vector<384x128xbf16>, vector<256x128xf32> -> vector<256x128xf32>
    %c0_45 = arith.constant 0 : index
    %c1_46 = arith.constant 1 : index
    %c0_47 = arith.constant 0 : index
    %c0_48 = arith.constant 0 : index
    %31 = vector.load %arg7[%c0_45, %c1_46, %c0_47, %c0_48] : memref<1x18x18x128xbf16, #tpu.memory_space<vmem>>, vector<1x16x16x128xbf16>
    %32 = vector.shape_cast %31 : vector<1x16x16x128xbf16> to vector<256x128xbf16>
    %c0_49 = arith.constant 0 : index
    %c0_50 = arith.constant 0 : index
    %33 = vector.load %arg8[%c0_49, %c0_50] : memref<256x384xbf16, #tpu.memory_space<vmem>>, vector<256x128xbf16>
    tpu.vector_store %arg8[%c0_49, %c0_50], %32 {strides = array<i32>} : memref<256x384xbf16, #tpu.memory_space<vmem>>, vector<256x128xbf16>,
    %c0_51 = arith.constant 0 : index
    %c1_52 = arith.constant 1 : index
    %c1_53 = arith.constant 1 : index
    %c0_54 = arith.constant 0 : index
    %34 = vector.load %arg7[%c0_51, %c1_52, %c1_53, %c0_54] : memref<1x18x18x128xbf16, #tpu.memory_space<vmem>>, vector<1x16x16x128xbf16>
    %35 = vector.shape_cast %34 : vector<1x16x16x128xbf16> to vector<256x128xbf16>
    %c0_55 = arith.constant 0 : index
    %c128_56 = arith.constant 128 : index
    %36 = vector.load %arg8[%c0_55, %c128_56] : memref<256x384xbf16, #tpu.memory_space<vmem>>, vector<256x128xbf16>
    tpu.vector_store %arg8[%c0_55, %c128_56], %35 {strides = array<i32>} : memref<256x384xbf16, #tpu.memory_space<vmem>>, vector<256x128xbf16>,
    %c0_57 = arith.constant 0 : index
    %c1_58 = arith.constant 1 : index
    %c2_59 = arith.constant 2 : index
    %c0_60 = arith.constant 0 : index
    %37 = vector.load %arg7[%c0_57, %c1_58, %c2_59, %c0_60] : memref<1x18x18x128xbf16, #tpu.memory_space<vmem>>, vector<1x16x16x128xbf16>
    %38 = vector.shape_cast %37 : vector<1x16x16x128xbf16> to vector<256x128xbf16>
    %c0_61 = arith.constant 0 : index
    %c256_62 = arith.constant 256 : index
    %39 = vector.load %arg8[%c0_61, %c256_62] : memref<256x384xbf16, #tpu.memory_space<vmem>>, vector<256x128xbf16>
    tpu.vector_store %arg8[%c0_61, %c256_62], %38 {strides = array<i32>} : memref<256x384xbf16, #tpu.memory_space<vmem>>, vector<256x128xbf16>,
    %c0_63 = arith.constant 0 : index
    %c0_64 = arith.constant 0 : index
    %40 = vector.load %arg8[%c0_63, %c0_64] : memref<256x384xbf16, #tpu.memory_space<vmem>>, vector<256x384xbf16>
    %c384 = arith.constant 384 : index
    %c0_65 = arith.constant 0 : index
    %41 = vector.load %arg4[%c384, %c0_65] : memref<1152x128xbf16, #tpu.memory_space<vmem>>, vector<384x128xbf16>
    %cst_66 = arith.constant dense<0.000000e+00> : vector<256x128xf32>
    %42 = tpu.matmul %40, %41, %cst_66 {dimension_numbers = #tpu.dot_dimension_numbers<[1], [0], [0], [1], [0, 0, 1, 1], [], []>} : vector<256x384xbf16>, vector<384x128xbf16>, vector<256x128xf32> -> vector<256x128xf32>
    %43 = arith.addf %30, %42 : vector<256x128xf32>
    %c0_67 = arith.constant 0 : index
    %c2_68 = arith.constant 2 : index
    %c0_69 = arith.constant 0 : index
    %c0_70 = arith.constant 0 : index
    %44 = vector.load %arg7[%c0_67, %c2_68, %c0_69, %c0_70] : memref<1x18x18x128xbf16, #tpu.memory_space<vmem>>, vector<1x16x16x128xbf16>
    %45 = vector.shape_cast %44 : vector<1x16x16x128xbf16> to vector<256x128xbf16>
    %c0_71 = arith.constant 0 : index
    %c0_72 = arith.constant 0 : index
    %46 = vector.load %arg8[%c0_71, %c0_72] : memref<256x384xbf16, #tpu.memory_space<vmem>>, vector<256x128xbf16>
    tpu.vector_store %arg8[%c0_71, %c0_72], %45 {strides = array<i32>} : memref<256x384xbf16, #tpu.memory_space<vmem>>, vector<256x128xbf16>,
    %c0_73 = arith.constant 0 : index
    %c2_74 = arith.constant 2 : index
    %c1_75 = arith.constant 1 : index
    %c0_76 = arith.constant 0 : index
    %47 = vector.load %arg7[%c0_73, %c2_74, %c1_75, %c0_76] : memref<1x18x18x128xbf16, #tpu.memory_space<vmem>>, vector<1x16x16x128xbf16>
    %48 = vector.shape_cast %47 : vector<1x16x16x128xbf16> to vector<256x128xbf16>
    %c0_77 = arith.constant 0 : index
    %c128_78 = arith.constant 128 : index
    %49 = vector.load %arg8[%c0_77, %c128_78] : memref<256x384xbf16, #tpu.memory_space<vmem>>, vector<256x128xbf16>
    tpu.vector_store %arg8[%c0_77, %c128_78], %48 {strides = array<i32>} : memref<256x384xbf16, #tpu.memory_space<vmem>>, vector<256x128xbf16>,
    %c0_79 = arith.constant 0 : index
    %c2_80 = arith.constant 2 : index
    %c2_81 = arith.constant 2 : index
    %c0_82 = arith.constant 0 : index
    %50 = vector.load %arg7[%c0_79, %c2_80, %c2_81, %c0_82] : memref<1x18x18x128xbf16, #tpu.memory_space<vmem>>, vector<1x16x16x128xbf16>
    %51 = vector.shape_cast %50 : vector<1x16x16x128xbf16> to vector<256x128xbf16>
    %c0_83 = arith.constant 0 : index
    %c256_84 = arith.constant 256 : index
    %52 = vector.load %arg8[%c0_83, %c256_84] : memref<256x384xbf16, #tpu.memory_space<vmem>>, vector<256x128xbf16>
    tpu.vector_store %arg8[%c0_83, %c256_84], %51 {strides = array<i32>} : memref<256x384xbf16, #tpu.memory_space<vmem>>, vector<256x128xbf16>,
    %c0_85 = arith.constant 0 : index
    %c0_86 = arith.constant 0 : index
    %53 = vector.load %arg8[%c0_85, %c0_86] : memref<256x384xbf16, #tpu.memory_space<vmem>>, vector<256x384xbf16>
    %c768 = arith.constant 768 : index
    %c0_87 = arith.constant 0 : index
    %54 = vector.load %arg4[%c768, %c0_87] : memref<1152x128xbf16, #tpu.memory_space<vmem>>, vector<384x128xbf16>
    %cst_88 = arith.constant dense<0.000000e+00> : vector<256x128xf32>
    %55 = tpu.matmul %53, %54, %cst_88 {dimension_numbers = #tpu.dot_dimension_numbers<[1], [0], [0], [1], [0, 0, 1, 1], [], []>} : vector<256x384xbf16>, vector<384x128xbf16>, vector<256x128xf32> -> vector<256x128xf32>
    %56 = arith.addf %43, %55 : vector<256x128xf32>
    %57 = arith.truncf %56 : vector<256x128xf32> to vector<256x128xbf16>
    %c0_89 = arith.constant 0 : index
    %c0_90 = arith.constant 0 : index
    %58 = vector.load %arg5[%c0_89, %c0_90] : memref<256x128xbf16, #tpu.memory_space<vmem>>, vector<256x128xbf16>
    tpu.vector_store %arg5[%c0_89, %c0_90], %57 {strides = array<i32>} : memref<256x128xbf16, #tpu.memory_space<vmem>>, vector<256x128xbf16>,
    %cst_91 = arith.constant dense<0.000000e+00> : vector<128xf32>
    %59 = vector.multi_reduction <add>, %56, %cst_91 [0] : vector<256x128xf32> to vector<128xf32>
    %60 = vector.shape_cast %59 : vector<128xf32> to vector<1x128xf32>
    %61 = arith.mulf %56, %56 : vector<256x128xf32>
    %cst_92 = arith.constant dense<0.000000e+00> : vector<128xf32>
    %62 = vector.multi_reduction <add>, %61, %cst_92 [0] : vector<256x128xf32> to vector<128xf32>
    %63 = vector.shape_cast %62 : vector<128xf32> to vector<1x128xf32>
    %64 = vector.shape_cast %60 : vector<1x128xf32> to vector<1x1x128xf32>
    %c0_93 = arith.constant 0 : index
    %c0_94 = arith.constant 0 : index
    %c0_95 = arith.constant 0 : index
    %65 = vector.load %arg6[%c0_93, %c0_94, %c0_95] : memref<1x2x128xf32, #tpu.memory_space<vmem>>, vector<1x1x128xf32>
    tpu.vector_store %arg6[%c0_93, %c0_94, %c0_95], %64 {strides = array<i32>} : memref<1x2x128xf32, #tpu.memory_space<vmem>>, vector<1x1x128xf32>,
    %66 = vector.shape_cast %63 : vector<1x128xf32> to vector<1x1x128xf32>
    %c0_96 = arith.constant 0 : index
    %c1_97 = arith.constant 1 : index
    %c0_98 = arith.constant 0 : index
    %67 = vector.load %arg6[%c0_96, %c1_97, %c0_98] : memref<1x2x128xf32, #tpu.memory_space<vmem>>, vector<1x1x128xf32>
    tpu.vector_store %arg6[%c0_96, %c1_97, %c0_98], %66 {strides = array<i32>} : memref<1x2x128xf32, #tpu.memory_space<vmem>>, vector<1x1x128xf32>,
    return
  }
  func.func @transform_0(%arg0: i32) -> (i32, i32) {
    %c0_i32 = arith.constant 0 : i32
    %c0_i32_0 = arith.constant 0 : i32
    return %arg0, %c0_i32 : i32, i32
  }
  func.func @transform_1(%arg0: i32) -> (i32, i32) {
    %c0_i32 = arith.constant 0 : i32
    %c0_i32_0 = arith.constant 0 : i32
    %c0_i32_1 = arith.constant 0 : i32
    return %c0_i32, %c0_i32_0 : i32, i32
  }
  func.func @transform_2(%arg0: i32) -> (i32, i32) {
    %c0_i32 = arith.constant 0 : i32
    %c0_i32_0 = arith.constant 0 : i32
    %c0_i32_1 = arith.constant 0 : i32
    return %c0_i32, %c0_i32_0 : i32, i32
  }
  func.func @transform_3(%arg0: i32) -> (i32, i32) {
    %c0_i32 = arith.constant 0 : i32
    %c0_i32_0 = arith.constant 0 : i32
    %c0_i32_1 = arith.constant 0 : i32
    return %c0_i32, %c0_i32_0 : i32, i32
  }
  func.func @transform_4(%arg0: i32) -> (i32, i32) {
    %c0_i32 = arith.constant 0 : i32
    %c0_i32_0 = arith.constant 0 : i32
    return %arg0, %c0_i32 : i32, i32
  }
  func.func @transform_5(%arg0: i32) -> (i32, i32, i32) {
    %c0_i32 = arith.constant 0 : i32
    %c0_i32_0 = arith.constant 0 : i32
    %c0_i32_1 = arith.constant 0 : i32
    return %arg0, %c0_i32, %c0_i32_0 : i32, i32, i32
  }
}

</mosaic_0001>

<bundles_post_ra>
// kernel: basic_block.5
= control target key start
LH: loop header
LB: loop body
LE: loop exit
PB: predicated region body
PF: predicated region fallthrough
CT: control target
= control target key end

     0   :  { %s696_s15 = smov 0   ;;  %s884_s0 = inlined_call_operand.vmem [shape: bf16[512,128], index: 0, kind: input, shape index: {}]   ;;  %s885_s1 = inlined_call_operand.vmem [shape: f32[512,128], index: 1, kind: input, shape index: {}]   ;;  %s886_s2 = inlined_call_operand.vmem [shape: f32[1,128], index: 2, kind: input, shape index: {}]   ;;  %s887_s3 = inlined_call_operand.vmem [shape: f32[1,128], index: 3, kind: input, shape index: {}]   ;;  %s888_s4 = inlined_call_operand.vmem [shape: f32[512,128], index: 4, kind: output, shape index: {}]  }
   0x1 LB: > { %s561_s16 = sadd.s32 4294967295, %s669_s15   ;;  %p565_p0 = scmp.ge.s32.totalorder %s669_s15, 1  ;;  %s669_s15 = sphi %s696_s15, %s14_s15  }
   0x2   : > { %p174_p1 = scmp.lt.s32.totalorder %s669_s15, 3 }
   0x4   : > { %p175_p2 = pnand %p565_p0, %p174_p1 }
   0x5   : > { %s566_s17 = sshll.u32 (!%p175_p2), %s561_s16, 5  ;;  %v717_v1 = vld [vmem:[%s886_s2] ss:$0 sm:$0xff] (!%p175_p2) }
   0x6   : > { %178 = sbr.rel (%p175_p2) target bundleno = 60 (0x3c), region = 36  ;;  %p206_p3 = scmp.lt.s32.totalorder (!%p175_p2), %s566_s17, 63  ;;  %v730_v5 = vld [vmem:[%s887_s3] ss:$0 sm:$0xff] (!%p175_p2) }
   0xd   : > { %s890_s17 = smov (!%p206_p3, %s566_s17), 63 }
   0xe   : > { %s567_s18 = sshll.u32 %s890_s17, 2  ;;  %s569_s19 = sshll.u32 %s890_s17, 3 }
   0xf   : > { %s711_s22 = scalar_lea.vmem %s884_s0, %s567_s18  ;;  %s724_s27 = scalar_lea.vmem %s885_s1, %s569_s19 }
  0x10   : > { %v577_v0 = vld [vmem:[%s711_s22] sm:$0xff]   ;;  %v640_v4 = vld [vmem:[%s711_s22 + $0x8] sm:$0xff]   ;;  %v641_v8 = vld [vmem:[%s711_s22 + $0x10] sm:$0xff]   ;;  %s761_s6 = scalar_lea.vmem %s888_s4, %s569_s19 }
  0x11   : > { %v578_v2 = vunpack.c.l.bf16 %v577_v0  ;;  %v579_v3 = vunpack.c.h.bf16 %v577_v0  ;;  %v582_v6 = vunpack.c.l.bf16 %v640_v4  ;;  %v583_v7 = vunpack.c.h.bf16 %v640_v4  ;;  %v642_v13 = vld [vmem:[%s711_s22 + $0x18] sm:$0xff]   ;;  %v365_v14 = vld [vmem:[%s724_s27] sm:$0xff]  ;;  %v366_v15 = vld [vmem:[%s724_s27 + $0x8] sm:$0xff] }
  0x12   : > { %v586_v11 = vunpack.c.l.bf16 %v641_v8  ;;  %v587_v12 = vunpack.c.h.bf16 %v641_v8  ;;  %v590_v18 = vunpack.c.l.bf16 %v642_v13  ;;  %v591_v19 = vunpack.c.h.bf16 %v642_v13  ;;  %v367_v22 = vld [vmem:[%s724_s27 + $0x10] sm:$0xff]  ;;  %v368_v23 = vld [vmem:[%s724_s27 + $0x18] sm:$0xff]  ;;  %v369_v28 = vld [vmem:[%s724_s27 + $0x20] sm:$0xff] }
  0x13   : > { %v294_v9 = vmul.f32 %v578_v2, %v717_v1  ;;  %v295_v10 = vmul.f32 %v579_v3, %v717_v1  ;;  %v296_v16 = vmul.f32 %v582_v6, %v717_v1  ;;  %v297_v17 = vmul.f32 %v583_v7, %v717_v1  ;;  %v370_v29 = vld [vmem:[%s724_s27 + $0x28] sm:$0xff]  ;;  %v371_v36 = vld [vmem:[%s724_s27 + $0x30] sm:$0xff]  ;;  %v372_v37 = vld [vmem:[%s724_s27 + $0x38] sm:$0xff] }
  0x14   : > { %v298_v24 = vmul.f32 %v586_v11, %v717_v1  ;;  %v299_v25 = vmul.f32 %v587_v12, %v717_v1  ;;  %v300_v30 = vmul.f32 %v590_v18, %v717_v1  ;;  %v301_v31 = vmul.f32 %v591_v19, %v717_v1  ;;  %v643_v42 = vld [vmem:[%s711_s22 + $0x20] sm:$0xff]   ;;  %v644_v47 = vld [vmem:[%s711_s22 + $0x28] sm:$0xff]   ;;  %v645_v52 = vld [vmem:[%s711_s22 + $0x30] sm:$0xff]  }
  0x15   : > { %v333_v20 = vadd.f32 %v730_v5, %v294_v9  ;;  %v334_v21 = vadd.f32 %v730_v5, %v295_v10  ;;  %v335_v26 = vadd.f32 %v730_v5, %v296_v16  ;;  %v336_v27 = vadd.f32 %v730_v5, %v297_v17  ;;  %v646_v57 = vld [vmem:[%s711_s22 + $0x38] sm:$0xff]   ;;  %v373_v3 = vld [vmem:[%s724_s27 + $0x40] sm:$0xff]  ;;  %v374_v4 = vld [vmem:[%s724_s27 + $0x48] sm:$0xff] }
  0x16   : > { %v337_v34 = vadd.f32 %v730_v5, %v298_v24  ;;  %v338_v35 = vadd.f32 %v730_v5, %v299_v25  ;;  %v339_v40 = vadd.f32 %v730_v5, %v300_v30  ;;  %v340_v41 = vadd.f32 %v730_v5, %v301_v31  ;;  %v375_v12 = vld [vmem:[%s724_s27 + $0x50] sm:$0xff]  ;;  %v376_v13 = vld [vmem:[%s724_s27 + $0x58] sm:$0xff]  ;;  %v377_v18 = vld [vmem:[%s724_s27 + $0x60] sm:$0xff] }
  0x17   : > { %v397_v32 = vadd.f32 %v365_v14, %v333_v20  ;;  %v398_v33 = vadd.f32 %v366_v15, %v334_v21  ;;  %v399_v38 = vadd.f32 %v367_v22, %v335_v26  ;;  %v400_v39 = vadd.f32 %v368_v23, %v336_v27  ;;  %v378_v19 = vld [vmem:[%s724_s27 + $0x68] sm:$0xff]  ;;  %v379_v26 = vld [vmem:[%s724_s27 + $0x70] sm:$0xff]  ;;  %v380_v27 = vld [vmem:[%s724_s27 + $0x78] sm:$0xff] }
  0x18   : > { %v401_v45 = vadd.f32 %v369_v28, %v337_v34  ;;  %v402_v46 = vadd.f32 %v370_v29, %v338_v35  ;;  %v403_v50 = vadd.f32 %v371_v36, %v339_v40  ;;  %v404_v51 = vadd.f32 %v372_v37, %v340_v41  ;;  %v648_v37 = vld [vmem:[%s711_s22 + $0x48] sm:$0xff]  }
  0x19   : > { %v429_v43 = vmax.f32 %v397_v32, 0.0  ;;  %v430_v44 = vmax.f32 %v398_v33, 0.0  ;;  %v431_v48 = vmax.f32 %v399_v38, 0.0  ;;  %v432_v49 = vmax.f32 %v400_v39, 0.0  ;;  %v647_v32 = vld [vmem:[%s711_s22 + $0x40] sm:$0xff]  }
  0x1a   : > { %v433_v53 = vmax.f32 %v401_v45, 0.0  ;;  %v434_v54 = vmax.f32 %v402_v46, 0.0  ;;  %v594_v55 = vunpack.c.l.bf16 %v643_v42  ;;  %v595_v56 = vunpack.c.h.bf16 %v643_v42  ;;  %v649_v42 = vld [vmem:[%s711_s22 + $0x50] sm:$0xff]  }
  0x1b   : > { %461 = vst [vmem:[%s761_s6] sm:$0xff] %v429_v43  ;;  %462 = vst [vmem:[%s761_s6 + $0x8] sm:$0xff] %v430_v44  ;;  %v435_v58 = vmax.f32 %v403_v50, 0.0  ;;  %v436_v59 = vmax.f32 %v404_v51, 0.0  ;;  %v598_v60 = vunpack.c.l.bf16 %v644_v47  ;;  %v599_v61 = vunpack.c.h.bf16 %v644_v47  ;;  %v650_v47 = vld [vmem:[%s711_s22 + $0x58] sm:$0xff]  }
  0x1c   : > { %463 = vst [vmem:[%s761_s6 + $0x10] sm:$0xff] %v431_v48  ;;  %464 = vst [vmem:[%s761_s6 + $0x18] sm:$0xff] %v432_v49  ;;  %v302_v62 = vmul.f32 %v594_v55, %v717_v1  ;;  %v303_v63 = vmul.f32 %v595_v56, %v717_v1  ;;  %v602_v0 = vunpack.c.l.bf16 %v645_v52  ;;  %v603_v2 = vunpack.c.h.bf16 %v645_v52  ;;  %v381_v56 = vld [vmem:[%s724_s27 + $0x80] sm:$0xff] }
  0x1d   : > { %465 = vst [vmem:[%s761_s6 + $0x20] sm:$0xff] %v433_v53  ;;  %466 = vst [vmem:[%s761_s6 + $0x28] sm:$0xff] %v434_v54  ;;  %v304_v6 = vmul.f32 %v598_v60, %v717_v1  ;;  %v305_v7 = vmul.f32 %v599_v61, %v717_v1  ;;  %v606_v8 = vunpack.c.l.bf16 %v646_v57  ;;  %v607_v9 = vunpack.c.h.bf16 %v646_v57  ;;  %v382_v57 = vld [vmem:[%s724_s27 + $0x88] sm:$0xff] }
  0x1e   : > { %467 = vst [vmem:[%s761_s6 + $0x30] sm:$0xff] %v435_v58  ;;  %468 = vst [vmem:[%s761_s6 + $0x38] sm:$0xff] %v436_v59  ;;  %v341_v10 = vadd.f32 %v730_v5, %v302_v62  ;;  %v342_v11 = vadd.f32 %v730_v5, %v303_v63  ;;  %v306_v14 = vmul.f32 %v602_v0, %v717_v1  ;;  %v610_v45 = vunpack.c.l.bf16 %v647_v32  ;;  %v383_v0 = vld [vmem:[%s724_s27 + $0x90] sm:$0xff] }
  0x1f   : > { %v307_v15 = vmul.f32 %v603_v2, %v717_v1  ;;  %v343_v16 = vadd.f32 %v730_v5, %v304_v6  ;;  %v344_v17 = vadd.f32 %v730_v5, %v305_v7  ;;  %v308_v20 = vmul.f32 %v606_v8, %v717_v1  ;;  %v384_v2 = vld [vmem:[%s724_s27 + $0x98] sm:$0xff]  ;;  %v385_v8 = vld [vmem:[%s724_s27 + $0xa0] sm:$0xff] }
  0x20   : > { %v309_v21 = vmul.f32 %v607_v9, %v717_v1  ;;  %v405_v22 = vadd.f32 %v373_v3, %v341_v10  ;;  %v406_v23 = vadd.f32 %v374_v4, %v342_v11  ;;  %v345_v24 = vadd.f32 %v730_v5, %v306_v14  ;;  %v386_v9 = vld [vmem:[%s724_s27 + $0xa8] sm:$0xff] }
  0x21   : > { %v346_v25 = vadd.f32 %v730_v5, %v307_v15  ;;  %v407_v28 = vadd.f32 %v375_v12, %v343_v16  ;;  %v408_v29 = vadd.f32 %v376_v13, %v344_v17  ;;  %v347_v30 = vadd.f32 %v730_v5, %v308_v20  ;;  %v387_v16 = vld [vmem:[%s724_s27 + $0xb0] sm:$0xff]  ;;  %v388_v17 = vld [vmem:[%s724_s27 + $0xb8] sm:$0xff] }
  0x22   : > { %v348_v31 = vadd.f32 %v730_v5, %v309_v21  ;;  %v437_v33 = vmax.f32 %v405_v22, 0.0  ;;  %v438_v34 = vmax.f32 %v406_v23, 0.0  ;;  %v409_v35 = vadd.f32 %v377_v18, %v345_v24  ;;  %v651_v22 = vld [vmem:[%s711_s22 + $0x60] sm:$0xff]  }
  0x23   : > { %v410_v36 = vadd.f32 %v378_v19, %v346_v25  ;;  %v439_v38 = vmax.f32 %v407_v28, 0.0  ;;  %v440_v39 = vmax.f32 %v408_v29, 0.0  ;;  %v411_v40 = vadd.f32 %v379_v26, %v347_v30 }
  0x24   : > { %v412_v41 = vadd.f32 %v380_v27, %v348_v31  ;;  %469 = vst [vmem:[%s761_s6 + $0x40] sm:$0xff] %v437_v33  ;;  %470 = vst [vmem:[%s761_s6 + $0x48] sm:$0xff] %v438_v34  ;;  %v441_v43 = vmax.f32 %v409_v35, 0.0  ;;  %v611_v46 = vunpack.c.h.bf16 %v647_v32  ;;  %v614_v50 = vunpack.c.l.bf16 %v648_v37  ;;  %v652_v27 = vld [vmem:[%s711_s22 + $0x68] sm:$0xff]   ;;  %v653_v32 = vld [vmem:[%s711_s22 + $0x70] sm:$0xff]  }
  0x25   : > { %v442_v44 = vmax.f32 %v410_v36, 0.0  ;;  %471 = vst [vmem:[%s761_s6 + $0x50] sm:$0xff] %v439_v38  ;;  %472 = vst [vmem:[%s761_s6 + $0x58] sm:$0xff] %v440_v39  ;;  %v443_v48 = vmax.f32 %v411_v40, 0.0  ;;  %v615_v51 = vunpack.c.h.bf16 %v648_v37  ;;  %v310_v52 = vmul.f32 %v610_v45, %v717_v1  ;;  %v654_v37 = vld [vmem:[%s711_s22 + $0x78] sm:$0xff]  }
  0x26   : > { %v444_v49 = vmax.f32 %v412_v41, 0.0  ;;  %473 = vst [vmem:[%s761_s6 + $0x60] sm:$0xff] %v441_v43  ;;  %v311_v53 = vmul.f32 %v611_v46, %v717_v1  ;;  %v618_v54 = vunpack.c.l.bf16 %v649_v42  ;;  %v619_v55 = vunpack.c.h.bf16 %v649_v42  ;;  %v389_v46 = vld [vmem:[%s724_s27 + $0xc0] sm:$0xff] }
  0x27   : > { %474 = vst [vmem:[%s761_s6 + $0x68] sm:$0xff] %v442_v44  ;;  %475 = vst [vmem:[%s761_s6 + $0x70] sm:$0xff] %v443_v48  ;;  %v312_v58 = vmul.f32 %v614_v50, %v717_v1  ;;  %v313_v59 = vmul.f32 %v615_v51, %v717_v1  ;;  %v622_v60 = vunpack.c.l.bf16 %v650_v47  ;;  %v623_v61 = vunpack.c.h.bf16 %v650_v47  ;;  %v390_v47 = vld [vmem:[%s724_s27 + $0xc8] sm:$0xff] }
  0x28   : > { %476 = vst [vmem:[%s761_s6 + $0x78] sm:$0xff] %v444_v49  ;;  %v349_v62 = vadd.f32 %v730_v5, %v310_v52  ;;  %v350_v63 = vadd.f32 %v730_v5, %v311_v53  ;;  %v314_v3 = vmul.f32 %v618_v54, %v717_v1  ;;  %v315_v4 = vmul.f32 %v619_v55, %v717_v1  ;;  %v391_v54 = vld [vmem:[%s724_s27 + $0xd0] sm:$0xff]  ;;  %v392_v55 = vld [vmem:[%s724_s27 + $0xd8] sm:$0xff] }
  0x29   : > { %v351_v6 = vadd.f32 %v730_v5, %v312_v58  ;;  %v352_v7 = vadd.f32 %v730_v5, %v313_v59  ;;  %v316_v10 = vmul.f32 %v622_v60, %v717_v1  ;;  %v317_v11 = vmul.f32 %v623_v61, %v717_v1  ;;  %v393_v60 = vld [vmem:[%s724_s27 + $0xe0] sm:$0xff]  ;;  %v394_v61 = vld [vmem:[%s724_s27 + $0xe8] sm:$0xff] }
  0x2a   : > { %v413_v12 = vadd.f32 %v381_v56, %v349_v62  ;;  %v414_v13 = vadd.f32 %v382_v57, %v350_v63  ;;  %v353_v14 = vadd.f32 %v730_v5, %v314_v3  ;;  %v354_v15 = vadd.f32 %v730_v5, %v315_v4 }
  0x2b   : > { %v415_v18 = vadd.f32 %v383_v0, %v351_v6  ;;  %v416_v19 = vadd.f32 %v384_v2, %v352_v7  ;;  %v355_v20 = vadd.f32 %v730_v5, %v316_v10  ;;  %v356_v21 = vadd.f32 %v730_v5, %v317_v11  ;;  %v395_v6 = vld [vmem:[%s724_s27 + $0xf0] sm:$0xff]  ;;  %v396_v7 = vld [vmem:[%s724_s27 + $0xf8] sm:$0xff] }
  0x2c   : > { %v445_v23 = vmax.f32 %v413_v12, 0.0  ;;  %v446_v24 = vmax.f32 %v414_v13, 0.0  ;;  %v417_v25 = vadd.f32 %v385_v8, %v353_v14  ;;  %v418_v26 = vadd.f32 %v386_v9, %v354_v15 }
  0x2d   : > { %v447_v28 = vmax.f32 %v415_v18, 0.0  ;;  %v448_v29 = vmax.f32 %v416_v19, 0.0  ;;  %v419_v30 = vadd.f32 %v387_v16, %v355_v20  ;;  %v420_v31 = vadd.f32 %v388_v17, %v356_v21 }
  0x2e   : > { %477 = vst [vmem:[%s761_s6 + $0x80] sm:$0xff] %v445_v23  ;;  %478 = vst [vmem:[%s761_s6 + $0x88] sm:$0xff] %v446_v24  ;;  %v449_v33 = vmax.f32 %v417_v25, 0.0  ;;  %v450_v34 = vmax.f32 %v418_v26, 0.0  ;;  %v626_v35 = vunpack.c.l.bf16 %v651_v22  ;;  %v627_v36 = vunpack.c.h.bf16 %v651_v22 }
  0x2f   : > { %479 = vst [vmem:[%s761_s6 + $0x90] sm:$0xff] %v447_v28  ;;  %480 = vst [vmem:[%s761_s6 + $0x98] sm:$0xff] %v448_v29  ;;  %v451_v38 = vmax.f32 %v419_v30, 0.0  ;;  %v452_v39 = vmax.f32 %v420_v31, 0.0  ;;  %v630_v40 = vunpack.c.l.bf16 %v652_v27  ;;  %v631_v41 = vunpack.c.h.bf16 %v652_v27 }
  0x30   : > { %481 = vst [vmem:[%s761_s6 + $0xa0] sm:$0xff] %v449_v33  ;;  %482 = vst [vmem:[%s761_s6 + $0xa8] sm:$0xff] %v450_v34  ;;  %v318_v42 = vmul.f32 %v626_v35, %v717_v1  ;;  %v319_v43 = vmul.f32 %v627_v36, %v717_v1  ;;  %v634_v44 = vunpack.c.l.bf16 %v653_v32  ;;  %v635_v45 = vunpack.c.h.bf16 %v653_v32 }
  0x31   : > { %483 = vst [vmem:[%s761_s6 + $0xb0] sm:$0xff] %v451_v38  ;;  %484 = vst [vmem:[%s761_s6 + $0xb8] sm:$0xff] %v452_v39  ;;  %v320_v48 = vmul.f32 %v630_v40, %v717_v1  ;;  %v321_v49 = vmul.f32 %v631_v41, %v717_v1  ;;  %v638_v50 = vunpack.c.l.bf16 %v654_v37  ;;  %v639_v51 = vunpack.c.h.bf16 %v654_v37 }
  0x32   : > { %v357_v52 = vadd.f32 %v730_v5, %v318_v42  ;;  %v358_v53 = vadd.f32 %v730_v5, %v319_v43  ;;  %v322_v56 = vmul.f32 %v634_v44, %v717_v1  ;;  %v323_v57 = vmul.f32 %v635_v45, %v717_v1 }
  0x33   : > { %v359_v58 = vadd.f32 %v730_v5, %v320_v48  ;;  %v360_v59 = vadd.f32 %v730_v5, %v321_v49  ;;  %v324_v62 = vmul.f32 %v638_v50, %v717_v1  ;;  %v325_v63 = vmul.f32 %v639_v51, %v717_v1 }
  0x34   : > { %v421_v0 = vadd.f32 %v389_v46, %v357_v52  ;;  %v422_v2 = vadd.f32 %v390_v47, %v358_v53  ;;  %v361_v3 = vadd.f32 %v730_v5, %v322_v56  ;;  %v362_v4 = vadd.f32 %v730_v5, %v323_v57 }
  0x35   : > { %v423_v8 = vadd.f32 %v391_v54, %v359_v58  ;;  %v424_v9 = vadd.f32 %v392_v55, %v360_v59  ;;  %v363_v10 = vadd.f32 %v730_v5, %v324_v62  ;;  %v364_v11 = vadd.f32 %v730_v5, %v325_v63 }
  0x36   : > { %v453_v12 = vmax.f32 %v421_v0, 0.0  ;;  %v454_v1 = vmax.f32 %v422_v2, 0.0  ;;  %v425_v13 = vadd.f32 %v393_v60, %v361_v3  ;;  %v426_v14 = vadd.f32 %v394_v61, %v362_v4 }
  0x37   : > { %v455_v15 = vmax.f32 %v423_v8, 0.0  ;;  %v456_v16 = vmax.f32 %v424_v9, 0.0  ;;  %v427_v17 = vadd.f32 %v395_v6, %v363_v10  ;;  %v428_v18 = vadd.f32 %v396_v7, %v364_v11 }
  0x38   : > { %485 = vst [vmem:[%s761_s6 + $0xc0] sm:$0xff] %v453_v12  ;;  %486 = vst [vmem:[%s761_s6 + $0xc8] sm:$0xff] %v454_v1  ;;  %v457_v19 = vmax.f32 %v425_v13, 0.0  ;;  %v458_v20 = vmax.f32 %v426_v14, 0.0 }
  0x39   : > { %487 = vst [vmem:[%s761_s6 + $0xd0] sm:$0xff] %v455_v15  ;;  %488 = vst [vmem:[%s761_s6 + $0xd8] sm:$0xff] %v456_v16  ;;  %v459_v21 = vmax.f32 %v427_v17, 0.0  ;;  %v460_v5 = vmax.f32 %v428_v18, 0.0 }
  0x3a   : > { %489 = vst [vmem:[%s761_s6 + $0xe0] sm:$0xff] %v457_v19  ;;  %490 = vst [vmem:[%s761_s6 + $0xe8] sm:$0xff] %v458_v20 }
  0x3b   : > { %491 = vst [vmem:[%s761_s6 + $0xf0] sm:$0xff] %v459_v21  ;;  %492 = vst [vmem:[%s761_s6 + $0xf8] sm:$0xff] %v460_v5 }
  0x3c PF: > { %s14_s15 = sadd.s32 1, %s669_s15  }
  0x3d   : > { %p11_p4 = scmp.ge.s32.totalorder %s14_s15, 4  }
  0x3f   :  { %13 = sbr.rel (!%p11_p4) target bundleno = 1 (0x1), region = 69 }

// kernel: basic_block.4
= control target key start
LH: loop header
LB: loop body
LE: loop exit
PB: predicated region body
PF: predicated region fallthrough
CT: control target
= control target key end

     0   :  { %s7462_s18 = smov 0   ;;  %s8952_s0 = inlined_call_operand.vmem [shape: bf16[512,128], index: 0, kind: input, shape index: {}]   ;;  %s8953_s1 = inlined_call_operand.vmem [shape: f32[1,128], index: 1, kind: input, shape index: {}]   ;;  %s8954_s2 = inlined_call_operand.vmem [shape: f32[1,128], index: 2, kind: input, shape index: {}]   ;;  %s8955_s3 = inlined_call_operand.vmem [shape: bf16[1152,128], index: 3, kind: input, shape index: {}]   ;;  %s8956_s4 = inlined_call_operand.vmem [shape: bf16[512,128], index: 4, kind: output, shape index: {0}]   ;;  %s8957_s5 = inlined_call_operand.vmem [shape: f32[2,2,128], index: 5, kind: output, shape index: {1}]  }
   0x1 LB: > { %s7468_s19 = sadd.s32 4294967295, %s7429_s18   ;;  %p5983_p0 = scmp.ge.s32.totalorder %s7429_s18, 1  ;;  %s7429_s18 = sphi %s7462_s18, %s16_s18  }
   0x2   : > { %p191_p1 = scmp.lt.s32.totalorder %s7429_s18, 3 }
   0x4   : > { %p192_p2 = pnand %p5983_p0, %p191_p1 }
   0x6   : > { %195 = sbr.rel (%p192_p2) target bundleno = 677 (0x2a5), region = 36 }
   0xd   : > { %v7475_v0 = vld [vmem:[%s8955_s3 + $0x140] sm:$0xff]   ;;  %v7488_v3 = vld [vmem:[%s8955_s3 + $0x148] sm:$0xff]   ;;  %v7500_v6 = vld [vmem:[%s8955_s3 + $0x150] sm:$0xff]   ;;  %s5984_s9 = sshll.u32 %s7468_s19, 5  ;;  %v7431_v10 = vmov 0   ;;  %vm437_vm0 = vcmask 1040384  }
   0xe   : > { %v7297_v1 = vld [vmem:[%s8955_s3 + $0x100] sm:$0xff]   ;;  %7111 = vmatprep.subr.bf16.mxu1 %v7475_v0  ;;  %v7300_v4 = vld [vmem:[%s8955_s3 + $0x108] sm:$0xff]   ;;  %v7303_v7 = vld [vmem:[%s8955_s3 + $0x110] sm:$0xff]   ;;  %p7516_p3 = scmp.lt.s32.totalorder %s5984_s9, 63  ;;  %430 = vst [vmem:[#allocation2] sm:$0xf] %v7431_v10 }
   0xf   : > { %v7298_v2 = vld [vmem:[%s8955_s3 + $0xc0] sm:$0xff]   ;;  %7119 = vmatpush3.bf16.msra.mxu1 %v7475_v0  ;;  %6559 = vmatprep.subr.bf16.mxu0 %v7297_v1  ;;  %v7301_v5 = vld [vmem:[%s8955_s3 + $0xc8] sm:$0xff]   ;;  %v7304_v8 = vld [vmem:[%s8955_s3 + $0xd0] sm:$0xff]   ;;  %431 = vst [vmem:[#allocation2 + $0x4] sm:$0xf] %v7431_v10  ;;  %vm953_vm6 = vcmask 1043456  }
  0x10   : > { %6560 = vmatpush3.bf16.msra.mxu0 %v7298_v2  ;;  %7112 = vmatprep.subr.bf16.mxu1 %v7488_v3  ;;  %v7514_v9 = vld [vmem:[%s8955_s3 + $0x158] sm:$0xff]   ;;  %432 = vst [vmem:[#allocation2 + $0x8] sm:$0x1] %v7431_v10  ;;  %434 = vst [vmem:[#allocation2 + $0xcc] sm:$0xf] %v7431_v10  ;;  %v7531_v13 = vld [vmem:[%s8955_s3 + $0x160] sm:$0xff]  }
  0x11   : > { %6561 = vmatprep.subr.bf16.mxu0 %v7300_v4  ;;  %435 = vst [vmem:[#allocation2 + $0xd0] sm:$0xf] %v7431_v10  ;;  %436 = vst [vmem:[#allocation2 + $0xd4] sm:$0x1] %v7431_v10  ;;  %v7306_v11 = vld [vmem:[%s8955_s3 + $0x118] sm:$0xff]   ;;  %v7309_v14 = vld [vmem:[%s8955_s3 + $0x120] sm:$0xff]  }
  0x12   : > { %v7307_v12 = vld [vmem:[%s8955_s3 + $0xd8] sm:$0xff]   ;;  %s8976_s9 = smov (!%p7516_p3, %s5984_s9), 63  ;;  %v7310_v15 = vld [vmem:[%s8955_s3 + $0xe0] sm:$0xff]   ;;  %v7311_v16 = vld [vmem:[%s8955_s3 + $0x168] sm:$0xff]   ;;  %vm438_vm1 = vsmask.f32 256 }
  0x13   : > { %7120 = vmatpush3.bf16.msra.mxu1 %v7488_v3  ;;  %v7312_v17 = vld [vmem:[%s8955_s3 + $0x128] sm:$0xff]   ;;  %s5985_s8 = sshll.u32 %s8976_s9, 2  ;;  %v7314_v19 = vld [vmem:[%s8955_s3 + $0x170] sm:$0xff]   ;;  %v7317_v22 = vld [vmem:[%s8955_s3 + $0x178] sm:$0xff]   ;;  %vm494_vm2 = vsmask.f32 7938 }
  0x14   : > { %6562 = vmatpush3.bf16.msra.mxu0 %v7301_v5  ;;  %7113 = vmatprep.subr.bf16.mxu1 %v7500_v6  ;;  %v7313_v18 = vld [vmem:[%s8955_s3 + $0xe8] sm:$0xff]   ;;  %s7564_s16 = scalar_lea.vmem %s8952_s0, %s5985_s8  ;;  %v7315_v20 = vld [vmem:[%s8955_s3 + $0x130] sm:$0xff]   ;;  %v7318_v23 = vld [vmem:[%s8955_s3 + $0x138] sm:$0xff]   ;;  %vm630_vm5 = vsmask.f32 4368  ;;  %vm1822_vm7 = vcmask 1042432   ;;  %s8889_s22 = scalar_lea.vmem %s8956_s4, %s5985_s8 }
  0x15   : > { %6563 = vmatprep.subr.bf16.mxu0 %v7303_v7  ;;  %v7316_v21 = vld [vmem:[%s8955_s3 + $0xf0] sm:$0xff]   ;;  %v6536_v24 = vld [vmem:[%s7564_s16 + $0x40] sm:$0xff]   ;;  %v467_v29 = vld [vmem:[#allocation2 + $0x6c] sm:$0x1]  ;;  %vm1823_vm8 = vcmask 1046532   ;;  %p235_p4 = scmp.lt.s32.totalorder %s7468_s19, 1 }
  0x16   : > { %v7582_v25 = vld [vmem:[%s8953_s1] ss:$0 sm:$0xff]  ;;  %v6419_v27 = vunpack.c.l.bf16 %v6536_v24  ;;  %v6420_v28 = vunpack.c.h.bf16 %v6536_v24  ;;  %vm7591_vm3 = vmand %vm437_vm0, %vm438_vm1  ;;  %v523_v31 = vld [vmem:[#allocation2 + $0x74] sm:$0x1]  ;;  %vm1259_vm12 = vsmask.f32 3328 }
  0x17   : > { %7121 = vmatpush3.bf16.msra.mxu1 %v7500_v6  ;;  %v7587_v26 = vld [vmem:[%s8954_s2] ss:$0 sm:$0xff]  ;;  %v468_v34 = vsel %vm7591_vm3, 0, %v467_v29  ;;  %vm7601_vm4 = vmand %vm437_vm0, %vm494_vm2  ;;  %v6537_v37 = vld [vmem:[%s7564_s16 + $0x48] sm:$0xff]   ;;  %vm1260_vm13 = vsmask.f32 7440 }
  0x18   : > { %6564 = vmatpush3.bf16.msra.mxu0 %v7304_v8  ;;  %7114 = vmatprep.subr.bf16.mxu1 %v7514_v9  ;;  %v327_v32 = vmul.f32 %v6419_v27, %v7582_v25  ;;  %v328_v33 = vmul.f32 %v6420_v28, %v7582_v25  ;;  %469 = vst [vmem:[#allocation2 + $0x6c] sm:$0x1] %v468_v34  ;;  %v524_v36 = vsel %vm7601_vm4, 0, %v523_v31  ;;  %v470_v38 = vld [vmem:[#allocation2 + $0x78] sm:$0x1]  ;;  %v6423_v42 = vunpack.c.l.bf16 %v6537_v37  ;;  %v7320_v47 = vld [vmem:[%s8955_s3 + $0x40] sm:$0xff]   ;;  %vm7635_vm9 = vmor %vm438_vm1, %vm630_vm5 }
  0x19   : > { %6565 = vmatprep.subr.bf16.mxu0 %v7306_v11  ;;  %525 = vst [vmem:[#allocation2 + $0x74] sm:$0x1] %v524_v36  ;;  %v7319_v41 = vld [vmem:[%s8955_s3 + $0xf8] sm:$0xff]   ;;  %v6424_v43 = vunpack.c.h.bf16 %v6537_v37  ;;  %v526_v44 = vld [vmem:[#allocation2 + $0x80] sm:$0x1]  ;;  %v471_v45 = vsel %vm7591_vm3, 0, %v470_v38  ;;  %vm7643_vm10 = vmand %vm953_vm6, %vm494_vm2 }
  0x1a   : > { %v366_v39 = vadd.f32 %v7587_v26, %v327_v32  ;;  %v367_v40 = vadd.f32 %v7587_v26, %v328_v33  ;;  %v527_v46 = vsel %vm7601_vm4, 0, %v526_v44  ;;  %v329_v50 = vmul.f32 %v6423_v42, %v7582_v25  ;;  %472 = vst [vmem:[#allocation2 + $0x78] sm:$0x1] %v471_v45  ;;  %v6386_v52 = vld [vmem:[%s7564_s16] sm:$0xff]   ;;  %v443_v53 = vld [vmem:[#allocation2 + $0xc] sm:$0x1]  ;;  %vm7673_vm11 = vmor %vm1822_vm7, %vm1823_vm8 }
  0x1b   : > { %7122 = vmatpush3.bf16.msra.mxu1 %v7514_v9  ;;  %v330_v51 = vmul.f32 %v6424_v43, %v7582_v25  ;;  %528 = vst [vmem:[#allocation2 + $0x80] sm:$0x1] %v527_v46  ;;  %v499_v54 = vld [vmem:[#allocation2 + $0x14] sm:$0x1]  ;;  %v6387_v59 = vunpack.c.l.bf16 %v6386_v52  ;;  %v6388_v60 = vunpack.c.h.bf16 %v6386_v52  ;;  %v444_v61 = vsel %vm7591_vm3, 0, %v443_v53  ;;  %vm7739_vm14 = vmor %vm1259_vm12, %vm1260_vm13  ;;  %s8978_s19 = smov (!%p235_p4, %s7468_s19), 1 }
  0x1c   : > { %6566 = vmatpush3.bf16.msra.mxu0 %v7307_v12  ;;  %7115 = vmatprep.subr.bf16.mxu1 %v7531_v13  ;;  %v398_v48 = vmax.f32 %v366_v39, 0.0  ;;  %v399_v49 = vmax.f32 %v367_v40, 0.0  ;;  %v368_v57 = vadd.f32 %v7587_v26, %v329_v50  ;;  %v500_v62 = vsel %vm7601_vm4, 0, %v499_v54  ;;  %445 = vst [vmem:[#allocation2 + $0xc] sm:$0x1] %v444_v61  ;;  %v6538_v11 = vld [vmem:[%s7564_s16 + $0x50] sm:$0xff]  }
  0x1d   : > { %6567 = vmatprep.subr.bf16.mxu0 %v7309_v14  ;;  %v369_v58 = vadd.f32 %v7587_v26, %v330_v51  ;;  %501 = vst [vmem:[#allocation2 + $0x14] sm:$0x1] %v500_v62  ;;  %v311_v8 = vmul.f32 %v6387_v59, %v7582_v25  ;;  %v312_v10 = vmul.f32 %v6388_v60, %v7582_v25  ;;  %v473_v31 = vld [vmem:[#allocation2 + $0x84] sm:$0x1]  ;;  %v529_v32 = vld [vmem:[#allocation2 + $0x8c] sm:$0x1] }
  0x1e   : > { %v6337_v55 = vpack.c.bf16 %v398_v48, %v398_v48  ;;  %v6338_v56 = vpack.c.bf16 %v399_v49, %v399_v49  ;;  %v400_v5 = vmax.f32 %v368_v57, 0.0  ;;  %v474_v51 = vsel %vm7591_vm3, 0, %v473_v31  ;;  %v476_v57 = vld [vmem:[#allocation2 + $0x90] sm:$0x1]  ;;  %v6539_v62 = vld [vmem:[%s7564_s16 + $0x58] sm:$0xff]   ;;  %s5988_s9 = sshll.u32 %s8978_s19, 1 }
  0x1f   : > { %7123 = vmatpush3.bf16.msra.mxu1 %v7531_v13  ;;  %v401_v7 = vmax.f32 %v369_v58, 0.0  ;;  %v530_v52 = vsel %vm7601_vm4, 0, %v529_v32  ;;  %475 = vst [vmem:[#allocation2 + $0x84] sm:$0x1] %v474_v51  ;;  %s238_s24 = scalar_lea.vmem %s8957_s5, %s5988_s9 }
  0x20   : > { %6568 = vmatpush3.bf16.msra.mxu0 %v7310_v15  ;;  %7116 = vmatprep.subr.bf16.mxu1 %v7311_v16  ;;  %v769_v63 = vshrl.u32 %v6337_v55, 16  ;;  %v772_v1 = vshll.u32 %v6337_v55, 16  ;;  %v777_v2 = vshrl.u32 %v6338_v56, 16  ;;  %v780_v4 = vshll.u32 %v6338_v56, 16  ;;  %531 = vst [vmem:[#allocation2 + $0x8c] sm:$0x1] %v530_v52 }
  0x21   : > { %6569 = vmatprep.subr.bf16.mxu0 %v7312_v17  ;;  %v6427_v15 = vunpack.c.l.bf16 %v6538_v11  ;;  %v1018_v45 = vld [vmem:[#allocation2 + $0x78] sm:$0xf] }
  0x22   : > { %v771_v12 = vrot.slane %v769_v63, 7  ;;  %v779_v14 = vrot.slane %v777_v2, 7  ;;  %v1022_v48 = vld [vmem:[#allocation2 + $0x80] sm:$0x1]  ;;  %v7662_v63 = vld [vmem:[%s7564_s16 + $0x8] sm:$0xff]  }
  0x23   : > { %7124 = vmatpush3.bf16.msra.mxu1 %v7311_v16  ;;  %v6428_v16 = vunpack.c.h.bf16 %v6538_v11 }
  0x24   : > { %6570 = vmatpush3.bf16.msra.mxu0 %v7313_v18  ;;  %7117 = vmatprep.subr.bf16.mxu1 %v7314_v19  ;;  %v1011_v18 = vld [vmem:[#allocation2 + $0x6c] sm:$0xf]  ;;  %v774_v24 = vor.u32 %v772_v1, %v771_v12  ;;  %v775_v27 = vrot.slane %v771_v12, 4  ;;  %v782_v28 = vor.u32 %v780_v4, %v779_v14  ;;  %v784_v29 = vrot.slane %v779_v14, 4 }
  0x25   : > { %6571 = vmatprep.subr.bf16.mxu0 %v7315_v20  ;;  %v6339_v20 = vpack.c.bf16 %v400_v5, %v400_v5  ;;  %v332_v50 = vmul.f32 %v6428_v16, %v7582_v25  ;;  %v955_v14 = vld [vmem:[#allocation2 + $0xc] sm:$0xf]  ;;  %v6431_v16 = vunpack.c.l.bf16 %v6539_v62 }
  0x26   : > { %v783_v39 = vsel %vm7635_vm9, %v775_v27, %v782_v28  ;;  %v1012_v40 = vsel %vm7643_vm10, %v774_v24, %v1011_v18  ;;  %v6432_v18 = vunpack.c.h.bf16 %v6539_v62  ;;  %v6391_v27 = vunpack.c.l.bf16 %v7662_v63 }
  0x27   : > { %7125 = vmatpush3.bf16.msra.mxu1 %v7314_v19  ;;  %v1015_v19 = vld [vmem:[#allocation2 + $0x74] sm:$0x1]  ;;  %v786_v34 = vshrl.u32 %v6339_v20, 16  ;;  %v789_v36 = vshll.u32 %v6339_v20, 16  ;;  %1013 = vst [vmem:[#allocation2 + $0x6c] sm:$0xf] %v1012_v40  ;;  %v371_v5 = vadd.f32 %v7587_v26, %v332_v50  ;;  %v6392_v28 = vunpack.c.h.bf16 %v7662_v63 }
  0x28   : > { %6572 = vmatpush3.bf16.msra.mxu0 %v7316_v21  ;;  %7118 = vmatprep.subr.bf16.mxu1 %v7317_v22  ;;  %v6340_v21 = vpack.c.bf16 %v401_v7, %v401_v7  ;;  %1014 = vst [vmem:[#allocation2 + $0x70] sm:$0xf] %v783_v39  ;;  %v532_v50 = vld [vmem:[#allocation2 + $0x98] sm:$0x1] }
  0x29   : > { %6573 = vmatprep.subr.bf16.mxu0 %v7318_v23  ;;  %v351_v23 = vadd.f32 %v7587_v26, %v312_v10  ;;  %v788_v43 = vrot.slane %v786_v34, 7 }
  0x2a   : > { %v794_v37 = vshrl.u32 %v6340_v21, 16  ;;  %v797_v38 = vshll.u32 %v6340_v21, 16 }
  0x2b   : > { %7126 = vmatpush3.bf16.msra.mxu1 %v7317_v22  ;;  %v350_v22 = vadd.f32 %v7587_v26, %v311_v8  ;;  %v383_v46 = vmax.f32 %v351_v23, 0.0  ;;  %v791_v53 = vor.u32 %v789_v36, %v788_v43  ;;  %v792_v54 = vrot.slane %v788_v43, 4 }
  0x2c   : > { %6574 = vmatpush3.bf16.msra.mxu0 %v7319_v41  ;;  %6695 = vmatprep.subr.bf16.mxu1 %v7320_v47  ;;  %v1016_v41 = vsel %vm7591_vm3, %v784_v29, %v1015_v19  ;;  %v796_v44 = vrot.slane %v794_v37, 7  ;;  %v331_v47 = vmul.f32 %v6427_v15, %v7582_v25  ;;  %v403_v15 = vmax.f32 %v371_v5, 0.0 }
  0x2d   : > { %6967 = vmatprep.subr.bf16.mxu0 %v7475_v0  ;;  %v382_v42 = vmax.f32 %v350_v22, 0.0  ;;  %1017 = vst [vmem:[#allocation2 + $0x74] sm:$0x1] %v1016_v41  ;;  %v6322_v58 = vpack.c.bf16 %v383_v46, %v383_v46  ;;  %v1019_v2 = vsel %vm7643_vm10, %v791_v53, %v1018_v45  ;;  %v477_v19 = vsel %vm7591_vm3, 0, %v476_v57 }
  0x2e   : > { %v799_v55 = vor.u32 %v797_v38, %v796_v44  ;;  %v801_v56 = vrot.slane %v796_v44, 4  ;;  %v370_v61 = vadd.f32 %v7587_v26, %v331_v47  ;;  %1020 = vst [vmem:[#allocation2 + $0x78] sm:$0xf] %v1019_v2  ;;  %v2793_v20 = vld [vmem:[#allocation2 + $0x6c] sm:$0xe]  ;;  %v6342_v38 = vpack.c.bf16 %v403_v15, %v403_v15 }
  0x2f   : > { %v6321_v49 = vpack.c.bf16 %v382_v42, %v382_v42  ;;  %v641_v8 = vshrl.u32 %v6322_v58, 16  ;;  %v644_v10 = vshll.u32 %v6322_v58, 16  ;;  %v2794_v21 = vld [vmem:[#allocation2 + $0x70] sm:$0xf]  ;;  %478 = vst [vmem:[#allocation2 + $0x90] sm:$0x1] %v477_v19  ;;  %v333_v44 = vmul.f32 %v6431_v16, %v7582_v25 }
  0x30   : > { %v800_v1 = vsel %vm7635_vm9, %v792_v54, %v799_v55  ;;  %v1023_v4 = vsel %vm7591_vm3, %v801_v56, %v1022_v48  ;;  %v402_v11 = vmax.f32 %v370_v61, 0.0  ;;  %v6127_v29 = vrot.slane %v2793_v20, 9  ;;  %v959_v42 = vld [vmem:[#allocation2 + $0x14] sm:$0x1]  ;;  %v1029_v15 = vld [vmem:[#allocation2 + $0x8c] sm:$0x1] }
  0x31   : > { %v633_v59 = vshrl.u32 %v6321_v49, 16  ;;  %v636_v60 = vshll.u32 %v6321_v49, 16  ;;  %1021 = vst [vmem:[#allocation2 + $0x7c] sm:$0xf] %v800_v1  ;;  %1024 = vst [vmem:[#allocation2 + $0x80] sm:$0x1] %v1023_v4  ;;  %v334_v55 = vmul.f32 %v6432_v18, %v7582_v25  ;;  %v372_v56 = vadd.f32 %v7587_v26, %v333_v44 }
  0x32   : > { %v6341_v24 = vpack.c.bf16 %v402_v11, %v402_v11  ;;  %v2923_v31 = vrot.slane %v2794_v21, 5  ;;  %v643_v36 = vrot.slane %v641_v8, 7  ;;  %v811_v48 = vshrl.u32 %v6342_v38, 16  ;;  %v1025_v49 = vld [vmem:[#allocation2 + $0x84] sm:$0xf]  ;;  %v7323_v11 = vld [vmem:[%s8955_s3 + $0x48] sm:$0xff]  }
  0x33   : > { %v635_v7 = vrot.slane %v633_v59, 7  ;;  %v313_v57 = vmul.f32 %v6391_v27, %v7582_v25  ;;  %v373_v16 = vadd.f32 %v7587_v26, %v334_v55  ;;  %v404_v18 = vmax.f32 %v372_v56, 0.0  ;;  %v446_v20 = vld [vmem:[#allocation2 + $0x18] sm:$0x1] }
  0x34   : > { %v2795_v22 = vld [vmem:[#allocation2 + $0x74] sm:$0x1]  ;;  %v803_v39 = vshrl.u32 %v6341_v24, 16  ;;  %v2924_v40 = vsel %vm7673_vm11, %v6127_v29, %v2923_v31  ;;  %v2925_v41 = vrot.slane %v2923_v31, 4  ;;  %v806_v43 = vshll.u32 %v6341_v24, 16  ;;  %v7712_v29 = vld [vmem:[%s7564_s16 + $0x60] sm:$0xff]  }
  0x35   : > { %v638_v23 = vor.u32 %v636_v60, %v635_v7  ;;  %v2926_v32 = vrot.slane %v2795_v22, 5  ;;  %v639_v34 = vrot.slane %v635_v7, 4  ;;  %v646_v45 = vor.u32 %v644_v10, %v643_v36  ;;  %v2796_v52 = vld [vmem:[#allocation2 + $0x78] sm:$0xe]  ;;  %v7321_v7 = vld [vmem:[%s8955_s3] sm:$0xff]  }
  0x36   : > { %v648_v46 = vrot.slane %v643_v36, 4  ;;  %v805_v47 = vrot.slane %v803_v39, 7  ;;  %v6128_v59 = vrot.slane %v2796_v52, 9  ;;  %v813_v8 = vrot.slane %v811_v48, 7  ;;  %v7325_v48 = vld [vmem:[%s8955_s3 + $0x50] sm:$0xff]  }
  0x37   : > { %v956_v37 = vsel %vm7643_vm10, %v638_v23, %v955_v14  ;;  %v2927_v51 = vsel %vm7673_vm11, %v2925_v41, %v2926_v32  ;;  %v647_v62 = vsel %vm7635_vm9, %v639_v34, %v646_v45  ;;  %v814_v10 = vshll.u32 %v6342_v38, 16  ;;  %v7324_v45 = vld [vmem:[%s8955_s3 + $0x8] sm:$0xff]  }
  0x38   : > { %957 = vst [vmem:[#allocation2 + $0xc] sm:$0xf] %v956_v37  ;;  %v2797_v53 = vld [vmem:[#allocation2 + $0x7c] sm:$0xf]  ;;  %v2798_v54 = vld [vmem:[#allocation2 + $0x80] sm:$0x1]  ;;  %v6143_v58 = vcombine.low %v2924_v40, %v2927_v51  ;;  %v960_v63 = vsel %vm7591_vm3, %v648_v46, %v959_v42  ;;  %v808_v1 = vor.u32 %v806_v43, %v805_v47  ;;  %v314_v27 = vmul.f32 %v6392_v28, %v7582_v25 }
  0x39   : > { %v2930_v60 = vrot.slane %v2797_v53, 5  ;;  %v2933_v61 = vrot.slane %v2798_v54, 5  ;;  %v809_v2 = vrot.slane %v805_v47, 4  ;;  %958 = vst [vmem:[#allocation2 + $0x10] sm:$0xf] %v647_v62  ;;  %v533_v19 = vsel %vm7601_vm4, 0, %v532_v50 }
  0x3a   : > { %6999 = vmatprep.mubr.bf16.mxu1 %v6143_v58  ;;  %961 = vst [vmem:[#allocation2 + $0x14] sm:$0x1] %v960_v63  ;;  %v1026_v14 = vsel %vm7643_vm10, %v808_v1, %v1025_v49  ;;  %v816_v23 = vor.u32 %v814_v10, %v813_v8  ;;  %v818_v24 = vrot.slane %v813_v8, 4  ;;  %534 = vst [vmem:[#allocation2 + $0x98] sm:$0x1] %v533_v19  ;;  %v405_v36 = vmax.f32 %v373_v16, 0.0 }
  0x3b   : > { %v2931_v4 = vsel %vm7673_vm11, %v6128_v59, %v2930_v60  ;;  %v2932_v5 = vrot.slane %v2930_v60, 4  ;;  %1027 = vst [vmem:[#allocation2 + $0x84] sm:$0xf] %v1026_v14  ;;  %v7715_v37 = vld [vmem:[%s7564_s16 + $0x68] sm:$0xff]   ;;  %v6343_v40 = vpack.c.bf16 %v404_v18, %v404_v18  ;;  %v352_v41 = vadd.f32 %v7587_v26, %v313_v57  ;;  %v502_v62 = vld [vmem:[#allocation2 + $0x20] sm:$0x1] }
  0x3c   : > { %v817_v38 = vsel %vm7635_vm9, %v809_v2, %v816_v23  ;;  %v1030_v39 = vsel %vm7591_vm3, %v818_v24, %v1029_v15  ;;  %v6344_v43 = vpack.c.bf16 %v405_v36, %v405_v36  ;;  %v353_v44 = vadd.f32 %v7587_v26, %v314_v27  ;;  %v1032_v15 = vld [vmem:[#allocation2 + $0x90] sm:$0xf] }
  0x3d   : > { %v2934_v21 = vsel %vm7673_vm11, %v2932_v5, %v2933_v61  ;;  %1028 = vst [vmem:[#allocation2 + $0x88] sm:$0xf] %v817_v38  ;;  %1031 = vst [vmem:[#allocation2 + $0x8c] sm:$0x1] %v1030_v39  ;;  %v820_v46 = vshrl.u32 %v6343_v40, 16  ;;  %v823_v47 = vshll.u32 %v6343_v40, 16  ;;  %v6435_v54 = vunpack.c.l.bf16 %v7712_v29 }
  0x3e   : > { %v6144_v31 = vcombine.low %v2931_v4, %v2934_v21  ;;  %v384_v49 = vmax.f32 %v352_v41, 0.0  ;;  %v447_v50 = vsel %vm7591_vm3, 0, %v446_v20  ;;  %v6436_v55 = vunpack.c.h.bf16 %v7712_v29  ;;  %v7326_v61 = vld [vmem:[%s8955_s3 + $0x10] sm:$0xff]   ;;  %v7333_v29 = vld [vmem:[%s8955_s3 + $0x68] sm:$0xff]  }
  0x3f   : > { %v2257_v22 = vld [vmem:[#allocation2 + $0xc] sm:$0xf]  ;;  %448 = vst [vmem:[#allocation2 + $0x18] sm:$0x1] %v447_v50  ;;  %v6439_v56 = vunpack.c.l.bf16 %v7715_v37  ;;  %v822_v60 = vrot.slane %v820_v46, 7  ;;  %v828_v4 = vshrl.u32 %v6344_v43, 16 }
  0x40   : > { %v2306_v32 = vshrl.u32 %v2257_v22, 16  ;;  %v2309_v34 = vshll.u32 %v2257_v22, 16  ;;  %7000 = vmatmul.mubr.bf16.vlgmr.msra.gmra.mrb[0].mxu1 %v6144_v31  ;;  %v2258_v51 = vld [vmem:[#allocation2 + $0x10] sm:$0xf]  ;;  %v831_v5 = vshll.u32 %v6344_v43, 16  ;;  %v503_v21 = vsel %vm7601_vm4, 0, %v502_v62 }
  0x41   : > { %6696 = vmatpush3.bf16.msra.mxu1 %v7321_v7  ;;  %v2259_v52 = vld [vmem:[#allocation2 + $0x14] sm:$0x1]  ;;  %v2315_v57 = vshll.u32 %v2258_v51, 16  ;;  %v2319_v58 = vshrl.u32 %v2258_v51, 16  ;;  %v385_v7 = vmax.f32 %v353_v44, 0.0  ;;  %v825_v16 = vor.u32 %v823_v47, %v822_v60  ;;  %v7328_v22 = vld [vmem:[%s8955_s3 + $0x58] sm:$0xff]  }
  0x42   : > { %v2308_v42 = vrot.slane %v2306_v32, 4  ;;  %v2311_v28 = vrot.slane %v2309_v34, 5  ;;  %6697 = vmatprep.subr.bf16.mxu1 %v7323_v11  ;;  %v2325_v59 = vshll.u32 %v2259_v52, 16  ;;  %v2799_v2 = vld [vmem:[#allocation2 + $0x84] sm:$0xe]  ;;  %v826_v18 = vrot.slane %v822_v60, 4 }
  0x43   : > { %v2317_v8 = vrot.slane %v2315_v57, 5  ;;  %v2321_v10 = vrot.slane %v2319_v58, 4  ;;  %v6129_v14 = vrot.slane %v2799_v2, 9  ;;  %v830_v19 = vrot.slane %v828_v4, 7  ;;  %v1036_v20 = vld [vmem:[#allocation2 + $0x98] sm:$0x1] }
  0x44   : > { %v2312_v53 = vor.u32 %v2311_v28, %v2308_v42  ;;  %v2327_v11 = vrot.slane %v2325_v59, 5  ;;  %v2800_v27 = vld [vmem:[#allocation2 + $0x88] sm:$0xf]  ;;  %v2801_v31 = vld [vmem:[#allocation2 + $0x8c] sm:$0x1]  ;;  %v6323_v32 = vpack.c.bf16 %v384_v49, %v384_v49  ;;  %v6324_v34 = vpack.c.bf16 %v385_v7, %v385_v7  ;;  %v7329_v44 = vld [vmem:[%s8955_s3 + $0x18] sm:$0xff]  }
  0x45   : > { %6698 = vmatpush3.bf16.msra.mxu1 %v7324_v45  ;;  %v2322_v24 = vor.u32 %v2321_v10, %v2317_v8  ;;  %504 = vst [vmem:[#allocation2 + $0x20] sm:$0x1] %v503_v21  ;;  %v2937_v36 = vrot.slane %v2800_v27, 5  ;;  %v2940_v38 = vrot.slane %v2801_v31, 5  ;;  %v833_v39 = vor.u32 %v831_v5, %v830_v19  ;;  %v479_v45 = vld [vmem:[#allocation2 + $0x9c] sm:$0x1] }
  0x46   : > { %v2313_v1 = vrot.slane %v2312_v53, 4  ;;  %6699 = vmatprep.subr.bf16.mxu1 %v7325_v48  ;;  %v835_v40 = vrot.slane %v830_v19, 4  ;;  %v1033_v42 = vsel %vm7643_vm10, %v825_v16, %v1032_v15  ;;  %v650_v28 = vshrl.u32 %v6323_v32, 16  ;;  %v535_v46 = vld [vmem:[#allocation2 + $0xa4] sm:$0x1]  ;;  %v7322_v53 = vld [vmem:[#allocation2 + $0xc] sm:$0xff]  }
  0x47   : > { %v2323_v41 = vrot.slane %v2322_v24, 4  ;;  %v653_v43 = vshll.u32 %v6323_v32, 16  ;;  %v2938_v47 = vsel %vm7673_vm11, %v6129_v14, %v2937_v36  ;;  %v2939_v48 = vrot.slane %v2937_v36, 4  ;;  %1034 = vst [vmem:[#allocation2 + $0x90] sm:$0xf] %v1033_v42  ;;  %v7330_v51 = vld [vmem:[%s8955_s3 + $0x60] sm:$0xff]  }
  0x48   : > { %v2318_v23 = vsel %vm7739_vm14, %v2313_v1, %v2317_v8  ;;  %v834_v49 = vsel %vm7635_vm9, %v826_v18, %v833_v39  ;;  %v1037_v50 = vsel %vm7591_vm3, %v835_v40, %v1036_v20  ;;  %v652_v57 = vrot.slane %v650_v28, 7  ;;  %v482_v60 = vld [vmem:[#allocation2 + $0xa8] sm:$0x1]  ;;  %v962_v2 = vld [vmem:[#allocation2 + $0x18] sm:$0xf]  ;;  %v7796_v32 = vld [vmem:[%s7564_s16 + $0x10] sm:$0xff]  }
  0x49   : > { %6700 = vmatpush3.bf16.msra.mxu1 %v7326_v61  ;;  %v2328_v52 = vsel %vm7739_vm14, %v2323_v41, %v2327_v11  ;;  %1035 = vst [vmem:[#allocation2 + $0x94] sm:$0xf] %v834_v49  ;;  %1038 = vst [vmem:[#allocation2 + $0x98] sm:$0x1] %v1037_v50  ;;  %v658_v58 = vshrl.u32 %v6324_v34, 16  ;;  %v661_v59 = vshll.u32 %v6324_v34, 16  ;;  %v2941_v1 = vsel %vm7673_vm11, %v2939_v48, %v2940_v38 }
  0x4a   : > { %6701 = vmatprep.subr.bf16.mxu1 %v7328_v22  ;;  %v7331_v61 = vld [vmem:[%s8955_s3 + $0x20] sm:$0xff]   ;;  %v6103_v62 = vcombine.low %v2318_v23, %v2328_v52  ;;  %v335_v4 = vmul.f32 %v6435_v54, %v7582_v25  ;;  %v336_v5 = vmul.f32 %v6436_v55, %v7582_v25  ;;  %v538_v7 = vld [vmem:[#allocation2 + $0xb0] sm:$0x1]  ;;  %v6145_v8 = vcombine.low %v2938_v47, %v2941_v1 }
  0x4b   : > { %v655_v10 = vor.u32 %v653_v43, %v652_v57  ;;  %v656_v11 = vrot.slane %v652_v57, 4  ;;  %v660_v14 = vrot.slane %v658_v58, 7  ;;  %v480_v19 = vsel %vm7591_vm3, 0, %v479_v45  ;;  %v449_v49 = vld [vmem:[#allocation2 + $0x24] sm:$0x1] }
  0x4c   : > { %3329 = vmatprep.mubr.bf16.mxu0 %v6103_v62  ;;  %v966_v15 = vld [vmem:[#allocation2 + $0x20] sm:$0x1]  ;;  %v374_v16 = vadd.f32 %v7587_v26, %v335_v4  ;;  %v375_v18 = vadd.f32 %v7587_v26, %v336_v5  ;;  %v536_v54 = vsel %vm7601_vm4, 0, %v535_v46  ;;  %7003 = vmatprep.mubr.bf16.mxu1 %v6145_v8  ;;  %481 = vst [vmem:[#allocation2 + $0x9c] sm:$0x1] %v480_v19  ;;  %v6440_v22 = vunpack.c.h.bf16 %v7715_v37  ;;  %v7334_v37 = vld [vmem:[%s8955_s3 + $0x28] sm:$0xff]  }
  0x4d   : > { %6702 = vmatpush3.bf16.msra.mxu1 %v7329_v44  ;;  %3330 = vmatmul.mubr.bf16.vlgmr.msra.gmra.mrb[0].mxu0 %v7322_v53  ;;  %v663_v55 = vor.u32 %v661_v59, %v660_v14  ;;  %v665_v20 = vrot.slane %v660_v14, 4  ;;  %v963_v21 = vsel %vm7643_vm10, %v655_v10, %v962_v2  ;;  %537 = vst [vmem:[#allocation2 + $0xa4] sm:$0x1] %v536_v54  ;;  %v483_v31 = vsel %vm7591_vm3, 0, %v482_v60  ;;  %v7335_v44 = vld [vmem:[%s8955_s3 + $0x70] sm:$0xff]   ;;  %v7338_v5 = vld [vmem:[%s8955_s3 + $0x78] sm:$0xff]  }
  0x4e   : > { %6703 = vmatprep.subr.bf16.mxu1 %v7330_v51  ;;  %6968 = vmatpush3.bf16.msra.mxu0 %v7475_v0  ;;  %964 = vst [vmem:[#allocation2 + $0x18] sm:$0xf] %v963_v21  ;;  %v406_v23 = vmax.f32 %v374_v16, 0.0  ;;  %v407_v24 = vmax.f32 %v375_v18, 0.0  ;;  %v337_v27 = vmul.f32 %v6439_v56, %v7582_v25  ;;  %v2802_v34 = vld [vmem:[#allocation2 + $0x90] sm:$0xe]  ;;  %v338_v0 = vmul.f32 %v6440_v22, %v7582_v25 }
  0x4f   : > { %v664_v36 = vsel %vm7635_vm9, %v656_v11, %v663_v55  ;;  %v967_v38 = vsel %vm7591_vm3, %v665_v20, %v966_v15  ;;  %484 = vst [vmem:[#allocation2 + $0xa8] sm:$0x1] %v483_v31  ;;  %v539_v39 = vsel %vm7601_vm4, 0, %v538_v7  ;;  %6969 = vmatprep.subr.bf16.mxu0 %v7488_v3  ;;  %v6130_v41 = vrot.slane %v2802_v34, 9  ;;  %v7842_v55 = vld [vmem:[%s8955_s3 + $0x80] sm:$0xff]  }
  0x50   : > { %v2803_v56 = vld [vmem:[#allocation2 + $0x94] sm:$0xf]  ;;  %v2804_v40 = vld [vmem:[#allocation2 + $0x98] sm:$0x1]  ;;  %965 = vst [vmem:[#allocation2 + $0x1c] sm:$0xf] %v664_v36  ;;  %v6345_v42 = vpack.c.bf16 %v406_v23, %v406_v23  ;;  %v6346_v28 = vpack.c.bf16 %v407_v24, %v407_v24  ;;  %v376_v43 = vadd.f32 %v7587_v26, %v337_v27  ;;  %v377_v47 = vadd.f32 %v7587_v26, %v338_v0 }
  0x51   : > { %6704 = vmatpush3.bf16.msra.mxu1 %v7331_v61  ;;  %968 = vst [vmem:[#allocation2 + $0x20] sm:$0x1] %v967_v38  ;;  %540 = vst [vmem:[#allocation2 + $0xb0] sm:$0x1] %v539_v39  ;;  %v2944_v45 = vrot.slane %v2803_v56, 5  ;;  %v2947_v46 = vrot.slane %v2804_v40, 5  ;;  %v6395_v48 = vunpack.c.l.bf16 %v7796_v32  ;;  %v6396_v2 = vunpack.c.h.bf16 %v7796_v32 }
  0x52   : > { %6705 = vmatprep.subr.bf16.mxu1 %v7333_v29  ;;  %v837_v50 = vshrl.u32 %v6345_v42, 16  ;;  %v840_v51 = vshll.u32 %v6345_v42, 16  ;;  %v845_v52 = vshrl.u32 %v6346_v28, 16  ;;  %v848_v53 = vshll.u32 %v6346_v28, 16  ;;  %6970 = vmatpush3.bf16.msra.mxu0 %v7488_v3  ;;  %v7336_v61 = vld [vmem:[%s8955_s3 + $0x30] sm:$0xff]   ;;  %v7339_v29 = vld [vmem:[%s8955_s3 + $0x38] sm:$0xff]  }
  0x53   : > { %v2945_v57 = vsel %vm7673_vm11, %v6130_v41, %v2944_v45  ;;  %v2946_v58 = vrot.slane %v2944_v45, 4  ;;  %v408_v59 = vmax.f32 %v376_v43, 0.0  ;;  %v409_v60 = vmax.f32 %v377_v47, 0.0  ;;  %6971 = vmatprep.subr.bf16.mxu0 %v7500_v6  ;;  %v7825_v3 = vld [vmem:[%s7564_s16 + $0x70] sm:$0xff]   ;;  %v1039_v54 = vld [vmem:[#allocation2 + $0x9c] sm:$0xf] }
  0x54   : > { %v839_v62 = vrot.slane %v837_v50, 7  ;;  %v847_v1 = vrot.slane %v845_v52, 7  ;;  %v315_v4 = vmul.f32 %v6395_v48, %v7582_v25  ;;  %v450_v14 = vsel %vm7591_vm3, 0, %v449_v49  ;;  %v1043_v38 = vld [vmem:[#allocation2 + $0xa4] sm:$0x1] }
  0x55   : > { %6706 = vmatpush3.bf16.msra.mxu1 %v7334_v37  ;;  %v2948_v7 = vsel %vm7673_vm11, %v2946_v58, %v2947_v46  ;;  %v2260_v8 = vld [vmem:[#allocation2 + $0x18] sm:$0xf]  ;;  %v6347_v10 = vpack.c.bf16 %v408_v59, %v408_v59  ;;  %v7832_v11 = vpack.c.bf16 %v409_v60, %v409_v60  ;;  %451 = vst [vmem:[#allocation2 + $0x24] sm:$0x1] %v450_v14  ;;  %v6443_v27 = vunpack.c.l.bf16 %v7825_v3  ;;  %v505_v28 = vld [vmem:[#allocation2 + $0x2c] sm:$0x1] }
  0x56   : > { %6707 = vmatprep.subr.bf16.mxu1 %v7335_v44  ;;  %v6146_v15 = vcombine.low %v2945_v57, %v2948_v7  ;;  %v2330_v16 = vshrl.u32 %v2260_v8, 16  ;;  %v2333_v18 = vshll.u32 %v2260_v8, 16  ;;  %v842_v19 = vor.u32 %v840_v51, %v839_v62  ;;  %6972 = vmatpush3.bf16.msra.mxu0 %v7500_v6  ;;  %v485_v51 = vld [vmem:[#allocation2 + $0xb4] sm:$0x1]  ;;  %v7418_v8 = vld [vmem:[%s8955_s3 + $0x168] sm:$0xff]  }
  0x57   : > { %v2261_v20 = vld [vmem:[#allocation2 + $0x1c] sm:$0xf]  ;;  %v850_v22 = vor.u32 %v848_v53, %v847_v1  ;;  %v316_v23 = vmul.f32 %v6396_v2, %v7582_v25  ;;  %v354_v24 = vadd.f32 %v7587_v26, %v315_v4  ;;  %6973 = vmatprep.subr.bf16.mxu0 %v7514_v9  ;;  %v843_v0 = vrot.slane %v839_v62, 4  ;;  %v1046_v53 = vld [vmem:[#allocation2 + $0xa8] sm:$0xf] }
  0x58   : > { %v2262_v21 = vld [vmem:[#allocation2 + $0x20] sm:$0x1]  ;;  %7004 = vmatmul.mubr.bf16.gmra.mrb[4].mxu1 %v6146_v15  ;;  %v2332_v31 = vrot.slane %v2330_v16, 4  ;;  %v2335_v32 = vrot.slane %v2333_v18, 5  ;;  %v2339_v34 = vshll.u32 %v2261_v20, 16  ;;  %v2343_v36 = vshrl.u32 %v2261_v20, 16 }
  0x59   : > { %6708 = vmatpush3.bf16.msra.mxu1 %v7336_v61  ;;  %v2349_v6 = vshll.u32 %v2262_v21, 16  ;;  %v852_v39 = vrot.slane %v847_v1, 4  ;;  %v1040_v37 = vsel %vm7643_vm10, %v842_v19, %v1039_v54  ;;  %v854_v42 = vshrl.u32 %v6347_v10, 16  ;;  %v7416_v9 = vld [vmem:[%s8955_s3 + $0x158] sm:$0xff]   ;;  %v7417_v1 = vld [vmem:[%s8955_s3 + $0x160] sm:$0xff]  }
  0x5a   : > { %6709 = vmatprep.subr.bf16.mxu1 %v7338_v5  ;;  %v2336_v56 = vor.u32 %v2335_v32, %v2332_v31  ;;  %v2341_v40 = vrot.slane %v2339_v34, 5  ;;  %v2345_v41 = vrot.slane %v2343_v36, 4  ;;  %1041 = vst [vmem:[#allocation2 + $0x9c] sm:$0xf] %v1040_v37  ;;  %6974 = vmatpush3.bf16.msra.mxu0 %v7416_v9  ;;  %v851_v44 = vsel %vm7635_vm9, %v843_v0, %v850_v22  ;;  %v1050_v4 = vld [vmem:[#allocation2 + $0xb0] sm:$0x1] }
  0x5b   : > { %v2351_v43 = vrot.slane %v2349_v6, 5  ;;  %v1044_v45 = vsel %vm7591_vm3, %v852_v39, %v1043_v38  ;;  %v857_v46 = vshll.u32 %v6347_v10, 16  ;;  %6975 = vmatprep.subr.bf16.mxu0 %v7531_v13  ;;  %1042 = vst [vmem:[#allocation2 + $0xa0] sm:$0xf] %v851_v44  ;;  %v856_v49 = vrot.slane %v854_v42, 7  ;;  %v6543_v31 = vld [vmem:[%s7564_s16 + $0x78] sm:$0xff]  }
  0x5c   : > { %v2337_v47 = vrot.slane %v2336_v56, 4  ;;  %v2346_v48 = vor.u32 %v2345_v41, %v2341_v40  ;;  %1045 = vst [vmem:[#allocation2 + $0xa4] sm:$0x1] %v1044_v45  ;;  %v862_v50 = vshrl.u32 %v7832_v11, 16  ;;  %v865_v52 = vshll.u32 %v7832_v11, 16  ;;  %v7327_v11 = vld [vmem:[#allocation2 + $0x18] sm:$0xff]  }
  0x5d   : > { %6710 = vmatpush3.bf16.msra.mxu1 %v7339_v29  ;;  %v355_v57 = vadd.f32 %v7587_v26, %v316_v23  ;;  %v386_v58 = vmax.f32 %v354_v24, 0.0  ;;  %v506_v59 = vsel %vm7601_vm4, 0, %v505_v28  ;;  %v859_v61 = vor.u32 %v857_v46, %v856_v49  ;;  %v541_v24 = vld [vmem:[#allocation2 + $0xbc] sm:$0x1]  ;;  %v7419_v0 = vld [vmem:[%s8955_s3 + $0x170] sm:$0xff]  }
  0x5e   : > { %7015 = vmatprep.subr.bf16.mxu1 %v7842_v55  ;;  %v2342_v13 = vsel %vm7739_vm14, %v2337_v47, %v2341_v40  ;;  %v2347_v60 = vrot.slane %v2346_v48, 4  ;;  %v860_v62 = vrot.slane %v856_v49, 4  ;;  %507 = vst [vmem:[#allocation2 + $0x2c] sm:$0x1] %v506_v59  ;;  %6976 = vmatpush3.bf16.msra.mxu0 %v7417_v1  ;;  %v864_v2 = vrot.slane %v862_v50, 7 }
  0x5f   : > { %v387_v5 = vmax.f32 %v355_v57, 0.0  ;;  %v6325_v26 = vpack.c.bf16 %v386_v58, %v386_v58  ;;  %v6444_v7 = vunpack.c.h.bf16 %v7825_v3  ;;  %6977 = vmatprep.subr.bf16.mxu0 %v7418_v8  ;;  %v1047_v14 = vsel %vm7643_vm10, %v859_v61, %v1046_v53  ;;  %v7893_v56 = vld [vmem:[%s8954_s2] ss:$0 sm:$0xff]  ;;  %v969_v42 = vld [vmem:[#allocation2 + $0x24] sm:$0xf]  ;;  %v7421_v57 = vld [vmem:[%s8955_s3 + $0x178] sm:$0xff]  }
  0x60   : > { %v2352_v10 = vsel %vm7739_vm14, %v2347_v60, %v2351_v43  ;;  %v339_v15 = vmul.f32 %v6443_v27, %v7582_v25  ;;  %v486_v16 = vsel %vm7591_vm3, 0, %v485_v51  ;;  %v867_v19 = vor.u32 %v865_v52, %v864_v2  ;;  %1048 = vst [vmem:[#allocation2 + $0xa8] sm:$0xf] %v1047_v14  ;;  %v488_v53 = vld [vmem:[#allocation2 + $0xc0] sm:$0x1] }
  0x61   : > { %v6104_v18 = vcombine.low %v2342_v13, %v2352_v10  ;;  %v2805_v3 = vld [vmem:[#allocation2 + $0x9c] sm:$0xe]  ;;  %v869_v54 = vrot.slane %v864_v2, 4  ;;  %v6326_v29 = vpack.c.bf16 %v387_v5, %v387_v5  ;;  %487 = vst [vmem:[#allocation2 + $0xb4] sm:$0x1] %v486_v16  ;;  %v667_v21 = vshrl.u32 %v6325_v26, 16 }
  0x62   : > { %v6131_v20 = vrot.slane %v2805_v3, 9  ;;  %v670_v22 = vshll.u32 %v6325_v26, 16  ;;  %v340_v23 = vmul.f32 %v6444_v7, %v7582_v25  ;;  %6978 = vmatpush3.bf16.msra.mxu0 %v7418_v8  ;;  %v2806_v27 = vld [vmem:[#allocation2 + $0xa0] sm:$0xf]  ;;  %v868_v34 = vsel %vm7635_vm9, %v860_v62, %v867_v19  ;;  %v544_v1 = vld [vmem:[#allocation2 + $0xc8] sm:$0x1] }
  0x63   : > { %3337 = vmatprep.mubr.bf16.mxu0 %v6104_v18  ;;  %v2807_v32 = vld [vmem:[#allocation2 + $0xa4] sm:$0x1]  ;;  %v1051_v36 = vsel %vm7591_vm3, %v869_v54, %v1050_v4  ;;  %v675_v38 = vshrl.u32 %v6326_v29, 16  ;;  %v678_v6 = vshll.u32 %v6326_v29, 16  ;;  %6979 = vmatprep.subr.bf16.mxu0 %v7419_v0  ;;  %v2951_v25 = vrot.slane %v2806_v27, 5  ;;  %v6531_v2 = vld [vmem:[%s7564_s16 + $0x18] sm:$0xff]  }
  0x64   : > { %3338 = vmatmul.mubr.bf16.gmra.mrb[4].mxu0 %v7327_v11  ;;  %v2954_v39 = vrot.slane %v2807_v32, 5  ;;  %1049 = vst [vmem:[#allocation2 + $0xac] sm:$0xf] %v868_v34  ;;  %1052 = vst [vmem:[#allocation2 + $0xb0] sm:$0x1] %v1051_v36  ;;  %v669_v37 = vrot.slane %v667_v21, 7  ;;  %v378_v40 = vadd.f32 %v7893_v56, %v339_v15  ;;  %v379_v28 = vadd.f32 %v7893_v56, %v340_v23 }
  0x65   : > { %v677_v41 = vrot.slane %v675_v38, 7  ;;  %v542_v9 = vsel %vm7601_vm4, 0, %v541_v24  ;;  %v6447_v43 = vunpack.c.l.bf16 %v6543_v31  ;;  %v2952_v44 = vsel %vm7673_vm11, %v6131_v20, %v2951_v25  ;;  %v973_v48 = vld [vmem:[#allocation2 + $0x2c] sm:$0x1]  ;;  %v7911_v61 = vld [vmem:[%s8953_s1] ss:$0 sm:$0xff] }
  0x66   : > { %v2953_v45 = vrot.slane %v2951_v25, 4  ;;  %v672_v46 = vor.u32 %v670_v22, %v669_v37  ;;  %v673_v47 = vrot.slane %v669_v37, 4  ;;  %543 = vst [vmem:[#allocation2 + $0xbc] sm:$0x1] %v542_v9  ;;  %6980 = vmatpush3.bf16.msra.mxu0 %v7419_v0  ;;  %v410_v51 = vmax.f32 %v378_v40, 0.0 }
  0x67   : > { %v680_v49 = vor.u32 %v678_v6, %v677_v41  ;;  %v682_v50 = vrot.slane %v677_v41, 4  ;;  %v411_v52 = vmax.f32 %v379_v28, 0.0  ;;  %6981 = vmatprep.subr.bf16.mxu0 %v7421_v57  ;;  %v2808_v59 = vld [vmem:[#allocation2 + $0xa8] sm:$0xe]  ;;  %v6448_v60 = vunpack.c.h.bf16 %v6543_v31 }
  0x68   : > { %v2955_v58 = vsel %vm7673_vm11, %v2953_v45, %v2954_v39  ;;  %v970_v13 = vsel %vm7643_vm10, %v672_v46, %v969_v42  ;;  %v341_v62 = vmul.f32 %v7911_v61, %v6447_v43  ;;  %v6132_v5 = vrot.slane %v2808_v59, 9  ;;  %v1053_v38 = vld [vmem:[#allocation2 + $0xb4] sm:$0xf] }
  0x69   : > { %v6147_v4 = vcombine.low %v2952_v44, %v2955_v58  ;;  %v681_v26 = vsel %vm7635_vm9, %v673_v47, %v680_v49  ;;  %971 = vst [vmem:[#allocation2 + $0x24] sm:$0xf] %v970_v13  ;;  %v974_v7 = vsel %vm7591_vm3, %v682_v50, %v973_v48  ;;  %v6349_v8 = vpack.c.bf16 %v410_v51, %v410_v51 }
  0x6a   : > { %972 = vst [vmem:[#allocation2 + $0x28] sm:$0xf] %v681_v26  ;;  %975 = vst [vmem:[#allocation2 + $0x2c] sm:$0x1] %v974_v7  ;;  %v6350_v10 = vpack.c.bf16 %v411_v52, %v411_v52  ;;  %v342_v11 = vmul.f32 %v7911_v61, %v6448_v60  ;;  %v380_v14 = vadd.f32 %v7893_v56, %v341_v62  ;;  %6982 = vmatpush3.bf16.msra.mxu0 %v7421_v57 }
  0x6b   : > { %7007 = vmatprep.mubr.bf16.mxu1 %v6147_v4  ;;  %v2809_v15 = vld [vmem:[#allocation2 + $0xac] sm:$0xf]  ;;  %v2810_v16 = vld [vmem:[#allocation2 + $0xb0] sm:$0x1]  ;;  %v489_v18 = vsel %vm7591_vm3, 0, %v488_v53  ;;  %v545_v3 = vsel %vm7601_vm4, 0, %v544_v1  ;;  %v6399_v19 = vunpack.c.l.bf16 %v6531_v2  ;;  %v6400_v54 = vunpack.c.h.bf16 %v6531_v2 }
  0x6c   : > { %v2958_v29 = vrot.slane %v2809_v15, 5  ;;  %v2961_v20 = vrot.slane %v2810_v16, 5  ;;  %v871_v21 = vshrl.u32 %v6349_v8, 16  ;;  %v874_v22 = vshll.u32 %v6349_v8, 16  ;;  %490 = vst [vmem:[#allocation2 + $0xc0] sm:$0x1] %v489_v18 }
  0x6d   : > { %546 = vst [vmem:[#allocation2 + $0xc8] sm:$0x1] %v545_v3  ;;  %v879_v23 = vshrl.u32 %v6350_v10, 16  ;;  %v882_v24 = vshll.u32 %v6350_v10, 16  ;;  %v381_v31 = vadd.f32 %v7893_v56, %v342_v11  ;;  %v412_v27 = vmax.f32 %v380_v14, 0.0 }
  0x6e   : > { %v2959_v32 = vsel %vm7673_vm11, %v6132_v5, %v2958_v29  ;;  %v2960_v34 = vrot.slane %v2958_v29, 4  ;;  %v873_v36 = vrot.slane %v871_v21, 7  ;;  %v317_v6 = vmul.f32 %v7911_v61, %v6399_v19  ;;  %v1057_v9 = vld [vmem:[#allocation2 + $0xbc] sm:$0x1]  ;;  %v452_v4 = vld [vmem:[#allocation2 + $0x30] sm:$0x1] }
  0x6f   : > { %v881_v0 = vrot.slane %v879_v23, 7  ;;  %v413_v25 = vmax.f32 %v381_v31, 0.0  ;;  %v6351_v39 = vpack.c.bf16 %v412_v27, %v412_v27  ;;  %v318_v37 = vmul.f32 %v7911_v61, %v6400_v54  ;;  %v508_v10 = vld [vmem:[#allocation2 + $0x38] sm:$0x1] }
  0x70   : > { %v2962_v40 = vsel %vm7673_vm11, %v2960_v34, %v2961_v20  ;;  %v2263_v41 = vld [vmem:[#allocation2 + $0x24] sm:$0xf]  ;;  %v876_v42 = vor.u32 %v874_v22, %v873_v36  ;;  %v877_v28 = vrot.slane %v873_v36, 4  ;;  %v356_v43 = vadd.f32 %v7893_v56, %v317_v6 }
  0x71   : > { %v6148_v44 = vcombine.low %v2959_v32, %v2962_v40  ;;  %v2264_v45 = vld [vmem:[#allocation2 + $0x28] sm:$0xf]  ;;  %v2265_v46 = vld [vmem:[#allocation2 + $0x2c] sm:$0x1]  ;;  %v2354_v47 = vshrl.u32 %v2263_v41, 16  ;;  %v2357_v48 = vshll.u32 %v2263_v41, 16  ;;  %v884_v49 = vor.u32 %v882_v24, %v881_v0 }
  0x72   : > { %v2363_v50 = vshll.u32 %v2264_v45, 16  ;;  %v2367_v51 = vshrl.u32 %v2264_v45, 16  ;;  %v2373_v52 = vshll.u32 %v2265_v46, 16  ;;  %v1054_v53 = vsel %vm7643_vm10, %v876_v42, %v1053_v38  ;;  %v440_v24 = vld [vmem:[#allocation2] sm:$0x1] }
  0x73   : > { %7008 = vmatmul.mubr.bf16.gmra.mrb[8].mxu1 %v6148_v44  ;;  %v2356_v57 = vrot.slane %v2354_v47, 4  ;;  %v2359_v58 = vrot.slane %v2357_v48, 5  ;;  %v885_v59 = vsel %vm7635_vm9, %v877_v28, %v884_v49  ;;  %v886_v13 = vrot.slane %v881_v0, 4  ;;  %1055 = vst [vmem:[#allocation2 + $0xb4] sm:$0xf] %v1054_v53  ;;  %v7332_v0 = vld [vmem:[#allocation2 + $0x24] sm:$0xff]  }
  0x74   : > { %v2365_v60 = vrot.slane %v2363_v50, 5  ;;  %v2369_v62 = vrot.slane %v2367_v51, 4  ;;  %v2375_v1 = vrot.slane %v2373_v52, 5  ;;  %1056 = vst [vmem:[#allocation2 + $0xb8] sm:$0xf] %v885_v59  ;;  %v6352_v2 = vpack.c.bf16 %v413_v25, %v413_v25  ;;  %v6532_v45 = vld [vmem:[%s7564_s16 + $0x20] sm:$0xff]  }
  0x75   : > { %v2360_v5 = vor.u32 %v2359_v58, %v2356_v57  ;;  %v1058_v26 = vsel %vm7591_vm3, %v886_v13, %v1057_v9  ;;  %v888_v7 = vshrl.u32 %v6351_v39, 16  ;;  %v891_v8 = vshll.u32 %v6351_v39, 16  ;;  %v1060_v21 = vld [vmem:[#allocation2 + $0xc0] sm:$0xf]  ;;  %v1064_v34 = vld [vmem:[#allocation2 + $0xc8] sm:$0x1] }
  0x76   : > { %v2370_v11 = vor.u32 %v2369_v62, %v2365_v60  ;;  %1059 = vst [vmem:[#allocation2 + $0xbc] sm:$0x1] %v1058_v26  ;;  %v896_v14 = vshrl.u32 %v6352_v2, 16  ;;  %v899_v15 = vshll.u32 %v6352_v2, 16  ;;  %v357_v16 = vadd.f32 %v7893_v56, %v318_v37  ;;  %v496_v38 = vld [vmem:[#allocation2 + $0x8] sm:$0x1] }
  0x77   : > { %v2361_v18 = vrot.slane %v2360_v5, 4  ;;  %v890_v3 = vrot.slane %v888_v7, 7  ;;  %v388_v19 = vmax.f32 %v356_v43, 0.0  ;;  %v453_v54 = vsel %vm7591_vm3, 0, %v452_v4  ;;  %v1212_v41 = vld [vmem:[#allocation2 + $0x4] sm:$0xf] }
  0x78   : > { %v2371_v29 = vrot.slane %v2370_v11, 4  ;;  %v898_v20 = vrot.slane %v896_v14, 7  ;;  %v389_v22 = vmax.f32 %v357_v16, 0.0  ;;  %454 = vst [vmem:[#allocation2 + $0x30] sm:$0x1] %v453_v54  ;;  %v509_v23 = vsel %vm7601_vm4, 0, %v508_v10 }
  0x79   : > { %v2366_v31 = vsel %vm7739_vm14, %v2361_v18, %v2365_v60  ;;  %v893_v27 = vor.u32 %v891_v8, %v890_v3  ;;  %v894_v32 = vrot.slane %v890_v3, 4  ;;  %510 = vst [vmem:[#allocation2 + $0x38] sm:$0x1] %v509_v23  ;;  %v6327_v36 = vpack.c.bf16 %v388_v19, %v388_v19  ;;  %v455_v62 = vld [vmem:[#allocation2 + $0x3c] sm:$0x1]  ;;  %v7971_v23 = vld [vmem:[%s7564_s16 + $0x30] sm:$0xff]  }
  0x7a   : > { %v2376_v6 = vsel %vm7739_vm14, %v2371_v29, %v2375_v1  ;;  %v2811_v25 = vld [vmem:[#allocation2 + $0xb4] sm:$0xe]  ;;  %v901_v39 = vor.u32 %v899_v15, %v898_v20  ;;  %v903_v37 = vrot.slane %v898_v20, 4  ;;  %v6328_v40 = vpack.c.bf16 %v389_v22, %v389_v22  ;;  %v511_v15 = vld [vmem:[#allocation2 + $0x44] sm:$0x1]  ;;  %v6533_v22 = vld [vmem:[%s7564_s16 + $0x28] sm:$0xff]  }
  0x7b   : > { %v6105_v42 = vcombine.low %v2366_v31, %v2376_v6  ;;  %v2812_v28 = vld [vmem:[#allocation2 + $0xb8] sm:$0xf]  ;;  %v6133_v9 = vrot.slane %v2811_v25, 9  ;;  %v1061_v43 = vsel %vm7643_vm10, %v893_v27, %v1060_v21  ;;  %v684_v44 = vshrl.u32 %v6327_v36, 16 }
  0x7c   : > { %v2965_v46 = vrot.slane %v2812_v28, 5  ;;  %v902_v47 = vsel %vm7635_vm9, %v894_v32, %v901_v39  ;;  %1062 = vst [vmem:[#allocation2 + $0xc0] sm:$0xf] %v1061_v43  ;;  %v1065_v48 = vsel %vm7591_vm3, %v903_v37, %v1064_v34  ;;  %v687_v49 = vshll.u32 %v6327_v36, 16  ;;  %v7981_v36 = vld [vmem:[#allocation2 + $0xc] sm:$0xf] }
  0x7d   : > { %3345 = vmatprep.mubr.bf16.mxu0 %v6105_v42  ;;  %v2813_v50 = vld [vmem:[#allocation2 + $0xbc] sm:$0x1]  ;;  %1063 = vst [vmem:[#allocation2 + $0xc4] sm:$0xf] %v902_v47  ;;  %1066 = vst [vmem:[#allocation2 + $0xc8] sm:$0x1] %v1065_v48  ;;  %v6403_v11 = vunpack.c.l.bf16 %v6532_v45  ;;  %v6404_v14 = vunpack.c.h.bf16 %v6532_v45  ;;  %v6407_v28 = vunpack.c.l.bf16 %v6533_v22  ;;  %v6411_v47 = vunpack.c.l.bf16 %v7971_v23 }
  0x7e   : > { %v686_v51 = vrot.slane %v684_v44, 7  ;;  %v692_v52 = vshrl.u32 %v6328_v40, 16  ;;  %v695_v53 = vshll.u32 %v6328_v40, 16  ;;  %v441_v57 = vsel %vm7591_vm3, 0, %v440_v24  ;;  %3346 = vmatmul.mubr.bf16.gmra.mrb[8].mxu0 %v7332_v0 }
  0x7f   : > { %v2966_v58 = vsel %vm7673_vm11, %v6133_v9, %v2965_v46  ;;  %v2967_v59 = vrot.slane %v2965_v46, 4  ;;  %v2968_v13 = vrot.slane %v2813_v50, 5  ;;  %442 = vst [vmem:[#allocation2] sm:$0x1] %v441_v57  ;;  %v497_v60 = vsel %vm7601_vm4, 0, %v496_v38 }
  0x80   : > { %v689_v1 = vor.u32 %v687_v49, %v686_v51  ;;  %v690_v2 = vrot.slane %v686_v51, 4  ;;  %v694_v4 = vrot.slane %v692_v52, 7  ;;  %v976_v5 = vld [vmem:[#allocation2 + $0x30] sm:$0xf]  ;;  %498 = vst [vmem:[#allocation2 + $0x8] sm:$0x1] %v497_v60  ;;  %v319_v20 = vmul.f32 %v7911_v61, %v6403_v11 }
  0x81   : > { %v1272_v26 = vshll.u32 %v1212_v41, 16  ;;  %v2969_v7 = vsel %vm7673_vm11, %v2967_v59, %v2968_v13  ;;  %v980_v8 = vld [vmem:[#allocation2 + $0x38] sm:$0x1]  ;;  %v1276_v10 = vshrl.u32 %v1212_v41, 16  ;;  %v320_v21 = vmul.f32 %v7911_v61, %v6404_v14 }
  0x82   : > { %v6149_v16 = vcombine.low %v2966_v58, %v2969_v7  ;;  %v697_v18 = vor.u32 %v695_v53, %v694_v4  ;;  %v699_v3 = vrot.slane %v694_v4, 4  ;;  %v977_v19 = vsel %vm7643_vm10, %v689_v1, %v976_v5 }
  0x83   : > { %978 = vst [vmem:[#allocation2 + $0x30] sm:$0xf] %v977_v19  ;;  %v7965_v54 = vrot.slane %v1272_v26, 5  ;;  %v1278_v29 = vrot.slane %v1276_v10, 4  ;;  %v2814_v24 = vld [vmem:[#allocation2 + $0xc0] sm:$0xe]  ;;  %v358_v39 = vadd.f32 %v7893_v56, %v319_v20  ;;  %v359_v37 = vadd.f32 %v7893_v56, %v320_v21 }
  0x84   : > { %7011 = vmatprep.mubr.bf16.mxu1 %v6149_v16  ;;  %v698_v31 = vsel %vm7635_vm9, %v690_v2, %v697_v18  ;;  %v981_v27 = vsel %vm7591_vm3, %v699_v3, %v980_v8  ;;  %v456_v32 = vsel %vm7591_vm3, 0, %v455_v62  ;;  %v512_v34 = vsel %vm7601_vm4, 0, %v511_v15  ;;  %v2815_v38 = vld [vmem:[#allocation2 + $0xc4] sm:$0xf]  ;;  %v2816_v6 = vld [vmem:[#allocation2 + $0xc8] sm:$0x1] }
  0x85   : > { %v6134_v0 = vrot.slane %v2814_v24, 9  ;;  %979 = vst [vmem:[#allocation2 + $0x34] sm:$0xf] %v698_v31  ;;  %982 = vst [vmem:[#allocation2 + $0x38] sm:$0x1] %v981_v27  ;;  %v1279_v25 = vor.u32 %v1278_v29, %v7965_v54  ;;  %v2972_v40 = vrot.slane %v2815_v38, 5  ;;  %v6408_v9 = vunpack.c.h.bf16 %v6533_v22 }
  0x86   : > { %457 = vst [vmem:[#allocation2 + $0x3c] sm:$0x1] %v456_v32  ;;  %513 = vst [vmem:[#allocation2 + $0x44] sm:$0x1] %v512_v34  ;;  %v2975_v41 = vrot.slane %v2816_v6, 5  ;;  %v390_v51 = vmax.f32 %v358_v39, 0.0  ;;  %v321_v14 = vmul.f32 %v7911_v61, %v6407_v28 }
  0x87   : > { %v1211_v42 = vld [vmem:[#allocation2] sm:$0xf]  ;;  %v1213_v43 = vld [vmem:[#allocation2 + $0x8] sm:$0x1]  ;;  %v1280_v46 = vrot.slane %v1279_v25, 4  ;;  %v2973_v48 = vsel %vm7673_vm11, %v6134_v0, %v2972_v40  ;;  %v2974_v49 = vrot.slane %v2972_v40, 4  ;;  %v322_v15 = vmul.f32 %v7911_v61, %v6408_v9 }
  0x88   : > { %v1263_v44 = vshrl.u32 %v1211_v42, 16  ;;  %v1266_v45 = vshll.u32 %v1211_v42, 16  ;;  %v1282_v50 = vshll.u32 %v1213_v43, 16  ;;  %v391_v57 = vmax.f32 %v359_v37, 0.0  ;;  %v1215_v34 = vld [vmem:[#allocation2 + $0x10] sm:$0xf] }
  0x89   : > { %v1287_v58 = vshrl.u32 %v7981_v36, 16  ;;  %v2976_v59 = vsel %vm7673_vm11, %v2974_v49, %v2975_v41  ;;  %v6329_v62 = vpack.c.bf16 %v390_v51, %v390_v51  ;;  %v1290_v1 = vshll.u32 %v7981_v36, 16  ;;  %v7340_v6 = vld [vmem:[#allocation2] sm:$0xff]   ;;  %v1216_v37 = vld [vmem:[#allocation2 + $0x14] sm:$0x1]  ;;  %v7346_v49 = vld [vmem:[%s8955_s3 + $0x88] sm:$0xff]  }
  0x8a   : > { %v1265_v52 = vrot.slane %v1263_v44, 4  ;;  %v1268_v53 = vrot.slane %v1266_v45, 5  ;;  %v2266_v13 = vld [vmem:[#allocation2 + $0x30] sm:$0xf]  ;;  %v1284_v60 = vrot.slane %v1282_v50, 5  ;;  %v6150_v2 = vcombine.low %v2973_v48, %v2976_v59 }
  0x8b   : > { %v2378_v4 = vshrl.u32 %v2266_v13, 16  ;;  %v2381_v5 = vshll.u32 %v2266_v13, 16  ;;  %v6330_v11 = vpack.c.bf16 %v391_v57, %v391_v57  ;;  %v701_v21 = vshrl.u32 %v6329_v62, 16  ;;  %v458_v48 = vld [vmem:[#allocation2 + $0x48] sm:$0x1] }
  0x8c   : > { %v1269_v26 = vor.u32 %v1268_v53, %v1265_v52  ;;  %v2267_v7 = vld [vmem:[#allocation2 + $0x34] sm:$0xf]  ;;  %v2268_v8 = vld [vmem:[#allocation2 + $0x38] sm:$0x1]  ;;  %v1285_v10 = vsel %vm7739_vm14, %v1280_v46, %v1284_v60  ;;  %7012 = vmatmul.mubr.bf16.gmra.mrb[12].mxu1 %v6150_v2  ;;  %v704_v22 = vshll.u32 %v6329_v62, 16  ;;  %v1289_v45 = vrot.slane %v1287_v58, 4 }
  0x8d   : > { %v2380_v16 = vrot.slane %v2378_v4, 4  ;;  %v2383_v18 = vrot.slane %v2381_v5, 5  ;;  %v2387_v3 = vshll.u32 %v2267_v7, 16  ;;  %v2391_v19 = vshrl.u32 %v2267_v7, 16  ;;  %v983_v39 = vld [vmem:[#allocation2 + $0x3c] sm:$0xf] }
  0x8e   : > { %v2397_v29 = vshll.u32 %v2268_v8, 16  ;;  %v1270_v20 = vrot.slane %v1269_v26, 4  ;;  %v709_v32 = vshrl.u32 %v6330_v11, 16  ;;  %v703_v0 = vrot.slane %v701_v21, 7  ;;  %v987_v9 = vld [vmem:[#allocation2 + $0x44] sm:$0x1] }
  0x8f   : > { %v2384_v24 = vor.u32 %v2383_v18, %v2380_v16  ;;  %v2389_v31 = vrot.slane %v2387_v3, 5  ;;  %v2393_v27 = vrot.slane %v2391_v19, 4  ;;  %v712_v25 = vshll.u32 %v6330_v11, 16  ;;  %v514_v58 = vld [vmem:[#allocation2 + $0x50] sm:$0x1] }
  0x90   : > { %v2399_v36 = vrot.slane %v2397_v29, 5  ;;  %v1275_v38 = vsel %vm7739_vm14, %v1270_v20, %v7965_v54  ;;  %v711_v28 = vrot.slane %v709_v32, 7  ;;  %v706_v43 = vor.u32 %v704_v22, %v703_v0  ;;  %v1217_v60 = vld [vmem:[#allocation2 + $0x18] sm:$0xf]  ;;  %v1218_v26 = vld [vmem:[#allocation2 + $0x1c] sm:$0xf] }
  0x91   : > { %v2385_v40 = vrot.slane %v2384_v24, 4  ;;  %v2394_v41 = vor.u32 %v2393_v27, %v2389_v31  ;;  %v6039_v42 = vcombine.low %v1275_v38, %v1285_v10  ;;  %v707_v44 = vrot.slane %v703_v0, 4  ;;  %v1219_v29 = vld [vmem:[#allocation2 + $0x20] sm:$0x1]  ;;  %v7351_v20 = vld [vmem:[%s8955_s3 + $0x90] sm:$0xff]  }
  0x92   : > { %v1292_v46 = vrot.slane %v1290_v1, 5  ;;  %v714_v51 = vor.u32 %v712_v25, %v711_v28  ;;  %v716_v52 = vrot.slane %v711_v28, 4  ;;  %v984_v53 = vsel %vm7643_vm10, %v706_v43, %v983_v39  ;;  %v7337_v1 = vld [vmem:[#allocation2 + $0x30] sm:$0xff]  }
  0x93   : > { %v2390_v54 = vsel %vm7739_vm14, %v2385_v40, %v2389_v31  ;;  %v2395_v50 = vrot.slane %v2394_v41, 4  ;;  %3795 = vmatprep.mubr.bf16.mxu1 %v6039_v42  ;;  %v1296_v59 = vshll.u32 %v1215_v34, 16  ;;  %v1300_v13 = vshrl.u32 %v1215_v34, 16  ;;  %985 = vst [vmem:[#allocation2 + $0x3c] sm:$0xf] %v984_v53  ;;  %v7356_v40 = vld [vmem:[%s8955_s3 + $0x98] sm:$0xff]  }
  0x94   : > { %v1293_v57 = vor.u32 %v1292_v46, %v1289_v45  ;;  %3796 = vmatmul.mubr.bf16.vlgmr.msra.gmra.mrb[16].mxu1 %v7340_v6  ;;  %v715_v2 = vsel %vm7635_vm9, %v707_v44, %v714_v51  ;;  %v988_v4 = vsel %vm7591_vm3, %v716_v52, %v987_v9  ;;  %v1306_v5 = vshll.u32 %v1216_v37, 16  ;;  %v7343_v6 = vld [vmem:[#allocation2 + $0xc] sm:$0xff]  }
  0x95   : > { %v2400_v62 = vsel %vm7739_vm14, %v2395_v50, %v2399_v36  ;;  %986 = vst [vmem:[#allocation2 + $0x40] sm:$0xf] %v715_v2  ;;  %989 = vst [vmem:[#allocation2 + $0x44] sm:$0x1] %v988_v4  ;;  %7016 = vmatpush3.bf16.msra.mxu1 %v7842_v55  ;;  %v1298_v10 = vrot.slane %v1296_v59, 5  ;;  %v1302_v11 = vrot.slane %v1300_v13, 4  ;;  %v360_v18 = vadd.f32 %v7893_v56, %v321_v14 }
  0x96   : > { %v6106_v7 = vcombine.low %v2390_v54, %v2400_v62  ;;  %v1294_v8 = vrot.slane %v1293_v57, 4  ;;  %v1308_v16 = vrot.slane %v1306_v5, 5  ;;  %v361_v3 = vadd.f32 %v7893_v56, %v322_v15  ;;  %7017 = vmatprep.subr.bf16.mxu1 %v7346_v49 }
  0x97   : > { %v459_v19 = vsel %vm7591_vm3, 0, %v458_v48  ;;  %v1303_v21 = vor.u32 %v1302_v11, %v1298_v10  ;;  %v515_v14 = vsel %vm7601_vm4, 0, %v514_v58  ;;  %v1311_v22 = vshrl.u32 %v1217_v60, 16 }
  0x98   : > { %3353 = vmatprep.mubr.bf16.mxu0 %v6106_v7  ;;  %v1299_v55 = vsel %vm7739_vm14, %v1294_v8, %v1298_v10  ;;  %460 = vst [vmem:[#allocation2 + $0x48] sm:$0x1] %v459_v19  ;;  %v392_v15 = vmax.f32 %v360_v18, 0.0  ;;  %v393_v24 = vmax.f32 %v361_v3, 0.0  ;;  %516 = vst [vmem:[#allocation2 + $0x50] sm:$0x1] %v515_v14  ;;  %v6412_v43 = vunpack.c.h.bf16 %v7971_v23 }
  0x99   : > { %3354 = vmatmul.mubr.bf16.gmra.mrb[12].mxu0 %v7337_v1  ;;  %v1314_v31 = vshll.u32 %v1217_v60, 16  ;;  %v1320_v27 = vshll.u32 %v1218_v26, 16  ;;  %v1304_v32 = vrot.slane %v1303_v21, 4  ;;  %v1313_v34 = vrot.slane %v1311_v22, 4  ;;  %7018 = vmatpush3.bf16.msra.mxu1 %v7346_v49  ;;  %v7361_v60 = vld [vmem:[%s8955_s3 + $0xa0] sm:$0xff]   ;;  %v7366_v10 = vld [vmem:[%s8955_s3 + $0xa8] sm:$0xff]  }
  0x9a   : > { %v1324_v36 = vshrl.u32 %v1218_v26, 16  ;;  %v1330_v38 = vshll.u32 %v1219_v29, 16  ;;  %v6331_v0 = vpack.c.bf16 %v392_v15, %v392_v15  ;;  %v6332_v25 = vpack.c.bf16 %v393_v24, %v393_v24  ;;  %7019 = vmatprep.subr.bf16.mxu1 %v7351_v20  ;;  %v2269_v41 = vld [vmem:[#allocation2 + $0x3c] sm:$0xf] }
  0x9b   : > { %v1316_v39 = vrot.slane %v1314_v31, 5  ;;  %v1322_v37 = vrot.slane %v1320_v27, 5  ;;  %v1309_v42 = vsel %vm7739_vm14, %v1304_v32, %v1308_v16  ;;  %v2402_v46 = vshrl.u32 %v2269_v41, 16  ;;  %v7345_v29 = vld [vmem:[#allocation2 + $0x18] sm:$0xff]   ;;  %v1220_v31 = vld [vmem:[#allocation2 + $0x24] sm:$0xf] }
  0x9c   : > { %v1326_v28 = vrot.slane %v1324_v36, 4  ;;  %v1332_v9 = vrot.slane %v1330_v38, 5  ;;  %v2270_v44 = vld [vmem:[#allocation2 + $0x40] sm:$0xf]  ;;  %v2271_v45 = vld [vmem:[#allocation2 + $0x44] sm:$0x1]  ;;  %v6040_v49 = vcombine.low %v1299_v55, %v1309_v42 }
  0x9d   : > { %v2405_v48 = vshll.u32 %v2269_v41, 16  ;;  %v1317_v54 = vor.u32 %v1316_v39, %v1313_v34  ;;  %v2411_v50 = vshll.u32 %v2270_v44, 16  ;;  %v2415_v51 = vshrl.u32 %v2270_v44, 16  ;;  %7020 = vmatpush3.bf16.msra.mxu1 %v7351_v20  ;;  %v461_v55 = vld [vmem:[#allocation2 + $0x54] sm:$0x1]  ;;  %v6535_v23 = vld [vmem:[%s7564_s16 + $0x38] sm:$0xff]  }
  0x9e   : > { %v2421_v52 = vshll.u32 %v2271_v45, 16  ;;  %v1327_v53 = vor.u32 %v1326_v28, %v1322_v37  ;;  %v2404_v57 = vrot.slane %v2402_v46, 4  ;;  %3803 = vmatprep.mubr.bf16.mxu1 %v6040_v49  ;;  %v718_v13 = vshrl.u32 %v6331_v0, 16  ;;  %7021 = vmatprep.subr.bf16.mxu1 %v7356_v40  ;;  %v517_v21 = vld [vmem:[#allocation2 + $0x5c] sm:$0x1]  ;;  %v7371_v46 = vld [vmem:[%s8955_s3 + $0xb0] sm:$0xff]  }
  0x9f   : > { %v2407_v59 = vrot.slane %v2405_v48, 5  ;;  %v721_v58 = vshll.u32 %v6331_v0, 16  ;;  %v2413_v62 = vrot.slane %v2411_v50, 5  ;;  %v2417_v1 = vrot.slane %v2415_v51, 4  ;;  %3804 = vmatmul.mubr.bf16.gmra.mrb[20].mxu1 %v7343_v6  ;;  %v990_v18 = vld [vmem:[#allocation2 + $0x48] sm:$0xf] }
  0xa0   : > { %v2423_v2 = vrot.slane %v2421_v52, 5  ;;  %v726_v4 = vshrl.u32 %v6332_v25, 16  ;;  %v720_v26 = vrot.slane %v718_v13, 7  ;;  %v729_v7 = vshll.u32 %v6332_v25, 16  ;;  %v994_v3 = vld [vmem:[#allocation2 + $0x50] sm:$0x1] }
  0xa1   : > { %v2408_v5 = vor.u32 %v2407_v59, %v2404_v57  ;;  %v1318_v8 = vrot.slane %v1317_v54, 4  ;;  %v2418_v11 = vor.u32 %v2417_v1, %v2413_v62  ;;  %v1328_v19 = vrot.slane %v1327_v53, 4  ;;  %7022 = vmatpush3.bf16.msra.mxu1 %v7356_v40  ;;  %v7342_v38 = vld [vmem:[#allocation2 + $0x3c] sm:$0xff]   ;;  %v1221_v39 = vld [vmem:[#allocation2 + $0x28] sm:$0xf] }
  0xa2   : > { %v728_v16 = vrot.slane %v726_v4, 7  ;;  %v323_v20 = vmul.f32 %v7911_v61, %v6411_v47  ;;  %v723_v22 = vor.u32 %v721_v58, %v720_v26  ;;  %v724_v15 = vrot.slane %v720_v26, 4  ;;  %7023 = vmatprep.subr.bf16.mxu1 %v7361_v60  ;;  %v7372_v59 = vld [vmem:[%s8955_s3 + $0x1c0] sm:$0xff]  }
  0xa3   : > { %v2409_v14 = vrot.slane %v2408_v5, 4  ;;  %v1323_v24 = vsel %vm7739_vm14, %v1318_v8, %v1322_v37  ;;  %v2419_v27 = vrot.slane %v2418_v11, 4  ;;  %v1333_v36 = vsel %vm7739_vm14, %v1328_v19, %v1332_v9  ;;  %v1222_v37 = vld [vmem:[#allocation2 + $0x2c] sm:$0x1]  ;;  %6831 = vmatprep.subr.bf16.mxu0 %v7372_v59 }
  0xa4   : > { %v731_v32 = vor.u32 %v729_v7, %v728_v16  ;;  %v733_v34 = vrot.slane %v728_v16, 4  ;;  %v991_v6 = vsel %vm7643_vm10, %v723_v22, %v990_v18  ;;  %v6041_v0 = vcombine.low %v1323_v24, %v1333_v36 }
  0xa5   : > { %v2414_v47 = vsel %vm7739_vm14, %v2409_v14, %v2413_v62  ;;  %v324_v25 = vmul.f32 %v7911_v61, %v6412_v43  ;;  %v2424_v40 = vsel %vm7739_vm14, %v2419_v27, %v2423_v2  ;;  %992 = vst [vmem:[#allocation2 + $0x48] sm:$0xf] %v991_v6  ;;  %v362_v28 = vadd.f32 %v7893_v56, %v323_v20 }
  0xa6   : > { %v732_v41 = vsel %vm7635_vm9, %v724_v15, %v731_v32  ;;  %v995_v42 = vsel %vm7591_vm3, %v733_v34, %v994_v3  ;;  %7024 = vmatpush3.bf16.msra.mxu1 %v7361_v60  ;;  %v6107_v9 = vcombine.low %v2414_v47, %v2424_v40  ;;  %3811 = vmatprep.mubr.bf16.mxu1 %v6041_v0  ;;  %v462_v44 = vsel %vm7591_vm3, 0, %v461_v55  ;;  %v464_v0 = vld [vmem:[#allocation2 + $0x60] sm:$0x1] }
  0xa7   : > { %993 = vst [vmem:[#allocation2 + $0x4c] sm:$0xf] %v732_v41  ;;  %996 = vst [vmem:[#allocation2 + $0x50] sm:$0x1] %v995_v42  ;;  %v363_v43 = vadd.f32 %v7893_v56, %v324_v25  ;;  %v518_v45 = vsel %vm7601_vm4, 0, %v517_v21  ;;  %7025 = vmatprep.subr.bf16.mxu1 %v7366_v10  ;;  %3812 = vmatmul.mubr.bf16.gmra.mrb[24].mxu1 %v7345_v29  ;;  %v394_v48 = vmax.f32 %v362_v28, 0.0  ;;  %v6415_v57 = vunpack.c.l.bf16 %v6535_v23 }
  0xa8   : > { %463 = vst [vmem:[#allocation2 + $0x54] sm:$0x1] %v462_v44  ;;  %519 = vst [vmem:[#allocation2 + $0x5c] sm:$0x1] %v518_v45  ;;  %v1335_v49 = vshrl.u32 %v1220_v31, 16  ;;  %v1338_v54 = vshll.u32 %v1220_v31, 16  ;;  %3361 = vmatprep.mubr.bf16.mxu0 %v6107_v9  ;;  %v6416_v4 = vunpack.c.h.bf16 %v6535_v23 }
  0xa9   : > { %v1344_v50 = vshll.u32 %v1221_v39, 16  ;;  %v395_v51 = vmax.f32 %v363_v43, 0.0  ;;  %v1348_v52 = vshrl.u32 %v1221_v39, 16  ;;  %v1354_v53 = vshll.u32 %v1222_v37, 16  ;;  %3362 = vmatmul.mubr.bf16.gmra.mrb[16].mxu0 %v7342_v38  ;;  %v520_v42 = vld [vmem:[#allocation2 + $0x68] sm:$0x1] }
  0xaa   : > { %v6333_v13 = vpack.c.bf16 %v394_v48, %v394_v48  ;;  %v1337_v58 = vrot.slane %v1335_v49, 4  ;;  %v1340_v60 = vrot.slane %v1338_v54, 5  ;;  %7026 = vmatpush3.bf16.msra.mxu1 %v7366_v10  ;;  %v325_v8 = vmul.f32 %v7911_v61, %v6415_v57  ;;  %v7348_v44 = vld [vmem:[#allocation2 + $0x24] sm:$0xff]   ;;  %v1223_v45 = vld [vmem:[#allocation2 + $0x30] sm:$0xf] }
  0xab   : > { %v8068_v62 = vrot.slane %v1344_v50, 5  ;;  %v6334_v1 = vpack.c.bf16 %v395_v51, %v395_v51  ;;  %v1350_v2 = vrot.slane %v1348_v52, 4  ;;  %7027 = vmatprep.subr.bf16.mxu1 %v7371_v46  ;;  %v1356_v7 = vrot.slane %v1354_v53, 5  ;;  %v1224_v57 = vld [vmem:[#allocation2 + $0x34] sm:$0xf] }
  0xac   : > { %v735_v5 = vshrl.u32 %v6333_v13, 16  ;;  %v738_v26 = vshll.u32 %v6333_v13, 16  ;;  %v2272_v11 = vld [vmem:[#allocation2 + $0x48] sm:$0xf]  ;;  %v1341_v3 = vor.u32 %v1340_v60, %v1337_v58  ;;  %v326_v19 = vmul.f32 %v7911_v61, %v6416_v4 }
  0xad   : > { %v743_v16 = vshrl.u32 %v6334_v1, 16  ;;  %v746_v18 = vshll.u32 %v6334_v1, 16  ;;  %v2426_v55 = vshrl.u32 %v2272_v11, 16  ;;  %v2429_v10 = vshll.u32 %v2272_v11, 16 }
  0xae   : > { %v2273_v29 = vld [vmem:[#allocation2 + $0x4c] sm:$0xf]  ;;  %v2274_v20 = vld [vmem:[#allocation2 + $0x50] sm:$0x1]  ;;  %v1351_v21 = vor.u32 %v1350_v2, %v8068_v62  ;;  %v364_v14 = vadd.f32 %v7893_v56, %v325_v8  ;;  %7028 = vmatpush3.bf16.msra.mxu1 %v7371_v46  ;;  %v365_v31 = vadd.f32 %v7893_v56, %v326_v19  ;;  %v737_v34 = vrot.slane %v735_v5, 7 }
  0xaf   : > { %v2435_v22 = vshll.u32 %v2273_v29, 16  ;;  %v2439_v15 = vshrl.u32 %v2273_v29, 16  ;;  %v2445_v24 = vshll.u32 %v2274_v20, 16  ;;  %v2428_v27 = vrot.slane %v2426_v55, 4  ;;  %v997_v38 = vld [vmem:[#allocation2 + $0x54] sm:$0xf] }
  0xb0   : > { %v2431_v32 = vrot.slane %v2429_v10, 5  ;;  %v745_v36 = vrot.slane %v743_v16, 7  ;;  %v1342_v6 = vrot.slane %v1341_v3, 4  ;;  %v740_v39 = vor.u32 %v738_v26, %v737_v34  ;;  %v1001_v41 = vld [vmem:[#allocation2 + $0x5c] sm:$0x1]  ;;  %v7344_v2 = vld [vmem:[#allocation2 + $0x48] sm:$0xff]  }
  0xb1   : > { %v2437_v23 = vrot.slane %v2435_v22, 5  ;;  %v2441_v61 = vrot.slane %v2439_v15, 4  ;;  %v2447_v47 = vrot.slane %v2445_v24, 5  ;;  %v741_v37 = vrot.slane %v737_v34, 4  ;;  %v1225_v8 = vld [vmem:[#allocation2 + $0x38] sm:$0x1] }
  0xb2   : > { %v2432_v25 = vor.u32 %v2431_v32, %v2428_v27  ;;  %v748_v40 = vor.u32 %v746_v18, %v745_v36  ;;  %v750_v9 = vrot.slane %v745_v36, 4  ;;  %v1347_v56 = vsel %vm7739_vm14, %v1342_v6, %v8068_v62  ;;  %v8092_v62 = vld [vmem:[#allocation2 + $0x6c] sm:$0xf] }
  0xb3   : > { %v2442_v28 = vor.u32 %v2441_v61, %v2437_v23  ;;  %v1352_v43 = vrot.slane %v1351_v21, 4  ;;  %v998_v49 = vsel %vm7643_vm10, %v740_v39, %v997_v38  ;;  %v396_v54 = vmax.f32 %v364_v14, 0.0 }
  0xb4   : > { %v2433_v46 = vrot.slane %v2432_v25, 4  ;;  %v749_v48 = vsel %vm7635_vm9, %v741_v37, %v748_v40  ;;  %999 = vst [vmem:[#allocation2 + $0x54] sm:$0xf] %v998_v49  ;;  %v1002_v51 = vsel %vm7591_vm3, %v750_v9, %v1001_v41  ;;  %v397_v53 = vmax.f32 %v365_v31, 0.0 }
  0xb5   : > { %v2443_v50 = vrot.slane %v2442_v28, 4  ;;  %1000 = vst [vmem:[#allocation2 + $0x58] sm:$0xf] %v749_v48  ;;  %v1357_v52 = vsel %vm7739_vm14, %v1352_v43, %v1356_v7  ;;  %1003 = vst [vmem:[#allocation2 + $0x5c] sm:$0x1] %v1002_v51  ;;  %v465_v58 = vsel %vm7591_vm3, 0, %v464_v0  ;;  %v6335_v4 = vpack.c.bf16 %v396_v54, %v396_v54 }
  0xb6   : > { %v2438_v59 = vsel %vm7739_vm14, %v2433_v46, %v2437_v23  ;;  %v6042_v13 = vcombine.low %v1347_v56, %v1357_v52  ;;  %v521_v60 = vsel %vm7601_vm4, 0, %v520_v42  ;;  %466 = vst [vmem:[#allocation2 + $0x60] sm:$0x1] %v465_v58  ;;  %v6336_v5 = vpack.c.bf16 %v397_v53, %v397_v53  ;;  %v2282_v48 = vld [vmem:[#allocation2 + $0x70] sm:$0xf] }
  0xb7   : > { %v2448_v1 = vsel %vm7739_vm14, %v2443_v50, %v2447_v47  ;;  %522 = vst [vmem:[#allocation2 + $0x68] sm:$0x1] %v521_v60  ;;  %v1359_v26 = vshrl.u32 %v1223_v45, 16  ;;  %v1362_v11 = vshll.u32 %v1223_v45, 16  ;;  %v1368_v16 = vshll.u32 %v1224_v57, 16 }
  0xb8   : > { %v6108_v7 = vcombine.low %v2438_v59, %v2448_v1  ;;  %3819 = vmatprep.mubr.bf16.mxu1 %v6042_v13  ;;  %v1372_v18 = vshrl.u32 %v1224_v57, 16  ;;  %v752_v3 = vshrl.u32 %v6335_v4, 16  ;;  %v755_v19 = vshll.u32 %v6335_v4, 16  ;;  %v2283_v52 = vld [vmem:[#allocation2 + $0x74] sm:$0x1] }
  0xb9   : > { %3820 = vmatmul.mubr.bf16.gmra.mrb[28].mxu1 %v7348_v44  ;;  %v760_v29 = vshrl.u32 %v6336_v5, 16  ;;  %v763_v20 = vshll.u32 %v6336_v5, 16  ;;  %v1361_v55 = vrot.slane %v1359_v26, 4  ;;  %v1364_v10 = vrot.slane %v1362_v11, 5  ;;  %v1226_v13 = vld [vmem:[#allocation2 + $0x3c] sm:$0xf] }
  0xba   : > { %3369 = vmatprep.mubr.bf16.mxu0 %v6108_v7  ;;  %v1370_v21 = vrot.slane %v1368_v16, 5  ;;  %v1374_v14 = vrot.slane %v1372_v18, 4  ;;  %v754_v22 = vrot.slane %v752_v3, 7  ;;  %v1378_v24 = vshll.u32 %v1225_v8, 16  ;;  %v1227_v58 = vld [vmem:[#allocation2 + $0x40] sm:$0xf] }
  0xbb   : > { %3370 = vmatmul.mubr.bf16.gmra.mrb[20].mxu0 %v7344_v2  ;;  %v762_v15 = vrot.slane %v760_v29, 7  ;;  %v2498_v31 = vshrl.u32 %v8092_v62, 16  ;;  %v2275_v27 = vld [vmem:[#allocation2 + $0x54] sm:$0xf]  ;;  %v1365_v34 = vor.u32 %v1364_v10, %v1361_v55  ;;  %v2501_v17 = vshll.u32 %v8092_v62, 16 }
  0xbc   : > { %v2276_v32 = vld [vmem:[#allocation2 + $0x58] sm:$0xf]  ;;  %v1375_v36 = vor.u32 %v1374_v14, %v1370_v21  ;;  %v2277_v23 = vld [vmem:[#allocation2 + $0x5c] sm:$0x1]  ;;  %v2450_v61 = vshrl.u32 %v2275_v27, 16  ;;  %v2453_v47 = vshll.u32 %v2275_v27, 16  ;;  %v757_v25 = vor.u32 %v755_v19, %v754_v22 }
  0xbd   : > { %v2459_v38 = vshll.u32 %v2276_v32, 16  ;;  %v2463_v6 = vshrl.u32 %v2276_v32, 16  ;;  %v2469_v0 = vshll.u32 %v2277_v23, 16  ;;  %v758_v39 = vrot.slane %v754_v22, 4  ;;  %v1004_v9 = vld [vmem:[#allocation2 + $0x60] sm:$0xf] }
  0xbe   : > { %v765_v37 = vor.u32 %v763_v20, %v762_v15  ;;  %v2452_v40 = vrot.slane %v2450_v61, 4  ;;  %v2455_v41 = vrot.slane %v2453_v47, 5  ;;  %v767_v44 = vrot.slane %v762_v15, 4  ;;  %v1008_v46 = vld [vmem:[#allocation2 + $0x68] sm:$0x1]  ;;  %v7350_v5 = vld [vmem:[#allocation2 + $0x30] sm:$0xff]  }
  0xbf   : > { %v2461_v42 = vrot.slane %v2459_v38, 5  ;;  %v2465_v28 = vrot.slane %v2463_v6, 4  ;;  %v2471_v56 = vrot.slane %v2469_v0, 5  ;;  %v1005_v45 = vsel %vm7643_vm10, %v757_v25, %v1004_v9  ;;  %v7347_v16 = vld [vmem:[#allocation2 + $0x54] sm:$0xff]  }
  0xc0   : > { %v766_v43 = vsel %vm7635_vm9, %v758_v39, %v765_v37  ;;  %v2456_v49 = vor.u32 %v2455_v41, %v2452_v40  ;;  %1006 = vst [vmem:[#allocation2 + $0x60] sm:$0xf] %v1005_v45  ;;  %v1366_v50 = vrot.slane %v1365_v34, 4  ;;  %v1376_v51 = vrot.slane %v1375_v36, 4  ;;  %v1228_v37 = vld [vmem:[#allocation2 + $0x44] sm:$0x1] }
  0xc1   : > { %v2466_v54 = vor.u32 %v2465_v28, %v2461_v42  ;;  %1007 = vst [vmem:[#allocation2 + $0x64] sm:$0xf] %v766_v43  ;;  %v1009_v53 = vsel %vm7591_vm3, %v767_v44, %v1008_v46  ;;  %v1380_v57 = vrot.slane %v1378_v24, 5  ;;  %v2500_v59 = vrot.slane %v2498_v31, 4  ;;  %v2284_v9 = vld [vmem:[#allocation2 + $0x78] sm:$0xf] }
  0xc2   : > { %v2457_v33 = vrot.slane %v2456_v49, 4  ;;  %1010 = vst [vmem:[#allocation2 + $0x68] sm:$0x1] %v1009_v53  ;;  %v1371_v1 = vsel %vm7739_vm14, %v1366_v50, %v1370_v21  ;;  %v2507_v2 = vshll.u32 %v2282_v48, 16  ;;  %v2503_v26 = vrot.slane %v2501_v17, 5 }
  0xc3   : > { %v2467_v60 = vrot.slane %v2466_v54, 4  ;;  %v1381_v4 = vsel %vm7739_vm14, %v1376_v51, %v1380_v57  ;;  %v2511_v7 = vshrl.u32 %v2282_v48, 16  ;;  %v2517_v8 = vshll.u32 %v2283_v52, 16  ;;  %v2286_v51 = vld [vmem:[#allocation2 + $0x80] sm:$0x1] }
  0xc4   : > { %v2462_v11 = vsel %vm7739_vm14, %v2457_v33, %v2461_v42  ;;  %v6043_v18 = vcombine.low %v1371_v1, %v1381_v4  ;;  %v2509_v3 = vrot.slane %v2507_v2, 5  ;;  %v2504_v29 = vor.u32 %v2503_v26, %v2500_v59 }
  0xc5   : > { %v2472_v62 = vsel %vm7739_vm14, %v2467_v60, %v2471_v56  ;;  %v2513_v20 = vrot.slane %v2511_v7, 4  ;;  %v2519_v55 = vrot.slane %v2517_v8, 5  ;;  %v1383_v10 = vshrl.u32 %v1226_v13, 16  ;;  %v2285_v56 = vld [vmem:[#allocation2 + $0x7c] sm:$0xf] }
  0xc6   : > { %v6109_v19 = vcombine.low %v2462_v11, %v2472_v62  ;;  %3827 = vmatprep.mubr.bf16.mxu1 %v6043_v18  ;;  %v1386_v21 = vshll.u32 %v1226_v13, 16  ;;  %v1392_v14 = vshll.u32 %v1227_v58, 16  ;;  %v2505_v23 = vrot.slane %v2504_v29, 4  ;;  %v1229_v60 = vld [vmem:[#allocation2 + $0x48] sm:$0xf] }
  0xc7   : > { %v2278_v22 = vld [vmem:[#allocation2 + $0x60] sm:$0xf]  ;;  %3828 = vmatmul.mubr.bf16.gmra.mrb[32].mxu1 %v7350_v5  ;;  %v2514_v24 = vor.u32 %v2513_v20, %v2509_v3  ;;  %v1385_v47 = vrot.slane %v1383_v10, 4  ;;  %v1396_v38 = vshrl.u32 %v1227_v58, 16  ;;  %v1402_v50 = vshll.u32 %v1228_v37, 16 }
  0xc8   : > { %3377 = vmatprep.mubr.bf16.mxu0 %v6109_v19  ;;  %v2279_v15 = vld [vmem:[#allocation2 + $0x64] sm:$0xf]  ;;  %v2474_v31 = vshrl.u32 %v2278_v22, 16  ;;  %v2477_v27 = vshll.u32 %v2278_v22, 16  ;;  %v2510_v41 = vsel %vm7739_vm14, %v2505_v23, %v2509_v3  ;;  %v1388_v28 = vrot.slane %v1386_v21, 5  ;;  %v7382_v21 = vld [vmem:[%s8955_s3 + $0xb8] sm:$0xff]  }
  0xc9   : > { %3378 = vmatmul.mubr.bf16.gmra.mrb[24].mxu0 %v7347_v16  ;;  %v2483_v32 = vshll.u32 %v2279_v15, 16  ;;  %v2487_v34 = vshrl.u32 %v2279_v15, 16  ;;  %v2280_v36 = vld [vmem:[#allocation2 + $0x68] sm:$0x1]  ;;  %v2515_v61 = vrot.slane %v2514_v24, 4  ;;  %v1394_v46 = vrot.slane %v1392_v14, 5  ;;  %7029 = vmatprep.subr.bf16.mxu1 %v7382_v21 }
  0xca   : > { %v2476_v6 = vrot.slane %v2474_v31, 4  ;;  %v2479_v0 = vrot.slane %v2477_v27, 5  ;;  %v2493_v40 = vshll.u32 %v2280_v36, 16  ;;  %v1389_v49 = vor.u32 %v1388_v28, %v1385_v47  ;;  %v7349_v4 = vld [vmem:[#allocation2 + $0x60] sm:$0xff]   ;;  %v1230_v7 = vld [vmem:[#allocation2 + $0x4c] sm:$0xf]  ;;  %7030 = vmatpush3.bf16.msra.mxu1 %v7382_v21 }
  0xcb   : > { %v2485_v25 = vrot.slane %v2483_v32, 5  ;;  %v2489_v39 = vrot.slane %v2487_v34, 4  ;;  %v2520_v42 = vsel %vm7739_vm14, %v2515_v61, %v2519_v55  ;;  %v1398_v54 = vrot.slane %v1396_v38, 4  ;;  %v1231_v18 = vld [vmem:[#allocation2 + $0x50] sm:$0x1]  ;;  %v7353_v22 = vld [vmem:[#allocation2 + $0x3c] sm:$0xff]  }
  0xcc   : > { %v2480_v43 = vor.u32 %v2479_v0, %v2476_v6  ;;  %v6111_v45 = vcombine.low %v2510_v41, %v2520_v42  ;;  %v2495_v48 = vrot.slane %v2493_v40, 5  ;;  %v2522_v57 = vshrl.u32 %v2284_v9, 16  ;;  %v2287_v3 = vld [vmem:[#allocation2 + $0x84] sm:$0xf]  ;;  %v2288_v10 = vld [vmem:[#allocation2 + $0x88] sm:$0xf] }
  0xcd   : > { %v2490_v44 = vor.u32 %v2489_v39, %v2485_v25  ;;  %v2525_v59 = vshll.u32 %v2284_v9, 16  ;;  %v1390_v17 = vrot.slane %v1389_v49, 4  ;;  %v1399_v13 = vor.u32 %v1398_v54, %v1394_v46  ;;  %v7352_v6 = vld [vmem:[#allocation2 + $0x6c] sm:$0xff]  }
  0xce   : > { %v2481_v52 = vrot.slane %v2480_v43, 4  ;;  %v1404_v58 = vrot.slane %v1402_v50, 5  ;;  %v2531_v33 = vshll.u32 %v2285_v56, 16  ;;  %v2524_v5 = vrot.slane %v2522_v57, 4  ;;  %v2289_v37 = vld [vmem:[#allocation2 + $0x8c] sm:$0x1] }
  0xcf   : > { %v2491_v53 = vrot.slane %v2490_v44, 4  ;;  %v2527_v26 = vrot.slane %v2525_v59, 5  ;;  %v1395_v11 = vsel %vm7739_vm14, %v1390_v17, %v1394_v46  ;;  %v1400_v62 = vrot.slane %v1399_v13, 4  ;;  %v1233_v17 = vld [vmem:[#allocation2 + $0x58] sm:$0xf] }
  0xd0   : > { %v2486_v1 = vsel %vm7739_vm14, %v2481_v52, %v2485_v25  ;;  %v2533_v16 = vrot.slane %v2531_v33, 5  ;;  %v2535_v29 = vshrl.u32 %v2285_v56, 16  ;;  %v2541_v20 = vshll.u32 %v2286_v51, 16  ;;  %v1232_v56 = vld [vmem:[#allocation2 + $0x54] sm:$0xf] }
  0xd1   : > { %v2496_v2 = vsel %vm7739_vm14, %v2491_v53, %v2495_v48  ;;  %v2528_v19 = vor.u32 %v2527_v26, %v2524_v5  ;;  %v1407_v55 = vshrl.u32 %v1229_v60, 16  ;;  %v1405_v14 = vsel %vm7739_vm14, %v1400_v62, %v1404_v58  ;;  %v2290_v51 = vld [vmem:[#allocation2 + $0x90] sm:$0xf]  ;;  %v7355_v53 = vld [vmem:[#allocation2 + $0x48] sm:$0xff]  }
  0xd2   : > { %v6110_v8 = vcombine.low %v2486_v1, %v2496_v2  ;;  %v1410_v15 = vshll.u32 %v1229_v60, 16  ;;  %v1416_v24 = vshll.u32 %v1230_v7, 16  ;;  %v1420_v31 = vshrl.u32 %v1230_v7, 16  ;;  %v1234_v2 = vld [vmem:[#allocation2 + $0x5c] sm:$0x1] }
  0xd3   : > { %v6044_v27 = vcombine.low %v1395_v11, %v1405_v14  ;;  %v2529_v32 = vrot.slane %v2528_v19, 4  ;;  %v2537_v34 = vrot.slane %v2535_v29, 4  ;;  %v2543_v36 = vrot.slane %v2541_v20, 5  ;;  %v1235_v19 = vld [vmem:[#allocation2 + $0x60] sm:$0xf] }
  0xd4   : > { %3385 = vmatprep.mubr.bf16.mxu0 %v6110_v8  ;;  %v1409_v23 = vrot.slane %v1407_v55, 4  ;;  %v1412_v61 = vrot.slane %v1410_v15, 5  ;;  %v1418_v47 = vrot.slane %v1416_v24, 5  ;;  %v1422_v38 = vrot.slane %v1420_v31, 4  ;;  %v2291_v8 = vld [vmem:[#allocation2 + $0x94] sm:$0xf] }
  0xd5   : > { %3386 = vmatmul.mubr.bf16.gmra.mrb[28].mxu0 %v7349_v4  ;;  %3835 = vmatprep.mubr.bf16.mxu1 %v6044_v27  ;;  %v2534_v0 = vsel %vm7739_vm14, %v2529_v32, %v2533_v16  ;;  %v2538_v25 = vor.u32 %v2537_v34, %v2533_v16  ;;  %v1426_v39 = vshll.u32 %v1231_v18, 16  ;;  %v2546_v40 = vshrl.u32 %v2287_v3, 16  ;;  %v7354_v24 = vld [vmem:[#allocation2 + $0x78] sm:$0xff]  }
  0xd6   : > { %3393 = vmatprep.mubr.bf16.mxu0 %v6111_v45  ;;  %3836 = vmatmul.mubr.bf16.gmra.mrb[36].mxu1 %v7353_v22  ;;  %v1413_v41 = vor.u32 %v1412_v61, %v1409_v23  ;;  %v1423_v42 = vor.u32 %v1422_v38, %v1418_v47  ;;  %v2549_v28 = vshll.u32 %v2287_v3, 16  ;;  %v2555_v9 = vshll.u32 %v2288_v10, 16  ;;  %v2292_v3 = vld [vmem:[#allocation2 + $0x98] sm:$0x1] }
  0xd7   : > { %v2539_v43 = vrot.slane %v2538_v25, 4  ;;  %v1428_v44 = vrot.slane %v1426_v39, 5  ;;  %v2548_v45 = vrot.slane %v2546_v40, 4  ;;  %v2559_v46 = vshrl.u32 %v2288_v10, 16 }
  0xd8   : > { %v1414_v48 = vrot.slane %v1413_v41, 4  ;;  %v1424_v49 = vrot.slane %v1423_v42, 4  ;;  %v2551_v54 = vrot.slane %v2549_v28, 5  ;;  %v2557_v50 = vrot.slane %v2555_v9, 5  ;;  %v2294_v9 = vld [vmem:[#allocation2 + $0xa0] sm:$0xf] }
  0xd9   : > { %v2544_v52 = vsel %vm7739_vm14, %v2539_v43, %v2543_v36  ;;  %v2561_v57 = vrot.slane %v2559_v46, 4  ;;  %v2565_v59 = vshll.u32 %v2289_v37, 16  ;;  %v1431_v13 = vshrl.u32 %v1232_v56, 16  ;;  %v1236_v36 = vld [vmem:[#allocation2 + $0x64] sm:$0xf] }
  0xda   : > { %v6112_v58 = vcombine.low %v2534_v0, %v2544_v52  ;;  %v1419_v33 = vsel %vm7739_vm14, %v1414_v48, %v1418_v47  ;;  %v1429_v60 = vsel %vm7739_vm14, %v1424_v49, %v1428_v44  ;;  %v2552_v1 = vor.u32 %v2551_v54, %v2548_v45  ;;  %v2293_v37 = vld [vmem:[#allocation2 + $0x9c] sm:$0xf]  ;;  %v1237_v45 = vld [vmem:[#allocation2 + $0x68] sm:$0x1]  ;;  %v7358_v54 = vld [vmem:[#allocation2 + $0x54] sm:$0xff]  }
  0xdb   : > { %v6045_v4 = vcombine.low %v1419_v33, %v1429_v60  ;;  %v2562_v5 = vor.u32 %v2561_v57, %v2557_v50  ;;  %v2567_v26 = vrot.slane %v2565_v59, 5  ;;  %v1433_v7 = vrot.slane %v1431_v13, 4 }
  0xdc   : > { %v2553_v11 = vrot.slane %v2552_v1, 4  ;;  %v1434_v62 = vshll.u32 %v1232_v56, 16  ;;  %v1440_v16 = vshll.u32 %v1233_v17, 16  ;;  %v1444_v18 = vshrl.u32 %v1233_v17, 16  ;;  %v7357_v17 = vld [vmem:[#allocation2 + $0x84] sm:$0xff]  }
  0xdd   : > { %3394 = vmatmul.mubr.bf16.gmra.mrb[32].mxu0 %v7352_v6  ;;  %3843 = vmatprep.mubr.bf16.mxu1 %v6045_v4  ;;  %v2563_v29 = vrot.slane %v2562_v5, 4  ;;  %v1450_v20 = vshll.u32 %v1234_v2, 16  ;;  %v2570_v55 = vshrl.u32 %v2290_v51, 16  ;;  %v2573_v10 = vshll.u32 %v2290_v51, 16  ;;  %v2295_v4 = vld [vmem:[#allocation2 + $0xa4] sm:$0x1] }
  0xde   : > { %3401 = vmatprep.mubr.bf16.mxu0 %v6112_v58  ;;  %3844 = vmatmul.mubr.bf16.gmra.mrb[40].mxu1 %v7355_v53  ;;  %v2558_v21 = vsel %vm7739_vm14, %v2553_v11, %v2557_v50  ;;  %v1436_v14 = vrot.slane %v1434_v62, 5  ;;  %v1442_v22 = vrot.slane %v1440_v16, 5  ;;  %v1446_v15 = vrot.slane %v1444_v18, 4  ;;  %v1238_v16 = vld [vmem:[#allocation2 + $0x6c] sm:$0xf] }
  0xdf   : > { %v2568_v31 = vsel %vm7739_vm14, %v2563_v29, %v2567_v26  ;;  %v1452_v27 = vrot.slane %v1450_v20, 5  ;;  %v2572_v32 = vrot.slane %v2570_v55, 4  ;;  %v2575_v34 = vrot.slane %v2573_v10, 5  ;;  %v1239_v20 = vld [vmem:[#allocation2 + $0x70] sm:$0xf] }
  0xe0   : > { %v6113_v23 = vcombine.low %v2558_v21, %v2568_v31  ;;  %v1437_v61 = vor.u32 %v1436_v14, %v1433_v7  ;;  %v1447_v47 = vor.u32 %v1446_v15, %v1442_v22  ;;  %v2579_v38 = vshll.u32 %v2291_v8, 16 }
  0xe1   : > { %v2576_v6 = vor.u32 %v2575_v34, %v2572_v32  ;;  %v2583_v0 = vshrl.u32 %v2291_v8, 16  ;;  %v2589_v25 = vshll.u32 %v2292_v3, 16  ;;  %v1455_v39 = vshrl.u32 %v1235_v19, 16  ;;  %v2296_v32 = vld [vmem:[#allocation2 + $0xa8] sm:$0xf]  ;;  %v8152_v34 = vld [vmem:[%s8955_s3 + $0x200] sm:$0xff]  }
  0xe2   : > { %v1438_v40 = vrot.slane %v1437_v61, 4  ;;  %v1448_v41 = vrot.slane %v1447_v47, 4  ;;  %v2581_v42 = vrot.slane %v2579_v38, 5  ;;  %v1458_v28 = vshll.u32 %v1235_v19, 16  ;;  %v2297_v38 = vld [vmem:[#allocation2 + $0xac] sm:$0xf]  ;;  %7063 = vmatprep.subr.bf16.mxu1 %v8152_v34 }
  0xe3   : > { %v2577_v56 = vrot.slane %v2576_v6, 4  ;;  %v2585_v43 = vrot.slane %v2583_v0, 4  ;;  %v2591_v44 = vrot.slane %v2589_v25, 5  ;;  %v1457_v46 = vrot.slane %v1455_v39, 4  ;;  %v7360_v0 = vld [vmem:[#allocation2 + $0x60] sm:$0xff]  }
  0xe4   : > { %v1443_v48 = vsel %vm7739_vm14, %v1438_v40, %v1442_v22  ;;  %v1453_v49 = vsel %vm7739_vm14, %v1448_v41, %v1452_v27  ;;  %v1460_v50 = vrot.slane %v1458_v28, 5  ;;  %v1464_v51 = vshll.u32 %v1236_v36, 16  ;;  %v1240_v22 = vld [vmem:[#allocation2 + $0x74] sm:$0x1] }
  0xe5   : > { %3402 = vmatmul.mubr.bf16.gmra.mrb[36].mxu0 %v7354_v24  ;;  %v6046_v52 = vcombine.low %v1443_v48, %v1453_v49  ;;  %v2582_v53 = vsel %vm7739_vm14, %v2577_v56, %v2581_v42  ;;  %v2586_v57 = vor.u32 %v2585_v43, %v2581_v42  ;;  %v1468_v59 = vshrl.u32 %v1236_v36, 16  ;;  %v7359_v40 = vld [vmem:[#allocation2 + $0x90] sm:$0xff]   ;;  %v1241_v43 = vld [vmem:[#allocation2 + $0x78] sm:$0xf] }
  0xe6   : > { %3409 = vmatprep.mubr.bf16.mxu0 %v6113_v23  ;;  %v1461_v13 = vor.u32 %v1460_v50, %v1457_v46  ;;  %v1466_v58 = vrot.slane %v1464_v51, 5  ;;  %v1474_v33 = vshll.u32 %v1237_v45, 16  ;;  %v2594_v60 = vshrl.u32 %v2293_v37, 16  ;;  %v2298_v56 = vld [vmem:[#allocation2 + $0xb0] sm:$0x1] }
  0xe7   : > { %3851 = vmatprep.mubr.bf16.mxu1 %v6046_v52  ;;  %v2587_v1 = vrot.slane %v2586_v57, 4  ;;  %v1470_v2 = vrot.slane %v1468_v59, 4  ;;  %v2597_v5 = vshll.u32 %v2293_v37, 16  ;;  %v2603_v26 = vshll.u32 %v2294_v9, 16 }
  0xe8   : > { %3852 = vmatmul.mubr.bf16.gmra.mrb[44].mxu1 %v7358_v54  ;;  %v1462_v7 = vrot.slane %v1461_v13, 4  ;;  %v1476_v8 = vrot.slane %v1474_v33, 5  ;;  %v2596_v11 = vrot.slane %v2594_v60, 4  ;;  %v2607_v62 = vshrl.u32 %v2294_v9, 16 }
  0xe9   : > { %v2592_v18 = vsel %vm7739_vm14, %v2587_v1, %v2591_v44  ;;  %v1471_v3 = vor.u32 %v1470_v2, %v1466_v58  ;;  %v2599_v19 = vrot.slane %v2597_v5, 5  ;;  %v2605_v29 = vrot.slane %v2603_v26, 5  ;;  %v1243_v1 = vld [vmem:[#allocation2 + $0x80] sm:$0x1] }
  0xea   : > { %v6114_v55 = vcombine.low %v2582_v53, %v2592_v18  ;;  %v1467_v10 = vsel %vm7739_vm14, %v1462_v7, %v1466_v58  ;;  %v2609_v21 = vrot.slane %v2607_v62, 4  ;;  %v2613_v14 = vshll.u32 %v2295_v4, 16  ;;  %v2299_v7 = vld [vmem:[#allocation2 + $0xb4] sm:$0xf] }
  0xeb   : > { %v1472_v15 = vrot.slane %v1471_v3, 4  ;;  %v2600_v24 = vor.u32 %v2599_v19, %v2596_v11  ;;  %v1479_v31 = vshrl.u32 %v1238_v16, 16  ;;  %v1482_v27 = vshll.u32 %v1238_v16, 16  ;;  %v7363_v3 = vld [vmem:[#allocation2 + $0x6c] sm:$0xff]  }
  0xec   : > { %v2610_v36 = vor.u32 %v2609_v21, %v2605_v29  ;;  %v2615_v23 = vrot.slane %v2613_v14, 5  ;;  %v1488_v61 = vshll.u32 %v1239_v20, 16  ;;  %v1492_v47 = vshrl.u32 %v1239_v20, 16 }
  0xed   : > { %3410 = vmatmul.mubr.bf16.gmra.mrb[40].mxu0 %v7357_v17  ;;  %v1477_v6 = vsel %vm7739_vm14, %v1472_v15, %v1476_v8  ;;  %v2601_v25 = vrot.slane %v2600_v24, 4  ;;  %v1481_v39 = vrot.slane %v1479_v31, 4  ;;  %v1484_v37 = vrot.slane %v1482_v27, 5  ;;  %v1242_v17 = vld [vmem:[#allocation2 + $0x7c] sm:$0xf] }
  0xee   : > { %3417 = vmatprep.mubr.bf16.mxu0 %v6114_v55  ;;  %v6047_v41 = vcombine.low %v1467_v10, %v1477_v6  ;;  %v2611_v42 = vrot.slane %v2610_v36, 4  ;;  %v1490_v28 = vrot.slane %v1488_v61, 5  ;;  %v1494_v9 = vrot.slane %v1492_v47, 4  ;;  %v2300_v55 = vld [vmem:[#allocation2 + $0xb8] sm:$0xf]  ;;  %v7362_v24 = vld [vmem:[#allocation2 + $0x9c] sm:$0xff]  }
  0xef   : > { %v2606_v44 = vsel %vm7739_vm14, %v2601_v25, %v2605_v29  ;;  %v1485_v45 = vor.u32 %v1484_v37, %v1481_v39  ;;  %v1498_v46 = vshll.u32 %v1240_v22, 16  ;;  %v2618_v48 = vshrl.u32 %v2296_v32, 16  ;;  %v2301_v15 = vld [vmem:[#allocation2 + $0xbc] sm:$0x1] }
  0xf0   : > { %3859 = vmatprep.mubr.bf16.mxu1 %v6047_v41  ;;  %v2616_v49 = vsel %vm7739_vm14, %v2611_v42, %v2615_v23  ;;  %v1495_v54 = vor.u32 %v1494_v9, %v1490_v28  ;;  %v2621_v50 = vshll.u32 %v2296_v32, 16  ;;  %v2627_v51 = vshll.u32 %v2297_v38, 16  ;;  %v1244_v23 = vld [vmem:[#allocation2 + $0x84] sm:$0xf]  ;;  %v1245_v9 = vld [vmem:[#allocation2 + $0x88] sm:$0xf] }
  0xf1   : > { %3860 = vmatmul.mubr.bf16.gmra.mrb[48].mxu1 %v7360_v0  ;;  %v6115_v52 = vcombine.low %v2606_v44, %v2616_v49  ;;  %v1486_v53 = vrot.slane %v1485_v45, 4  ;;  %v1500_v57 = vrot.slane %v1498_v46, 5  ;;  %v2620_v59 = vrot.slane %v2618_v48, 4  ;;  %v1246_v46 = vld [vmem:[#allocation2 + $0x8c] sm:$0x1] }
  0xf2   : > { %v1496_v13 = vrot.slane %v1495_v54, 4  ;;  %v2623_v58 = vrot.slane %v2621_v50, 5  ;;  %v2629_v33 = vrot.slane %v2627_v51, 5  ;;  %v2631_v60 = vshrl.u32 %v2297_v38, 16 }
  0xf3   : > { %v1491_v2 = vsel %vm7739_vm14, %v1486_v53, %v1490_v28  ;;  %v2637_v4 = vshll.u32 %v2298_v56, 16  ;;  %v1503_v5 = vshrl.u32 %v1241_v43, 16  ;;  %v1506_v26 = vshll.u32 %v1241_v43, 16 }
  0xf4   : > { %v1501_v8 = vsel %vm7739_vm14, %v1496_v13, %v1500_v57  ;;  %v2624_v11 = vor.u32 %v2623_v58, %v2620_v59  ;;  %v2633_v62 = vrot.slane %v2631_v60, 4  ;;  %v1512_v16 = vshll.u32 %v1242_v17, 16  ;;  %v2302_v59 = vld [vmem:[#allocation2 + $0xc0] sm:$0xf]  ;;  %v7365_v58 = vld [vmem:[#allocation2 + $0x78] sm:$0xff]  }
  0xf5   : > { %3418 = vmatmul.mubr.bf16.gmra.mrb[44].mxu0 %v7359_v40  ;;  %v6048_v18 = vcombine.low %v1491_v2, %v1501_v8  ;;  %v2639_v19 = vrot.slane %v2637_v4, 5  ;;  %v1505_v29 = vrot.slane %v1503_v5, 4  ;;  %v1508_v20 = vrot.slane %v1506_v26, 5  ;;  %v2303_v2 = vld [vmem:[#allocation2 + $0xc4] sm:$0xf] }
  0xf6   : > { %3425 = vmatprep.mubr.bf16.mxu0 %v6115_v52  ;;  %v2625_v10 = vrot.slane %v2624_v11, 4  ;;  %v2634_v21 = vor.u32 %v2633_v62, %v2629_v33  ;;  %v1514_v14 = vrot.slane %v1512_v16, 5  ;;  %v1516_v22 = vshrl.u32 %v1242_v17, 16  ;;  %v7364_v17 = vld [vmem:[#allocation2 + $0xa8] sm:$0xff]  }
  0xf7   : > { %3867 = vmatprep.mubr.bf16.mxu1 %v6048_v18  ;;  %v1509_v31 = vor.u32 %v1508_v20, %v1505_v29  ;;  %v1522_v27 = vshll.u32 %v1243_v1, 16  ;;  %v2642_v32 = vshrl.u32 %v2299_v7, 16  ;;  %v2645_v36 = vshll.u32 %v2299_v7, 16  ;;  %v2304_v16 = vld [vmem:[#allocation2 + $0xc8] sm:$0x1] }
  0xf8   : > { %v2630_v61 = vsel %vm7739_vm14, %v2625_v10, %v2629_v33  ;;  %v2635_v47 = vrot.slane %v2634_v21, 4  ;;  %v1518_v38 = vrot.slane %v1516_v22, 4  ;;  %v2651_v6 = vshll.u32 %v2300_v55, 16 }
  0xf9   : > { %3868 = vmatmul.mubr.bf16.gmra.mrb[52].mxu1 %v7363_v3  ;;  %v1510_v0 = vrot.slane %v1509_v31, 4  ;;  %v1524_v25 = vrot.slane %v1522_v27, 5  ;;  %v2644_v39 = vrot.slane %v2642_v32, 4  ;;  %v2647_v37 = vrot.slane %v2645_v36, 5  ;;  %v1249_v36 = vld [vmem:[#allocation2 + $0x98] sm:$0x1] }
  0xfa   : > { %v2640_v40 = vsel %vm7739_vm14, %v2635_v47, %v2639_v19  ;;  %v1519_v41 = vor.u32 %v1518_v38, %v1514_v14  ;;  %v2653_v42 = vrot.slane %v2651_v6, 5  ;;  %v2655_v28 = vshrl.u32 %v2300_v55, 16  ;;  %v1247_v55 = vld [vmem:[#allocation2 + $0x90] sm:$0xf] }
  0xfb   : > { %v6116_v56 = vcombine.low %v2630_v61, %v2640_v40  ;;  %v1515_v43 = vsel %vm7739_vm14, %v1510_v0, %v1514_v14  ;;  %v2648_v44 = vor.u32 %v2647_v37, %v2644_v39  ;;  %v2661_v45 = vshll.u32 %v2301_v15, 16  ;;  %v1248_v15 = vld [vmem:[#allocation2 + $0x94] sm:$0xf]  ;;  %v2770_v61 = vld [vmem:[#allocation2 + $0x10] sm:$0xf] }
  0xfc   : > { %v1520_v48 = vrot.slane %v1519_v41, 4  ;;  %v2657_v49 = vrot.slane %v2655_v28, 4  ;;  %v1527_v54 = vshrl.u32 %v1244_v23, 16  ;;  %v1530_v50 = vshll.u32 %v1244_v23, 16  ;;  %v2769_v23 = vld [vmem:[#allocation2 + $0xc] sm:$0xe] }
  0xfd   : > { %3426 = vmatmul.mubr.bf16.gmra.mrb[48].mxu0 %v7362_v24  ;;  %v2649_v51 = vrot.slane %v2648_v44, 4  ;;  %v2663_v52 = vrot.slane %v2661_v45, 5  ;;  %v1536_v53 = vshll.u32 %v1245_v9, 16  ;;  %v1540_v57 = vshrl.u32 %v1245_v9, 16  ;;  %v7367_v41 = vld [vmem:[#allocation2 + $0xb4] sm:$0xff]   ;;  %v7368_v28 = vld [vmem:[#allocation2 + $0x84] sm:$0xff]  }
  0xfe   : > { %3433 = vmatprep.mubr.bf16.mxu0 %v6116_v56  ;;  %v1525_v13 = vsel %vm7739_vm14, %v1520_v48, %v1524_v25  ;;  %v2658_v33 = vor.u32 %v2657_v49, %v2653_v42  ;;  %v1529_v60 = vrot.slane %v1527_v54, 4  ;;  %v1532_v1 = vrot.slane %v1530_v50, 5  ;;  %v2771_v44 = vld [vmem:[#allocation2 + $0x14] sm:$0x1]  ;;  %v2772_v54 = vld [vmem:[#allocation2 + $0x18] sm:$0xe] }
  0xff   : > { %v6049_v4 = vcombine.low %v1515_v43, %v1525_v13  ;;  %v2654_v5 = vsel %vm7739_vm14, %v2649_v51, %v2653_v42  ;;  %v1538_v26 = vrot.slane %v1536_v53, 5  ;;  %v1542_v7 = vrot.slane %v1540_v57, 4  ;;  %v2773_v57 = vld [vmem:[#allocation2 + $0x1c] sm:$0xf] }
 0x100   : > { %v2659_v8 = vrot.slane %v2658_v33, 4  ;;  %v1533_v11 = vor.u32 %v1532_v1, %v1529_v60  ;;  %v1546_v62 = vshll.u32 %v1246_v46, 16  ;;  %v2666_v18 = vshrl.u32 %v2302_v59, 16  ;;  %v2774_v33 = vld [vmem:[#allocation2 + $0x20] sm:$0x1] }
 0x101   : > { %3875 = vmatprep.mubr.bf16.mxu1 %v6049_v4  ;;  %v1543_v3 = vor.u32 %v1542_v7, %v1538_v26  ;;  %v2669_v19 = vshll.u32 %v2302_v59, 16  ;;  %v2675_v29 = vshll.u32 %v2303_v2, 16  ;;  %v2679_v20 = vshrl.u32 %v2303_v2, 16  ;;  %v1250_v60 = vld [vmem:[#allocation2 + $0x9c] sm:$0xf] }
 0x102   : > { %3876 = vmatmul.mubr.bf16.gmra.mrb[56].mxu1 %v7365_v58  ;;  %v2664_v10 = vsel %vm7739_vm14, %v2659_v8, %v2663_v52  ;;  %v1534_v21 = vrot.slane %v1533_v11, 4  ;;  %v1548_v14 = vrot.slane %v1546_v62, 5  ;;  %v2668_v22 = vrot.slane %v2666_v18, 4  ;;  %v1252_v7 = vld [vmem:[#allocation2 + $0xa4] sm:$0x1] }
 0x103   : > { %v6117_v24 = vcombine.low %v2654_v5, %v2664_v10  ;;  %v1544_v31 = vrot.slane %v1543_v3, 4  ;;  %v2671_v27 = vrot.slane %v2669_v19, 5  ;;  %v2677_v32 = vrot.slane %v2675_v29, 5  ;;  %v2775_v18 = vld [vmem:[#allocation2 + $0x24] sm:$0xe] }
 0x104   : > { %v1539_v47 = vsel %vm7739_vm14, %v1534_v21, %v1538_v26  ;;  %v2681_v38 = vrot.slane %v2679_v20, 4  ;;  %v2685_v6 = vshll.u32 %v2304_v16, 16  ;;  %v1551_v0 = vshrl.u32 %v1247_v55, 16  ;;  %v1251_v26 = vld [vmem:[#allocation2 + $0xa0] sm:$0xf] }
 0x105   : > { %3434 = vmatmul.mubr.bf16.gmra.mrb[52].mxu0 %v7364_v17  ;;  %v1549_v25 = vsel %vm7739_vm14, %v1544_v31, %v1548_v14  ;;  %v2672_v39 = vor.u32 %v2671_v27, %v2668_v22  ;;  %v1554_v37 = vshll.u32 %v1247_v55, 16  ;;  %v1560_v40 = vshll.u32 %v1248_v15, 16  ;;  %v2776_v22 = vld [vmem:[#allocation2 + $0x28] sm:$0xf] }
 0x106   : > { %3441 = vmatprep.mubr.bf16.mxu0 %v6117_v24  ;;  %v6050_v42 = vcombine.low %v1539_v47, %v1549_v25  ;;  %v2682_v9 = vor.u32 %v2681_v38, %v2677_v32  ;;  %v2687_v56 = vrot.slane %v2685_v6, 5  ;;  %v1553_v43 = vrot.slane %v1551_v0, 4  ;;  %v7369_v24 = vld [vmem:[#allocation2 + $0xc0] sm:$0xff]   ;;  %v7370_v47 = vld [vmem:[#allocation2 + $0x90] sm:$0xff]  }
 0x107   : > { %v2673_v45 = vrot.slane %v2672_v39, 4  ;;  %v1556_v46 = vrot.slane %v1554_v37, 5  ;;  %v1562_v48 = vrot.slane %v1560_v40, 5  ;;  %v1564_v49 = vshrl.u32 %v1248_v15, 16  ;;  %v2777_v15 = vld [vmem:[#allocation2 + $0x2c] sm:$0x1] }
 0x108   : > { %3883 = vmatprep.mubr.bf16.mxu1 %v6050_v42  ;;  %v2683_v50 = vrot.slane %v2682_v9, 4  ;;  %v1570_v51 = vshll.u32 %v1249_v36, 16  ;;  %v6119_v52 = vrot.slane %v2769_v23, 9  ;;  %v2867_v53 = vrot.slane %v2770_v61, 5  ;;  %v2778_v23 = vld [vmem:[#allocation2 + $0x30] sm:$0xe] }
 0x109   : > { %v2678_v59 = vsel %vm7739_vm14, %v2673_v45, %v2677_v32  ;;  %v1557_v17 = vor.u32 %v1556_v46, %v1553_v43  ;;  %v1566_v13 = vrot.slane %v1564_v49, 4  ;;  %v2870_v58 = vrot.slane %v2771_v44, 5  ;;  %v2779_v25 = vld [vmem:[#allocation2 + $0x34] sm:$0xf]  ;;  %v2780_v42 = vld [vmem:[#allocation2 + $0x38] sm:$0x1] }
 0x10a   : > { %3884 = vmatmul.mubr.bf16.gmra.mrb[60].mxu1 %v7368_v28  ;;  %v2688_v1 = vsel %vm7739_vm14, %v2683_v50, %v2687_v56  ;;  %v1572_v2 = vrot.slane %v1570_v51, 5  ;;  %v2868_v4 = vsel %vm7673_vm11, %v6119_v52, %v2867_v53  ;;  %v2869_v5 = vrot.slane %v2867_v53, 4  ;;  %v1253_v28 = vld [vmem:[#allocation2 + $0xa8] sm:$0xf]  ;;  %v1255_v53 = vld [vmem:[#allocation2 + $0xb0] sm:$0x1] }
 0x10b   : > { %v6118_v8 = vcombine.low %v2678_v59, %v2688_v1  ;;  %v1558_v11 = vrot.slane %v1557_v17, 4  ;;  %v1567_v62 = vor.u32 %v1566_v13, %v1562_v48  ;;  %v6120_v16 = vrot.slane %v2772_v54, 9  ;;  %v1254_v54 = vld [vmem:[#allocation2 + $0xac] sm:$0xf]  ;;  %v2783_v1 = vld [vmem:[#allocation2 + $0x44] sm:$0x1] }
 0x10c   : > { %v2871_v3 = vsel %vm7673_vm11, %v2869_v5, %v2870_v58  ;;  %v2874_v19 = vrot.slane %v2773_v57, 5  ;;  %v2877_v29 = vrot.slane %v2774_v33, 5  ;;  %v1575_v20 = vshrl.u32 %v1250_v60, 16  ;;  %v2781_v33 = vld [vmem:[#allocation2 + $0x3c] sm:$0xe] }
 0x10d   : > { %3442 = vmatmul.mubr.bf16.gmra.mrb[56].mxu0 %v7367_v41  ;;  %v1563_v55 = vsel %vm7739_vm14, %v1558_v11, %v1562_v48  ;;  %v1568_v10 = vrot.slane %v1567_v62, 4  ;;  %v6135_v21 = vcombine.low %v2868_v4, %v2871_v3  ;;  %v1578_v14 = vshll.u32 %v1250_v60, 16  ;;  %v2782_v60 = vld [vmem:[#allocation2 + $0x40] sm:$0xf] }
 0x10e   : > { %3449 = vmatprep.mubr.bf16.mxu0 %v6118_v8  ;;  %v8193_v31 = vsel %vm7673_vm11, %v6120_v16, %v2874_v19  ;;  %v2876_v27 = vrot.slane %v2874_v19, 4  ;;  %v1577_v32 = vrot.slane %v1575_v20, 4  ;;  %v1584_v36 = vshll.u32 %v1251_v26, 16  ;;  %v2784_v20 = vld [vmem:[#allocation2 + $0x48] sm:$0xe] }
 0x10f   : > { %v1573_v61 = vsel %vm7739_vm14, %v1568_v10, %v1572_v2  ;;  %v1580_v38 = vrot.slane %v1578_v14, 5  ;;  %v1588_v6 = vshrl.u32 %v1251_v26, 16  ;;  %v1594_v0 = vshll.u32 %v1252_v7, 16  ;;  %v7373_v10 = vld [vmem:[%s8955_s3 + $0x180] sm:$0xff]  }
 0x110   : > { %v6051_v39 = vcombine.low %v1563_v55, %v1573_v61  ;;  %v8199_v37 = vsel %vm7673_vm11, %v2876_v27, %v2877_v29  ;;  %v1586_v40 = vrot.slane %v1584_v36, 5  ;;  %v6121_v41 = vrot.slane %v2775_v18, 9  ;;  %v7375_v18 = vld [vmem:[#allocation2 + $0x9c] sm:$0xff]   ;;  %v2785_v55 = vld [vmem:[#allocation2 + $0x4c] sm:$0xf] }
 0x111   : > { %v6136_v9 = vcombine.low %v8193_v31, %v8199_v37  ;;  %v1581_v56 = vor.u32 %v1580_v38, %v1577_v32  ;;  %v1590_v43 = vrot.slane %v1588_v6, 4  ;;  %v1596_v44 = vrot.slane %v1594_v0, 5  ;;  %v7374_v31 = vld [vmem:[%s8955_s3 + $0x1c8] sm:$0xff]   ;;  %v1256_v61 = vld [vmem:[#allocation2 + $0xb4] sm:$0xf] }
 0x112   : > { %3891 = vmatprep.mubr.bf16.mxu1 %v6051_v39  ;;  %v2881_v45 = vrot.slane %v2776_v22, 5  ;;  %v2884_v46 = vrot.slane %v2777_v15, 5  ;;  %v6122_v48 = vrot.slane %v2778_v23, 9  ;;  %v2888_v49 = vrot.slane %v2779_v25, 5  ;;  %v1257_v25 = vld [vmem:[#allocation2 + $0xb8] sm:$0xf] }
 0x113   : > { %3892 = vmatmul.mubr.bf16.gmra.mrb[64].mxu1 %v7370_v47  ;;  %v1582_v50 = vrot.slane %v1581_v56, 4  ;;  %v1591_v51 = vor.u32 %v1590_v43, %v1586_v40  ;;  %v2891_v52 = vrot.slane %v2780_v42, 5  ;;  %v1599_v57 = vshrl.u32 %v1253_v28, 16  ;;  %v7376_v39 = vld [vmem:[%s8955_s3 + $0x188] sm:$0xff]   ;;  %v2787_v56 = vld [vmem:[#allocation2 + $0x54] sm:$0xe] }
 0x114   : > { %v2882_v59 = vsel %vm7673_vm11, %v6121_v41, %v2881_v45  ;;  %v2883_v17 = vrot.slane %v2881_v45, 4  ;;  %v8207_v13 = vsel %vm7673_vm11, %v6122_v48, %v2888_v49  ;;  %v2890_v58 = vrot.slane %v2888_v49, 4  ;;  %v2788_v43 = vld [vmem:[#allocation2 + $0x58] sm:$0xf]  ;;  %v2789_v49 = vld [vmem:[#allocation2 + $0x5c] sm:$0x1] }
 0x115   : > { %3450 = vmatmul.mubr.bf16.gmra.mrb[60].mxu0 %v7369_v24  ;;  %v1587_v2 = vsel %vm7739_vm14, %v1582_v50, %v1586_v40  ;;  %v1592_v4 = vrot.slane %v1591_v51, 4  ;;  %v1601_v5 = vrot.slane %v1599_v57, 4  ;;  %v1602_v26 = vshll.u32 %v1253_v28, 16  ;;  %v2786_v24 = vld [vmem:[#allocation2 + $0x50] sm:$0x1] }
 0x116   : > { %6983 = vmatprep.mubr.bf16.mxu0 %v6135_v21  ;;  %v2885_v7 = vsel %vm7673_vm11, %v2883_v17, %v2884_v46  ;;  %v8215_v8 = vsel %vm7673_vm11, %v2890_v58, %v2891_v52  ;;  %v1608_v11 = vshll.u32 %v1254_v54, 16  ;;  %v1612_v62 = vshrl.u32 %v1254_v54, 16  ;;  %v1258_v28 = vld [vmem:[#allocation2 + $0xbc] sm:$0x1]  ;;  %v2791_v57 = vld [vmem:[#allocation2 + $0x64] sm:$0xf] }
 0x117   : > { %v1597_v16 = vsel %vm7739_vm14, %v1592_v4, %v1596_v44  ;;  %v6137_v3 = vcombine.low %v2882_v59, %v2885_v7  ;;  %v6138_v19 = vcombine.low %v8207_v13, %v8215_v8  ;;  %v1604_v29 = vrot.slane %v1602_v26, 5  ;;  %v7378_v59 = vld [vmem:[%s8955_s3 + $0x190] sm:$0xff]   ;;  %v7380_v58 = vld [vmem:[#allocation2 + $0xa8] sm:$0xff]  }
 0x118   : > { %v6052_v21 = vcombine.low %v1587_v2, %v1597_v16  ;;  %v1610_v14 = vrot.slane %v1608_v11, 5  ;;  %v1614_v22 = vrot.slane %v1612_v62, 4  ;;  %v1618_v15 = vshll.u32 %v1255_v53, 16  ;;  %v2790_v53 = vld [vmem:[#allocation2 + $0x60] sm:$0xe] }
 0x119   : > { %v1605_v27 = vor.u32 %v1604_v29, %v1601_v5  ;;  %v6123_v32 = vrot.slane %v2781_v33, 9  ;;  %v2895_v36 = vrot.slane %v2782_v60, 5  ;;  %v2898_v23 = vrot.slane %v2783_v1, 5  ;;  %v2792_v2 = vld [vmem:[#allocation2 + $0x68] sm:$0x1]  ;;  %v7379_v5 = vld [vmem:[%s8955_s3 + $0x1d8] sm:$0xff]  }
 0x11a   : > { %3899 = vmatprep.mubr.bf16.mxu1 %v6052_v21  ;;  %v1615_v47 = vor.u32 %v1614_v22, %v1610_v14  ;;  %v1620_v38 = vrot.slane %v1618_v15, 5  ;;  %v6124_v6 = vrot.slane %v2784_v20, 9  ;;  %v2902_v0 = vrot.slane %v2785_v55, 5  ;;  %v1726_v62 = vld [vmem:[#allocation2] sm:$0xe] }
 0x11b   : > { %3900 = vmatmul.mubr.bf16.gmra.mrb[68].mxu1 %v7375_v18  ;;  %v1606_v37 = vrot.slane %v1605_v27, 4  ;;  %v8232_v40 = vsel %vm7673_vm11, %v6123_v32, %v2895_v36  ;;  %v2897_v41 = vrot.slane %v2895_v36, 4  ;;  %v2905_v42 = vrot.slane %v2786_v24, 5  ;;  %v1727_v20 = vld [vmem:[#allocation2 + $0x4] sm:$0xf]  ;;  %v7381_v24 = vld [vmem:[%s8955_s3 + $0x198] sm:$0xff]  }
 0x11c   : > { %v1616_v44 = vrot.slane %v1615_v47, 4  ;;  %v8239_v45 = vsel %vm7673_vm11, %v6124_v6, %v2902_v0  ;;  %v2904_v46 = vrot.slane %v2902_v0, 4  ;;  %v1623_v48 = vshrl.u32 %v1256_v61, 16  ;;  %v1728_v22 = vld [vmem:[#allocation2 + $0x8] sm:$0x1] }
 0x11d   : > { %6984 = vmatmul.mubr.bf16.vlgmr.msra.gmra.mrb[64].mxu0 %v6136_v9  ;;  %v7377_v9 = vld [vmem:[%s8955_s3 + $0x1d0] sm:$0xff]   ;;  %v1611_v54 = vsel %vm7739_vm14, %v1606_v37, %v1610_v14  ;;  %v2899_v50 = vsel %vm7673_vm11, %v2897_v41, %v2898_v23  ;;  %v1626_v51 = vshll.u32 %v1256_v61, 16  ;;  %v1632_v52 = vshll.u32 %v1257_v25, 16  ;;  %v1729_v23 = vld [vmem:[#allocation2 + $0xc] sm:$0xe] }
 0x11e   : > { %6832 = vmatpush3.bf16.msra.mxu0 %v7373_v10  ;;  %6987 = vmatprep.mubr.bf16.mxu0 %v6137_v3  ;;  %v1621_v17 = vsel %vm7739_vm14, %v1616_v44, %v1620_v38  ;;  %v6139_v33 = vcombine.low %v8232_v40, %v2899_v50  ;;  %v8253_v60 = vsel %vm7673_vm11, %v2904_v46, %v2905_v42  ;;  %v1625_v1 = vrot.slane %v1623_v48, 4  ;;  %v4230_v41 = vld [vmem:[#allocation2 + $0x18] sm:$0xf]  ;;  %v7383_v42 = vld [vmem:[%s8955_s3 + $0x1e0] sm:$0xff]   ;;  %v4231_v44 = vld [vmem:[#allocation2 + $0x1c] sm:$0xf] }
 0x11f   : > { %6833 = vmatprep.subr.bf16.mxu0 %v7374_v31  ;;  %v6053_v4 = vcombine.low %v1611_v54, %v1621_v17  ;;  %v6140_v26 = vcombine.low %v8239_v45, %v8253_v60  ;;  %v1628_v7 = vrot.slane %v1626_v51, 5  ;;  %v8260_v11 = vrot.slane %v1632_v52, 5  ;;  %v7384_v48 = vld [vmem:[%s8955_s3 + $0x1a0] sm:$0xff]   ;;  %v7386_v54 = vld [vmem:[#allocation2 + $0xb4] sm:$0xff]  }
 0x120   : > { %v1636_v16 = vshrl.u32 %v1257_v25, 16  ;;  %v1642_v18 = vshll.u32 %v1258_v28, 16  ;;  %v6125_v3 = vrot.slane %v2787_v56, 9  ;;  %v2909_v29 = vrot.slane %v2788_v43, 5  ;;  %v8262_v15 = vpop.f32.mrb[0].mxu0 }
 0x121   : > { %3907 = vmatprep.mubr.bf16.mxu1 %v6053_v4  ;;  %v1629_v55 = vor.u32 %v1628_v7, %v1625_v1  ;;  %v2912_v10 = vrot.slane %v2789_v49, 5  ;;  %v6126_v21 = vrot.slane %v2790_v53, 9  ;;  %v2916_v14 = vrot.slane %v2791_v57, 5  ;;  %v8271_v61 = vpop.f32.mrb[1].mxu0  ;;  %v1730_v25 = vld [vmem:[#allocation2 + $0x10] sm:$0xf] }
 0x122   : > { %6834 = vmatpush3.bf16.msra.mxu0 %v7376_v39  ;;  %v1638_v31 = vrot.slane %v1636_v16, 4  ;;  %v1644_v27 = vrot.slane %v1642_v18, 5  ;;  %v8269_v32 = vsel %vm7673_vm11, %v6125_v3, %v2909_v29  ;;  %v2911_v36 = vrot.slane %v2909_v29, 4  ;;  %v8280_v39 = vpop.f32.mrb[2].mxu0  ;;  %v4232_v53 = vld [vmem:[#allocation2 + $0x20] sm:$0x1] }
 0x123   : > { %6835 = vmatprep.subr.bf16.mxu0 %v7377_v9  ;;  %3908 = vmatmul.mubr.bf16.gmra.mrb[72].mxu1 %v7380_v58  ;;  %v1630_v47 = vrot.slane %v1629_v55, 4  ;;  %v8278_v38 = vsel %vm7673_vm11, %v6126_v21, %v2916_v14  ;;  %v2918_v6 = vrot.slane %v2916_v14, 4  ;;  %v2919_v0 = vrot.slane %v2792_v2, 5  ;;  %v8296_v46 = vpop.f32.mrb[3].mxu0  ;;  %v1732_v57 = vld [vmem:[#allocation2 + $0x18] sm:$0xe] }
 0x124   : > { %v1639_v37 = vor.u32 %v1638_v31, %v8260_v11  ;;  %v2913_v40 = vsel %vm7673_vm11, %v2911_v36, %v2912_v10  ;;  %v6055_v13 = vrot.slane %v1726_v62, 9  ;;  %v1827_v8 = vrot.slane %v1727_v20, 5  ;;  %v7385_v62 = vld [vmem:[%s8955_s3 + $0x1e8] sm:$0xff]   ;;  %v1734_v29 = vld [vmem:[#allocation2 + $0x20] sm:$0x1] }
 0x125   : > { %6988 = vmatmul.mubr.bf16.gmra.mrb[68].mxu0 %v6138_v19  ;;  %v1731_v19 = vld [vmem:[#allocation2 + $0x14] sm:$0x1]  ;;  %v1635_v28 = vsel %vm7739_vm14, %v1630_v47, %v8260_v11  ;;  %v6141_v56 = vcombine.low %v8269_v32, %v2913_v40  ;;  %v8294_v43 = vsel %vm7673_vm11, %v2918_v6, %v2919_v0  ;;  %v1830_v9 = vrot.slane %v1728_v22, 5  ;;  %v1735_v20 = vld [vmem:[#allocation2 + $0x24] sm:$0xe] }
 0x126   : > { %6836 = vmatpush3.bf16.msra.mxu0 %v7378_v59  ;;  %6991 = vmatprep.mubr.bf16.mxu0 %v6139_v33  ;;  %v1640_v49 = vrot.slane %v1639_v37, 4  ;;  %v6142_v50 = vcombine.low %v8278_v38, %v8294_v43  ;;  %v1828_v51 = vsel %vm7673_vm11, %v6055_v13, %v1827_v8  ;;  %v1829_v52 = vrot.slane %v1827_v8, 4  ;;  %v1733_v59 = vld [vmem:[#allocation2 + $0x1c] sm:$0xf]  ;;  %v1736_v22 = vld [vmem:[#allocation2 + $0x28] sm:$0xf] }
 0x127   : > { %6837 = vmatprep.subr.bf16.mxu0 %v7379_v5  ;;  %v6056_v17 = vrot.slane %v1729_v23, 9  ;;  %v1834_v58 = vrot.slane %v1730_v25, 5  ;;  %v1837_v33 = vrot.slane %v1731_v19, 5  ;;  %v4279_v1 = vshrl.u32 %v4230_v41, 16  ;;  %v1737_v23 = vld [vmem:[#allocation2 + $0x2c] sm:$0x1] }
 0x128   : > { %v1645_v2 = vsel %vm7739_vm14, %v1640_v49, %v1644_v27  ;;  %v1831_v4 = vsel %vm7673_vm11, %v1829_v52, %v1830_v9  ;;  %v4282_v5 = vshll.u32 %v4230_v41, 16  ;;  %v4288_v7 = vshll.u32 %v4231_v44, 16  ;;  %v4233_v60 = vld [vmem:[#allocation2 + $0x24] sm:$0xf]  ;;  %v7388_v25 = vld [vmem:[%s8955_s3 + $0x1f0] sm:$0xff]   ;;  %v7391_v38 = vld [vmem:[%s8955_s3 + $0x1b8] sm:$0xff]  }
 0x129   : > { %v6054_v11 = vcombine.low %v1635_v28, %v1645_v2  ;;  %v6071_v16 = vcombine.low %v1828_v51, %v1831_v4  ;;  %v8314_v18 = vsel %vm7673_vm11, %v6056_v17, %v1834_v58  ;;  %v1836_v3 = vrot.slane %v1834_v58, 4  ;;  %v4235_v19 = vld [vmem:[#allocation2 + $0x2c] sm:$0x1]  ;;  %v1738_v41 = vld [vmem:[#allocation2 + $0x30] sm:$0xe] }
 0x12a   : > { %6838 = vmatpush3.bf16.msra.mxu0 %v7381_v24  ;;  %v4281_v55 = vrot.slane %v4279_v1, 4  ;;  %v4284_v10 = vrot.slane %v4282_v5, 5  ;;  %v4290_v21 = vrot.slane %v4288_v7, 5  ;;  %v4292_v14 = vshrl.u32 %v4231_v44, 16  ;;  %v7387_v24 = vld [vmem:[%s8955_s3 + $0x1a8] sm:$0xff]  }
 0x12b   : > { %6839 = vmatprep.subr.bf16.mxu0 %v7383_v42  ;;  %3915 = vmatprep.mubr.bf16.mxu1 %v6054_v11  ;;  %v1838_v31 = vsel %vm7673_vm11, %v1836_v3, %v1837_v33  ;;  %v4298_v27 = vshll.u32 %v4232_v53, 16  ;;  %v6057_v32 = vrot.slane %v1732_v57, 9  ;;  %v1841_v36 = vrot.slane %v1733_v59, 5  ;;  %v1740_v53 = vld [vmem:[#allocation2 + $0x38] sm:$0x1] }
 0x12c   : > { %3916 = vmatmul.mubr.bf16.gmra.mrb[76].mxu1 %v7386_v54  ;;  %v6072_v47 = vcombine.low %v8314_v18, %v1838_v31  ;;  %v4285_v6 = vor.u32 %v4284_v10, %v4281_v55  ;;  %v4294_v0 = vrot.slane %v4292_v14, 4  ;;  %v1844_v45 = vrot.slane %v1734_v29, 5  ;;  %v7390_v57 = vld [vmem:[%s8955_s3 + $0x1f8] sm:$0xff]   ;;  %v1742_v11 = vld [vmem:[#allocation2 + $0x40] sm:$0xf]  ;;  %v7394_v10 = vld [vmem:[%s8955_s3 + $0x208] sm:$0xff]  }
 0x12d   : > { %6992 = vmatmul.mubr.bf16.gmra.mrb[72].mxu0 %v6140_v26  ;;  %v4234_v26 = vld [vmem:[#allocation2 + $0x28] sm:$0xf]  ;;  %v4300_v37 = vrot.slane %v4298_v27, 5  ;;  %v1842_v40 = vsel %vm7673_vm11, %v6057_v32, %v1841_v36  ;;  %v1843_v13 = vrot.slane %v1841_v36, 4  ;;  %v6058_v8 = vrot.slane %v1735_v20, 9  ;;  %7031 = vmatprep.mubr.bf16.mxu1 %v6071_v16  ;;  %v7393_v32 = vld [vmem:[#allocation2 + $0x18] sm:$0xff]  }
 0x12e   : > { %6840 = vmatpush3.bf16.msra.mxu0 %v7384_v48  ;;  %6995 = vmatprep.mubr.bf16.mxu0 %v6141_v56  ;;  %v4286_v42 = vrot.slane %v4285_v6, 4  ;;  %v4295_v28 = vor.u32 %v4294_v0, %v4290_v21  ;;  %v1848_v9 = vrot.slane %v1736_v22, 5  ;;  %v1851_v44 = vrot.slane %v1737_v23, 5  ;;  %v1739_v48 = vld [vmem:[#allocation2 + $0x34] sm:$0xf] }
 0x12f   : > { %6841 = vmatprep.subr.bf16.mxu0 %v7385_v62  ;;  %v7389_v56 = vld [vmem:[%s8955_s3 + $0x1b0] sm:$0xff]   ;;  %v1845_v49 = vsel %vm7673_vm11, %v1843_v13, %v1844_v45  ;;  %v4303_v54 = vshrl.u32 %v4233_v60, 16  ;;  %v4306_v51 = vshll.u32 %v4233_v60, 16  ;;  %v4312_v52 = vshll.u32 %v4234_v26, 16  ;;  %v1741_v1 = vld [vmem:[#allocation2 + $0x3c] sm:$0xe] }
 0x130   : > { %v4291_v59 = vsel %vm7739_vm14, %v4286_v42, %v4290_v21  ;;  %v4296_v17 = vrot.slane %v4295_v28, 4  ;;  %v6073_v58 = vcombine.low %v1842_v40, %v1845_v49  ;;  %v8342_v33 = vsel %vm7673_vm11, %v6058_v8, %v1848_v9  ;;  %v1743_v14 = vld [vmem:[#allocation2 + $0x44] sm:$0x1]  ;;  %v4236_v22 = vld [vmem:[#allocation2 + $0x30] sm:$0xf] }
 0x131   : > { %v1850_v2 = vrot.slane %v1848_v9, 4  ;;  %v4305_v4 = vrot.slane %v4303_v54, 4  ;;  %v4308_v5 = vrot.slane %v4306_v51, 5  ;;  %v8344_v7 = vrot.slane %v4312_v52, 5  ;;  %v4237_v27 = vld [vmem:[#allocation2 + $0x34] sm:$0xf] }
 0x132   : > { %6842 = vmatpush3.bf16.msra.mxu0 %v7387_v24  ;;  %v4301_v62 = vsel %vm7739_vm14, %v4296_v17, %v4300_v37  ;;  %v4316_v16 = vshrl.u32 %v4234_v26, 16  ;;  %v4322_v18 = vshll.u32 %v4235_v19, 16  ;;  %v6059_v3 = vrot.slane %v1738_v41, 9  ;;  %v4238_v0 = vld [vmem:[#allocation2 + $0x38] sm:$0x1]  ;;  %v7396_v45 = vld [vmem:[%s8955_s3 + $0x210] sm:$0xff]  }
 0x133   : > { %6843 = vmatprep.subr.bf16.mxu0 %v7388_v25  ;;  %v6215_v29 = vcombine.low %v4291_v59, %v4301_v62  ;;  %v8353_v20 = vsel %vm7673_vm11, %v1850_v2, %v1851_v44  ;;  %v4309_v55 = vor.u32 %v4308_v5, %v4305_v4  ;;  %v1855_v21 = vrot.slane %v1739_v48, 5  ;;  %v1744_v40 = vld [vmem:[#allocation2 + $0x48] sm:$0xe]  ;;  %v1746_v28 = vld [vmem:[#allocation2 + $0x50] sm:$0x1]  ;;  %v7398_v17 = vld [vmem:[%s8955_s3 + $0x218] sm:$0xff]  }
 0x134   : > { %7032 = vmatmul.mubr.bf16.vlgmr.msra.gmra.mrb[80].mxu1 %v6072_v47  ;;  %v6074_v43 = vcombine.low %v8342_v33, %v8353_v20  ;;  %v4324_v24 = vrot.slane %v4322_v18, 5  ;;  %v1858_v31 = vrot.slane %v1740_v53, 5  ;;  %v6060_v47 = vrot.slane %v1741_v1, 9  ;;  %v1747_v9 = vld [vmem:[#allocation2 + $0x54] sm:$0xe] }
 0x135   : > { %6996 = vmatmul.mubr.bf16.gmra.mrb[76].mxu0 %v6142_v50  ;;  %v4318_v50 = vrot.slane %v4316_v16, 4  ;;  %v4310_v36 = vrot.slane %v4309_v55, 4  ;;  %v1856_v23 = vsel %vm7673_vm11, %v6059_v3, %v1855_v21  ;;  %v1857_v6 = vrot.slane %v1855_v21, 4  ;;  %7064 = vmatpush3.bf16.msra.mxu1 %v8152_v34  ;;  %v1745_v34 = vld [vmem:[#allocation2 + $0x4c] sm:$0xf]  ;;  %v7395_v55 = vld [vmem:[#allocation2 + $0x24] sm:$0xff]  }
 0x136   : > { %6844 = vmatpush3.bf16.msra.mxu0 %v7389_v56  ;;  %5302 = vmatprep.mubr.bf16.mxu0 %v6215_v29  ;;  %v1862_v26 = vrot.slane %v1742_v11, 5  ;;  %v1865_v25 = vrot.slane %v1743_v14, 5  ;;  %v4327_v37 = vshrl.u32 %v4236_v22, 16  ;;  %v4330_v41 = vshll.u32 %v4236_v22, 16  ;;  %v1748_v54 = vld [vmem:[#allocation2 + $0x58] sm:$0xf] }
 0x137   : > { %6845 = vmatprep.subr.bf16.mxu0 %v7390_v57  ;;  %7035 = vmatprep.mubr.bf16.mxu1 %v6073_v58  ;;  %v4319_v60 = vor.u32 %v4318_v50, %v8344_v7  ;;  %v8370_v13 = vpop.f32.mrb[4].mxu0  ;;  %v4315_v8 = vsel %vm7739_vm14, %v4310_v36, %v8344_v7  ;;  %v1859_v19 = vsel %vm7673_vm11, %v1857_v6, %v1858_v31  ;;  %v4336_v42 = vshll.u32 %v4237_v27, 16  ;;  %v1749_v51 = vld [vmem:[#allocation2 + $0x5c] sm:$0x1]  ;;  %v7400_v50 = vld [vmem:[%s8955_s3 + $0x220] sm:$0xff]  }
 0x138   : > { %7065 = vmatprep.subr.bf16.mxu1 %v7394_v10  ;;  %v6075_v48 = vcombine.low %v1856_v23, %v1859_v19  ;;  %v8379_v56 = vsel %vm7673_vm11, %v6060_v47, %v1862_v26  ;;  %v1864_v49 = vrot.slane %v1862_v26, 4  ;;  %v4329_v52 = vrot.slane %v4327_v37, 4  ;;  %v4239_v62 = vld [vmem:[#allocation2 + $0x3c] sm:$0xf]  ;;  %v8392_v16 = vpop.f32.mrb[5].mxu0 }
 0x139   : > { %v4320_v44 = vrot.slane %v4319_v60, 4  ;;  %v4332_v53 = vrot.slane %v4330_v41, 5  ;;  %v4338_v57 = vrot.slane %v4336_v42, 5  ;;  %v4340_v59 = vshrl.u32 %v4237_v27, 16  ;;  %7066 = vmatpush3.bf16.msra.mxu1 %v7394_v10  ;;  %v4241_v27 = vld [vmem:[#allocation2 + $0x44] sm:$0x1] }
 0x13a   : > { %6846 = vmatpush3.bf16.msra.mxu0 %v7391_v38  ;;  %v8388_v33 = vsel %vm7673_vm11, %v1864_v49, %v1865_v25  ;;  %v4346_v1 = vshll.u32 %v4238_v0, 16  ;;  %v6061_v2 = vrot.slane %v1744_v40, 9  ;;  %7067 = vmatprep.subr.bf16.mxu1 %v7396_v45  ;;  %v1869_v3 = vrot.slane %v1745_v34, 5  ;;  %v4240_v38 = vld [vmem:[#allocation2 + $0x40] sm:$0xf] }
 0x13b   : > { %v4325_v58 = vsel %vm7739_vm14, %v4320_v44, %v4324_v24  ;;  %v6076_v5 = vcombine.low %v8379_v56, %v8388_v33  ;;  %v4333_v7 = vor.u32 %v4332_v53, %v4329_v52  ;;  %v4342_v11 = vrot.slane %v4340_v59, 4  ;;  %v8397_v24 = vpop.f32.mrb[6].mxu0  ;;  %v1750_v23 = vld [vmem:[#allocation2 + $0x60] sm:$0xe]  ;;  %v1752_v25 = vld [vmem:[#allocation2 + $0x68] sm:$0x1] }
 0x13c   : > { %v6216_v4 = vcombine.low %v4315_v8, %v4325_v58  ;;  %7036 = vmatmul.mubr.bf16.gmra.mrb[84].mxu1 %v6074_v43  ;;  %v4348_v18 = vrot.slane %v4346_v1, 5  ;;  %v1872_v29 = vrot.slane %v1746_v28, 5  ;;  %v6062_v20 = vrot.slane %v1747_v9, 9  ;;  %v8401_v6 = vpop.f32.mrb[7].mxu0  ;;  %v1753_v41 = vld [vmem:[#allocation2 + $0x6c] sm:$0xe] }
 0x13d   : > { %5303 = vmatmul.mubr.bf16.vlgmr.msra.gmra.mrb[80].mxu0 %v7393_v32  ;;  %7039 = vmatprep.mubr.bf16.mxu1 %v6075_v48  ;;  %v4334_v10 = vrot.slane %v4333_v7, 4  ;;  %v4343_v21 = vor.u32 %v4342_v11, %v4338_v57  ;;  %v1876_v14 = vrot.slane %v1748_v54, 5  ;;  %v1879_v22 = vrot.slane %v1749_v51, 5  ;;  %v1754_v44 = vld [vmem:[#allocation2 + $0x70] sm:$0xf]  ;;  %v7402_v53 = vld [vmem:[%s8955_s3 + $0x228] sm:$0xff]  }
 0x13e   : > { %5310 = vmatprep.mubr.bf16.mxu0 %v6216_v4  ;;  %7068 = vmatpush3.bf16.msra.mxu1 %v7396_v45  ;;  %v1870_v43 = vsel %vm7673_vm11, %v6061_v2, %v1869_v3  ;;  %v1871_v31 = vrot.slane %v1869_v3, 4  ;;  %v4351_v32 = vshrl.u32 %v4239_v62, 16  ;;  %v4354_v36 = vshll.u32 %v4239_v62, 16  ;;  %v1751_v45 = vld [vmem:[#allocation2 + $0x64] sm:$0xf]  ;;  %v7397_v11 = vld [vmem:[#allocation2 + $0x30] sm:$0xff]  }
 0x13f   : > { %v4339_v47 = vsel %vm7739_vm14, %v4334_v10, %v4338_v57  ;;  %v4344_v0 = vrot.slane %v4343_v21, 4  ;;  %v8407_v60 = vsel %vm7673_vm11, %v6062_v20, %v1876_v14  ;;  %v1878_v26 = vrot.slane %v1876_v14, 4  ;;  %7069 = vmatprep.subr.bf16.mxu1 %v7398_v17  ;;  %v1755_v48 = vld [vmem:[#allocation2 + $0x74] sm:$0x1]  ;;  %v4242_v52 = vld [vmem:[#allocation2 + $0x48] sm:$0xf] }
 0x140   : > { %v1873_v37 = vsel %vm7673_vm11, %v1871_v31, %v1872_v29  ;;  %v4353_v40 = vrot.slane %v4351_v32, 4  ;;  %v4356_v8 = vrot.slane %v4354_v36, 5  ;;  %v4360_v19 = vshll.u32 %v4240_v38, 16  ;;  %v4243_v29 = vld [vmem:[#allocation2 + $0x4c] sm:$0xf]  ;;  %v7404_v36 = vld [vmem:[%s8955_s3 + $0x230] sm:$0xff]  }
 0x141   : > { %v4349_v42 = vsel %vm7739_vm14, %v4344_v0, %v4348_v18  ;;  %v6077_v34 = vcombine.low %v1870_v43, %v1873_v37  ;;  %v8415_v28 = vsel %vm7673_vm11, %v1878_v26, %v1879_v22  ;;  %v4364_v9 = vshrl.u32 %v4240_v38, 16  ;;  %v4244_v20 = vld [vmem:[#allocation2 + $0x50] sm:$0x1]  ;;  %v1756_v14 = vld [vmem:[#allocation2 + $0x78] sm:$0xe] }
 0x142   : > { %v6217_v56 = vcombine.low %v4339_v47, %v4349_v42  ;;  %v6078_v49 = vcombine.low %v8407_v60, %v8415_v28  ;;  %v4357_v54 = vor.u32 %v4356_v8, %v4353_v40  ;;  %v4362_v51 = vrot.slane %v4360_v19, 5  ;;  %7070 = vmatpush3.bf16.msra.mxu1 %v7398_v17  ;;  %v1757_v22 = vld [vmem:[#allocation2 + $0x7c] sm:$0xf]  ;;  %v1758_v32 = vld [vmem:[#allocation2 + $0x80] sm:$0x1] }
 0x143   : > { %v4366_v57 = vrot.slane %v4364_v9, 4  ;;  %v4370_v59 = vshll.u32 %v4241_v27, 16  ;;  %v6063_v58 = vrot.slane %v1750_v23, 9  ;;  %v1883_v33 = vrot.slane %v1751_v45, 5  ;;  %7071 = vmatprep.subr.bf16.mxu1 %v7400_v50  ;;  %v1759_v26 = vld [vmem:[#allocation2 + $0x84] sm:$0xe] }
 0x144   : > { %7040 = vmatmul.mubr.bf16.gmra.mrb[88].mxu1 %v6076_v5  ;;  %v4358_v1 = vrot.slane %v4357_v54, 4  ;;  %v1886_v2 = vrot.slane %v1752_v25, 5  ;;  %v6064_v4 = vrot.slane %v1753_v41, 9  ;;  %v1890_v7 = vrot.slane %v1754_v44, 5  ;;  %v1760_v45 = vld [vmem:[#allocation2 + $0x88] sm:$0xf] }
 0x145   : > { %5311 = vmatmul.mubr.bf16.gmra.mrb[84].mxu0 %v7395_v55  ;;  %7043 = vmatprep.mubr.bf16.mxu1 %v6077_v34  ;;  %v4367_v17 = vor.u32 %v4366_v57, %v4362_v51  ;;  %v4372_v62 = vrot.slane %v4370_v59, 5  ;;  %v1884_v18 = vsel %vm7673_vm11, %v6063_v58, %v1883_v33  ;;  %v1885_v3 = vrot.slane %v1883_v33, 4  ;;  %v1761_v19 = vld [vmem:[#allocation2 + $0x8c] sm:$0x1]  ;;  %v4245_v41 = vld [vmem:[#allocation2 + $0x54] sm:$0xf] }
 0x146   : > { %5318 = vmatprep.mubr.bf16.mxu0 %v6217_v56  ;;  %v4363_v55 = vsel %vm7739_vm14, %v4358_v1, %v4362_v51  ;;  %v8428_v5 = vsel %vm7673_vm11, %v6064_v4, %v1890_v7  ;;  %v1892_v10 = vrot.slane %v1890_v7, 4  ;;  %v1893_v21 = vrot.slane %v1755_v48, 5  ;;  %7072 = vmatpush3.bf16.msra.mxu1 %v7400_v50 }
 0x147   : > { %v4368_v38 = vrot.slane %v4367_v17, 4  ;;  %v1887_v43 = vsel %vm7673_vm11, %v1885_v3, %v1886_v2  ;;  %v4375_v31 = vshrl.u32 %v4242_v52, 16  ;;  %v4378_v27 = vshll.u32 %v4242_v52, 16  ;;  %7073 = vmatprep.subr.bf16.mxu1 %v7402_v53  ;;  %v7406_v52 = vld [vmem:[%s8955_s3 + $0x238] sm:$0xff]   ;;  %v1762_v17 = vld [vmem:[#allocation2 + $0x90] sm:$0xe] }
 0x148   : > { %v6079_v23 = vcombine.low %v1884_v18, %v1887_v43  ;;  %v8437_v47 = vsel %vm7673_vm11, %v1892_v10, %v1893_v21  ;;  %v4384_v50 = vshll.u32 %v4243_v29, 16  ;;  %v4388_v0 = vshrl.u32 %v4243_v29, 16  ;;  %v1763_v3 = vld [vmem:[#allocation2 + $0x94] sm:$0xf]  ;;  %v1764_v21 = vld [vmem:[#allocation2 + $0x98] sm:$0x1] }
 0x149   : > { %v4373_v25 = vsel %vm7739_vm14, %v4368_v38, %v4372_v62  ;;  %v6080_v37 = vcombine.low %v8428_v5, %v8437_v47  ;;  %v4377_v40 = vrot.slane %v4375_v31, 4  ;;  %v4380_v8 = vrot.slane %v4378_v27, 5  ;;  %v7399_v62 = vld [vmem:[#allocation2 + $0x3c] sm:$0xff]   ;;  %v4250_v47 = vld [vmem:[#allocation2 + $0x68] sm:$0x1] }
 0x14a   : > { %v6218_v42 = vcombine.low %v4363_v55, %v4373_v25  ;;  %v4386_v34 = vrot.slane %v4384_v50, 5  ;;  %v4390_v9 = vrot.slane %v4388_v0, 4  ;;  %v4394_v44 = vshll.u32 %v4244_v20, 16  ;;  %7074 = vmatpush3.bf16.msra.mxu1 %v7402_v53  ;;  %v4246_v53 = vld [vmem:[#allocation2 + $0x58] sm:$0xf] }
 0x14b   : > { %v4381_v48 = vor.u32 %v4380_v8, %v4377_v40  ;;  %v6065_v56 = vrot.slane %v1756_v14, 9  ;;  %v1897_v54 = vrot.slane %v1757_v22, 5  ;;  %v1900_v51 = vrot.slane %v1758_v32, 5  ;;  %7075 = vmatprep.subr.bf16.mxu1 %v7404_v36  ;;  %v1765_v14 = vld [vmem:[#allocation2 + $0x9c] sm:$0xe] }
 0x14c   : > { %7044 = vmatmul.mubr.bf16.gmra.mrb[92].mxu1 %v6078_v49  ;;  %v4391_v57 = vor.u32 %v4390_v9, %v4386_v34  ;;  %v4396_v59 = vrot.slane %v4394_v44, 5  ;;  %v6066_v58 = vrot.slane %v1759_v26, 9  ;;  %v1904_v33 = vrot.slane %v1760_v45, 5  ;;  %v1766_v27 = vld [vmem:[#allocation2 + $0xa0] sm:$0xf] }
 0x14d   : > { %5319 = vmatmul.mubr.bf16.gmra.mrb[88].mxu0 %v7397_v11  ;;  %7047 = vmatprep.mubr.bf16.mxu1 %v6079_v23  ;;  %v4382_v1 = vrot.slane %v4381_v48, 4  ;;  %v1898_v2 = vsel %vm7673_vm11, %v6065_v56, %v1897_v54  ;;  %v1899_v4 = vrot.slane %v1897_v54, 4  ;;  %v1907_v7 = vrot.slane %v1761_v19, 5  ;;  %v4247_v11 = vld [vmem:[#allocation2 + $0x5c] sm:$0x1] }
 0x14e   : > { %5326 = vmatprep.mubr.bf16.mxu0 %v6218_v42  ;;  %v4392_v18 = vrot.slane %v4391_v57, 4  ;;  %v8453_v60 = vsel %vm7673_vm11, %v6066_v58, %v1904_v33  ;;  %v1906_v28 = vrot.slane %v1904_v33, 4  ;;  %v4399_v49 = vshrl.u32 %v4245_v41, 16  ;;  %7076 = vmatpush3.bf16.msra.mxu1 %v7404_v36  ;;  %v1767_v32 = vld [vmem:[#allocation2 + $0xa4] sm:$0x1] }
 0x14f   : > { %v4387_v29 = vsel %vm7739_vm14, %v4382_v1, %v4386_v34  ;;  %v1901_v20 = vsel %vm7673_vm11, %v1899_v4, %v1900_v51  ;;  %v4402_v55 = vshll.u32 %v4245_v41, 16  ;;  %v4408_v10 = vshll.u32 %v4246_v53, 16  ;;  %7077 = vmatprep.subr.bf16.mxu1 %v7406_v52  ;;  %v4248_v45 = vld [vmem:[#allocation2 + $0x60] sm:$0xf]  ;;  %v4249_v56 = vld [vmem:[#allocation2 + $0x64] sm:$0xf] }
 0x150   : > { %v4397_v22 = vsel %vm7739_vm14, %v4392_v18, %v4396_v59  ;;  %v6081_v38 = vcombine.low %v1898_v2, %v1901_v20  ;;  %v8463_v43 = vsel %vm7673_vm11, %v1906_v28, %v1907_v7  ;;  %v4401_v31 = vrot.slane %v4399_v49, 4  ;;  %v1768_v7 = vld [vmem:[#allocation2 + $0xa8] sm:$0xe]  ;;  %v1769_v28 = vld [vmem:[#allocation2 + $0xac] sm:$0xf] }
 0x151   : > { %v8465_v36 = vpop.f32.mrb[8].mxu0  ;;  %v6219_v23 = vcombine.low %v4387_v29, %v4397_v22  ;;  %v6082_v50 = vcombine.low %v8453_v60, %v8463_v43  ;;  %v4404_v0 = vrot.slane %v4402_v55, 5  ;;  %v4410_v26 = vrot.slane %v4408_v10, 5  ;;  %v1770_v49 = vld [vmem:[#allocation2 + $0xb0] sm:$0x1] }
 0x152   : > { %v8469_v25 = vpop.f32.mrb[9].mxu0  ;;  %v4412_v40 = vshrl.u32 %v4246_v53, 16  ;;  %v4418_v8 = vshll.u32 %v4247_v11, 16  ;;  %v6067_v19 = vrot.slane %v1762_v17, 9  ;;  %v1911_v41 = vrot.slane %v1763_v3, 5  ;;  %7078 = vmatpush3.bf16.msra.mxu1 %v7406_v52  ;;  %v7401_v11 = vld [vmem:[#allocation2 + $0x48] sm:$0xff]  }
 0x153   : > { %v8471_v42 = vpop.f32.mrb[10].mxu0  ;;  %v4405_v34 = vor.u32 %v4404_v0, %v4401_v31  ;;  %v1914_v9 = vrot.slane %v1764_v21, 5  ;;  %v6068_v44 = vrot.slane %v1765_v14, 9  ;;  %v1918_v48 = vrot.slane %v1766_v27, 5  ;;  %v1773_v0 = vld [vmem:[#allocation2 + $0xbc] sm:$0x1] }
 0x154   : > { %v8473_v54 = vpop.f32.mrb[11].mxu0  ;;  %7048 = vmatmul.mubr.bf16.gmra.mrb[0].mxu1 %v6080_v37  ;;  %v4414_v51 = vrot.slane %v4412_v40, 4  ;;  %v4420_v57 = vrot.slane %v4418_v8, 5  ;;  %v1912_v52 = vsel %vm7673_vm11, %v6067_v19, %v1911_v41  ;;  %v1913_v59 = vrot.slane %v1911_v41, 4  ;;  %v4251_v19 = vld [vmem:[#allocation2 + $0x6c] sm:$0xf] }
 0x155   : > { %5327 = vmatmul.mubr.bf16.gmra.mrb[92].mxu0 %v7399_v62  ;;  %7051 = vmatprep.mubr.bf16.mxu1 %v6081_v38  ;;  %v4406_v58 = vrot.slane %v4405_v34, 4  ;;  %v8482_v33 = vsel %vm7673_vm11, %v6068_v44, %v1918_v48  ;;  %v1920_v53 = vrot.slane %v1918_v48, 4  ;;  %v1921_v1 = vrot.slane %v1767_v32, 5  ;;  %v1771_v38 = vld [vmem:[#allocation2 + $0xb4] sm:$0xe] }
 0x156   : > { %5334 = vmatprep.mubr.bf16.mxu0 %v6219_v23  ;;  %v4415_v2 = vor.u32 %v4414_v51, %v4410_v26  ;;  %v1915_v5 = vsel %vm7673_vm11, %v1913_v59, %v1914_v9  ;;  %v4423_v37 = vshrl.u32 %v4248_v45, 16  ;;  %v4426_v4 = vshll.u32 %v4248_v45, 16  ;;  %v1772_v23 = vld [vmem:[#allocation2 + $0xb8] sm:$0xf]  ;;  %v4253_v59 = vld [vmem:[#allocation2 + $0x74] sm:$0x1] }
 0x157   : > { %v4411_v17 = vsel %vm7739_vm14, %v4406_v58, %v4410_v26  ;;  %v6083_v62 = vcombine.low %v1912_v52, %v1915_v5  ;;  %v8490_v18 = vsel %vm7673_vm11, %v1920_v53, %v1921_v1  ;;  %v4432_v60 = vshll.u32 %v4249_v56, 16  ;;  %v7403_v48 = vld [vmem:[#allocation2 + $0x54] sm:$0xff]  }
 0x158   : > { %v4416_v3 = vrot.slane %v4415_v2, 4  ;;  %v6084_v29 = vcombine.low %v8482_v33, %v8490_v18  ;;  %v4425_v20 = vrot.slane %v4423_v37, 4  ;;  %v4428_v55 = vrot.slane %v4426_v4, 5  ;;  %v4742_v1 = vld [vmem:[#allocation2 + $0x18] sm:$0xe] }
 0x159   : > { %v4434_v10 = vrot.slane %v4432_v60, 5  ;;  %v4436_v21 = vshrl.u32 %v4249_v56, 16  ;;  %v4442_v14 = vshll.u32 %v4250_v47, 16  ;;  %v6069_v22 = vrot.slane %v1768_v7, 9  ;;  %v4256_v33 = vld [vmem:[#allocation2 + $0x80] sm:$0x1] }
 0x15a   : > { %v4421_v43 = vsel %vm7739_vm14, %v4416_v3, %v4420_v57  ;;  %v4429_v31 = vor.u32 %v4428_v55, %v4425_v20  ;;  %v1925_v27 = vrot.slane %v1769_v28, 5  ;;  %v1928_v32 = vrot.slane %v1770_v49, 5  ;;  %v4746_v20 = vld [vmem:[#allocation2 + $0x28] sm:$0xf]  ;;  %v4747_v55 = vld [vmem:[#allocation2 + $0x2c] sm:$0x1] }
 0x15b   : > { %v6220_v26 = vcombine.low %v4411_v17, %v4421_v43  ;;  %v4438_v45 = vrot.slane %v4436_v21, 4  ;;  %v4444_v40 = vrot.slane %v4442_v14, 5  ;;  %v8498_v8 = vadd.f32 %v8271_v61, %v8262_v15  ;;  %v4252_v15 = vld [vmem:[#allocation2 + $0x70] sm:$0xf] }
 0x15c   : > { %7052 = vmatmul.mubr.bf16.gmra.mrb[4].mxu1 %v6082_v50  ;;  %v4430_v41 = vrot.slane %v4429_v31, 4  ;;  %v1926_v34 = vsel %vm7673_vm11, %v6069_v22, %v1925_v27  ;;  %v1927_v9 = vrot.slane %v1925_v27, 4  ;;  %v6070_v44 = vrot.slane %v1771_v38, 9 }
 0x15d   : > { %5335 = vmatmul.mubr.bf16.gmra.mrb[96].mxu0 %v7401_v11  ;;  %7055 = vmatprep.mubr.bf16.mxu1 %v6083_v62  ;;  %v4439_v56 = vor.u32 %v4438_v45, %v4434_v10  ;;  %v1932_v51 = vrot.slane %v1772_v23, 5  ;;  %v1935_v57 = vrot.slane %v1773_v0, 5  ;;  %v8504_v52 = vadd.f32 %v8296_v46, %v8280_v39  ;;  %v4743_v39 = vld [vmem:[#allocation2 + $0x1c] sm:$0xf]  ;;  %v4744_v46 = vld [vmem:[#allocation2 + $0x20] sm:$0x1] }
 0x15e   : > { %5342 = vmatprep.mubr.bf16.mxu0 %v6220_v26  ;;  %v4435_v61 = vsel %vm7739_vm14, %v4430_v41, %v4434_v10  ;;  %v1929_v50 = vsel %vm7673_vm11, %v1927_v9, %v1928_v32  ;;  %v4447_v58 = vshrl.u32 %v4251_v19, 16  ;;  %v4450_v53 = vshll.u32 %v4251_v19, 16  ;;  %v4745_v62 = vld [vmem:[#allocation2 + $0x24] sm:$0xe]  ;;  %v4254_v45 = vld [vmem:[#allocation2 + $0x78] sm:$0xf] }
 0x15f   : > { %v4440_v2 = vrot.slane %v4439_v56, 4  ;;  %v6085_v5 = vcombine.low %v1926_v34, %v1929_v50  ;;  %v8512_v47 = vsel %vm7673_vm11, %v6070_v44, %v1932_v51  ;;  %v1934_v37 = vrot.slane %v1932_v51, 4  ;;  %v4255_v44 = vld [vmem:[#allocation2 + $0x7c] sm:$0xf]  ;;  %v4749_v56 = vld [vmem:[#allocation2 + $0x34] sm:$0xf] }
 0x160   : > { %v4449_v4 = vrot.slane %v4447_v58, 4  ;;  %v4452_v7 = vrot.slane %v4450_v53, 5  ;;  %v4456_v11 = vshll.u32 %v4252_v15, 16  ;;  %v4460_v17 = vshrl.u32 %v4252_v15, 16  ;;  %v4750_v51 = vld [vmem:[#allocation2 + $0x38] sm:$0x1] }
 0x161   : > { %v4445_v60 = vsel %vm7739_vm14, %v4440_v2, %v4444_v40  ;;  %v8518_v28 = vsel %vm7673_vm11, %v1934_v37, %v1935_v57  ;;  %v4466_v49 = vshll.u32 %v4253_v59, 16  ;;  %v6231_v3 = vrot.slane %v4742_v1, 9  ;;  %v7405_v40 = vld [vmem:[#allocation2 + $0x60] sm:$0xff]   ;;  %v4751_v58 = vld [vmem:[#allocation2 + $0x3c] sm:$0xe] }
 0x162   : > { %v6221_v10 = vcombine.low %v4435_v61, %v4445_v60  ;;  %v6086_v21 = vcombine.low %v8512_v47, %v8518_v28  ;;  %v4453_v14 = vor.u32 %v4452_v7, %v4449_v4  ;;  %v4458_v22 = vrot.slane %v4456_v11, 5  ;;  %v4753_v7 = vld [vmem:[#allocation2 + $0x44] sm:$0x1] }
 0x163   : > { %v4462_v38 = vrot.slane %v4460_v17, 4  ;;  %v4468_v43 = vrot.slane %v4466_v49, 5  ;;  %v4840_v31 = vrot.slane %v4743_v39, 5  ;;  %v4843_v27 = vrot.slane %v4744_v46, 5  ;;  %v4257_v11 = vld [vmem:[#allocation2 + $0x84] sm:$0xf] }
 0x164   : > { %7056 = vmatmul.mubr.bf16.gmra.mrb[8].mxu1 %v6084_v29  ;;  %v4454_v32 = vrot.slane %v4453_v14, 4  ;;  %v8527_v23 = vadd.f32 %v8392_v16, %v8370_v13  ;;  %v6232_v0 = vrot.slane %v4745_v62, 9  ;;  %v4847_v26 = vrot.slane %v4746_v20, 5 }
 0x165   : > { %5343 = vmatmul.mubr.bf16.gmra.mrb[100].mxu0 %v7403_v48  ;;  %7059 = vmatprep.mubr.bf16.mxu1 %v6085_v5  ;;  %v4463_v19 = vor.u32 %v4462_v38, %v4458_v22  ;;  %v4841_v41 = vsel %vm7673_vm11, %v6231_v3, %v4840_v31  ;;  %v4842_v34 = vrot.slane %v4840_v31, 4  ;;  %v4850_v9 = vrot.slane %v4747_v55, 5  ;;  %v4748_v48 = vld [vmem:[#allocation2 + $0x30] sm:$0xe]  ;;  %v4752_v5 = vld [vmem:[#allocation2 + $0x40] sm:$0xf] }
 0x166   : > { %5350 = vmatprep.mubr.bf16.mxu0 %v6221_v10  ;;  %v4459_v18 = vsel %vm7739_vm14, %v4454_v32, %v4458_v22  ;;  %v8535_v13 = vsel %vm7673_vm11, %v6232_v0, %v4847_v26  ;;  %v4849_v16 = vrot.slane %v4847_v26, 4  ;;  %v8539_v29 = vadd.f32 %v8401_v6, %v8397_v24  ;;  %v4258_v32 = vld [vmem:[#allocation2 + $0x88] sm:$0xf] }
 0x167   : > { %v8541_v57 = vpop.f32.mrb[16].mxu1  ;;  %v4464_v15 = vrot.slane %v4463_v19, 4  ;;  %v4844_v61 = vsel %vm7673_vm11, %v4842_v34, %v4843_v27  ;;  %v4471_v50 = vshrl.u32 %v4254_v45, 16  ;;  %v4474_v59 = vshll.u32 %v4254_v45, 16 }
 0x168   : > { %v8545_v53 = vpop.f32.mrb[17].mxu1  ;;  %v6247_v1 = vcombine.low %v4841_v41, %v4844_v61  ;;  %v8549_v2 = vsel %vm7673_vm11, %v4849_v16, %v4850_v9  ;;  %v4480_v24 = vshll.u32 %v4255_v44, 16  ;;  %v4484_v6 = vshrl.u32 %v4255_v44, 16  ;;  %v4259_v41 = vld [vmem:[#allocation2 + $0x8c] sm:$0x1] }
 0x169   : > { %v8551_v47 = vpop.f32.mrb[18].mxu1  ;;  %v4469_v37 = vsel %vm7739_vm14, %v4464_v15, %v4468_v43  ;;  %v6248_v39 = vcombine.low %v8535_v13, %v8549_v2  ;;  %v4473_v46 = vrot.slane %v4471_v50, 4  ;;  %v4476_v4 = vrot.slane %v4474_v59, 5  ;;  %v4756_v15 = vld [vmem:[#allocation2 + $0x50] sm:$0x1] }
 0x16a   : > { %v8557_v17 = vpop.f32.mrb[19].mxu1  ;;  %v6222_v62 = vcombine.low %v4459_v18, %v4469_v37  ;;  %v4482_v60 = vrot.slane %v4480_v24, 5  ;;  %v4486_v28 = vrot.slane %v4484_v6, 4  ;;  %v4490_v49 = vshll.u32 %v4256_v33, 16  ;;  %v7407_v33 = vld [vmem:[#allocation2 + $0x6c] sm:$0xff]  }
 0x16b   : > { %v4477_v20 = vor.u32 %v4476_v4, %v4473_v46  ;;  %v6233_v55 = vrot.slane %v4748_v48, 9  ;;  %v4854_v10 = vrot.slane %v4749_v56, 5  ;;  %v4857_v14 = vrot.slane %v4750_v51, 5  ;;  %v4755_v51 = vld [vmem:[#allocation2 + $0x4c] sm:$0xf] }
 0x16c   : > { %v6593_v3 = vpop.f32.mrb[12].mxu0  ;;  %7060 = vmatmul.mubr.bf16.gmra.mrb[12].mxu1 %v6086_v21  ;;  %v4487_v38 = vor.u32 %v4486_v28, %v4482_v60  ;;  %v4492_v43 = vrot.slane %v4490_v49, 5  ;;  %v8561_v31 = vadd.f32 %v8469_v25, %v8465_v36  ;;  %v6234_v27 = vrot.slane %v4751_v58, 9  ;;  %v4754_v25 = vld [vmem:[#allocation2 + $0x48] sm:$0xe] }
 0x16d   : > { %5351 = vmatmul.mubr.bf16.gmra.mrb[104].mxu0 %v7405_v40  ;;  %v6594_v22 = vpop.f32.mrb[13].mxu0  ;;  %7079 = vmatprep.mubr.bf16.mxu1 %v6247_v1  ;;  %v4478_v26 = vrot.slane %v4477_v20, 4  ;;  %v4855_v45 = vsel %vm7673_vm11, %v6233_v55, %v4854_v10  ;;  %v4856_v40 = vrot.slane %v4854_v10, 4  ;;  %v4861_v19 = vrot.slane %v4752_v5, 5  ;;  %v4757_v59 = vld [vmem:[#allocation2 + $0x54] sm:$0xe] }
 0x16e   : > { %5358 = vmatprep.mubr.bf16.mxu0 %v6222_v62  ;;  %v6596_v0 = vpop.f32.mrb[14].mxu0  ;;  %v4488_v21 = vrot.slane %v4487_v38, 4  ;;  %v4864_v9 = vrot.slane %v4753_v7, 5  ;;  %v8567_v44 = vadd.f32 %v8473_v54, %v8471_v42  ;;  %v4495_v36 = vshrl.u32 %v4257_v11, 16  ;;  %v4758_v58 = vld [vmem:[#allocation2 + $0x58] sm:$0xf] }
 0x16f   : > { %v6597_v34 = vpop.f32.mrb[15].mxu0  ;;  %v4483_v18 = vsel %vm7739_vm14, %v4478_v26, %v4482_v60  ;;  %v4858_v16 = vsel %vm7673_vm11, %v4856_v40, %v4857_v14  ;;  %v8575_v48 = vsel %vm7673_vm11, %v6234_v27, %v4861_v19  ;;  %v4863_v56 = vrot.slane %v4861_v19, 4  ;;  %v4759_v37 = vld [vmem:[#allocation2 + $0x5c] sm:$0x1]  ;;  %v4260_v28 = vld [vmem:[#allocation2 + $0x90] sm:$0xf] }
 0x170   : > { %v4493_v42 = vsel %vm7739_vm14, %v4488_v21, %v4492_v43  ;;  %v6249_v54 = vcombine.low %v4855_v45, %v4858_v16  ;;  %v4497_v61 = vrot.slane %v4495_v36, 4  ;;  %v4498_v50 = vshll.u32 %v4257_v11, 16  ;;  %v4261_v21 = vld [vmem:[#allocation2 + $0x94] sm:$0xf]  ;;  %v4760_v16 = vld [vmem:[#allocation2 + $0x60] sm:$0xe] }
 0x171   : > { %v6223_v1 = vcombine.low %v4483_v18, %v4493_v42  ;;  %v8581_v24 = vsel %vm7673_vm11, %v4863_v56, %v4864_v9  ;;  %v4504_v6 = vshll.u32 %v4258_v32, 16  ;;  %v4508_v5 = vshrl.u32 %v4258_v32, 16  ;;  %v7408_v9 = vld [vmem:[#allocation2 + $0x78] sm:$0xff]   ;;  %v4763_v42 = vld [vmem:[#allocation2 + $0x6c] sm:$0xe] }
 0x172   : > { %v8583_v46 = vpop.f32.mrb[20].mxu1  ;;  %v6250_v4 = vcombine.low %v8575_v48, %v8581_v24  ;;  %v4500_v7 = vrot.slane %v4498_v50, 5  ;;  %v4514_v62 = vshll.u32 %v4259_v41, 16  ;;  %v6235_v60 = vrot.slane %v4754_v25, 9  ;;  %v4761_v48 = vld [vmem:[#allocation2 + $0x64] sm:$0xf] }
 0x173   : > { %v8587_v11 = vpop.f32.mrb[21].mxu1  ;;  %v4506_v49 = vrot.slane %v4504_v6, 5  ;;  %v4510_v20 = vrot.slane %v4508_v5, 4  ;;  %v4868_v55 = vrot.slane %v4755_v51, 5  ;;  %v4871_v10 = vrot.slane %v4756_v15, 5 }
 0x174   : > { %v8589_v14 = vpop.f32.mrb[22].mxu1  ;;  %7080 = vmatmul.mubr.bf16.vlgmr.msra.gmra.mrb[80].mxu1 %v6248_v39  ;;  %v4501_v38 = vor.u32 %v4500_v7, %v4497_v61  ;;  %v4516_v43 = vrot.slane %v4514_v62, 5  ;;  %v8594_v27 = vadd.f32 %v6594_v22, %v6593_v3  ;;  %v6236_v32 = vrot.slane %v4757_v59, 9  ;;  %v4262_v39 = vld [vmem:[#allocation2 + $0x98] sm:$0x1] }
 0x175   : > { %5359 = vmatmul.mubr.bf16.gmra.mrb[108].mxu0 %v7407_v33  ;;  %v8596_v26 = vpop.f32.mrb[23].mxu1  ;;  %7083 = vmatprep.mubr.bf16.mxu1 %v6249_v54  ;;  %v4511_v45 = vor.u32 %v4510_v20, %v4506_v49  ;;  %v4869_v40 = vsel %vm7673_vm11, %v6235_v60, %v4868_v55  ;;  %v4870_v19 = vrot.slane %v4868_v55, 4  ;;  %v4875_v41 = vrot.slane %v4758_v58, 5  ;;  %v4764_v58 = vld [vmem:[#allocation2 + $0x70] sm:$0xf] }
 0x176   : > { %5366 = vmatprep.mubr.bf16.mxu0 %v6223_v1  ;;  %v4502_v36 = vrot.slane %v4501_v38, 4  ;;  %v4878_v13 = vrot.slane %v4759_v37, 5  ;;  %v8600_v2 = vadd.f32 %v6597_v34, %v6596_v0  ;;  %v4519_v25 = vshrl.u32 %v4260_v28, 16  ;;  %v4762_v34 = vld [vmem:[#allocation2 + $0x68] sm:$0x1] }
 0x177   : > { %v4512_v3 = vrot.slane %v4511_v45, 4  ;;  %v4872_v22 = vsel %vm7673_vm11, %v4870_v19, %v4871_v10  ;;  %v8606_v33 = vsel %vm7673_vm11, %v6236_v32, %v4875_v41  ;;  %v4877_v18 = vrot.slane %v4875_v41, 4  ;;  %v4765_v7 = vld [vmem:[#allocation2 + $0x74] sm:$0x1]  ;;  %v4263_v10 = vld [vmem:[#allocation2 + $0x9c] sm:$0xf] }
 0x178   : > { %v4507_v56 = vsel %vm7739_vm14, %v4502_v36, %v4506_v49  ;;  %v6251_v51 = vcombine.low %v4869_v40, %v4872_v22  ;;  %v4521_v15 = vrot.slane %v4519_v25, 4  ;;  %v4522_v0 = vshll.u32 %v4260_v28, 16  ;;  %v7409_v25 = vld [vmem:[#allocation2 + $0x84] sm:$0xff]  }
 0x179   : > { %v4517_v54 = vsel %vm7739_vm14, %v4512_v3, %v4516_v43  ;;  %v8614_v61 = vsel %vm7673_vm11, %v4877_v18, %v4878_v13  ;;  %v4528_v50 = vshll.u32 %v4261_v21, 16  ;;  %v4532_v59 = vshrl.u32 %v4261_v21, 16  ;;  %v4264_v18 = vld [vmem:[#allocation2 + $0xa0] sm:$0xf] }
 0x17a   : > { %v8616_v1 = vpop.f32.mrb[24].mxu1  ;;  %v6224_v24 = vcombine.low %v4507_v56, %v4517_v54  ;;  %v6252_v6 = vcombine.low %v8606_v33, %v8614_v61  ;;  %v4524_v5 = vrot.slane %v4522_v0, 5  ;;  %v4538_v37 = vshll.u32 %v4262_v39, 16  ;;  %v4265_v0 = vld [vmem:[#allocation2 + $0xa4] sm:$0x1] }
 0x17b   : > { %v8620_v62 = vpop.f32.mrb[25].mxu1  ;;  %v4530_v60 = vrot.slane %v4528_v50, 5  ;;  %v4534_v28 = vrot.slane %v4532_v59, 4  ;;  %v8624_v49 = vadd.f32 %v8545_v53, %v8541_v57  ;;  %v8628_v55 = vadd.f32 %v8557_v17, %v8551_v47  ;;  %v4767_v59 = vld [vmem:[#allocation2 + $0x7c] sm:$0xf] }
 0x17c   : > { %v6599_v20 = vpop.f32.mrb[16].mxu0  ;;  %v8630_v38 = vpop.f32.mrb[26].mxu1  ;;  %7084 = vmatmul.mubr.bf16.gmra.mrb[84].mxu1 %v6250_v4  ;;  %v4525_v43 = vor.u32 %v4524_v5, %v4521_v15  ;;  %v4540_v32 = vrot.slane %v4538_v37, 5  ;;  %v6237_v45 = vrot.slane %v4760_v16, 9  ;;  %v4882_v40 = vrot.slane %v4761_v48, 5 }
 0x17d   : > { %5367 = vmatmul.mubr.bf16.gmra.mrb[112].mxu0 %v7408_v9  ;;  %v6600_v19 = vpop.f32.mrb[17].mxu0  ;;  %v8632_v41 = vpop.f32.mrb[27].mxu1  ;;  %7087 = vmatprep.mubr.bf16.mxu1 %v6251_v51  ;;  %v4535_v57 = vor.u32 %v4534_v28, %v4530_v60  ;;  %v4885_v53 = vrot.slane %v4762_v34, 5  ;;  %v6238_v9 = vrot.slane %v4763_v42, 9  ;;  %v4889_v13 = vrot.slane %v4764_v58, 5 }
 0x17e   : > { %5374 = vmatprep.mubr.bf16.mxu0 %v6224_v24  ;;  %v8634_v21 = vadd.f32 %v6600_v19, %v6599_v20  ;;  %v6602_v47 = vpop.f32.mrb[18].mxu0  ;;  %v4526_v17 = vrot.slane %v4525_v43, 4  ;;  %v4883_v36 = vsel %vm7673_vm11, %v6237_v45, %v4882_v40  ;;  %v4884_v4 = vrot.slane %v4882_v40, 4  ;;  %v4766_v34 = vld [vmem:[#allocation2 + $0x78] sm:$0xe] }
 0x17f   : > { %v6603_v39 = vpop.f32.mrb[19].mxu0  ;;  %v4536_v3 = vrot.slane %v4535_v57, 4  ;;  %v4892_v22 = vrot.slane %v4765_v7, 5  ;;  %v4543_v16 = vshrl.u32 %v4263_v10, 16  ;;  %v8646_v51 = vsel %vm7673_vm11, %v6238_v9, %v4889_v13  ;;  %v4768_v58 = vld [vmem:[#allocation2 + $0x80] sm:$0x1] }
 0x180   : > { %v8638_v33 = vadd.f32 %v6603_v39, %v6602_v47  ;;  %v4531_v48 = vsel %vm7739_vm14, %v4526_v17, %v4530_v60  ;;  %v4886_v56 = vsel %vm7673_vm11, %v4884_v4, %v4885_v53  ;;  %v4891_v15 = vrot.slane %v4889_v13, 4  ;;  %v4769_v60 = vld [vmem:[#allocation2 + $0x84] sm:$0xe]  ;;  %v4770_v28 = vld [vmem:[#allocation2 + $0x88] sm:$0xf] }
 0x181   : > { %v4541_v42 = vsel %vm7739_vm14, %v4536_v3, %v4540_v32  ;;  %v6253_v54 = vcombine.low %v4883_v36, %v4886_v56  ;;  %v4545_v61 = vrot.slane %v4543_v16, 4  ;;  %v4546_v50 = vshll.u32 %v4263_v10, 16  ;;  %v4771_v10 = vld [vmem:[#allocation2 + $0x8c] sm:$0x1]  ;;  %v4266_v9 = vld [vmem:[#allocation2 + $0xa8] sm:$0xf] }
 0x182   : > { %v6225_v24 = vcombine.low %v4531_v48, %v4541_v42  ;;  %v4893_v5 = vsel %vm7673_vm11, %v4891_v15, %v4892_v22  ;;  %v4552_v37 = vshll.u32 %v4264_v18, 16  ;;  %v4556_v7 = vshrl.u32 %v4264_v18, 16  ;;  %v4772_v15 = vld [vmem:[#allocation2 + $0x90] sm:$0xe] }
 0x183   : > { %v6254_v20 = vcombine.low %v8646_v51, %v4893_v5  ;;  %v4548_v43 = vrot.slane %v4546_v50, 5  ;;  %v4562_v45 = vshll.u32 %v4265_v0, 16  ;;  %v8655_v32 = vadd.f32 %v8587_v11, %v8583_v46  ;;  %v4774_v50 = vld [vmem:[#allocation2 + $0x98] sm:$0x1] }
 0x184   : > { %7088 = vmatmul.mubr.bf16.gmra.mrb[88].mxu1 %v6252_v6  ;;  %v4554_v40 = vrot.slane %v4552_v37, 5  ;;  %v4558_v19 = vrot.slane %v4556_v7, 4  ;;  %v8659_v57 = vadd.f32 %v8596_v26, %v8589_v14  ;;  %v6239_v53 = vrot.slane %v4766_v34, 9  ;;  %v7410_v6 = vld [vmem:[#allocation2 + $0x90] sm:$0xff]   ;;  %v4775_v37 = vld [vmem:[#allocation2 + $0x9c] sm:$0xe] }
 0x185   : > { %5375 = vmatmul.mubr.bf16.gmra.mrb[116].mxu0 %v7409_v25  ;;  %7091 = vmatprep.mubr.bf16.mxu1 %v6253_v54  ;;  %v4549_v47 = vor.u32 %v4548_v43, %v4545_v61  ;;  %v4564_v17 = vrot.slane %v4562_v45, 5  ;;  %v4896_v36 = vrot.slane %v4767_v59, 5  ;;  %v4899_v4 = vrot.slane %v4768_v58, 5  ;;  %v4267_v25 = vld [vmem:[#allocation2 + $0xac] sm:$0xf] }
 0x186   : > { %5382 = vmatprep.mubr.bf16.mxu0 %v6225_v24  ;;  %v4559_v13 = vor.u32 %v4558_v19, %v4554_v40  ;;  %v6240_v39 = vrot.slane %v4769_v60, 9  ;;  %v4903_v46 = vrot.slane %v4770_v28, 5  ;;  %v4906_v11 = vrot.slane %v4771_v10, 5  ;;  %v4268_v14 = vld [vmem:[#allocation2 + $0xb0] sm:$0x1] }
 0x187   : > { %v4550_v3 = vrot.slane %v4549_v47, 4  ;;  %v4897_v22 = vsel %vm7673_vm11, %v6239_v53, %v4896_v36  ;;  %v4898_v18 = vrot.slane %v4896_v36, 4  ;;  %v4567_v26 = vshrl.u32 %v4266_v9, 16  ;;  %v4773_v61 = vld [vmem:[#allocation2 + $0x94] sm:$0xf] }
 0x188   : > { %v4560_v16 = vrot.slane %v4559_v13, 4  ;;  %v8665_v48 = vsel %vm7673_vm11, %v6240_v39, %v4903_v46  ;;  %v4905_v56 = vrot.slane %v4903_v46, 4  ;;  %v4570_v51 = vshll.u32 %v4266_v9, 16  ;;  %v4776_v7 = vld [vmem:[#allocation2 + $0xa0] sm:$0xf] }
 0x189   : > { %v4555_v0 = vsel %vm7739_vm14, %v4550_v3, %v4554_v40  ;;  %v4900_v34 = vsel %vm7673_vm11, %v4898_v18, %v4899_v4  ;;  %v4569_v42 = vrot.slane %v4567_v26, 4  ;;  %v4576_v54 = vshll.u32 %v4267_v25, 16  ;;  %v4777_v40 = vld [vmem:[#allocation2 + $0xa4] sm:$0x1]  ;;  %v4269_v4 = vld [vmem:[#allocation2 + $0xb4] sm:$0xf] }
 0x18a   : > { %v4565_v59 = vsel %vm7739_vm14, %v4560_v16, %v4564_v17  ;;  %v6255_v58 = vcombine.low %v4897_v22, %v4900_v34  ;;  %v4907_v24 = vsel %vm7673_vm11, %v4905_v56, %v4906_v11  ;;  %v4572_v5 = vrot.slane %v4570_v51, 5  ;;  %v4270_v56 = vld [vmem:[#allocation2 + $0xb8] sm:$0xf]  ;;  %v4271_v34 = vld [vmem:[#allocation2 + $0xbc] sm:$0x1] }
 0x18b   : > { %v6226_v28 = vcombine.low %v4555_v0, %v4565_v59  ;;  %v6256_v43 = vcombine.low %v8665_v48, %v4907_v24  ;;  %v4578_v45 = vrot.slane %v4576_v54, 5  ;;  %v4580_v10 = vshrl.u32 %v4267_v25, 16 }
 0x18c   : > { %v8675_v60 = vpop.f32.mrb[28].mxu1  ;;  %7092 = vmatmul.mubr.bf16.gmra.mrb[92].mxu1 %v6254_v20  ;;  %v4573_v9 = vor.u32 %v4572_v5, %v4569_v42  ;;  %v4586_v47 = vshll.u32 %v4268_v14, 16  ;;  %v8680_v17 = vadd.f32 %v8620_v62, %v8616_v1  ;;  %v8684_v36 = vadd.f32 %v8632_v41, %v8630_v38  ;;  %v7411_v14 = vld [vmem:[#allocation2 + $0x9c] sm:$0xff]  }
 0x18d   : > { %5383 = vmatmul.mubr.bf16.gmra.mrb[120].mxu0 %v7410_v6  ;;  %v6730_v19 = vpop.f32.mrb[29].mxu1  ;;  %7095 = vmatprep.mubr.bf16.mxu1 %v6255_v58  ;;  %v4582_v46 = vrot.slane %v4580_v10, 4  ;;  %v6241_v11 = vrot.slane %v4772_v15, 9  ;;  %v4910_v25 = vrot.slane %v4773_v61, 5  ;;  %v4913_v20 = vrot.slane %v4774_v50, 5 }
 0x18e   : > { %v6605_v53 = vpop.f32.mrb[20].mxu0  ;;  %v6732_v13 = vpop.f32.mrb[30].mxu1  ;;  %5390 = vmatprep.mubr.bf16.mxu0 %v6226_v28  ;;  %v4574_v18 = vrot.slane %v4573_v9, 4  ;;  %v4588_v1 = vrot.slane %v4586_v47, 5  ;;  %v6242_v62 = vrot.slane %v4775_v37, 9  ;;  %v4917_v48 = vrot.slane %v4776_v7, 5 }
 0x18f   : > { %v6606_v39 = vpop.f32.mrb[21].mxu0  ;;  %v6733_v6 = vpop.f32.mrb[31].mxu1  ;;  %v4583_v38 = vor.u32 %v4582_v46, %v4578_v45  ;;  %v4911_v41 = vsel %vm7673_vm11, %v6241_v11, %v4910_v25  ;;  %v4912_v16 = vrot.slane %v4910_v25, 4  ;;  %v4920_v0 = vrot.slane %v4777_v40, 5  ;;  %v4778_v58 = vld [vmem:[#allocation2 + $0xa8] sm:$0xe] }
 0x190   : > { %v8686_v3 = vadd.f32 %v6606_v39, %v6605_v53  ;;  %v6608_v22 = vpop.f32.mrb[22].mxu0  ;;  %v4579_v15 = vsel %vm7739_vm14, %v4574_v18, %v4578_v45  ;;  %v4591_v42 = vshrl.u32 %v4269_v4, 16  ;;  %v8698_v50 = vsel %vm7673_vm11, %v6242_v62, %v4917_v48  ;;  %v4779_v28 = vld [vmem:[#allocation2 + $0xac] sm:$0xf]  ;;  %v4780_v9 = vld [vmem:[#allocation2 + $0xb0] sm:$0x1] }
 0x191   : > { %v6609_v26 = vpop.f32.mrb[23].mxu0  ;;  %v4584_v54 = vrot.slane %v4583_v38, 4  ;;  %v4914_v61 = vsel %vm7673_vm11, %v4912_v16, %v4913_v20  ;;  %v4919_v59 = vrot.slane %v4917_v48, 4  ;;  %v4594_v37 = vshll.u32 %v4269_v4, 16  ;;  %v4781_v47 = vld [vmem:[#allocation2 + $0xb4] sm:$0xe] }
 0x192   : > { %v8690_v51 = vadd.f32 %v6609_v26, %v6608_v22  ;;  %v6257_v24 = vcombine.low %v4911_v41, %v4914_v61  ;;  %v4593_v5 = vrot.slane %v4591_v42, 4  ;;  %v4600_v7 = vshll.u32 %v4270_v56, 16  ;;  %v4782_v4 = vld [vmem:[#allocation2 + $0xb8] sm:$0xf]  ;;  %v4783_v20 = vld [vmem:[#allocation2 + $0xbc] sm:$0x1] }
 0x193   : > { %v4589_v45 = vsel %vm7739_vm14, %v4584_v54, %v4588_v1  ;;  %v4921_v10 = vsel %vm7673_vm11, %v4919_v59, %v4920_v0  ;;  %v4604_v40 = vshrl.u32 %v4270_v56, 16  ;;  %v4610_v53 = vshll.u32 %v4271_v34, 16  ;;  %v7412_v16 = vld [vmem:[#allocation2 + $0xa8] sm:$0xff]   ;;  %v4273_v34 = vld [vmem:[#allocation2 + $0xc4] sm:$0xf] }
 0x194   : > { %7096 = vmatmul.mubr.bf16.gmra.mrb[0].mxu1 %v6256_v43  ;;  %v6227_v39 = vcombine.low %v4579_v15, %v4589_v45  ;;  %v6258_v46 = vcombine.low %v8698_v50, %v4921_v10  ;;  %v4596_v11 = vrot.slane %v4594_v37, 5  ;;  %v4602_v25 = vrot.slane %v4600_v7, 5  ;;  %v4274_v61 = vld [vmem:[#allocation2 + $0xc8] sm:$0x1]  ;;  %v4784_v45 = vld [vmem:[#allocation2 + $0xc0] sm:$0xe] }
 0x195   : > { %5391 = vmatmul.mubr.bf16.gmra.mrb[124].mxu0 %v7411_v14  ;;  %7099 = vmatprep.mubr.bf16.mxu1 %v6257_v24  ;;  %v4606_v22 = vrot.slane %v4604_v40, 4  ;;  %v4612_v18 = vrot.slane %v4610_v53, 5  ;;  %v8706_v1 = vadd.f32 %v6730_v19, %v8675_v60  ;;  %v8708_v62 = vadd.f32 %v6733_v6, %v6732_v13  ;;  %v4272_v14 = vld [vmem:[#allocation2 + $0xc0] sm:$0xf] }
 0x196   : > { %5398 = vmatprep.mubr.bf16.mxu0 %v6227_v39  ;;  %v4597_v26 = vor.u32 %v4596_v11, %v4593_v5  ;;  %v6243_v38 = vrot.slane %v4778_v58, 9  ;;  %v4924_v43 = vrot.slane %v4779_v28, 5  ;;  %v4927_v41 = vrot.slane %v4780_v9, 5  ;;  %v4785_v11 = vld [vmem:[#allocation2 + $0xc4] sm:$0xf] }
 0x197   : > { %v4607_v48 = vor.u32 %v4606_v22, %v4602_v25  ;;  %v6244_v56 = vrot.slane %v4781_v47, 9  ;;  %v4931_v15 = vrot.slane %v4782_v4, 5  ;;  %v4934_v0 = vrot.slane %v4783_v20, 5 }
 0x198   : > { %v4598_v42 = vrot.slane %v4597_v26, 4  ;;  %v4925_v54 = vsel %vm7673_vm11, %v6243_v38, %v4924_v43  ;;  %v4926_v60 = vrot.slane %v4924_v43, 4  ;;  %v4615_v19 = vshrl.u32 %v4272_v14, 16  ;;  %v4786_v38 = vld [vmem:[#allocation2 + $0xc8] sm:$0x1] }
 0x199   : > { %v4608_v13 = vrot.slane %v4607_v48, 4  ;;  %v4933_v6 = vrot.slane %v4931_v15, 4  ;;  %v4618_v50 = vshll.u32 %v4272_v14, 16  ;;  %v4624_v7 = vshll.u32 %v4273_v34, 16 }
 0x19a   : > { %v6735_v59 = vpop.f32.mrb[32].mxu1  ;;  %v4603_v24 = vsel %vm7739_vm14, %v4598_v42, %v4602_v25  ;;  %v4928_v5 = vsel %vm7673_vm11, %v4926_v60, %v4927_v41  ;;  %v4617_v37 = vrot.slane %v4615_v19, 4  ;;  %v4932_v9 = vsel %vm7673_vm11, %v6244_v56, %v4931_v15  ;;  %v547_v56 = vld [vmem:[#allocation2 + $0xd4] sm:$0x1]  ;;  %v491_v60 = vld [vmem:[#allocation2 + $0xcc] sm:$0x1] }
 0x19b   : > { %v6736_v28 = vpop.f32.mrb[33].mxu1  ;;  %v4613_v40 = vsel %vm7739_vm14, %v4608_v13, %v4612_v18  ;;  %v6259_v53 = vcombine.low %v4925_v54, %v4928_v5  ;;  %v4620_v47 = vrot.slane %v4618_v50, 5  ;;  %v4935_v22 = vsel %vm7673_vm11, %v4933_v6, %v4934_v0  ;;  %v7413_v0 = vld [vmem:[#allocation2 + $0xb4] sm:$0xff]   ;;  %v4276_v50 = vld [vmem:[#allocation2 + $0xd0] sm:$0xf] }
 0x19c   : > { %v6611_v58 = vpop.f32.mrb[24].mxu0  ;;  %v6738_v39 = vpop.f32.mrb[34].mxu1  ;;  %7100 = vmatmul.mubr.bf16.gmra.mrb[4].mxu1 %v6258_v46  ;;  %v6228_v20 = vcombine.low %v4603_v24, %v4613_v40  ;;  %v4626_v14 = vrot.slane %v4624_v7, 5  ;;  %v4628_v41 = vshrl.u32 %v4273_v34, 16  ;;  %v8724_v48 = vadd.f32 %v6736_v28, %v6735_v59  ;;  %v4788_v24 = vld [vmem:[#allocation2 + $0xd0] sm:$0xf] }
 0x19d   : > { %5399 = vmatmul.mubr.bf16.gmra.mrb[128].mxu0 %v7412_v16  ;;  %v6612_v10 = vpop.f32.mrb[25].mxu0  ;;  %v6739_v26 = vpop.f32.mrb[35].mxu1  ;;  %7103 = vmatprep.mubr.bf16.mxu1 %v6259_v53  ;;  %v4621_v18 = vor.u32 %v4620_v47, %v4617_v37  ;;  %v4634_v16 = vshll.u32 %v4274_v61, 16  ;;  %v6245_v42 = vrot.slane %v4784_v45, 9  ;;  %v4938_v54 = vrot.slane %v4785_v11, 5 }
 0x19e   : > { %v8720_v25 = vadd.f32 %v6612_v10, %v6611_v58  ;;  %v6614_v4 = vpop.f32.mrb[26].mxu0  ;;  %5406 = vmatprep.mubr.bf16.mxu0 %v6228_v20  ;;  %v8728_v46 = vadd.f32 %v6739_v26, %v6738_v39  ;;  %v4630_v13 = vrot.slane %v4628_v41, 4  ;;  %v4941_v6 = vrot.slane %v4786_v38, 5  ;;  %v4787_v45 = vld [vmem:[#allocation2 + $0xcc] sm:$0xe]  ;;  %v7414_v38 = vld [vmem:[#allocation2 + $0xc0] sm:$0xff]  }
 0x19f   : > { %v6615_v43 = vpop.f32.mrb[27].mxu0  ;;  %v4622_v19 = vrot.slane %v4621_v18, 4  ;;  %v6260_v58 = vcombine.low %v4932_v9, %v4935_v22  ;;  %v4939_v34 = vsel %vm7673_vm11, %v6245_v42, %v4938_v54  ;;  %v4940_v61 = vrot.slane %v4938_v54, 4 }
 0x1a0   : > { %v8726_v15 = vadd.f32 %v6615_v43, %v6614_v4  ;;  %v548_v59 = vsel %vm7601_vm4, 0, %v547_v56  ;;  %v4631_v5 = vor.u32 %v4630_v13, %v4626_v14  ;;  %v4636_v37 = vrot.slane %v4634_v16, 5 }
 0x1a1   : > { %549 = vst [vmem:[#allocation2 + $0xd4] sm:$0x1] %v548_v59  ;;  %v492_v7 = vsel %vm7591_vm3, 0, %v491_v60  ;;  %v4942_v28 = vsel %vm7673_vm11, %v4940_v61, %v4941_v6  ;;  %v4648_v10 = vshll.u32 %v4276_v50, 16  ;;  %v4652_v40 = vshrl.u32 %v4276_v50, 16 }
 0x1a2   : > { %493 = vst [vmem:[#allocation2 + $0xcc] sm:$0x1] %v492_v7  ;;  %v4627_v53 = vsel %vm7739_vm14, %v4622_v19, %v4626_v14  ;;  %v4632_v35 = vrot.slane %v4631_v5, 4  ;;  %v6261_v9 = vcombine.low %v4939_v34, %v4942_v28  ;;  %v4945_v47 = vrot.slane %v4788_v24, 5 }
 0x1a3   : > { %v4650_v39 = vrot.slane %v4648_v10, 5  ;;  %v4654_v11 = vrot.slane %v4652_v40, 4  ;;  %v6246_v4 = vrot.slane %v4787_v45, 9 }
 0x1a4   : > { %7104 = vmatmul.mubr.bf16.gmra.mrb[8].mxu1 %v6260_v58  ;;  %v4637_v30 = vsel %vm7739_vm14, %v4632_v35, %v4636_v37  ;;  %v4947_v43 = vrot.slane %v4945_v47, 4 }
 0x1a5   : > { %5407 = vmatmul.mubr.bf16.gmra.mrb[132].mxu0 %v7413_v0  ;;  %7107 = vmatprep.mubr.bf16.mxu1 %v6261_v9  ;;  %v6229_v22 = vcombine.low %v4627_v53, %v4637_v30  ;;  %v4655_v18 = vor.u32 %v4654_v11, %v4650_v39  ;;  %v4946_v54 = vsel %vm7673_vm11, %v6246_v4, %v4945_v47 }
 0x1a7   : > { %5414 = vmatprep.mubr.bf16.mxu0 %v6229_v22  ;;  %v4656_v59 = vrot.slane %v4655_v18, 4 }
 0x1a8   : > { %v6617_v20 = vpop.f32.mrb[28].mxu0  ;;  %v4789_v16 = vld [vmem:[#allocation2 + $0xd4] sm:$0x1] }
 0x1a9   : > { %v6618_v26 = vpop.f32.mrb[29].mxu0  ;;  %v4277_v56 = vld [vmem:[#allocation2 + $0xd4] sm:$0x1]  ;;  %v4948_v60 = vrot.slane %v4789_v16, 5  ;;  %v4275_v0 = vld [vmem:[#allocation2 + $0xcc] sm:$0xf] }
 0x1aa   : > { %v8742_v41 = vadd.f32 %v6618_v26, %v6617_v20  ;;  %v6620_v14 = vpop.f32.mrb[30].mxu0  ;;  %v4658_v19 = vshll.u32 %v4277_v56, 16  ;;  %v6741_v13 = vpop.f32.mrb[36].mxu1  ;;  %v4639_v50 = vshrl.u32 %v4275_v0, 16  ;;  %v4642_v58 = vshll.u32 %v4275_v0, 16 }
 0x1ab   : > { %v6621_v42 = vpop.f32.mrb[31].mxu0  ;;  %v6742_v34 = vpop.f32.mrb[37].mxu1  ;;  %v4949_v61 = vsel %vm7673_vm11, %v4947_v43, %v4948_v60 }
 0x1ac   : > { %v8746_v6 = vadd.f32 %v6621_v42, %v6620_v14  ;;  %v8750_v24 = vadd.f32 %v6742_v34, %v6741_v13  ;;  %v6744_v5 = vpop.f32.mrb[38].mxu1  ;;  %v6262_v37 = vcombine.low %v4946_v54, %v4949_v61  ;;  %v4641_v7 = vrot.slane %v4639_v50, 4 }
 0x1ad   : > { %5415 = vmatmul.mubr.bf16.gmra.mrb[136].mxu0 %v7414_v38  ;;  %v4644_v28 = vrot.slane %v4642_v58, 5  ;;  %v4660_v45 = vrot.slane %v4658_v19, 5  ;;  %v6745_v10 = vpop.f32.mrb[39].mxu1  ;;  %v7415_v38 = vld [vmem:[#allocation2 + $0xcc] sm:$0xff]  }
 0x1ae   : > { %v8752_v40 = vadd.f32 %v6745_v10, %v6744_v5  ;;  %7108 = vmatmul.mubr.bf16.gmra.mrb[12].mxu1 %v6262_v37 }
 0x1af   : > { %v4645_v35 = vor.u32 %v4644_v28, %v4641_v7  ;;  %v4661_v12 = vsel %vm7739_vm14, %v4656_v59, %v4660_v45 }
 0x1b0   : > { %v6623_v53 = vpop.f32.mrb[32].mxu0 }
 0x1b1   : > { %v6624_v9 = vpop.f32.mrb[33].mxu0  ;;  %v4646_v30 = vrot.slane %v4645_v35, 4  ;;  %v6747_v20 = vpop.f32.mrb[40].mxu1 }
 0x1b2   : > { %v6625_v47 = vadd.f32 %v6624_v9, %v6623_v53  ;;  %v6626_v11 = vpop.f32.mrb[34].mxu0  ;;  %v6748_v43 = vpop.f32.mrb[41].mxu1 }
 0x1b3   : > { %v6627_v4 = vpop.f32.mrb[35].mxu0  ;;  %v4651_v26 = vsel %vm7739_vm14, %v4646_v30, %v4650_v39  ;;  %v8758_v14 = vadd.f32 %v6748_v43, %v6747_v20  ;;  %v6750_v16 = vpop.f32.mrb[42].mxu1 }
 0x1b4   : > { %v6628_v22 = vadd.f32 %v6627_v4, %v6626_v11  ;;  %v6230_v18 = vcombine.low %v4651_v26, %v4661_v12  ;;  %v6751_v56 = vpop.f32.mrb[43].mxu1 }
 0x1b5   : > { %v8760_v42 = vadd.f32 %v6751_v56, %v6750_v16 }
 0x1b6   : > { %5422 = vmatprep.mubr.bf16.mxu0 %v6230_v18 }
 0x1b7   : > { %5423 = vmatmul.mubr.bf16.gmra.mrb[140].mxu0 %v7415_v38 }
 0x1b8   : > { %v6629_v54 = vpop.f32.mrb[36].mxu0 }
 0x1b9   : > { %v6630_v60 = vpop.f32.mrb[37].mxu0 }
 0x1ba   : > { %v6631_v0 = vadd.f32 %v6630_v60, %v6629_v54  ;;  %v6632_v19 = vpop.f32.mrb[38].mxu0 }
 0x1bb   : > { %v6633_v13 = vpop.f32.mrb[39].mxu0  ;;  %v6753_v58 = vpop.f32.mrb[44].mxu1 }
 0x1bc   : > { %v6634_v50 = vadd.f32 %v6633_v13, %v6632_v19  ;;  %v6754_v63 = vpop.f32.mrb[45].mxu1 }
 0x1bd   : > { %v8762_v39 = vadd.f32 %v6754_v63, %v6753_v58  ;;  %v6756_v34 = vpop.f32.mrb[46].mxu1 }
 0x1be   : > { %v6757_v59 = vpop.f32.mrb[47].mxu1 }
 0x1bf   : > { %v8764_v37 = vadd.f32 %v6757_v59, %v6756_v34 }
 0x1c0   : > { %v6635_v61 = vpop.f32.mrb[40].mxu0 }
 0x1c1   : > { %v6636_v5 = vpop.f32.mrb[41].mxu0 }
 0x1c2   : > { %v6637_v7 = vadd.f32 %v6636_v5, %v6635_v61  ;;  %v6638_v28 = vpop.f32.mrb[42].mxu0 }
 0x1c3   : > { %v6639_v45 = vpop.f32.mrb[43].mxu0 }
 0x1c4   : > { %v6640_v10 = vadd.f32 %v6639_v45, %v6638_v28  ;;  %v6759_v53 = vpop.f32.mrb[48].mxu1 }
 0x1c5   : > { %v6760_v35 = vpop.f32.mrb[49].mxu1 }
 0x1c6   : > { %v6761_v11 = vadd.f32 %v6760_v35, %v6759_v53  ;;  %v6762_v30 = vpop.f32.mrb[50].mxu1 }
 0x1c7   : > { %v6763_v4 = vpop.f32.mrb[51].mxu1 }
 0x1c8   : > { %v6641_v9 = vpop.f32.mrb[44].mxu0  ;;  %v8766_v38 = vadd.f32 %v6761_v11, %v6625_v47  ;;  %v6764_v43 = vadd.f32 %v6763_v4, %v6762_v30 }
 0x1c9   : > { %v6642_v12 = vpop.f32.mrb[45].mxu0 }
 0x1ca   : > { %v6643_v20 = vadd.f32 %v6642_v12, %v6641_v9  ;;  %v6644_v26 = vpop.f32.mrb[46].mxu0  ;;  %v8768_v56 = vadd.f32 %v6764_v43, %v6628_v22 }
 0x1cb   : > { %v6645_v18 = vpop.f32.mrb[47].mxu0 }
 0x1cc   : > { %v6646_v16 = vadd.f32 %v6645_v18, %v6644_v26  ;;  %v6765_v54 = vpop.f32.mrb[52].mxu1 }
 0x1cd   : > { %v6766_v60 = vpop.f32.mrb[53].mxu1 }
 0x1ce   : > { %v6767_v13 = vadd.f32 %v6766_v60, %v6765_v54  ;;  %v6768_v58 = vpop.f32.mrb[54].mxu1 }
 0x1cf   : > { %v6769_v34 = vpop.f32.mrb[55].mxu1 }
 0x1d0   : > { %v6647_v19 = vpop.f32.mrb[48].mxu0  ;;  %v8770_v5 = vadd.f32 %v6767_v13, %v6631_v0  ;;  %v6770_v28 = vadd.f32 %v6769_v34, %v6768_v58 }
 0x1d1   : > { %v6648_v63 = vpop.f32.mrb[49].mxu0 }
 0x1d2   : > { %v6649_v61 = vadd.f32 %v6648_v63, %v6647_v19  ;;  %v6650_v59 = vpop.f32.mrb[50].mxu0  ;;  %v8772_v53 = vadd.f32 %v6770_v28, %v6634_v50 }
 0x1d3   : > { %v6651_v45 = vpop.f32.mrb[51].mxu0 }
 0x1d4   : > { %v6652_v47 = vadd.f32 %v6651_v45, %v6650_v59  ;;  %8971 = vst [vmem:[#allocation4_spill] sm:$0xff] %v8772_v53 }
 0x1d5   : > { %v6771_v35 = vpop.f32.mrb[56].mxu1 }
 0x1d6   : > { %v6772_v22 = vpop.f32.mrb[57].mxu1 }
 0x1d7   : > { %v6773_v30 = vadd.f32 %v6772_v22, %v6771_v35  ;;  %v6774_v12 = vpop.f32.mrb[58].mxu1 }
 0x1d8   : > { %v6653_v9 = vpop.f32.mrb[52].mxu0  ;;  %v6775_v43 = vpop.f32.mrb[59].mxu1 }
 0x1d9   : > { %v6654_v11 = vpop.f32.mrb[53].mxu0  ;;  %v8774_v54 = vadd.f32 %v6773_v30, %v6637_v7  ;;  %v6776_v60 = vadd.f32 %v6775_v43, %v6774_v12 }
 0x1da   : > { %v6655_v4 = vadd.f32 %v6654_v11, %v6653_v9  ;;  %v6656_v26 = vpop.f32.mrb[54].mxu0 }
 0x1db   : > { %v6657_v18 = vpop.f32.mrb[55].mxu0  ;;  %v8776_v19 = vadd.f32 %v6776_v60, %v6640_v10 }
 0x1dc   : > { %v6658_v0 = vadd.f32 %v6657_v18, %v6656_v26 }
 0x1dd   : > { %8972 = vst [vmem:[#allocation5_spill] sm:$0xff] %v8776_v19  ;;  %v6777_v13 = vpop.f32.mrb[60].mxu1 }
 0x1de   : > { %v6778_v50 = vpop.f32.mrb[61].mxu1 }
 0x1df   : > { %v6779_v34 = vadd.f32 %v6778_v50, %v6777_v13  ;;  %v6780_v59 = vpop.f32.mrb[62].mxu1 }
 0x1e0   : > { %v6659_v58 = vpop.f32.mrb[56].mxu0  ;;  %v6781_v35 = vpop.f32.mrb[63].mxu1 }
 0x1e1   : > { %v6660_v63 = vpop.f32.mrb[57].mxu0  ;;  %v8778_v9 = vadd.f32 %v6779_v34, %v6643_v20  ;;  %v6782_v11 = vadd.f32 %v6781_v35, %v6780_v59 }
 0x1e2   : > { %v6661_v28 = vadd.f32 %v6660_v63, %v6659_v58  ;;  %v6662_v45 = vpop.f32.mrb[58].mxu0 }
 0x1e3   : > { %v6663_v22 = vpop.f32.mrb[59].mxu0  ;;  %v8780_v7 = vadd.f32 %v6782_v11, %v6646_v16 }
 0x1e4   : > { %v6664_v53 = vadd.f32 %v6663_v22, %v6662_v45 }
 0x1e6   : > { %v6783_v12 = vpop.f32.mrb[64].mxu1 }
 0x1e7   : > { %v6784_v26 = vpop.f32.mrb[65].mxu1 }
 0x1e8   : > { %v6665_v30 = vpop.f32.mrb[60].mxu0  ;;  %v6785_v60 = vadd.f32 %v6784_v26, %v6783_v12  ;;  %v6786_v13 = vpop.f32.mrb[66].mxu1 }
 0x1e9   : > { %v6666_v10 = vpop.f32.mrb[61].mxu0  ;;  %v6787_v58 = vpop.f32.mrb[67].mxu1 }
 0x1ea   : > { %v8782_v43 = vadd.f32 %v6666_v10, %v6665_v30  ;;  %v6668_v18 = vpop.f32.mrb[62].mxu0  ;;  %v8786_v19 = vadd.f32 %v6785_v60, %v6649_v61  ;;  %v6788_v20 = vadd.f32 %v6787_v58, %v6786_v13 }
 0x1eb   : > { %v6669_v50 = vpop.f32.mrb[63].mxu0 }
 0x1ec   : > { %v8784_v63 = vadd.f32 %v6669_v50, %v6668_v18  ;;  %v8788_v34 = vadd.f32 %v6788_v20, %v6652_v47 }
 0x1ee   : > { %v6789_v59 = vpop.f32.mrb[68].mxu1 }
 0x1ef   : > { %v6790_v22 = vpop.f32.mrb[69].mxu1 }
 0x1f0   : > { %v6985_v16 = vpop.f32.mrb[64].mxu0  ;;  %v6791_v12 = vadd.f32 %v6790_v22, %v6789_v59  ;;  %v6792_v10 = vpop.f32.mrb[70].mxu1 }
 0x1f1   : > { %v3501_v45 = vadd.f32 %v6985_v16, %v8527_v23  ;;  %v3492_v35 = vpop.f32.mrb[65].mxu0  ;;  %v6793_v60 = vpop.f32.mrb[71].mxu1 }
 0x1f2   : > { %v3493_v11 = vadd.f32 %v8498_v8, %v3492_v35  ;;  %v6986_v30 = vpop.f32.mrb[66].mxu0  ;;  %v8800_v23 = vadd.f32 %v6791_v12, %v6655_v4  ;;  %v6794_v50 = vadd.f32 %v6793_v60, %v6792_v10 }
 0x1f3   : > { %v8793_v26 = vadd.f32 %v8655_v32, %v3501_v45  ;;  %v3504_v61 = vadd.f32 %v6986_v30, %v8539_v29  ;;  %v3495_v18 = vpop.f32.mrb[67].mxu0 }
 0x1f4   : > { %v8797_v47 = vadd.f32 %v8624_v49, %v3493_v11  ;;  %v3496_v13 = vadd.f32 %v8504_v52, %v3495_v18  ;;  %v8806_v20 = vadd.f32 %v6794_v50, %v6658_v0 }
 0x1f5   : > { %v8803_v8 = vadd.f32 %v8659_v57, %v3504_v61 }
 0x1f6   : > { %v3801_v58 = vadd.f32 %v8628_v55, %v3496_v13  ;;  %v6795_v16 = vpop.f32.mrb[72].mxu1 }
 0x1f7   : > { %v6796_v45 = vpop.f32.mrb[73].mxu1 }
 0x1f8   : > { %v6989_v32 = vpop.f32.mrb[68].mxu0  ;;  %v6797_v52 = vadd.f32 %v6796_v45, %v6795_v16  ;;  %v6798_v4 = vpop.f32.mrb[74].mxu1 }
 0x1f9   : > { %v3517_v29 = vadd.f32 %v6989_v32, %v8594_v27  ;;  %v3508_v59 = vpop.f32.mrb[69].mxu0  ;;  %v6799_v55 = vpop.f32.mrb[75].mxu1 }
 0x1fa   : > { %v3509_v49 = vadd.f32 %v8561_v31, %v3508_v59  ;;  %v6990_v35 = vpop.f32.mrb[70].mxu0  ;;  %v8816_v12 = vadd.f32 %v6797_v52, %v6661_v28  ;;  %v6800_v27 = vadd.f32 %v6799_v55, %v6798_v4 }
 0x1fb   : > { %v8811_v22 = vadd.f32 %v8706_v1, %v3517_v29  ;;  %v3520_v57 = vadd.f32 %v6990_v35, %v8600_v2  ;;  %v3511_v11 = vpop.f32.mrb[71].mxu0 }
 0x1fc   : > { %v3814_v0 = vadd.f32 %v8680_v17, %v3509_v49  ;;  %v3512_v30 = vadd.f32 %v8567_v44, %v3511_v11  ;;  %v8822_v61 = vadd.f32 %v6800_v27, %v6664_v53 }
 0x1fd   : > { %v8819_v10 = vadd.f32 %v8708_v62, %v3520_v57 }
 0x1fe   : > { %v3817_v31 = vadd.f32 %v8684_v36, %v3512_v30 }
 0x1ff   : > { %v6801_v60 = vpop.f32.mrb[76].mxu1 }
 0x200   : > { %v6993_v1 = vpop.f32.mrb[72].mxu0  ;;  %v6802_v50 = vpop.f32.mrb[77].mxu1 }
 0x201   : > { %v3533_v18 = vadd.f32 %v6993_v1, %v8686_v3  ;;  %v3524_v2 = vpop.f32.mrb[73].mxu0  ;;  %v6803_v32 = vadd.f32 %v6802_v50, %v6801_v60  ;;  %v6804_v16 = vpop.f32.mrb[78].mxu1 }
 0x202   : > { %v3525_v13 = vadd.f32 %v8634_v21, %v3524_v2  ;;  %v6994_v17 = vpop.f32.mrb[74].mxu0  ;;  %v6805_v29 = vpop.f32.mrb[79].mxu1 }
 0x203   : > { %v8827_v44 = vadd.f32 %v8750_v24, %v3533_v18  ;;  %v3536_v28 = vadd.f32 %v6994_v17, %v8690_v51  ;;  %v3527_v62 = vpop.f32.mrb[75].mxu0  ;;  %v8836_v21 = vadd.f32 %v6803_v32, %v8782_v43  ;;  %v6806_v59 = vadd.f32 %v6805_v29, %v6804_v16 }
 0x204   : > { %v3830_v36 = vadd.f32 %v8724_v48, %v3525_v13  ;;  %v3528_v53 = vadd.f32 %v8638_v33, %v3527_v62 }
 0x205   : > { %v8833_v3 = vadd.f32 %v8752_v40, %v3536_v28  ;;  %v8840_v45 = vadd.f32 %v6806_v59, %v8784_v63 }
 0x206   : > { %v3833_v24 = vadd.f32 %v8728_v46, %v3528_v53 }
 0x208   : > { %v6997_v51 = vpop.f32.mrb[76].mxu0 }
 0x209   : > { %v3549_v49 = vadd.f32 %v6997_v51, %v8742_v41  ;;  %v3540_v35 = vpop.f32.mrb[77].mxu0 }
 0x20a   : > { %v3541_v48 = vadd.f32 %v8720_v25, %v3540_v35  ;;  %v6998_v33 = vpop.f32.mrb[78].mxu0 }
 0x20b   : > { %v8845_v52 = vadd.f32 %v8762_v39, %v3549_v49  ;;  %v3552_v40 = vadd.f32 %v6998_v33, %v8746_v6  ;;  %v3543_v43 = vpop.f32.mrb[79].mxu0 }
 0x20c   : > { %v3846_v4 = vadd.f32 %v8758_v14, %v3541_v48  ;;  %v3544_v46 = vadd.f32 %v8726_v15, %v3543_v43 }
 0x20d   : > { %v8851_v63 = vadd.f32 %v8764_v37, %v3552_v40 }
 0x20e   : > { %v3849_v57 = vadd.f32 %v8760_v42, %v3544_v46 }
 0x210   : > { %v6847_v41 = vpop.f32.mrb[80].mxu0 }
 0x211   : > { %v6848_v11 = vpop.f32.mrb[81].mxu0 }
 0x212   : > { %v6849_v55 = vadd.f32 %v6848_v11, %v6847_v41  ;;  %v6850_v25 = vpop.f32.mrb[82].mxu0 }
 0x213   : > { %v6851_v30 = vpop.f32.mrb[83].mxu0 }
 0x214   : > { %v6852_v27 = vadd.f32 %v6851_v30, %v6850_v25  ;;  %v7133_v39 = vadd.f32 %v6849_v55, %v8797_v47 }
 0x216   : > { %v8855_v1 = vadd.f32 %v6852_v27, %v3801_v58 }
 0x218   : > { %v6853_v6 = vpop.f32.mrb[84].mxu0 }
 0x219   : > { %v6854_v18 = vpop.f32.mrb[85].mxu0 }
 0x21a   : > { %v6855_v14 = vadd.f32 %v6854_v18, %v6853_v6  ;;  %v6856_v2 = vpop.f32.mrb[86].mxu0 }
 0x21b   : > { %v6857_v15 = vpop.f32.mrb[87].mxu0 }
 0x21c   : > { %v6858_v60 = vadd.f32 %v6857_v15, %v6856_v2  ;;  %v7129_v37 = vadd.f32 %v6855_v14, %v8793_v26 }
 0x21e   : > { %v7137_v42 = vadd.f32 %v6858_v60, %v8803_v8 }
 0x220   : > { %v6859_v13 = vpop.f32.mrb[88].mxu0 }
 0x221   : > { %v6860_v17 = vpop.f32.mrb[89].mxu0 }
 0x222   : > { %v6861_v50 = vadd.f32 %v6860_v17, %v6859_v13  ;;  %v6862_v28 = vpop.f32.mrb[90].mxu0 }
 0x223   : > { %v6863_v62 = vpop.f32.mrb[91].mxu0 }
 0x224   : > { %v6864_v32 = vadd.f32 %v6863_v62, %v6862_v28  ;;  %v8859_v16 = vadd.f32 %v6861_v50, %v3814_v0 }
 0x226   : > { %v8861_v47 = vadd.f32 %v6864_v32, %v3817_v31 }
 0x228   : > { %v6865_v58 = vpop.f32.mrb[92].mxu0 }
 0x229   : > { %v6866_v53 = vpop.f32.mrb[93].mxu0 }
 0x22a   : > { %v6867_v29 = vadd.f32 %v6866_v53, %v6865_v58  ;;  %v6868_v59 = vpop.f32.mrb[94].mxu0 }
 0x22b   : > { %v6869_v51 = vpop.f32.mrb[95].mxu0 }
 0x22c   : > { %v6870_v49 = vadd.f32 %v6869_v51, %v6868_v59  ;;  %v7145_v26 = vadd.f32 %v6867_v29, %v8811_v22 }
 0x22e   : > { %v8865_v8 = vadd.f32 %v6870_v49, %v8819_v10 }
 0x230   : > { %v6871_v35 = vpop.f32.mrb[96].mxu0 }
 0x231   : > { %v6872_v48 = vpop.f32.mrb[97].mxu0 }
 0x232   : > { %v6873_v33 = vadd.f32 %v6872_v48, %v6871_v35  ;;  %v6874_v40 = vpop.f32.mrb[98].mxu0 }
 0x233   : > { %v6875_v43 = vpop.f32.mrb[99].mxu0 }
 0x234   : > { %v6876_v0 = vadd.f32 %v6875_v43, %v6874_v40  ;;  %v8867_v46 = vadd.f32 %v6873_v33, %v3830_v36 }
 0x236   : > { %v8869_v31 = vadd.f32 %v6876_v0, %v3833_v24 }
 0x238   : > { %v6877_v41 = vpop.f32.mrb[100].mxu0 }
 0x239   : > { %v6878_v11 = vpop.f32.mrb[101].mxu0 }
 0x23a   : > { %v6879_v55 = vadd.f32 %v6878_v11, %v6877_v41  ;;  %v6880_v25 = vpop.f32.mrb[102].mxu0 }
 0x23b   : > { %v6881_v30 = vpop.f32.mrb[103].mxu0 }
 0x23c   : > { %v6882_v27 = vadd.f32 %v6881_v30, %v6880_v25  ;;  %v8872_v22 = vadd.f32 %v6879_v55, %v8827_v44 }
 0x23e   : > { %v8875_v10 = vadd.f32 %v6882_v27, %v8833_v3 }
 0x240   : > { %v6883_v6 = vpop.f32.mrb[104].mxu0 }
 0x241   : > { %v6884_v18 = vpop.f32.mrb[105].mxu0 }
 0x242   : > { %v6885_v14 = vadd.f32 %v6884_v18, %v6883_v6  ;;  %v6886_v2 = vpop.f32.mrb[106].mxu0 }
 0x243   : > { %v6887_v36 = vpop.f32.mrb[107].mxu0 }
 0x244   : > { %v6888_v15 = vadd.f32 %v6887_v36, %v6886_v2  ;;  %v8877_v24 = vadd.f32 %v6885_v14, %v3846_v4 }
 0x246   : > { %v8879_v60 = vadd.f32 %v6888_v15, %v3849_v57 }
 0x247   : > { %v7081_v50 = vpop.f32.mrb[80].mxu1 }
 0x248   : > { %v6889_v13 = vpop.f32.mrb[108].mxu0  ;;  %v7130_v62 = vadd.f32 %v7129_v37, %v7081_v50  ;;  %v5465_v32 = vpop.f32.mrb[81].mxu1 }
 0x249   : > { %v6890_v17 = vpop.f32.mrb[109].mxu0  ;;  %v7134_v58 = vadd.f32 %v7133_v39, %v5465_v32  ;;  %v7082_v53 = vpop.f32.mrb[82].mxu1 }
 0x24a   : > { %v6891_v28 = vadd.f32 %v6890_v17, %v6889_v13  ;;  %v6892_v44 = vpop.f32.mrb[110].mxu0  ;;  %v7138_v59 = vadd.f32 %v7137_v42, %v7082_v53  ;;  %v5468_v51 = vpop.f32.mrb[83].mxu1  ;;  %v5823_v33 = vmul.f32 %v7130_v62, %v7130_v62 }
 0x24b   : > { %v6893_v3 = vpop.f32.mrb[111].mxu0  ;;  %v7142_v4 = vadd.f32 %v8855_v1, %v5468_v51  ;;  %v5821_v37 = vmul.f32 %v7134_v58, %v7134_v58 }
 0x24c   : > { %v6894_v29 = vadd.f32 %v6893_v3, %v6892_v44  ;;  %v8882_v49 = vadd.f32 %v6891_v28, %v8845_v52  ;;  %v6457_v57 = vpack.c.bf16 %v7138_v59, %v7130_v62  ;;  %v5824_v30 = vmul.f32 %v7138_v59, %v7138_v59 }
 0x24d   : > { %v6452_v42 = vpack.c.bf16 %v7142_v4, %v7134_v58  ;;  %v5784_v35 = vadd.f32 %v7142_v4, %v7134_v58  ;;  %v5822_v48 = vmul.f32 %v7142_v4, %v7142_v4 }
 0x24e   : > { %v8893_v39 = vadd.f32 %v6894_v29, %v8851_v63  ;;  %6544 = vst [vmem:[%s8889_s22 + $0x8] sm:$0xff] %v6457_v57  }
 0x24f   : > { %6453 = vst [vmem:[%s8889_s22] sm:$0xff] %v6452_v42   ;;  %v5785_v40 = vadd.f32 %v7130_v62, %v5784_v35  ;;  %v5853_v43 = vadd.f32 %v5822_v48, %v5821_v37  ;;  %v7085_v41 = vpop.f32.mrb[84].mxu1 }
 0x250   : > { %v6895_v52 = vpop.f32.mrb[112].mxu0  ;;  %v7146_v25 = vadd.f32 %v7145_v26, %v7085_v41  ;;  %v5481_v1 = vpop.f32.mrb[85].mxu1 }
 0x251   : > { %v6896_v0 = vpop.f32.mrb[113].mxu0  ;;  %v5854_v27 = vadd.f32 %v5853_v43, %v5823_v33  ;;  %v7150_v6 = vadd.f32 %v8859_v16, %v5481_v1  ;;  %v5786_v18 = vadd.f32 %v7138_v59, %v5785_v40  ;;  %v7086_v14 = vpop.f32.mrb[86].mxu1 }
 0x252   : > { %v6897_v11 = vadd.f32 %v6896_v0, %v6895_v52  ;;  %v6898_v55 = vpop.f32.mrb[114].mxu0  ;;  %v7154_v36 = vadd.f32 %v8865_v8, %v7086_v14  ;;  %v5484_v15 = vpop.f32.mrb[87].mxu1  ;;  %v5827_v53 = vmul.f32 %v7146_v25, %v7146_v25 }
 0x253   : > { %v6899_v63 = vpop.f32.mrb[115].mxu0  ;;  %v5787_v17 = vadd.f32 %v7150_v6, %v5786_v18  ;;  %v5825_v50 = vmul.f32 %v7150_v6, %v7150_v6  ;;  %v5855_v26 = vadd.f32 %v5854_v27, %v5824_v30  ;;  %v7158_v28 = vadd.f32 %v8861_v47, %v5484_v15  ;;  %v8973_v30 = vld [vmem:[#allocation4_spill] sm:$0xff] }
 0x254   : > { %v6900_v2 = vadd.f32 %v6899_v63, %v6898_v55  ;;  %v8900_v13 = vadd.f32 %v8766_v38, %v6897_v11  ;;  %v6467_v44 = vpack.c.bf16 %v7154_v36, %v7146_v25  ;;  %v5828_v42 = vmul.f32 %v7154_v36, %v7154_v36 }
 0x255   : > { %v5856_v16 = vadd.f32 %v5855_v26, %v5825_v50  ;;  %v6462_v32 = vpack.c.bf16 %v7158_v28, %v7150_v6  ;;  %v5788_v3 = vadd.f32 %v7158_v28, %v5787_v17  ;;  %v5826_v58 = vmul.f32 %v7158_v28, %v7158_v28 }
 0x256   : > { %v8904_v62 = vadd.f32 %v8768_v56, %v6900_v2  ;;  %6546 = vst [vmem:[%s8889_s22 + $0x18] sm:$0xff] %v6467_v44  }
 0x257   : > { %6545 = vst [vmem:[%s8889_s22 + $0x10] sm:$0xff] %v6462_v32   ;;  %v5789_v29 = vadd.f32 %v7146_v25, %v5788_v3  ;;  %v5857_v38 = vadd.f32 %v5856_v16, %v5826_v58  ;;  %v7089_v51 = vpop.f32.mrb[88].mxu1 }
 0x258   : > { %v6901_v8 = vpop.f32.mrb[116].mxu0  ;;  %v7162_v47 = vadd.f32 %v8872_v22, %v7089_v51  ;;  %v5497_v37 = vpop.f32.mrb[89].mxu1 }
 0x259   : > { %v6902_v59 = vpop.f32.mrb[117].mxu0  ;;  %v5858_v56 = vadd.f32 %v5857_v38, %v5827_v53  ;;  %v7166_v48 = vadd.f32 %v8867_v46, %v5497_v37  ;;  %v5790_v52 = vadd.f32 %v7154_v36, %v5789_v29  ;;  %v7090_v33 = vpop.f32.mrb[90].mxu1 }
 0x25a   : > { %v6903_v4 = vadd.f32 %v6902_v59, %v6901_v8  ;;  %v6904_v57 = vpop.f32.mrb[118].mxu0  ;;  %v7170_v43 = vadd.f32 %v8875_v10, %v7090_v33  ;;  %v5500_v0 = vpop.f32.mrb[91].mxu1  ;;  %v5831_v2 = vmul.f32 %v7162_v47, %v7162_v47 }
 0x25b   : > { %v6905_v35 = vpop.f32.mrb[119].mxu0  ;;  %v5791_v11 = vadd.f32 %v7166_v48, %v5790_v52  ;;  %v5829_v55 = vmul.f32 %v7166_v48, %v7166_v48  ;;  %v5859_v25 = vadd.f32 %v5858_v56, %v5828_v42  ;;  %v7174_v22 = vadd.f32 %v8869_v31, %v5500_v0 }
 0x25c   : > { %v6906_v40 = vadd.f32 %v6905_v35, %v6904_v57  ;;  %v7192_v41 = vadd.f32 %v8770_v5, %v6903_v4  ;;  %v6477_v1 = vpack.c.bf16 %v7170_v43, %v7162_v47  ;;  %v5832_v28 = vmul.f32 %v7170_v43, %v7170_v43 }
 0x25d   : > { %v5860_v63 = vadd.f32 %v5859_v25, %v5829_v55  ;;  %v6472_v46 = vpack.c.bf16 %v7174_v22, %v7166_v48  ;;  %v5792_v6 = vadd.f32 %v7174_v22, %v5791_v11  ;;  %v5830_v18 = vmul.f32 %v7174_v22, %v7174_v22 }
 0x25e   : > { %v7198_v27 = vadd.f32 %v8973_v30, %v6906_v40  ;;  %6548 = vst [vmem:[%s8889_s22 + $0x28] sm:$0xff] %v6477_v1  }
 0x25f   : > { %6547 = vst [vmem:[%s8889_s22 + $0x20] sm:$0xff] %v6472_v46   ;;  %v5793_v10 = vadd.f32 %v7162_v47, %v5792_v6  ;;  %v5861_v36 = vadd.f32 %v5860_v63, %v5830_v18  ;;  %v7093_v5 = vpop.f32.mrb[92].mxu1  ;;  %v8974_v47 = vld [vmem:[#allocation5_spill] sm:$0xff] }
 0x260   : > { %v6907_v14 = vpop.f32.mrb[120].mxu0  ;;  %v7178_v26 = vadd.f32 %v8882_v49, %v7093_v5  ;;  %v5513_v31 = vpop.f32.mrb[93].mxu1 }
 0x261   : > { %v6908_v15 = vpop.f32.mrb[121].mxu0  ;;  %v5862_v44 = vadd.f32 %v5861_v36, %v5831_v2  ;;  %v7182_v32 = vadd.f32 %v8877_v24, %v5513_v31  ;;  %v5794_v3 = vadd.f32 %v7170_v43, %v5793_v10  ;;  %v7094_v58 = vpop.f32.mrb[94].mxu1 }
 0x262   : > { %v6909_v17 = vadd.f32 %v6908_v15, %v6907_v14  ;;  %v6910_v50 = vpop.f32.mrb[122].mxu0  ;;  %v7186_v53 = vadd.f32 %v8893_v39, %v7094_v58  ;;  %v5516_v29 = vpop.f32.mrb[95].mxu1  ;;  %v5835_v52 = vmul.f32 %v7178_v26, %v7178_v26 }
 0x263   : > { %v6911_v16 = vpop.f32.mrb[123].mxu0  ;;  %v5795_v59 = vadd.f32 %v7182_v32, %v5794_v3  ;;  %v5833_v51 = vmul.f32 %v7182_v32, %v7182_v32  ;;  %v5863_v4 = vadd.f32 %v5862_v44, %v5832_v28  ;;  %v7190_v49 = vadd.f32 %v8879_v60, %v5516_v29 }
 0x264   : > { %v6912_v8 = vadd.f32 %v6911_v16, %v6910_v50  ;;  %v7207_v38 = vadd.f32 %v8774_v54, %v6909_v17  ;;  %v6487_v57 = vpack.c.bf16 %v7186_v53, %v7178_v26  ;;  %v5836_v60 = vmul.f32 %v7186_v53, %v7186_v53 }
 0x265   : > { %v5864_v42 = vadd.f32 %v5863_v4, %v5833_v51  ;;  %v6482_v24 = vpack.c.bf16 %v7190_v49, %v7182_v32  ;;  %v5796_v56 = vadd.f32 %v7190_v49, %v5795_v59  ;;  %v5834_v35 = vmul.f32 %v7190_v49, %v7190_v49 }
 0x266   : > { %v7213_v37 = vadd.f32 %v8974_v47, %v6912_v8  ;;  %6550 = vst [vmem:[%s8889_s22 + $0x38] sm:$0xff] %v6487_v57  }
 0x267   : > { %6549 = vst [vmem:[%s8889_s22 + $0x30] sm:$0xff] %v6482_v24   ;;  %v5797_v39 = vadd.f32 %v7178_v26, %v5796_v56  ;;  %v5865_v33 = vadd.f32 %v5864_v42, %v5834_v35  ;;  %v7097_v54 = vpop.f32.mrb[0].mxu1 }
 0x268   : > { %v6913_v48 = vpop.f32.mrb[124].mxu0  ;;  %v7193_v11 = vadd.f32 %v7192_v41, %v7097_v54  ;;  %v5529_v55 = vpop.f32.mrb[1].mxu1 }
 0x269   : > { %v6914_v40 = vpop.f32.mrb[125].mxu0  ;;  %v5866_v25 = vadd.f32 %v5865_v33, %v5835_v52  ;;  %v7196_v1 = vadd.f32 %v8900_v13, %v5529_v55  ;;  %v5798_v30 = vadd.f32 %v7186_v53, %v5797_v39  ;;  %v7098_v63 = vpop.f32.mrb[2].mxu1 }
 0x26a   : > { %v6915_v43 = vadd.f32 %v6914_v40, %v6913_v48  ;;  %v6916_v0 = vpop.f32.mrb[126].mxu0  ;;  %v7199_v6 = vadd.f32 %v7198_v27, %v7098_v63  ;;  %v5532_v18 = vpop.f32.mrb[3].mxu1  ;;  %v5839_v28 = vmul.f32 %v7193_v11, %v7193_v11 }
 0x26b   : > { %v6917_v22 = vpop.f32.mrb[127].mxu0  ;;  %v5799_v2 = vadd.f32 %v7196_v1, %v5798_v30  ;;  %v5837_v10 = vmul.f32 %v7196_v1, %v7196_v1  ;;  %v5867_v36 = vadd.f32 %v5866_v25, %v5836_v60  ;;  %v7202_v41 = vadd.f32 %v8904_v62, %v5532_v18 }
 0x26c   : > { %v6918_v46 = vadd.f32 %v6917_v22, %v6916_v0  ;;  %v7204_v14 = vadd.f32 %v8778_v9, %v6915_v43  ;;  %v6497_v15 = vpack.c.bf16 %v7199_v6, %v7193_v11  ;;  %v5840_v62 = vmul.f32 %v7199_v6, %v7199_v6 }
 0x26d   : > { %v5868_v17 = vadd.f32 %v5867_v36, %v5837_v10  ;;  %v6492_v50 = vpack.c.bf16 %v7202_v41, %v7196_v1  ;;  %v5800_v13 = vadd.f32 %v7202_v41, %v5799_v2  ;;  %v5838_v26 = vmul.f32 %v7202_v41, %v7202_v41 }
 0x26e   : > { %v7210_v5 = vadd.f32 %v8780_v7, %v6918_v46  ;;  %6552 = vst [vmem:[%s8889_s22 + $0x48] sm:$0xff] %v6497_v15  }
 0x26f   : > { %6551 = vst [vmem:[%s8889_s22 + $0x40] sm:$0xff] %v6492_v50   ;;  %v5801_v27 = vadd.f32 %v7193_v11, %v5800_v13  ;;  %v5869_v44 = vadd.f32 %v5868_v17, %v5838_v26  ;;  %v7101_v9 = vpop.f32.mrb[4].mxu1 }
 0x270   : > { %v6919_v31 = vpop.f32.mrb[128].mxu0  ;;  %v7205_v58 = vadd.f32 %v7204_v14, %v7101_v9  ;;  %v5545_v8 = vpop.f32.mrb[5].mxu1 }
 0x271   : > { %v6920_v16 = vpop.f32.mrb[129].mxu0  ;;  %v5870_v53 = vadd.f32 %v5869_v44, %v5839_v28  ;;  %v7208_v7 = vadd.f32 %v7207_v38, %v5545_v8  ;;  %v5802_v59 = vadd.f32 %v7199_v6, %v5801_v27  ;;  %v7102_v51 = vpop.f32.mrb[6].mxu1 }
 0x272   : > { %v6921_v32 = vadd.f32 %v6920_v16, %v6919_v31  ;;  %v6922_v3 = vpop.f32.mrb[130].mxu0  ;;  %v7211_v49 = vadd.f32 %v7210_v5, %v7102_v51  ;;  %v5548_v57 = vpop.f32.mrb[7].mxu1  ;;  %v5843_v43 = vmul.f32 %v7205_v58, %v7205_v58 }
 0x273   : > { %v6923_v29 = vpop.f32.mrb[131].mxu0  ;;  %v5803_v42 = vadd.f32 %v7208_v7, %v5802_v59  ;;  %v5841_v24 = vmul.f32 %v7208_v7, %v7208_v7  ;;  %v5871_v56 = vadd.f32 %v5870_v53, %v5840_v62  ;;  %v7214_v35 = vadd.f32 %v7213_v37, %v5548_v57 }
 0x274   : > { %v6924_v4 = vadd.f32 %v6923_v29, %v6922_v3  ;;  %v7219_v47 = vadd.f32 %v8786_v19, %v6921_v32  ;;  %v6507_v48 = vpack.c.bf16 %v7211_v49, %v7205_v58  ;;  %v5844_v1 = vmul.f32 %v7211_v49, %v7211_v49 }
 0x275   : > { %v5872_v39 = vadd.f32 %v5871_v56, %v5841_v24  ;;  %v6502_v33 = vpack.c.bf16 %v7214_v35, %v7208_v7  ;;  %v5804_v40 = vadd.f32 %v7214_v35, %v5803_v42  ;;  %v5842_v38 = vmul.f32 %v7214_v35, %v7214_v35 }
 0x276   : > { %v7225_v52 = vadd.f32 %v8788_v34, %v6924_v4  ;;  %6554 = vst [vmem:[%s8889_s22 + $0x58] sm:$0xff] %v6507_v48  }
 0x277   : > { %6553 = vst [vmem:[%s8889_s22 + $0x50] sm:$0xff] %v6502_v33   ;;  %v5805_v0 = vadd.f32 %v7205_v58, %v5804_v40  ;;  %v5873_v11 = vadd.f32 %v5872_v39, %v5842_v38  ;;  %v7105_v60 = vpop.f32.mrb[8].mxu1 }
 0x278   : > { %v6925_v54 = vpop.f32.mrb[132].mxu0  ;;  %v5561_v22 = vpop.f32.mrb[9].mxu1 }
 0x279   : > { %v6926_v55 = vpop.f32.mrb[133].mxu0  ;;  %v5874_v37 = vadd.f32 %v5873_v11, %v5843_v43  ;;  %v7220_v63 = vadd.f32 %v7219_v47, %v5561_v22  ;;  %v5806_v34 = vadd.f32 %v7211_v49, %v5805_v0  ;;  %v7106_v46 = vpop.f32.mrb[10].mxu1 }
 0x27a   : > { %v6927_v19 = vadd.f32 %v6926_v55, %v6925_v54  ;;  %v6928_v25 = vpop.f32.mrb[134].mxu0  ;;  %v5564_v14 = vpop.f32.mrb[11].mxu1 }
 0x27b   : > { %v6929_v30 = vpop.f32.mrb[135].mxu0  ;;  %v5807_v2 = vadd.f32 %v7220_v63, %v5806_v34  ;;  %v5845_v10 = vmul.f32 %v7220_v63, %v7220_v63  ;;  %v5875_v36 = vadd.f32 %v5874_v37, %v5844_v1  ;;  %v7226_v41 = vadd.f32 %v7225_v52, %v5564_v14 }
 0x27c   : > { %v6930_v6 = vadd.f32 %v6929_v30, %v6928_v25  ;;  %v7216_v18 = vadd.f32 %v8800_v23, %v6927_v19 }
 0x27d   : > { %v5876_v17 = vadd.f32 %v5875_v36, %v5845_v10  ;;  %v6512_v50 = vpack.c.bf16 %v7226_v41, %v7220_v63  ;;  %v5808_v13 = vadd.f32 %v7226_v41, %v5807_v2  ;;  %v5846_v26 = vmul.f32 %v7226_v41, %v7226_v41 }
 0x27e   : > { %v7217_v15 = vadd.f32 %v7216_v18, %v7105_v60  ;;  %v7222_v5 = vadd.f32 %v8806_v20, %v6930_v6 }
 0x27f   : > { %6555 = vst [vmem:[%s8889_s22 + $0x60] sm:$0xff] %v6512_v50   ;;  %v5877_v16 = vadd.f32 %v5876_v17, %v5846_v26 }
 0x280   : > { %v7223_v31 = vadd.f32 %v7222_v5, %v7106_v46  ;;  %v6931_v28 = vpop.f32.mrb[136].mxu0  ;;  %v5847_v27 = vmul.f32 %v7217_v15, %v7217_v15  ;;  %v5809_v44 = vadd.f32 %v7217_v15, %v5808_v13 }
 0x281   : > { %v6932_v23 = vpop.f32.mrb[137].mxu0  ;;  %v7109_v53 = vpop.f32.mrb[12].mxu1 }
 0x282   : > { %v6517_v9 = vpack.c.bf16 %v7223_v31, %v7217_v15  ;;  %v6933_v32 = vadd.f32 %v6932_v23, %v6931_v28  ;;  %v6934_v3 = vpop.f32.mrb[138].mxu0  ;;  %v5848_v58 = vmul.f32 %v7223_v31, %v7223_v31  ;;  %v5878_v8 = vadd.f32 %v5877_v16, %v5847_v27  ;;  %v5577_v7 = vpop.f32.mrb[13].mxu1 }
 0x283   : > { %v6935_v62 = vpop.f32.mrb[139].mxu0  ;;  %v5810_v20 = vadd.f32 %v7223_v31, %v5809_v44  ;;  %v7110_v4 = vpop.f32.mrb[14].mxu1 }
 0x284   : > { %6556 = vst [vmem:[%s8889_s22 + $0x68] sm:$0xff] %v6517_v9   ;;  %v6936_v29 = vadd.f32 %v6935_v62, %v6934_v3  ;;  %v7231_v59 = vadd.f32 %v8816_v12, %v6933_v32  ;;  %v5879_v51 = vadd.f32 %v5878_v8, %v5848_v58  ;;  %v5580_v57 = vpop.f32.mrb[15].mxu1 }
 0x286   : > { %v7232_v49 = vadd.f32 %v7231_v59, %v5577_v7  ;;  %v7237_v47 = vadd.f32 %v8822_v61, %v6936_v29 }
 0x288   : > { %v5811_v42 = vadd.f32 %v7232_v49, %v5810_v20  ;;  %v5849_v24 = vmul.f32 %v7232_v49, %v7232_v49  ;;  %v7238_v56 = vadd.f32 %v7237_v47, %v5580_v57 }
 0x28a   : > { %v5880_v35 = vadd.f32 %v5879_v51, %v5849_v24  ;;  %v6522_v48 = vpack.c.bf16 %v7238_v56, %v7232_v49  ;;  %v5812_v52 = vadd.f32 %v7238_v56, %v5811_v42  ;;  %v5850_v39 = vmul.f32 %v7238_v56, %v7238_v56  ;;  %v6937_v33 = vpop.f32.mrb[140].mxu0 }
 0x28b   : > { %v6938_v38 = vpop.f32.mrb[141].mxu0 }
 0x28c   : > { %6557 = vst [vmem:[%s8889_s22 + $0x70] sm:$0xff] %v6522_v48   ;;  %v5881_v40 = vadd.f32 %v5880_v35, %v5850_v39  ;;  %v6939_v12 = vadd.f32 %v6938_v38, %v6937_v33  ;;  %v6940_v54 = vpop.f32.mrb[142].mxu0 }
 0x28d   : > { %v6941_v43 = vpop.f32.mrb[143].mxu0 }
 0x28e   : > { %v7228_v0 = vadd.f32 %v8836_v21, %v6939_v12  ;;  %v6942_v61 = vadd.f32 %v6941_v43, %v6940_v54 }
 0x290   : > { %v7229_v11 = vadd.f32 %v7228_v0, %v7109_v53  ;;  %v7234_v55 = vadd.f32 %v8840_v45, %v6942_v61 }
 0x292   : > { %v5813_v60 = vadd.f32 %v7229_v11, %v5812_v52  ;;  %v5851_v19 = vmul.f32 %v7229_v11, %v7229_v11  ;;  %v7235_v25 = vadd.f32 %v7234_v55, %v7110_v4 }
 0x294   : > { %v5882_v22 = vadd.f32 %v5881_v40, %v5851_v19  ;;  %v6527_v1 = vpack.c.bf16 %v7235_v25, %v7229_v11  ;;  %v5814_v37 = vadd.f32 %v7235_v25, %v5813_v60  ;;  %v5852_v30 = vmul.f32 %v7235_v25, %v7235_v25 }
 0x296   : > { %6558 = vst [vmem:[%s8889_s22 + $0x78] sm:$0xff] %v6527_v1   ;;  %v5815_v63 = vrot.slane %v5814_v37, 4  ;;  %v5883_v34 = vadd.f32 %v5882_v22, %v5852_v30 }
 0x298   : > { %v5816_v46 = vadd.f32 %v5815_v63, %v5814_v37  ;;  %v5884_v6 = vrot.slane %v5883_v34, 4 }
 0x29a   : > { %v5817_v18 = vrot.slane %v5816_v46, 2  ;;  %v5885_v21 = vadd.f32 %v5884_v6, %v5883_v34 }
 0x29c   : > { %v5818_v14 = vadd.f32 %v5817_v18, %v5816_v46  ;;  %v5886_v2 = vrot.slane %v5885_v21, 2 }
 0x29e   : > { %v5819_v45 = vrot.slane %v5818_v14, 1  ;;  %v5887_v10 = vadd.f32 %v5886_v2, %v5885_v21 }
 0x2a0   : > { %v5820_v36 = vadd.f32 %v5819_v45, %v5818_v14  ;;  %v5888_v41 = vrot.slane %v5887_v10, 1 }
 0x2a2   : > { %v5889_v15 = vadd.f32 %v5888_v41, %v5887_v10  ;;  %5890 = vst [vmem:[%s238_s24] sm:$0x1] %v5820_v36 }
 0x2a4   : > { %5891 = vst [vmem:[%s238_s24 + $0x1] sm:$0x1] %v5889_v15 }
 0x2a5 PF: > { %s16_s18 = sadd.s32 1, %s7429_s18  }
 0x2a6   : > { %p13_p5 = scmp.ge.s32.totalorder %s16_s18, 4  }
 0x2a8   :  { %15 = sbr.rel (!%p13_p5) target bundleno = 1 (0x1), region = 81 }

// kernel: basic_block.3
= control target key start
LH: loop header
LB: loop body
LE: loop exit
PB: predicated region body
PF: predicated region fallthrough
CT: control target
= control target key end

     0   :  { %s7167_s12 = smov 0   ;;  %s8476_s0 = inlined_call_operand.vmem [shape: f32[2,16,16,128], index: 0, kind: input, shape index: {}]   ;;  %s8477_s1 = inlined_call_operand.vmem [shape: bf16[1152,128], index: 1, kind: input, shape index: {}]   ;;  %s8478_s2 = inlined_call_operand.vmem [shape: bf16[512,128], index: 2, kind: output, shape index: {0}]   ;;  %s8479_s3 = inlined_call_operand.vmem [shape: f32[2,2,128], index: 3, kind: output, shape index: {1}]  }
   0x1 LB: > { %s7173_s13 = sadd.s32 4294967295, %s7144_s12   ;;  %p5785_p0 = scmp.ge.s32.totalorder %s7144_s12, 1  ;;  %s7144_s12 = sphi %s7167_s12, %s14_s12  }
   0x2   : > { %p140_p1 = scmp.lt.s32.totalorder %s7144_s12, 3 }
   0x4   : > { %p141_p2 = pnand %p5785_p0, %p140_p1 }
   0x6   : > { %144 = sbr.rel (%p141_p2) target bundleno = 650 (0x28a), region = 28 }
   0xd   : > { %v7018_v0 = vld [vmem:[%s8477_s1 + $0x100] sm:$0xff]   ;;  %v7021_v3 = vld [vmem:[%s8477_s1 + $0x108] sm:$0xff]   ;;  %v7024_v6 = vld [vmem:[%s8477_s1 + $0x110] sm:$0xff]   ;;  %v7146_v9 = vmov 0   ;;  %p168_p3 = scmp.lt.s32.totalorder %s7173_s13, 1  ;;  %vm239_vm0 = vcmask 1040384  }
   0xe   : > { %v7183_v1 = vld [vmem:[%s8477_s1 + $0x140] sm:$0xff]   ;;  %6281 = vmatprep.subr.bf16.mxu0 %v7018_v0  ;;  %v7196_v4 = vld [vmem:[%s8477_s1 + $0x148] sm:$0xff]   ;;  %v7208_v7 = vld [vmem:[%s8477_s1 + $0x150] sm:$0xff]   ;;  %232 = vst [vmem:[#allocation2] sm:$0xf] %v7146_v9  ;;  %vm755_vm6 = vcmask 1043456  }
   0xf   : > { %v7020_v2 = vld [vmem:[%s8477_s1 + $0xc0] sm:$0xff]   ;;  %6833 = vmatprep.subr.bf16.mxu1 %v7183_v1  ;;  %v7023_v5 = vld [vmem:[%s8477_s1 + $0xc8] sm:$0xff]   ;;  %v7026_v8 = vld [vmem:[%s8477_s1 + $0xd0] sm:$0xff]   ;;  %233 = vst [vmem:[#allocation2 + $0x4] sm:$0xf] %v7146_v9  ;;  %s7245_s21 = scalar_select %p168_p3, %s7173_s13, 1 }
  0x10   : > { %6282 = vmatpush3.bf16.msra.mxu0 %v7020_v2  ;;  %6841 = vmatpush3.bf16.msra.mxu1 %v7183_v1  ;;  %234 = vst [vmem:[#allocation2 + $0x8] sm:$0x1] %v7146_v9  ;;  %236 = vst [vmem:[#allocation2 + $0xcc] sm:$0xf] %v7146_v9  ;;  %v7027_v10 = vld [vmem:[%s8477_s1 + $0x118] sm:$0xff]   ;;  %v7030_v13 = vld [vmem:[%s8477_s1 + $0x120] sm:$0xff]  }
  0x11   : > { %6283 = vmatprep.subr.bf16.mxu0 %v7021_v3  ;;  %6834 = vmatprep.subr.bf16.mxu1 %v7196_v4  ;;  %237 = vst [vmem:[#allocation2 + $0xd0] sm:$0xf] %v7146_v9  ;;  %238 = vst [vmem:[#allocation2 + $0xd4] sm:$0x1] %v7146_v9  ;;  %v7221_v11 = vld [vmem:[%s8477_s1 + $0x158] sm:$0xff]   ;;  %v7235_v14 = vld [vmem:[%s8477_s1 + $0x160] sm:$0xff]  }
  0x12   : > { %v7029_v12 = vld [vmem:[%s8477_s1 + $0xd8] sm:$0xff]   ;;  %v7032_v15 = vld [vmem:[%s8477_s1 + $0xe0] sm:$0xff]   ;;  %v7033_v16 = vld [vmem:[%s8477_s1 + $0x128] sm:$0xff]   ;;  %s6121_s28 = sshll.u32 %s7245_s21, 8  ;;  %vm240_vm1 = vsmask.f32 256 }
  0x13   : > { %v7251_v17 = vld [vmem:[%s8477_s1 + $0x168] sm:$0xff]   ;;  %v7036_v19 = vld [vmem:[%s8477_s1 + $0x130] sm:$0xff]   ;;  %v7039_v22 = vld [vmem:[%s8477_s1 + $0x138] sm:$0xff]   ;;  %s7276_s10 = scalar_lea.vmem %s8476_s0, %s6121_s28  ;;  %vm296_vm3 = vsmask.f32 7938  ;;  %vm1624_vm8 = vcmask 1042432  }
  0x14   : > { %6284 = vmatpush3.bf16.msra.mxu0 %v7023_v5  ;;  %6842 = vmatpush3.bf16.msra.mxu1 %v7196_v4  ;;  %v7035_v18 = vld [vmem:[%s8477_s1 + $0xe8] sm:$0xff]   ;;  %v7265_v20 = vld [vmem:[%s8477_s1 + $0x170] sm:$0xff]   ;;  %v200_v23 = vld [vmem:[%s7276_s10 + $0x80] sm:$0xff]  ;;  %vm432_vm5 = vsmask.f32 4368  ;;  %vm1625_vm10 = vcmask 1046532  }
  0x15   : > { %6285 = vmatprep.subr.bf16.mxu0 %v7024_v6  ;;  %6835 = vmatprep.subr.bf16.mxu1 %v7208_v7  ;;  %v7038_v21 = vld [vmem:[%s8477_s1 + $0xf0] sm:$0xff]   ;;  %v201_v24 = vld [vmem:[%s7276_s10 + $0x88] sm:$0xff]  ;;  %v7285_v26 = vld [vmem:[%s8477_s1 + $0x178] sm:$0xff]   ;;  %v6138_v29 = vpack.c.bf16 %v200_v23, %v200_v23  ;;  %vm1061_vm11 = vsmask.f32 3328  ;;  %s5788_s18 = sshll.u32 %s7173_s13, 5 }
  0x16   : > { %v269_v25 = vld [vmem:[#allocation2 + $0x6c] sm:$0x1]  ;;  %vm7289_vm2 = vmand %vm239_vm0, %vm240_vm1  ;;  %v325_v28 = vld [vmem:[#allocation2 + $0x74] sm:$0x1]  ;;  %v6139_v30 = vpack.c.bf16 %v201_v24, %v201_v24  ;;  %vm1062_vm12 = vsmask.f32 7440 }
  0x17   : > { %v270_v31 = vsel %vm7289_vm2, 0, %v269_v25  ;;  %vm7297_vm4 = vmand %vm239_vm0, %vm296_vm3  ;;  %v184_v33 = vld [vmem:[%s7276_s10] sm:$0xff]  ;;  %v185_v34 = vld [vmem:[%s7276_s10 + $0x8] sm:$0xff]  ;;  %v571_v36 = vshrl.u32 %v6138_v29, 16  ;;  %v574_v37 = vshll.u32 %v6138_v29, 16  ;;  %p174_p4 = scmp.lt.s32.totalorder %s5788_s18, 63 }
  0x18   : > { %6286 = vmatpush3.bf16.msra.mxu0 %v7026_v8  ;;  %6843 = vmatpush3.bf16.msra.mxu1 %v7208_v7  ;;  %271 = vst [vmem:[#allocation2 + $0x6c] sm:$0x1] %v270_v31  ;;  %v326_v35 = vsel %vm7297_vm4, 0, %v325_v28  ;;  %v579_v38 = vshrl.u32 %v6139_v30, 16  ;;  %v245_v39 = vld [vmem:[#allocation2 + $0xc] sm:$0x1]  ;;  %v6122_v44 = vpack.c.bf16 %v184_v33, %v184_v33  ;;  %v6123_v45 = vpack.c.bf16 %v185_v34, %v185_v34  ;;  %vm7319_vm7 = vmor %vm240_vm1, %vm432_vm5 }
  0x19   : > { %6287 = vmatprep.subr.bf16.mxu0 %v7027_v10  ;;  %6836 = vmatprep.subr.bf16.mxu1 %v7221_v11  ;;  %v7041_v40 = vld [vmem:[%s8477_s1 + $0xf8] sm:$0xff]   ;;  %327 = vst [vmem:[#allocation2 + $0x74] sm:$0x1] %v326_v35  ;;  %v582_v41 = vshll.u32 %v6139_v30, 16  ;;  %v246_v42 = vsel %vm7289_vm2, 0, %v245_v39  ;;  %v573_v46 = vrot.slane %v571_v36, 7  ;;  %vm7335_vm9 = vmand %vm755_vm6, %vm296_vm3 }
  0x1a   : > { %v301_v43 = vld [vmem:[#allocation2 + $0x14] sm:$0x1]  ;;  %v581_v47 = vrot.slane %v579_v38, 7  ;;  %247 = vst [vmem:[#allocation2 + $0xc] sm:$0x1] %v246_v42  ;;  %v203_v50 = vld [vmem:[%s7276_s10 + $0x98] sm:$0xff]  ;;  %vm7367_vm13 = vmor %vm1624_vm8, %vm1625_vm10 }
  0x1b   : > { %v302_v48 = vsel %vm7297_vm4, 0, %v301_v43  ;;  %v202_v49 = vld [vmem:[%s7276_s10 + $0x90] sm:$0xff]  ;;  %v435_v51 = vshrl.u32 %v6122_v44, 16  ;;  %v438_v52 = vshll.u32 %v6122_v44, 16  ;;  %v443_v53 = vshrl.u32 %v6123_v45, 16  ;;  %v7042_v8 = vld [vmem:[%s8477_s1 + $0x40] sm:$0xff]   ;;  %vm7388_vm14 = vmor %vm1061_vm11, %vm1062_vm12 }
  0x1c   : > { %6288 = vmatpush3.bf16.msra.mxu0 %v7029_v12  ;;  %6844 = vmatpush3.bf16.msra.mxu1 %v7221_v11  ;;  %303 = vst [vmem:[#allocation2 + $0x14] sm:$0x1] %v302_v48  ;;  %v446_v54 = vshll.u32 %v6123_v45, 16  ;;  %v272_v55 = vld [vmem:[#allocation2 + $0x78] sm:$0x1]  ;;  %v576_v56 = vor.u32 %v574_v37, %v573_v46  ;;  %v577_v57 = vrot.slane %v573_v46, 4  ;;  %v584_v58 = vor.u32 %v582_v41, %v581_v47 }
  0x1d   : > { %6289 = vmatprep.subr.bf16.mxu0 %v7030_v13  ;;  %6837 = vmatprep.subr.bf16.mxu1 %v7235_v14  ;;  %v586_v59 = vrot.slane %v581_v47, 4  ;;  %v328_v60 = vld [vmem:[#allocation2 + $0x80] sm:$0x1]  ;;  %v437_v62 = vrot.slane %v435_v51, 7  ;;  %v445_v63 = vrot.slane %v443_v53, 7  ;;  %v273_v0 = vsel %vm7289_vm2, 0, %v272_v55 }
  0x1e   : > { %v329_v2 = vsel %vm7297_vm4, 0, %v328_v60  ;;  %v585_v3 = vsel %vm7319_vm7, %v577_v57, %v584_v58  ;;  %274 = vst [vmem:[#allocation2 + $0x78] sm:$0x1] %v273_v0  ;;  %v6140_v5 = vpack.c.bf16 %v202_v49, %v202_v49  ;;  %v6141_v6 = vpack.c.bf16 %v203_v50, %v203_v50  ;;  %v204_v30 = vld [vmem:[%s7276_s10 + $0xa0] sm:$0xff]  ;;  %v205_v38 = vld [vmem:[%s7276_s10 + $0xa8] sm:$0xff]  ;;  %v186_v55 = vld [vmem:[%s7276_s10 + $0x10] sm:$0xff] }
  0x1f   : > { %330 = vst [vmem:[#allocation2 + $0x80] sm:$0x1] %v329_v2  ;;  %v813_v10 = vld [vmem:[#allocation2 + $0x6c] sm:$0xf]  ;;  %816 = vst [vmem:[#allocation2 + $0x70] sm:$0xf] %v585_v3  ;;  %v440_v12 = vor.u32 %v438_v52, %v437_v62  ;;  %v6142_v36 = vpack.c.bf16 %v204_v30, %v204_v30  ;;  %v7355_v49 = vpack.c.bf16 %v205_v38, %v205_v38 }
  0x20   : > { %6290 = vmatpush3.bf16.msra.mxu0 %v7032_v15  ;;  %6845 = vmatpush3.bf16.msra.mxu1 %v7235_v14  ;;  %v441_v13 = vrot.slane %v437_v62, 4  ;;  %v448_v15 = vor.u32 %v446_v54, %v445_v63  ;;  %v596_v23 = vshrl.u32 %v6141_v6, 16  ;;  %v599_v29 = vshll.u32 %v6141_v6, 16  ;;  %v275_v43 = vld [vmem:[#allocation2 + $0x84] sm:$0x1]  ;;  %v187_v58 = vld [vmem:[%s7276_s10 + $0x18] sm:$0xff] }
  0x21   : > { %6291 = vmatprep.subr.bf16.mxu0 %v7033_v16  ;;  %6838 = vmatprep.subr.bf16.mxu1 %v7251_v17  ;;  %v450_v16 = vrot.slane %v445_v63, 4  ;;  %v757_v28 = vld [vmem:[#allocation2 + $0xc] sm:$0xf]  ;;  %v276_v47 = vsel %vm7289_vm2, 0, %v275_v43  ;;  %v605_v54 = vshrl.u32 %v6142_v36, 16  ;;  %v608_v57 = vshll.u32 %v6142_v36, 16 }
  0x22   : > { %v449_v25 = vsel %vm7319_vm7, %v441_v13, %v448_v15  ;;  %v758_v31 = vsel %vm7335_vm9, %v440_v12, %v757_v28  ;;  %v598_v35 = vrot.slane %v596_v23, 7  ;;  %v331_v44 = vld [vmem:[#allocation2 + $0x8c] sm:$0x1]  ;;  %277 = vst [vmem:[#allocation2 + $0x84] sm:$0x1] %v276_v47  ;;  %v613_v0 = vshrl.u32 %v7355_v49, 16 }
  0x23   : > { %760 = vst [vmem:[#allocation2 + $0x10] sm:$0xf] %v449_v25  ;;  %v761_v33 = vld [vmem:[#allocation2 + $0x14] sm:$0x1]  ;;  %759 = vst [vmem:[#allocation2 + $0xc] sm:$0xf] %v758_v31  ;;  %v7375_v12 = vpack.c.bf16 %v186_v55, %v186_v55  ;;  %v7379_v25 = vpack.c.bf16 %v187_v58, %v187_v58 }
  0x24   : > { %6292 = vmatpush3.bf16.msra.mxu0 %v7035_v18  ;;  %6846 = vmatpush3.bf16.msra.mxu1 %v7251_v17  ;;  %v814_v18 = vsel %vm7335_vm9, %v576_v56, %v813_v10  ;;  %v762_v37 = vsel %vm7289_vm2, %v450_v16, %v761_v33  ;;  %v601_v41 = vor.u32 %v599_v29, %v598_v35  ;;  %v603_v42 = vrot.slane %v598_v35, 4  ;;  %v304_v33 = vld [vmem:[#allocation2 + $0x20] sm:$0x1]  ;;  %s8499_s18 = smov (!%p174_p4, %s5788_s18), 63  ;;  %s5790_s23 = sshll.u32 %s7245_s21, 1 }
  0x25   : > { %6293 = vmatprep.subr.bf16.mxu0 %v7036_v19  ;;  %6839 = vmatprep.subr.bf16.mxu1 %v7265_v20  ;;  %v817_v19 = vld [vmem:[#allocation2 + $0x74] sm:$0x1]  ;;  %815 = vst [vmem:[#allocation2 + $0x6c] sm:$0xf] %v814_v18  ;;  %763 = vst [vmem:[#allocation2 + $0x14] sm:$0x1] %v762_v37  ;;  %s182_s26 = scalar_lea.vmem %s8479_s3, %s5790_s23 }
  0x26   : > { %v818_v24 = vsel %vm7289_vm2, %v586_v59, %v817_v19  ;;  %v820_v45 = vld [vmem:[#allocation2 + $0x78] sm:$0xf]  ;;  %v824_v46 = vld [vmem:[#allocation2 + $0x80] sm:$0x1]  ;;  %v332_v48 = vsel %vm7297_vm4, 0, %v331_v44  ;;  %v607_v63 = vrot.slane %v605_v54, 7 }
  0x27   : > { %819 = vst [vmem:[#allocation2 + $0x74] sm:$0x1] %v818_v24  ;;  %v2596_v50 = vld [vmem:[#allocation2 + $0x70] sm:$0xf]  ;;  %v825_v53 = vsel %vm7289_vm2, %v603_v42, %v824_v46  ;;  %333 = vst [vmem:[#allocation2 + $0x8c] sm:$0x1] %v332_v48 }
  0x28   : > { %6294 = vmatpush3.bf16.msra.mxu0 %v7038_v21  ;;  %6847 = vmatpush3.bf16.msra.mxu1 %v7265_v20  ;;  %v588_v21 = vshrl.u32 %v6140_v5, 16  ;;  %v2725_v56 = vrot.slane %v2596_v50, 5  ;;  %826 = vst [vmem:[#allocation2 + $0x80] sm:$0x1] %v825_v53  ;;  %v248_v59 = vld [vmem:[#allocation2 + $0x18] sm:$0x1]  ;;  %v610_v19 = vor.u32 %v608_v57, %v607_v63 }
  0x29   : > { %6295 = vmatprep.subr.bf16.mxu0 %v7039_v22  ;;  %6840 = vmatprep.subr.bf16.mxu1 %v7285_v26  ;;  %v591_v22 = vshll.u32 %v6140_v5, 16  ;;  %v616_v2 = vshll.u32 %v7355_v49, 16  ;;  %v249_v3 = vsel %vm7289_vm2, 0, %v248_v59  ;;  %v611_v38 = vrot.slane %v607_v63, 4  ;;  %v7044_v63 = vld [vmem:[%s8477_s1] sm:$0xff]   ;;  %s5789_s13 = sshll.u32 %s8499_s18, 2 }
  0x2a   : > { %v590_v34 = vrot.slane %v588_v21, 7  ;;  %v2060_v10 = vld [vmem:[#allocation2 + $0x10] sm:$0xf]  ;;  %250 = vst [vmem:[#allocation2 + $0x18] sm:$0x1] %v249_v3  ;;  %v615_v44 = vrot.slane %v613_v0, 7  ;;  %s8404_s22 = scalar_lea.vmem %s8478_s2, %s5789_s13 }
  0x2b   : > { %v2059_v15 = vld [vmem:[#allocation2 + $0xc] sm:$0xf]  ;;  %v2117_v16 = vshll.u32 %v2060_v10, 16  ;;  %v2121_v18 = vshrl.u32 %v2060_v10, 16  ;;  %v305_v0 = vsel %vm7297_vm4, 0, %v304_v33  ;;  %v452_v10 = vshrl.u32 %v7375_v12, 16 }
  0x2c   : > { %6296 = vmatpush3.bf16.msra.mxu0 %v7041_v40  ;;  %6848 = vmatpush3.bf16.msra.mxu1 %v7285_v26  ;;  %v593_v39 = vor.u32 %v591_v22, %v590_v34  ;;  %v594_v40 = vrot.slane %v590_v34, 4  ;;  %v2595_v62 = vld [vmem:[#allocation2 + $0x6c] sm:$0xe]  ;;  %v2061_v22 = vld [vmem:[#allocation2 + $0x14] sm:$0x1]  ;;  %v2108_v23 = vshrl.u32 %v2059_v15, 16  ;;  %v618_v55 = vor.u32 %v616_v2, %v615_v44 }
  0x2d   : > { %6689 = vmatprep.subr.bf16.mxu0 %v7183_v1  ;;  %6417 = vmatprep.subr.bf16.mxu1 %v7042_v8  ;;  %v5927_v6 = vrot.slane %v2595_v62, 9  ;;  %v2727_v8 = vrot.slane %v2725_v56, 4  ;;  %v2111_v24 = vshll.u32 %v2059_v15, 16  ;;  %v2119_v29 = vrot.slane %v2117_v16, 5  ;;  %v206_v34 = vld [vmem:[%s7276_s10 + $0xb0] sm:$0xff]  ;;  %v7045_v2 = vld [vmem:[%s8477_s1 + $0x48] sm:$0xff]  }
  0x2e   : > { %v602_v51 = vsel %vm7319_vm7, %v594_v40, %v601_v41  ;;  %v821_v52 = vsel %vm7335_vm9, %v593_v39, %v820_v45  ;;  %v2597_v5 = vld [vmem:[#allocation2 + $0x74] sm:$0x1]  ;;  %v2123_v30 = vrot.slane %v2121_v18, 4  ;;  %v2127_v31 = vshll.u32 %v2061_v22, 16  ;;  %v827_v39 = vld [vmem:[#allocation2 + $0x84] sm:$0xf] }
  0x2f   : > { %822 = vst [vmem:[#allocation2 + $0x78] sm:$0xf] %v821_v52  ;;  %823 = vst [vmem:[#allocation2 + $0x7c] sm:$0xf] %v602_v51  ;;  %v2728_v13 = vrot.slane %v2597_v5, 5  ;;  %v2726_v21 = vsel %vm7367_vm13, %v5927_v6, %v2725_v56  ;;  %v2110_v36 = vrot.slane %v2108_v23, 4  ;;  %v828_v45 = vsel %vm7335_vm9, %v610_v19, %v827_v39 }
  0x30   : > { %v2113_v37 = vrot.slane %v2111_v24, 5  ;;  %v2124_v40 = vor.u32 %v2123_v30, %v2119_v29  ;;  %v2129_v41 = vrot.slane %v2127_v31, 5  ;;  %v2600_v48 = vld [vmem:[#allocation2 + $0x80] sm:$0x1]  ;;  %829 = vst [vmem:[#allocation2 + $0x84] sm:$0xf] %v828_v45  ;;  %v7392_v52 = vpack.c.bf16 %v206_v34, %v206_v34 }
  0x31   : > { %v2729_v28 = vsel %vm7367_vm13, %v2727_v8, %v2728_v13  ;;  %v831_v51 = vld [vmem:[#allocation2 + $0x8c] sm:$0x1]  ;;  %v2735_v54 = vrot.slane %v2600_v48, 5  ;;  %v620_v56 = vrot.slane %v615_v44, 4  ;;  %v278_v3 = vld [vmem:[#allocation2 + $0x90] sm:$0x1]  ;;  %v619_v6 = vsel %vm7319_vm7, %v611_v38, %v618_v55 }
  0x32   : > { %v5943_v35 = vcombine.low %v2726_v21, %v2729_v28  ;;  %v2114_v47 = vor.u32 %v2113_v37, %v2110_v36  ;;  %v2125_v53 = vrot.slane %v2124_v40, 4  ;;  %v7043_v62 = vld [vmem:[#allocation2 + $0xc] sm:$0xff]   ;;  %306 = vst [vmem:[#allocation2 + $0x20] sm:$0x1] %v305_v0  ;;  %v207_v13 = vld [vmem:[%s7276_s10 + $0xb8] sm:$0xff]  ;;  %v455_v19 = vshll.u32 %v7375_v12, 16 }
  0x33   : > { %v832_v8 = vsel %vm7289_vm2, %v620_v56, %v831_v51  ;;  %v334_v15 = vld [vmem:[#allocation2 + $0x98] sm:$0x1]  ;;  %830 = vst [vmem:[#allocation2 + $0x88] sm:$0xf] %v619_v6  ;;  %v460_v21 = vshrl.u32 %v7379_v25, 16  ;;  %v454_v28 = vrot.slane %v452_v10, 7  ;;  %v6145_v34 = vpack.c.bf16 %v207_v13, %v207_v13 }
  0x34   : > { %6721 = vmatprep.mubr.bf16.mxu1 %v5943_v35  ;;  %v2115_v57 = vrot.slane %v2114_v47, 4  ;;  %v2130_v5 = vsel %vm7388_vm14, %v2125_v53, %v2129_v41  ;;  %833 = vst [vmem:[#allocation2 + $0x8c] sm:$0x1] %v832_v8  ;;  %v764_v22 = vld [vmem:[#allocation2 + $0x18] sm:$0xf]  ;;  %v463_v30 = vshll.u32 %v7379_v25, 16 }
  0x35   : > { %v462_v31 = vrot.slane %v460_v21, 7  ;;  %v279_v33 = vsel %vm7289_vm2, 0, %v278_v3  ;;  %v335_v12 = vsel %vm7297_vm4, 0, %v334_v15  ;;  %v457_v36 = vor.u32 %v455_v19, %v454_v28  ;;  %v7047_v39 = vld [vmem:[%s8477_s1 + $0x50] sm:$0xff]   ;;  %v208_v40 = vld [vmem:[%s7276_s10 + $0xc0] sm:$0xff]  ;;  %v209_v45 = vld [vmem:[%s7276_s10 + $0xc8] sm:$0xff] }
  0x36   : > { %v2598_v42 = vld [vmem:[#allocation2 + $0x78] sm:$0xe]  ;;  %v2599_v43 = vld [vmem:[#allocation2 + $0x7c] sm:$0xf]  ;;  %v2120_v16 = vsel %vm7388_vm14, %v2115_v57, %v2119_v29  ;;  %v7046_v29 = vld [vmem:[%s8477_s1 + $0x8] sm:$0xff]   ;;  %v458_v37 = vrot.slane %v454_v28, 4  ;;  %v6146_v51 = vpack.c.bf16 %v208_v40, %v208_v40  ;;  %v6147_v57 = vpack.c.bf16 %v209_v45, %v209_v45 }
  0x37   : > { %v5928_v49 = vrot.slane %v2598_v42, 9  ;;  %v2732_v50 = vrot.slane %v2599_v43, 5  ;;  %v5903_v23 = vcombine.low %v2120_v16, %v2130_v5  ;;  %v2601_v35 = vld [vmem:[#allocation2 + $0x84] sm:$0xe]  ;;  %280 = vst [vmem:[#allocation2 + $0x90] sm:$0x1] %v279_v33  ;;  %v465_v42 = vor.u32 %v463_v30, %v462_v31 }
  0x38   : > { %336 = vst [vmem:[#allocation2 + $0x98] sm:$0x1] %v335_v12  ;;  %v622_v25 = vshrl.u32 %v7392_v52, 16  ;;  %v625_v38 = vshll.u32 %v7392_v52, 16  ;;  %v5929_v41 = vrot.slane %v2601_v35, 9  ;;  %v467_v43 = vrot.slane %v462_v31, 4 }
  0x39   : > { %v2733_v58 = vsel %vm7367_vm13, %v5928_v49, %v2732_v50  ;;  %v2734_v59 = vrot.slane %v2732_v50, 4  ;;  %3131 = vmatprep.mubr.bf16.mxu0 %v5903_v23  ;;  %v630_v44 = vshrl.u32 %v6145_v34, 16  ;;  %v765_v47 = vsel %vm7335_vm9, %v457_v36, %v764_v22  ;;  %v281_v50 = vld [vmem:[#allocation2 + $0x9c] sm:$0x1]  ;;  %v768_v53 = vld [vmem:[#allocation2 + $0x20] sm:$0x1] }
  0x3a   : > { %3132 = vmatmul.mubr.bf16.vlgmr.msra.gmra.mrb[0].mxu0 %v7043_v62  ;;  %v624_v48 = vrot.slane %v622_v25, 7  ;;  %v633_v49 = vshll.u32 %v6145_v34, 16  ;;  %v466_v52 = vsel %vm7319_vm7, %v458_v37, %v465_v42  ;;  %766 = vst [vmem:[#allocation2 + $0x18] sm:$0xf] %v765_v47  ;;  %v282_v55 = vsel %vm7289_vm2, 0, %v281_v50  ;;  %v7049_v8 = vld [vmem:[%s8477_s1 + $0x10] sm:$0xff]  }
  0x3b   : > { %v2736_v18 = vsel %vm7367_vm13, %v2734_v59, %v2735_v54  ;;  %6690 = vmatpush3.bf16.msra.mxu0 %v7183_v1  ;;  %v632_v54 = vrot.slane %v630_v44, 7  ;;  %v337_v56 = vld [vmem:[#allocation2 + $0xa4] sm:$0x1]  ;;  %v2602_v1 = vld [vmem:[#allocation2 + $0x88] sm:$0xf]  ;;  %v769_v59 = vsel %vm7289_vm2, %v467_v43, %v768_v53  ;;  %v7050_v10 = vld [vmem:[%s8477_s1 + $0x58] sm:$0xff]  }
  0x3c   : > { %v5944_v24 = vcombine.low %v2733_v58, %v2736_v18  ;;  %6691 = vmatprep.subr.bf16.mxu0 %v7196_v4  ;;  %v2603_v58 = vld [vmem:[#allocation2 + $0x8c] sm:$0x1]  ;;  %767 = vst [vmem:[#allocation2 + $0x1c] sm:$0xf] %v466_v52  ;;  %v627_v62 = vor.u32 %v625_v38, %v624_v48  ;;  %283 = vst [vmem:[#allocation2 + $0x9c] sm:$0x1] %v282_v55 }
  0x3d   : > { %v338_v0 = vsel %vm7297_vm4, 0, %v337_v56  ;;  %v2739_v3 = vrot.slane %v2602_v1, 5  ;;  %v2742_v5 = vrot.slane %v2603_v58, 5  ;;  %770 = vst [vmem:[#allocation2 + $0x20] sm:$0x1] %v769_v59  ;;  %v637_v6 = vrot.slane %v632_v54, 4 }
  0x3e   : > { %6722 = vmatmul.mubr.bf16.vlgmr.msra.gmra.mrb[0].mxu1 %v5944_v24  ;;  %339 = vst [vmem:[#allocation2 + $0xa4] sm:$0x1] %v338_v0  ;;  %v188_v13 = vld [vmem:[%s7276_s10 + $0x20] sm:$0xff]  ;;  %v639_v15 = vshrl.u32 %v6146_v51, 16  ;;  %v642_v16 = vshll.u32 %v6146_v51, 16  ;;  %v647_v18 = vshrl.u32 %v6147_v57, 16 }
  0x3f   : > { %6418 = vmatpush3.bf16.msra.mxu1 %v7044_v63  ;;  %v628_v63 = vrot.slane %v624_v48, 4  ;;  %v650_v19 = vshll.u32 %v6147_v57, 16  ;;  %v251_v21 = vld [vmem:[#allocation2 + $0x24] sm:$0x1]  ;;  %6692 = vmatpush3.bf16.msra.mxu0 %v7196_v4  ;;  %v2740_v22 = vsel %vm7367_vm13, %v5929_v41, %v2739_v3  ;;  %v2741_v23 = vrot.slane %v2739_v3, 4  ;;  %v189_v34 = vld [vmem:[%s7276_s10 + $0x28] sm:$0xff] }
  0x40   : > { %6419 = vmatprep.subr.bf16.mxu1 %v7045_v2  ;;  %v635_v2 = vor.u32 %v633_v49, %v632_v54  ;;  %v834_v28 = vld [vmem:[#allocation2 + $0x90] sm:$0xf]  ;;  %v838_v30 = vld [vmem:[#allocation2 + $0x98] sm:$0x1]  ;;  %6693 = vmatprep.subr.bf16.mxu0 %v7208_v7  ;;  %v641_v33 = vrot.slane %v639_v15, 7  ;;  %v649_v12 = vrot.slane %v647_v18, 7  ;;  %v7477_v50 = vpack.c.bf16 %v189_v34, %v189_v34 }
  0x41   : > { %v835_v31 = vsel %vm7335_vm9, %v627_v62, %v834_v28  ;;  %v839_v4 = vsel %vm7289_vm2, %v637_v6, %v838_v30  ;;  %v307_v35 = vld [vmem:[#allocation2 + $0x2c] sm:$0x1]  ;;  %v210_v36 = vld [vmem:[%s7276_s10 + $0xd0] sm:$0xff]  ;;  %v2743_v37 = vsel %vm7367_vm13, %v2741_v23, %v2742_v5  ;;  %v7051_v25 = vld [vmem:[%s8477_s1 + $0x18] sm:$0xff]  }
  0x42   : > { %v636_v24 = vsel %vm7319_vm7, %v628_v63, %v635_v2  ;;  %836 = vst [vmem:[#allocation2 + $0x90] sm:$0xf] %v835_v31  ;;  %840 = vst [vmem:[#allocation2 + $0x98] sm:$0x1] %v839_v4  ;;  %v308_v38 = vsel %vm7297_vm4, 0, %v307_v35  ;;  %v5945_v40 = vcombine.low %v2740_v22, %v2743_v37  ;;  %v644_v42 = vor.u32 %v642_v16, %v641_v33  ;;  %v7052_v45 = vld [vmem:[%s8477_s1 + $0x60] sm:$0xff]  }
  0x43   : > { %6420 = vmatpush3.bf16.msra.mxu1 %v7046_v29  ;;  %v252_v29 = vsel %vm7289_vm2, 0, %v251_v21  ;;  %837 = vst [vmem:[#allocation2 + $0x94] sm:$0xf] %v636_v24  ;;  %v2062_v41 = vld [vmem:[#allocation2 + $0x18] sm:$0xf]  ;;  %v645_v43 = vrot.slane %v641_v33, 4  ;;  %v652_v44 = vor.u32 %v650_v19, %v649_v12  ;;  %6694 = vmatpush3.bf16.msra.mxu0 %v7208_v7  ;;  %v7480_v52 = vpack.c.bf16 %v210_v36, %v210_v36 }
  0x44   : > { %6421 = vmatprep.subr.bf16.mxu1 %v7047_v39  ;;  %253 = vst [vmem:[#allocation2 + $0x24] sm:$0x1] %v252_v29  ;;  %v6126_v39 = vpack.c.bf16 %v188_v13, %v188_v13  ;;  %309 = vst [vmem:[#allocation2 + $0x2c] sm:$0x1] %v308_v38  ;;  %v2063_v47 = vld [vmem:[#allocation2 + $0x1c] sm:$0xf]  ;;  %6695 = vmatprep.subr.bf16.mxu0 %v7221_v11 }
  0x45   : > { %v2132_v48 = vshrl.u32 %v2062_v41, 16  ;;  %v2135_v49 = vshll.u32 %v2062_v41, 16  ;;  %v211_v51 = vld [vmem:[%s7276_s10 + $0xd8] sm:$0xff]  ;;  %6725 = vmatprep.mubr.bf16.mxu1 %v5945_v40  ;;  %v2064_v53 = vld [vmem:[#allocation2 + $0x20] sm:$0x1]  ;;  %v2141_v54 = vshll.u32 %v2063_v47, 16  ;;  %v653_v56 = vsel %vm7319_vm7, %v645_v43, %v652_v44 }
  0x46   : > { %v2145_v55 = vshrl.u32 %v2063_v47, 16  ;;  %v654_v57 = vrot.slane %v649_v12, 4  ;;  %v7054_v7 = vld [vmem:[%s8477_s1 + $0x20] sm:$0xff]   ;;  %v2151_v59 = vshll.u32 %v2064_v53, 16  ;;  %v841_v62 = vld [vmem:[#allocation2 + $0x9c] sm:$0xf] }
  0x47   : > { %6422 = vmatpush3.bf16.msra.mxu1 %v7049_v8  ;;  %v2134_v1 = vrot.slane %v2132_v48, 4  ;;  %v2137_v58 = vrot.slane %v2135_v49, 5  ;;  %844 = vst [vmem:[#allocation2 + $0xa0] sm:$0xf] %v653_v56  ;;  %v469_v63 = vshrl.u32 %v6126_v39, 16  ;;  %v2143_v0 = vrot.slane %v2141_v54, 5  ;;  %6696 = vmatpush3.bf16.msra.mxu0 %v7221_v11 }
  0x48   : > { %6423 = vmatprep.subr.bf16.mxu1 %v7050_v10  ;;  %v2147_v3 = vrot.slane %v2145_v55, 4  ;;  %v842_v5 = vsel %vm7335_vm9, %v644_v42, %v841_v62  ;;  %v845_v2 = vld [vmem:[#allocation2 + $0xa4] sm:$0x1]  ;;  %v472_v6 = vshll.u32 %v6126_v39, 16  ;;  %v7055_v8 = vld [vmem:[%s8477_s1 + $0x68] sm:$0xff]   ;;  %v2153_v13 = vrot.slane %v2151_v59, 5  ;;  %6697 = vmatprep.subr.bf16.mxu0 %v7235_v14 }
  0x49   : > { %v2138_v10 = vor.u32 %v2137_v58, %v2134_v1  ;;  %843 = vst [vmem:[#allocation2 + $0x9c] sm:$0xf] %v842_v5  ;;  %v846_v16 = vsel %vm7289_vm2, %v654_v57, %v845_v2  ;;  %v471_v18 = vrot.slane %v469_v63, 7  ;;  %v284_v21 = vld [vmem:[#allocation2 + $0xa8] sm:$0x1]  ;;  %v477_v30 = vshrl.u32 %v7477_v50, 16 }
  0x4a   : > { %v2605_v15 = vld [vmem:[#allocation2 + $0x94] sm:$0xf]  ;;  %v2148_v22 = vor.u32 %v2147_v3, %v2143_v0  ;;  %v2604_v23 = vld [vmem:[#allocation2 + $0x90] sm:$0xe]  ;;  %v2606_v24 = vld [vmem:[#allocation2 + $0x98] sm:$0x1]  ;;  %v7498_v11 = vpack.c.bf16 %v211_v51, %v211_v51 }
  0x4b   : > { %6424 = vmatpush3.bf16.msra.mxu1 %v7051_v25  ;;  %v771_v19 = vld [vmem:[#allocation2 + $0x24] sm:$0xf]  ;;  %v2746_v28 = vrot.slane %v2605_v15, 5  ;;  %847 = vst [vmem:[#allocation2 + $0xa4] sm:$0x1] %v846_v16  ;;  %v2139_v29 = vrot.slane %v2138_v10, 4  ;;  %v474_v33 = vor.u32 %v472_v6, %v471_v18  ;;  %6698 = vmatpush3.bf16.msra.mxu0 %v7235_v14 }
  0x4c   : > { %6425 = vmatprep.subr.bf16.mxu1 %v7052_v45  ;;  %v5930_v31 = vrot.slane %v2604_v23, 9  ;;  %v2749_v4 = vrot.slane %v2606_v24, 5  ;;  %v775_v12 = vld [vmem:[#allocation2 + $0x2c] sm:$0x1]  ;;  %v340_v34 = vld [vmem:[#allocation2 + $0xb0] sm:$0x1]  ;;  %6699 = vmatprep.subr.bf16.mxu0 %v7251_v17 }
  0x4d   : > { %v7056_v35 = vld [vmem:[%s8477_s1 + $0x28] sm:$0xff]   ;;  %v2149_v36 = vrot.slane %v2148_v22, 4  ;;  %v2748_v37 = vrot.slane %v2746_v28, 4  ;;  %v475_v25 = vrot.slane %v471_v18, 4  ;;  %v479_v38 = vrot.slane %v477_v30, 7  ;;  %v7048_v41 = vld [vmem:[#allocation2 + $0x18] sm:$0xff]  }
  0x4e   : > { %v2144_v39 = vsel %vm7388_vm14, %v2139_v29, %v2143_v0  ;;  %v2747_v40 = vsel %vm7367_vm13, %v5930_v31, %v2746_v28  ;;  %v480_v42 = vshll.u32 %v7477_v50, 16  ;;  %v772_v43 = vsel %vm7335_vm9, %v474_v33, %v771_v19  ;;  %v2608_v45 = vld [vmem:[#allocation2 + $0xa0] sm:$0xf]  ;;  %v213_v58 = vld [vmem:[%s7276_s10 + $0xe8] sm:$0xff]  ;;  %v287_v10 = vld [vmem:[#allocation2 + $0xb4] sm:$0x1] }
  0x4f   : > { %6426 = vmatpush3.bf16.msra.mxu1 %v7054_v7  ;;  %v2154_v44 = vsel %vm7388_vm14, %v2149_v36, %v2153_v13  ;;  %v2750_v14 = vsel %vm7367_vm13, %v2748_v37, %v2749_v4  ;;  %v484_v47 = vrot.slane %v479_v38, 4  ;;  %773 = vst [vmem:[#allocation2 + $0x24] sm:$0xf] %v772_v43  ;;  %v285_v48 = vsel %vm7289_vm2, 0, %v284_v21  ;;  %v212_v54 = vld [vmem:[%s7276_s10 + $0xe0] sm:$0xff]  ;;  %6700 = vmatpush3.bf16.msra.mxu0 %v7251_v17  ;;  %v190_v15 = vld [vmem:[%s7276_s10 + $0x30] sm:$0xff] }
  0x50   : > { %6427 = vmatprep.subr.bf16.mxu1 %v7055_v8  ;;  %v5904_v49 = vcombine.low %v2144_v39, %v2154_v44  ;;  %v5946_v50 = vcombine.low %v2747_v40, %v2750_v14  ;;  %v2753_v51 = vrot.slane %v2608_v45, 5  ;;  %v482_v53 = vor.u32 %v480_v42, %v479_v38  ;;  %286 = vst [vmem:[#allocation2 + $0xa8] sm:$0x1] %v285_v48  ;;  %v2607_v55 = vld [vmem:[#allocation2 + $0x9c] sm:$0xe]  ;;  %v7057_v18 = vld [vmem:[%s8477_s1 + $0x70] sm:$0xff]  }
  0x51   : > { %v776_v56 = vsel %vm7289_vm2, %v484_v47, %v775_v12  ;;  %v341_v57 = vsel %vm7297_vm4, 0, %v340_v34  ;;  %v656_v7 = vshrl.u32 %v7480_v52, 16  ;;  %v659_v1 = vshll.u32 %v7480_v52, 16  ;;  %6701 = vmatprep.subr.bf16.mxu0 %v7265_v20  ;;  %v191_v16 = vld [vmem:[%s7276_s10 + $0x38] sm:$0xff]  ;;  %v214_v28 = vld [vmem:[%s7276_s10 + $0xf0] sm:$0xff] }
  0x52   : > { %3139 = vmatprep.mubr.bf16.mxu0 %v5904_v49  ;;  %6726 = vmatmul.mubr.bf16.gmra.mrb[4].mxu1 %v5946_v50  ;;  %v2609_v59 = vld [vmem:[#allocation2 + $0xa4] sm:$0x1]  ;;  %v5931_v62 = vrot.slane %v2607_v55, 9  ;;  %v2755_v63 = vrot.slane %v2753_v51, 4  ;;  %v483_v0 = vsel %vm7319_vm7, %v475_v25, %v482_v53  ;;  %777 = vst [vmem:[#allocation2 + $0x2c] sm:$0x1] %v776_v56  ;;  %v7531_v2 = vpack.c.bf16 %v212_v54, %v212_v54 }
  0x53   : > { %6428 = vmatpush3.bf16.msra.mxu1 %v7056_v35  ;;  %342 = vst [vmem:[#allocation2 + $0xb0] sm:$0x1] %v341_v57  ;;  %v664_v3 = vshrl.u32 %v7498_v11, 16  ;;  %3140 = vmatmul.mubr.bf16.gmra.mrb[4].mxu0 %v7048_v41  ;;  %v2756_v5 = vrot.slane %v2609_v59, 5  ;;  %774 = vst [vmem:[#allocation2 + $0x28] sm:$0xf] %v483_v0  ;;  %v7536_v13 = vpack.c.bf16 %v213_v58, %v213_v58 }
  0x54   : > { %v658_v52 = vrot.slane %v656_v7, 7  ;;  %v667_v17 = vshll.u32 %v7498_v11, 16  ;;  %v2754_v6 = vsel %vm7367_vm13, %v5931_v62, %v2753_v51  ;;  %v288_v23 = vsel %vm7289_vm2, 0, %v287_v10  ;;  %v343_v24 = vld [vmem:[#allocation2 + $0xbc] sm:$0x1]  ;;  %6702 = vmatpush3.bf16.msra.mxu0 %v7265_v20  ;;  %6429 = vmatprep.subr.bf16.mxu1 %v7057_v18  ;;  %v7059_v7 = vld [vmem:[%s8477_s1 + $0x30] sm:$0xff]  }
  0x55   : > { %v666_v8 = vrot.slane %v664_v3, 7  ;;  %v2757_v19 = vsel %vm7367_vm13, %v2755_v63, %v2756_v5  ;;  %v215_v30 = vld [vmem:[%s7276_s10 + $0xf8] sm:$0xff]  ;;  %289 = vst [vmem:[#allocation2 + $0xb4] sm:$0x1] %v288_v23  ;;  %v344_v33 = vsel %vm7297_vm4, 0, %v343_v24  ;;  %6703 = vmatprep.subr.bf16.mxu0 %v7285_v26  ;;  %v673_v36 = vshrl.u32 %v7531_v2, 16 }
  0x56   : > { %v661_v21 = vor.u32 %v659_v1, %v658_v52  ;;  %v662_v22 = vrot.slane %v658_v52, 4  ;;  %v5947_v11 = vcombine.low %v2754_v6, %v2757_v19  ;;  %v2065_v29 = vld [vmem:[#allocation2 + $0x24] sm:$0xf]  ;;  %345 = vst [vmem:[#allocation2 + $0xbc] sm:$0x1] %v344_v33  ;;  %v676_v37 = vshll.u32 %v7531_v2, 16 }
  0x57   : > { %v669_v31 = vor.u32 %v667_v17, %v666_v8  ;;  %v671_v4 = vrot.slane %v666_v8, 4  ;;  %v2156_v12 = vshrl.u32 %v2065_v29, 16  ;;  %v2159_v34 = vshll.u32 %v2065_v29, 16  ;;  %v848_v35 = vld [vmem:[#allocation2 + $0xa8] sm:$0xf]  ;;  %6430 = vmatpush3.bf16.msra.mxu1 %v7059_v7  ;;  %v7060_v17 = vld [vmem:[%s8477_s1 + $0x78] sm:$0xff]  }
  0x58   : > { %6729 = vmatprep.mubr.bf16.mxu1 %v5947_v11  ;;  %v849_v25 = vsel %vm7335_vm9, %v661_v21, %v848_v35  ;;  %v681_v38 = vshrl.u32 %v7536_v13, 16  ;;  %v684_v39 = vshll.u32 %v7536_v13, 16  ;;  %v254_v40 = vld [vmem:[#allocation2 + $0x30] sm:$0x1]  ;;  %v310_v41 = vld [vmem:[#allocation2 + $0x38] sm:$0x1]  ;;  %v6128_v45 = vpack.c.bf16 %v190_v15, %v190_v15  ;;  %6704 = vmatpush3.bf16.msra.mxu0 %v7285_v26 }
  0x59   : > { %v670_v20 = vsel %vm7319_vm7, %v662_v22, %v669_v31  ;;  %v2067_v42 = vld [vmem:[#allocation2 + $0x2c] sm:$0x1]  ;;  %v2158_v43 = vrot.slane %v2156_v12, 4  ;;  %v2161_v44 = vrot.slane %v2159_v34, 5  ;;  %850 = vst [vmem:[#allocation2 + $0xa8] sm:$0xf] %v849_v25  ;;  %v7561_v47 = vpack.c.bf16 %v191_v16, %v191_v16  ;;  %6431 = vmatprep.subr.bf16.mxu1 %v7060_v17 }
  0x5a   : > { %851 = vst [vmem:[#allocation2 + $0xac] sm:$0xf] %v670_v20  ;;  %v852_v14 = vld [vmem:[#allocation2 + $0xb0] sm:$0x1]  ;;  %v2066_v48 = vld [vmem:[#allocation2 + $0x28] sm:$0xf]  ;;  %v7566_v51 = vpack.c.bf16 %v214_v28, %v214_v28  ;;  %v7568_v53 = vpack.c.bf16 %v215_v30, %v215_v30 }
  0x5b   : > { %v2175_v49 = vshll.u32 %v2067_v42, 16  ;;  %v853_v50 = vsel %vm7289_vm2, %v671_v4, %v852_v14  ;;  %v2162_v54 = vor.u32 %v2161_v44, %v2158_v43  ;;  %v2165_v55 = vshll.u32 %v2066_v48, 16  ;;  %v290_v52 = vld [vmem:[#allocation2 + $0xc0] sm:$0x1]  ;;  %v7061_v15 = vld [vmem:[%s8477_s1 + $0x38] sm:$0xff]   ;;  %v7053_v35 = vld [vmem:[#allocation2 + $0x24] sm:$0xff]  }
  0x5c   : > { %v2169_v56 = vshrl.u32 %v2066_v48, 16  ;;  %854 = vst [vmem:[#allocation2 + $0xb0] sm:$0x1] %v853_v50  ;;  %v675_v57 = vrot.slane %v673_v36, 7  ;;  %v683_v26 = vrot.slane %v681_v38, 7  ;;  %v255_v58 = vsel %vm7289_vm2, 0, %v254_v40  ;;  %6432 = vmatpush3.bf16.msra.mxu1 %v7061_v15 }
  0x5d   : > { %v2177_v1 = vrot.slane %v2175_v49, 5  ;;  %v311_v59 = vsel %vm7297_vm4, 0, %v310_v41  ;;  %v2163_v62 = vrot.slane %v2162_v54, 4  ;;  %v2167_v63 = vrot.slane %v2165_v55, 5  ;;  %v855_v5 = vld [vmem:[#allocation2 + $0xb4] sm:$0xf] }
  0x5e   : > { %v2171_v0 = vrot.slane %v2169_v56, 4  ;;  %v678_v3 = vor.u32 %v676_v37, %v675_v57  ;;  %256 = vst [vmem:[#allocation2 + $0x30] sm:$0x1] %v255_v58  ;;  %312 = vst [vmem:[#allocation2 + $0x38] sm:$0x1] %v311_v59  ;;  %v679_v2 = vrot.slane %v675_v57, 4  ;;  %v686_v6 = vor.u32 %v684_v39, %v683_v26 }
  0x5f   : > { %v688_v8 = vrot.slane %v683_v26, 4  ;;  %v859_v10 = vld [vmem:[#allocation2 + $0xbc] sm:$0x1]  ;;  %v486_v13 = vshrl.u32 %v6128_v45, 16  ;;  %v2168_v16 = vsel %vm7388_vm14, %v2163_v62, %v2167_v63  ;;  %v489_v21 = vshll.u32 %v6128_v45, 16  ;;  %v192_v42 = vld [vmem:[%s7276_s10 + $0x40] sm:$0xff] }
  0x60   : > { %v2172_v18 = vor.u32 %v2171_v0, %v2167_v63  ;;  %v856_v19 = vsel %vm7335_vm9, %v678_v3, %v855_v5  ;;  %v346_v22 = vld [vmem:[#allocation2 + $0xc8] sm:$0x1]  ;;  %v2610_v23 = vld [vmem:[#allocation2 + $0xa8] sm:$0xe]  ;;  %v687_v28 = vsel %vm7319_vm7, %v679_v2, %v686_v6  ;;  %v494_v29 = vshrl.u32 %v7561_v47, 16  ;;  %v7616_v59 = vld [vmem:[%s8477_s1 + $0x80] sm:$0xff]  }
  0x61   : > { %v2611_v24 = vld [vmem:[#allocation2 + $0xac] sm:$0xf]  ;;  %857 = vst [vmem:[#allocation2 + $0xb4] sm:$0xf] %v856_v19  ;;  %v860_v30 = vsel %vm7289_vm2, %v688_v8, %v859_v10  ;;  %v488_v11 = vrot.slane %v486_v13, 7  ;;  %v5932_v4 = vrot.slane %v2610_v23, 9  ;;  %v7623_v6 = vpack.c.bf16 %v192_v42, %v192_v42  ;;  %6737 = vmatprep.subr.bf16.mxu1 %v7616_v59 }
  0x62   : > { %v2173_v31 = vrot.slane %v2172_v18, 4  ;;  %v2760_v33 = vrot.slane %v2611_v24, 5  ;;  %858 = vst [vmem:[#allocation2 + $0xb8] sm:$0xf] %v687_v28  ;;  %861 = vst [vmem:[#allocation2 + $0xbc] sm:$0x1] %v860_v30 }
  0x63   : > { %v497_v12 = vshll.u32 %v7561_v47, 16  ;;  %v2612_v34 = vld [vmem:[#allocation2 + $0xb0] sm:$0x1]  ;;  %v491_v36 = vor.u32 %v489_v21, %v488_v11  ;;  %v492_v37 = vrot.slane %v488_v11, 4  ;;  %v496_v20 = vrot.slane %v494_v29, 7  ;;  %v193_v23 = vld [vmem:[%s7276_s10 + $0x48] sm:$0xff] }
  0x64   : > { %v291_v25 = vsel %vm7289_vm2, 0, %v290_v52  ;;  %v2178_v38 = vsel %vm7388_vm14, %v2173_v31, %v2177_v1  ;;  %v2761_v39 = vsel %vm7367_vm13, %v5932_v4, %v2760_v33  ;;  %v2762_v40 = vrot.slane %v2760_v33, 4  ;;  %v242_v26 = vld [vmem:[#allocation2] sm:$0x1]  ;;  %v298_v58 = vld [vmem:[#allocation2 + $0x8] sm:$0x1] }
  0x65   : > { %v2763_v41 = vrot.slane %v2612_v34, 5  ;;  %292 = vst [vmem:[#allocation2 + $0xc0] sm:$0x1] %v291_v25  ;;  %v5905_v43 = vcombine.low %v2168_v16, %v2178_v38  ;;  %v499_v44 = vor.u32 %v497_v12, %v496_v20  ;;  %v501_v14 = vrot.slane %v496_v20, 4  ;;  %v778_v45 = vld [vmem:[#allocation2 + $0x30] sm:$0xf] }
  0x66   : > { %v782_v47 = vld [vmem:[#allocation2 + $0x38] sm:$0x1]  ;;  %v347_v48 = vsel %vm7297_vm4, 0, %v346_v22  ;;  %v779_v50 = vsel %vm7335_vm9, %v491_v36, %v778_v45  ;;  %v690_v54 = vshrl.u32 %v7566_v51, 16  ;;  %v693_v55 = vshll.u32 %v7566_v51, 16  ;;  %v194_v36 = vld [vmem:[%s7276_s10 + $0x50] sm:$0xff] }
  0x67   : > { %v2764_v49 = vsel %vm7367_vm13, %v2762_v40, %v2763_v41  ;;  %348 = vst [vmem:[#allocation2 + $0xc8] sm:$0x1] %v347_v48  ;;  %3147 = vmatprep.mubr.bf16.mxu0 %v5905_v43  ;;  %v500_v57 = vsel %vm7319_vm7, %v492_v37, %v499_v44  ;;  %780 = vst [vmem:[#allocation2 + $0x30] sm:$0xf] %v779_v50  ;;  %v783_v7 = vsel %vm7289_vm2, %v501_v14, %v782_v47  ;;  %v1014_v15 = vld [vmem:[#allocation2 + $0x4] sm:$0xf] }
  0x68   : > { %v5948_v56 = vcombine.low %v2761_v39, %v2764_v49  ;;  %v698_v1 = vshrl.u32 %v7568_v53, 16  ;;  %3148 = vmatmul.mubr.bf16.gmra.mrb[8].mxu0 %v7053_v35  ;;  %v2613_v51 = vld [vmem:[#allocation2 + $0xb4] sm:$0xe]  ;;  %781 = vst [vmem:[#allocation2 + $0x34] sm:$0xf] %v500_v57  ;;  %v692_v62 = vrot.slane %v690_v54, 7  ;;  %v7645_v39 = vpack.c.bf16 %v193_v23, %v193_v23 }
  0x69   : > { %784 = vst [vmem:[#allocation2 + $0x38] sm:$0x1] %v783_v7  ;;  %v701_v63 = vshll.u32 %v7568_v53, 16  ;;  %v243_v0 = vsel %vm7289_vm2, 0, %v242_v26  ;;  %v299_v3 = vsel %vm7297_vm4, 0, %v298_v58  ;;  %v5933_v17 = vrot.slane %v2613_v51, 9 }
  0x6a   : > { %6730 = vmatmul.mubr.bf16.gmra.mrb[8].mxu1 %v5948_v56  ;;  %v2614_v5 = vld [vmem:[#allocation2 + $0xb8] sm:$0xf]  ;;  %v2615_v52 = vld [vmem:[#allocation2 + $0xbc] sm:$0x1]  ;;  %v700_v2 = vrot.slane %v698_v1, 7  ;;  %v695_v10 = vor.u32 %v693_v55, %v692_v62  ;;  %v696_v13 = vrot.slane %v692_v62, 4  ;;  %v7651_v7 = vpack.c.bf16 %v194_v36, %v194_v36 }
  0x6b   : > { %244 = vst [vmem:[#allocation2] sm:$0x1] %v243_v0  ;;  %300 = vst [vmem:[#allocation2 + $0x8] sm:$0x1] %v299_v3  ;;  %v2767_v8 = vrot.slane %v2614_v5, 5  ;;  %v2770_v53 = vrot.slane %v2615_v52, 5 }
  0x6c   : > { %v703_v16 = vor.u32 %v701_v63, %v700_v2  ;;  %v705_v18 = vrot.slane %v700_v2, 4  ;;  %v862_v19 = vld [vmem:[#allocation2 + $0xc0] sm:$0xf]  ;;  %v1074_v21 = vshll.u32 %v1014_v15, 16  ;;  %v1078_v22 = vshrl.u32 %v1014_v15, 16  ;;  %v195_v40 = vld [vmem:[%s7276_s10 + $0x58] sm:$0xff] }
  0x6d   : > { %v2768_v24 = vsel %vm7367_vm13, %v5933_v17, %v2767_v8  ;;  %v2769_v28 = vrot.slane %v2767_v8, 4  ;;  %v863_v30 = vsel %vm7335_vm9, %v695_v10, %v862_v19  ;;  %v257_v11 = vld [vmem:[#allocation2 + $0x3c] sm:$0x1]  ;;  %v313_v29 = vld [vmem:[#allocation2 + $0x44] sm:$0x1]  ;;  %v503_v31 = vshrl.u32 %v7623_v6, 16 }
  0x6e   : > { %v704_v4 = vsel %vm7319_vm7, %v696_v13, %v703_v16  ;;  %864 = vst [vmem:[#allocation2 + $0xc0] sm:$0xf] %v863_v30  ;;  %v866_v33 = vld [vmem:[#allocation2 + $0xc8] sm:$0x1]  ;;  %v7634_v12 = vrot.slane %v1074_v21, 5  ;;  %v1080_v34 = vrot.slane %v1078_v22, 4  ;;  %v7653_v1 = vpack.c.bf16 %v195_v40, %v195_v40 }
  0x6f   : > { %v258_v35 = vsel %vm7289_vm2, 0, %v257_v11  ;;  %v2771_v37 = vsel %vm7367_vm13, %v2769_v28, %v2770_v53  ;;  %v2068_v20 = vld [vmem:[#allocation2 + $0x30] sm:$0xf]  ;;  %865 = vst [vmem:[#allocation2 + $0xc4] sm:$0xf] %v704_v4  ;;  %v867_v25 = vsel %vm7289_vm2, %v705_v18, %v866_v33  ;;  %v314_v38 = vsel %vm7297_vm4, 0, %v313_v29 }
  0x70   : > { %259 = vst [vmem:[#allocation2 + $0x3c] sm:$0x1] %v258_v35  ;;  %v5949_v41 = vcombine.low %v2768_v24, %v2771_v37  ;;  %v2069_v42 = vld [vmem:[#allocation2 + $0x34] sm:$0xf]  ;;  %v2070_v43 = vld [vmem:[#allocation2 + $0x38] sm:$0x1]  ;;  %v1081_v45 = vor.u32 %v1080_v34, %v7634_v12 }
  0x71   : > { %v2180_v44 = vshrl.u32 %v2068_v20, 16  ;;  %v2183_v14 = vshll.u32 %v2068_v20, 16  ;;  %868 = vst [vmem:[#allocation2 + $0xc8] sm:$0x1] %v867_v25  ;;  %315 = vst [vmem:[#allocation2 + $0x44] sm:$0x1] %v314_v38 }
  0x72   : > { %v2189_v47 = vshll.u32 %v2069_v42, 16  ;;  %v2193_v48 = vshrl.u32 %v2069_v42, 16  ;;  %v2199_v49 = vshll.u32 %v2070_v43, 16  ;;  %v7649_v50 = vrot.slane %v503_v31, 7  ;;  %6733 = vmatprep.mubr.bf16.mxu1 %v5949_v41  ;;  %v1013_v56 = vld [vmem:[#allocation2] sm:$0xf] }
  0x73   : > { %v2182_v54 = vrot.slane %v2180_v44, 4  ;;  %v2185_v55 = vrot.slane %v2183_v14, 5  ;;  %v1015_v57 = vld [vmem:[#allocation2 + $0x8] sm:$0x1]  ;;  %v1065_v62 = vshrl.u32 %v1013_v56, 16  ;;  %v1068_v0 = vshll.u32 %v1013_v56, 16 }
  0x74   : > { %v2191_v26 = vrot.slane %v2189_v47, 5  ;;  %v2195_v58 = vrot.slane %v2193_v48, 4  ;;  %v2201_v51 = vrot.slane %v2199_v49, 5  ;;  %v1082_v3 = vrot.slane %v1081_v45, 4  ;;  %v7058_v11 = vld [vmem:[#allocation2 + $0x30] sm:$0xff]  }
  0x75   : > { %v2186_v63 = vor.u32 %v2185_v55, %v2182_v54  ;;  %v1084_v5 = vshll.u32 %v1015_v57, 16  ;;  %v2616_v17 = vld [vmem:[#allocation2 + $0xc0] sm:$0xe]  ;;  %v1067_v2 = vrot.slane %v1065_v62, 4  ;;  %v506_v8 = vshll.u32 %v7623_v6, 16 }
  0x76   : > { %v2196_v52 = vor.u32 %v2195_v58, %v2191_v26  ;;  %v509_v53 = vrot.slane %v7649_v50, 4  ;;  %v2617_v13 = vld [vmem:[#allocation2 + $0xc4] sm:$0xf]  ;;  %v5934_v15 = vrot.slane %v2616_v17, 9  ;;  %v1070_v16 = vrot.slane %v1068_v0, 5 }
  0x77   : > { %v2187_v10 = vrot.slane %v2186_v63, 4  ;;  %v1086_v18 = vrot.slane %v1084_v5, 5  ;;  %v2774_v22 = vrot.slane %v2617_v13, 5  ;;  %v508_v23 = vor.u32 %v506_v8, %v7649_v50  ;;  %v785_v31 = vld [vmem:[#allocation2 + $0x3c] sm:$0xf] }
  0x78   : > { %v2197_v19 = vrot.slane %v2196_v52, 4  ;;  %v2618_v21 = vld [vmem:[#allocation2 + $0xc8] sm:$0x1]  ;;  %v511_v24 = vshrl.u32 %v7645_v39, 16  ;;  %v1071_v6 = vor.u32 %v1070_v16, %v1067_v2  ;;  %v789_v4 = vld [vmem:[#allocation2 + $0x44] sm:$0x1] }
  0x79   : > { %v2192_v28 = vsel %vm7388_vm14, %v2187_v10, %v2191_v26  ;;  %v2777_v30 = vrot.slane %v2618_v21, 5  ;;  %v1087_v29 = vsel %vm7388_vm14, %v1082_v3, %v1086_v18  ;;  %v2775_v34 = vsel %vm7367_vm13, %v5934_v15, %v2774_v22  ;;  %v1016_v40 = vld [vmem:[#allocation2 + $0xc] sm:$0xf]  ;;  %v1017_v41 = vld [vmem:[#allocation2 + $0x10] sm:$0xf]  ;;  %v7062_v10 = vld [vmem:[#allocation2] sm:$0xff]  }
  0x7a   : > { %v2202_v33 = vsel %vm7388_vm14, %v2197_v19, %v2201_v51  ;;  %v2776_v35 = vrot.slane %v2774_v22, 4  ;;  %v513_v36 = vrot.slane %v511_v24, 7  ;;  %v1072_v20 = vrot.slane %v1071_v6, 4  ;;  %v1018_v44 = vld [vmem:[#allocation2 + $0x14] sm:$0x1]  ;;  %v197_v6 = vld [vmem:[%s7276_s10 + $0x68] sm:$0xff] }
  0x7b   : > { %v5906_v37 = vcombine.low %v2192_v28, %v2202_v33  ;;  %v514_v25 = vshll.u32 %v7645_v39, 16  ;;  %v786_v38 = vsel %vm7335_vm9, %v508_v23, %v785_v31  ;;  %v1089_v14 = vshrl.u32 %v1016_v40, 16  ;;  %v260_v50 = vld [vmem:[#allocation2 + $0x48] sm:$0x1]  ;;  %v316_v54 = vld [vmem:[#allocation2 + $0x50] sm:$0x1] }
  0x7c   : > { %v2778_v42 = vsel %vm7367_vm13, %v2776_v35, %v2777_v30  ;;  %v518_v43 = vrot.slane %v513_v36, 4  ;;  %787 = vst [vmem:[#allocation2 + $0x3c] sm:$0xf] %v786_v38  ;;  %v1092_v45 = vshll.u32 %v1016_v40, 16  ;;  %v1077_v48 = vsel %vm7388_vm14, %v1072_v20, %v7634_v12  ;;  %v1019_v12 = vld [vmem:[#allocation2 + $0x18] sm:$0xf] }
  0x7d   : > { %3155 = vmatprep.mubr.bf16.mxu0 %v5906_v37  ;;  %v5950_v47 = vcombine.low %v2775_v34, %v2778_v42  ;;  %v516_v39 = vor.u32 %v514_v25, %v513_v36  ;;  %v1098_v49 = vshll.u32 %v1017_v41, 16  ;;  %v5839_v55 = vcombine.low %v1077_v48, %v1087_v29  ;;  %v1020_v34 = vld [vmem:[#allocation2 + $0x1c] sm:$0xf]  ;;  %v1021_v20 = vld [vmem:[#allocation2 + $0x20] sm:$0x1] }
  0x7e   : > { %3156 = vmatmul.mubr.bf16.gmra.mrb[12].mxu0 %v7058_v11  ;;  %v790_v56 = vsel %vm7289_vm2, %v518_v43, %v789_v4  ;;  %v1091_v57 = vrot.slane %v1089_v14, 4  ;;  %v1094_v26 = vrot.slane %v1092_v45, 5  ;;  %v1102_v62 = vshrl.u32 %v1017_v41, 16  ;;  %v263_v40 = vld [vmem:[#allocation2 + $0x54] sm:$0x1] }
  0x7f   : > { %6734 = vmatmul.mubr.bf16.gmra.mrb[12].mxu1 %v5950_v47  ;;  %v517_v58 = vsel %vm7319_vm7, %v509_v53, %v516_v39  ;;  %791 = vst [vmem:[#allocation2 + $0x44] sm:$0x1] %v790_v56  ;;  %v1100_v51 = vrot.slane %v1098_v49, 5  ;;  %v1108_v63 = vshll.u32 %v1018_v44, 16  ;;  %v261_v3 = vsel %vm7289_vm2, 0, %v260_v50 }
  0x80   : > { %3597 = vmatprep.mubr.bf16.mxu1 %v5839_v55  ;;  %788 = vst [vmem:[#allocation2 + $0x40] sm:$0xf] %v517_v58  ;;  %v1095_v0 = vor.u32 %v1094_v26, %v1091_v57  ;;  %v317_v5 = vsel %vm7297_vm4, 0, %v316_v54  ;;  %v520_v52 = vshrl.u32 %v7651_v7, 16  ;;  %v1104_v17 = vrot.slane %v1102_v62, 4  ;;  %v7073_v58 = vld [vmem:[%s8477_s1 + $0x90] sm:$0xff]  }
  0x81   : > { %v1110_v2 = vrot.slane %v1108_v63, 5  ;;  %262 = vst [vmem:[#allocation2 + $0x48] sm:$0x1] %v261_v3  ;;  %318 = vst [vmem:[#allocation2 + $0x50] sm:$0x1] %v317_v5  ;;  %v523_v8 = vshll.u32 %v7651_v7, 16  ;;  %v6135_v26 = vpack.c.bf16 %v197_v6, %v197_v6 }
  0x82   : > { %v528_v53 = vshrl.u32 %v7653_v1, 16  ;;  %v1096_v13 = vrot.slane %v1095_v0, 4  ;;  %v522_v15 = vrot.slane %v520_v52, 7  ;;  %v531_v16 = vshll.u32 %v7653_v1, 16  ;;  %v196_v7 = vld [vmem:[%s7276_s10 + $0x60] sm:$0xff]  ;;  %v7068_v1 = vld [vmem:[%s8477_s1 + $0x88] sm:$0xff]  }
  0x83   : > { %v1113_v18 = vshrl.u32 %v1019_v12, 16  ;;  %v2071_v19 = vld [vmem:[#allocation2 + $0x3c] sm:$0xf]  ;;  %v1105_v21 = vor.u32 %v1104_v17, %v1100_v51  ;;  %v1116_v23 = vshll.u32 %v1019_v12, 16  ;;  %v6134_v45 = vpack.c.bf16 %v196_v7, %v196_v7  ;;  %v7065_v12 = vld [vmem:[#allocation2 + $0xc] sm:$0xff]  }
  0x84   : > { %v530_v22 = vrot.slane %v528_v53, 7  ;;  %v2204_v24 = vshrl.u32 %v2071_v19, 16  ;;  %v2207_v28 = vshll.u32 %v2071_v19, 16  ;;  %v1101_v30 = vsel %vm7388_vm14, %v1096_v13, %v1100_v51  ;;  %v319_v14 = vld [vmem:[#allocation2 + $0x5c] sm:$0x1]  ;;  %v198_v19 = vld [vmem:[%s7276_s10 + $0x70] sm:$0xff] }
  0x85   : > { %v525_v11 = vor.u32 %v523_v8, %v522_v15  ;;  %v1106_v29 = vrot.slane %v1105_v21, 4  ;;  %v526_v31 = vrot.slane %v522_v15, 4  ;;  %v1115_v25 = vrot.slane %v1113_v18, 4  ;;  %v199_v21 = vld [vmem:[%s7276_s10 + $0x78] sm:$0xff] }
  0x86   : > { %v533_v4 = vor.u32 %v531_v16, %v530_v22  ;;  %v535_v33 = vrot.slane %v530_v22, 4  ;;  %v2073_v35 = vld [vmem:[#allocation2 + $0x44] sm:$0x1]  ;;  %v2206_v36 = vrot.slane %v2204_v24, 4  ;;  %v2209_v37 = vrot.slane %v2207_v28, 5 }
  0x87   : > { %v1118_v38 = vrot.slane %v1116_v23, 5  ;;  %v2072_v41 = vld [vmem:[#allocation2 + $0x40] sm:$0xf]  ;;  %v2223_v42 = vshll.u32 %v2073_v35, 16  ;;  %3598 = vmatmul.mubr.bf16.vlgmr.msra.gmra.mrb[16].mxu1 %v7062_v10  ;;  %v1111_v43 = vsel %vm7388_vm14, %v1106_v29, %v1110_v2  ;;  %v1122_v63 = vshll.u32 %v1020_v34, 16 }
  0x88   : > { %v534_v44 = vsel %vm7319_vm7, %v526_v31, %v533_v4  ;;  %v2210_v47 = vor.u32 %v2209_v37, %v2206_v36  ;;  %v2213_v48 = vshll.u32 %v2072_v41, 16  ;;  %v2217_v39 = vshrl.u32 %v2072_v41, 16  ;;  %6738 = vmatpush3.bf16.msra.mxu1 %v7616_v59  ;;  %v792_v50 = vld [vmem:[#allocation2 + $0x48] sm:$0xf]  ;;  %v796_v54 = vld [vmem:[#allocation2 + $0x50] sm:$0x1] }
  0x89   : > { %v5840_v49 = vcombine.low %v1101_v30, %v1111_v43  ;;  %795 = vst [vmem:[#allocation2 + $0x4c] sm:$0xf] %v534_v44  ;;  %v793_v55 = vsel %vm7335_vm9, %v525_v11, %v792_v50  ;;  %v797_v56 = vsel %vm7289_vm2, %v535_v33, %v796_v54  ;;  %v1119_v57 = vor.u32 %v1118_v38, %v1115_v25  ;;  %v7714_v10 = vld [vmem:[#allocation2 + $0x24] sm:$0xf]  ;;  %v7064_v4 = vld [vmem:[#allocation2 + $0x3c] sm:$0xff]  }
  0x8a   : > { %6739 = vmatprep.subr.bf16.mxu1 %v7068_v1  ;;  %v2211_v51 = vrot.slane %v2210_v47, 4  ;;  %v2215_v62 = vrot.slane %v2213_v48, 5  ;;  %v2219_v59 = vrot.slane %v2217_v39, 4  ;;  %794 = vst [vmem:[#allocation2 + $0x48] sm:$0xf] %v793_v55  ;;  %v1126_v3 = vshrl.u32 %v1020_v34, 16 }
  0x8b   : > { %3605 = vmatprep.mubr.bf16.mxu1 %v5840_v49  ;;  %798 = vst [vmem:[#allocation2 + $0x50] sm:$0x1] %v797_v56  ;;  %v7706_v0 = vrot.slane %v1119_v57, 4  ;;  %v1132_v5 = vshll.u32 %v1021_v20, 16  ;;  %v264_v52 = vsel %vm7289_vm2, 0, %v263_v40  ;;  %v2225_v2 = vrot.slane %v2223_v42, 5 }
  0x8c   : > { %v2220_v17 = vor.u32 %v2219_v59, %v2215_v62  ;;  %v7710_v8 = vrot.slane %v1122_v63, 5  ;;  %265 = vst [vmem:[#allocation2 + $0x54] sm:$0x1] %v264_v52  ;;  %v320_v53 = vsel %vm7297_vm4, 0, %v319_v14  ;;  %6740 = vmatpush3.bf16.msra.mxu1 %v7068_v1  ;;  %v2216_v13 = vsel %vm7388_vm14, %v2211_v51, %v2215_v62  ;;  %v1023_v44 = vld [vmem:[#allocation2 + $0x28] sm:$0xf] }
  0x8d   : > { %v1128_v15 = vrot.slane %v1126_v3, 4  ;;  %321 = vst [vmem:[#allocation2 + $0x5c] sm:$0x1] %v320_v53  ;;  %v537_v16 = vshrl.u32 %v6134_v45, 16  ;;  %v540_v18 = vshll.u32 %v6134_v45, 16  ;;  %6741 = vmatprep.subr.bf16.mxu1 %v7073_v58  ;;  %v1134_v23 = vrot.slane %v1132_v5, 5 }
  0x8e   : > { %v2221_v22 = vrot.slane %v2220_v17, 4  ;;  %v545_v24 = vshrl.u32 %v6135_v26, 16  ;;  %v548_v28 = vshll.u32 %v6135_v26, 16  ;;  %v1125_v11 = vsel %vm7388_vm14, %v7706_v0, %v7710_v8  ;;  %v7078_v57 = vld [vmem:[%s8477_s1 + $0x98] sm:$0xff]   ;;  %v1024_v63 = vld [vmem:[#allocation2 + $0x2c] sm:$0x1] }
  0x8f   : > { %3606 = vmatmul.mubr.bf16.gmra.mrb[20].mxu1 %v7065_v12  ;;  %v1129_v7 = vor.u32 %v1128_v15, %v7710_v8  ;;  %v539_v6 = vrot.slane %v537_v16, 7  ;;  %v1137_v29 = vshrl.u32 %v7714_v10, 16  ;;  %v7728_v25 = vpack.c.bf16 %v198_v19, %v198_v19  ;;  %v7067_v59 = vld [vmem:[#allocation2 + $0x18] sm:$0xff]   ;;  %v266_v12 = vld [vmem:[#allocation2 + $0x60] sm:$0x1] }
  0x90   : > { %v2075_v30 = vld [vmem:[#allocation2 + $0x4c] sm:$0xf]  ;;  %v2226_v31 = vsel %vm7388_vm14, %v2221_v22, %v2225_v2  ;;  %v547_v1 = vrot.slane %v545_v24, 7  ;;  %6742 = vmatpush3.bf16.msra.mxu1 %v7073_v58  ;;  %v7730_v38 = vpack.c.bf16 %v199_v21, %v199_v21  ;;  %v322_v17 = vld [vmem:[#allocation2 + $0x68] sm:$0x1]  ;;  %v1140_v8 = vshll.u32 %v7714_v10, 16 }
  0x91   : > { %v2237_v33 = vshll.u32 %v2075_v30, 16  ;;  %v2241_v34 = vshrl.u32 %v2075_v30, 16  ;;  %v5907_v35 = vcombine.low %v2216_v13, %v2226_v31  ;;  %v2074_v36 = vld [vmem:[#allocation2 + $0x48] sm:$0xf]  ;;  %v542_v20 = vor.u32 %v540_v18, %v539_v6  ;;  %6743 = vmatprep.subr.bf16.mxu1 %v7078_v57  ;;  %v1025_v21 = vld [vmem:[#allocation2 + $0x30] sm:$0xf] }
  0x92   : > { %v2076_v37 = vld [vmem:[#allocation2 + $0x50] sm:$0x1]  ;;  %v2228_v40 = vshrl.u32 %v2074_v36, 16  ;;  %v2231_v41 = vshll.u32 %v2074_v36, 16  ;;  %v1130_v45 = vrot.slane %v1129_v7, 4  ;;  %v543_v47 = vrot.slane %v539_v6, 4 }
  0x93   : > { %v2239_v42 = vrot.slane %v2237_v33, 5  ;;  %v2243_v43 = vrot.slane %v2241_v34, 4  ;;  %3163 = vmatprep.mubr.bf16.mxu0 %v5907_v35  ;;  %v2247_v14 = vshll.u32 %v2076_v37, 16  ;;  %v550_v48 = vor.u32 %v548_v28, %v547_v1  ;;  %v799_v39 = vld [vmem:[#allocation2 + $0x54] sm:$0xf]  ;;  %v7083_v22 = vld [vmem:[%s8477_s1 + $0xa0] sm:$0xff]  }
  0x94   : > { %3164 = vmatmul.mubr.bf16.gmra.mrb[16].mxu0 %v7064_v4  ;;  %v2230_v49 = vrot.slane %v2228_v40, 4  ;;  %v2233_v50 = vrot.slane %v2231_v41, 5  ;;  %v552_v55 = vrot.slane %v547_v1, 4  ;;  %v803_v56 = vld [vmem:[#allocation2 + $0x5c] sm:$0x1]  ;;  %v1135_v58 = vsel %vm7388_vm14, %v1130_v45, %v1134_v23  ;;  %6744 = vmatpush3.bf16.msra.mxu1 %v7078_v57 }
  0x95   : > { %v2244_v54 = vor.u32 %v2243_v43, %v2239_v42  ;;  %v2249_v26 = vrot.slane %v2247_v14, 5  ;;  %v551_v51 = vsel %vm7319_vm7, %v543_v47, %v550_v48  ;;  %v800_v62 = vsel %vm7335_vm9, %v542_v20, %v799_v39  ;;  %6745 = vmatprep.subr.bf16.mxu1 %v7083_v22  ;;  %v1026_v14 = vld [vmem:[#allocation2 + $0x34] sm:$0xf] }
  0x96   : > { %v2234_v0 = vor.u32 %v2233_v50, %v2230_v49  ;;  %v5841_v5 = vcombine.low %v1125_v11, %v1135_v58  ;;  %801 = vst [vmem:[#allocation2 + $0x54] sm:$0xf] %v800_v62  ;;  %802 = vst [vmem:[#allocation2 + $0x58] sm:$0xf] %v551_v51  ;;  %v804_v52 = vsel %vm7289_vm2, %v552_v55, %v803_v56  ;;  %v1139_v2 = vrot.slane %v1137_v29, 4  ;;  %v7066_v11 = vld [vmem:[#allocation2 + $0x48] sm:$0xff]  }
  0x97   : > { %v2245_v3 = vrot.slane %v2244_v54, 4  ;;  %805 = vst [vmem:[#allocation2 + $0x5c] sm:$0x1] %v804_v52  ;;  %v1146_v53 = vshll.u32 %v1023_v44, 16  ;;  %v1150_v13 = vshrl.u32 %v1023_v44, 16  ;;  %v1156_v18 = vshll.u32 %v1024_v63, 16 }
  0x98   : > { %v2235_v15 = vrot.slane %v2234_v0, 4  ;;  %3613 = vmatprep.mubr.bf16.mxu1 %v5841_v5  ;;  %v267_v19 = vsel %vm7289_vm2, 0, %v266_v12  ;;  %v1142_v23 = vrot.slane %v1140_v8, 5  ;;  %v323_v28 = vsel %vm7297_vm4, 0, %v322_v17  ;;  %6746 = vmatpush3.bf16.msra.mxu1 %v7083_v22  ;;  %v7070_v51 = vld [vmem:[#allocation2 + $0x24] sm:$0xff]  }
  0x99   : > { %v2250_v16 = vsel %vm7388_vm14, %v2245_v3, %v2249_v26  ;;  %3614 = vmatmul.mubr.bf16.gmra.mrb[24].mxu1 %v7067_v59  ;;  %v1148_v10 = vrot.slane %v1146_v53, 5  ;;  %v1152_v24 = vrot.slane %v1150_v13, 4  ;;  %268 = vst [vmem:[#allocation2 + $0x60] sm:$0x1] %v267_v19  ;;  %v1158_v7 = vrot.slane %v1156_v18, 5 }
  0x9a   : > { %v2240_v30 = vsel %vm7388_vm14, %v2235_v15, %v2239_v42  ;;  %324 = vst [vmem:[#allocation2 + $0x68] sm:$0x1] %v323_v28  ;;  %v554_v6 = vshrl.u32 %v7728_v25, 16  ;;  %v557_v29 = vshll.u32 %v7728_v25, 16  ;;  %v1143_v4 = vor.u32 %v1142_v23, %v1139_v2  ;;  %v1027_v0 = vld [vmem:[#allocation2 + $0x38] sm:$0x1] }
  0x9b   : > { %v5908_v31 = vcombine.low %v2240_v30, %v2250_v16  ;;  %v1153_v33 = vor.u32 %v1152_v24, %v1148_v10  ;;  %v562_v34 = vshrl.u32 %v7730_v38, 16  ;;  %v565_v35 = vshll.u32 %v7730_v38, 16  ;;  %v2083_v8 = vld [vmem:[#allocation2 + $0x6c] sm:$0xf]  ;;  %v2084_v53 = vld [vmem:[#allocation2 + $0x70] sm:$0xf] }
  0x9c   : > { %v556_v1 = vrot.slane %v554_v6, 7  ;;  %v1161_v36 = vshrl.u32 %v1025_v21, 16  ;;  %v1164_v37 = vshll.u32 %v1025_v21, 16  ;;  %v1144_v47 = vrot.slane %v1143_v4, 4  ;;  %v2085_v19 = vld [vmem:[#allocation2 + $0x74] sm:$0x1] }
  0x9d   : > { %3171 = vmatprep.mubr.bf16.mxu0 %v5908_v31  ;;  %v2077_v20 = vld [vmem:[#allocation2 + $0x54] sm:$0xf]  ;;  %v2078_v40 = vld [vmem:[#allocation2 + $0x58] sm:$0xf]  ;;  %v1154_v48 = vrot.slane %v1153_v33, 4  ;;  %v564_v12 = vrot.slane %v562_v34, 7 }
  0x9e   : > { %3172 = vmatmul.mubr.bf16.gmra.mrb[20].mxu0 %v7066_v11  ;;  %v2079_v41 = vld [vmem:[#allocation2 + $0x5c] sm:$0x1]  ;;  %v2252_v42 = vshrl.u32 %v2077_v20, 16  ;;  %v2255_v43 = vshll.u32 %v2077_v20, 16  ;;  %v2261_v25 = vshll.u32 %v2078_v40, 16  ;;  %v2265_v44 = vshrl.u32 %v2078_v40, 16 }
  0x9f   : > { %v2271_v45 = vshll.u32 %v2079_v41, 16  ;;  %v559_v39 = vor.u32 %v557_v29, %v556_v1  ;;  %v1149_v57 = vsel %vm7388_vm14, %v1144_v47, %v1148_v10  ;;  %v1159_v26 = vsel %vm7388_vm14, %v1154_v48, %v1158_v7  ;;  %v7069_v21 = vld [vmem:[#allocation2 + $0x54] sm:$0xff]   ;;  %v7088_v24 = vld [vmem:[%s8477_s1 + $0xa8] sm:$0xff]   ;;  %v1028_v6 = vld [vmem:[#allocation2 + $0x3c] sm:$0xf] }
  0xa0   : > { %v2254_v49 = vrot.slane %v2252_v42, 4  ;;  %v2257_v50 = vrot.slane %v2255_v43, 5  ;;  %v2263_v54 = vrot.slane %v2261_v25, 5  ;;  %v2267_v38 = vrot.slane %v2265_v44, 4  ;;  %v806_v55 = vld [vmem:[#allocation2 + $0x60] sm:$0xf]  ;;  %6747 = vmatprep.subr.bf16.mxu1 %v7088_v24 }
  0xa1   : > { %v2273_v56 = vrot.slane %v2271_v45, 5  ;;  %v560_v58 = vrot.slane %v556_v1, 4  ;;  %v5842_v63 = vcombine.low %v1149_v57, %v1159_v26  ;;  %v807_v3 = vsel %vm7335_vm9, %v559_v39, %v806_v55  ;;  %v810_v5 = vld [vmem:[#allocation2 + $0x68] sm:$0x1]  ;;  %6748 = vmatpush3.bf16.msra.mxu1 %v7088_v24  ;;  %v1029_v25 = vld [vmem:[#allocation2 + $0x40] sm:$0xf] }
  0xa2   : > { %v2258_v62 = vor.u32 %v2257_v50, %v2254_v49  ;;  %v2268_v59 = vor.u32 %v2267_v38, %v2263_v54  ;;  %v1163_v52 = vrot.slane %v1161_v36, 4  ;;  %v1166_v17 = vrot.slane %v1164_v37, 5  ;;  %808 = vst [vmem:[#allocation2 + $0x60] sm:$0xf] %v807_v3  ;;  %v7072_v38 = vld [vmem:[#allocation2 + $0x30] sm:$0xff]  }
  0xa3   : > { %v1170_v2 = vshll.u32 %v1026_v14, 16  ;;  %3621 = vmatprep.mubr.bf16.mxu1 %v5842_v63  ;;  %v567_v16 = vor.u32 %v565_v35, %v564_v12  ;;  %v569_v18 = vrot.slane %v564_v12, 4  ;;  %v1174_v10 = vshrl.u32 %v1026_v14, 16  ;;  %v1030_v63 = vld [vmem:[#allocation2 + $0x44] sm:$0x1] }
  0xa4   : > { %v2259_v13 = vrot.slane %v2258_v62, 4  ;;  %v2269_v15 = vrot.slane %v2268_v59, 4  ;;  %3622 = vmatmul.mubr.bf16.gmra.mrb[28].mxu1 %v7070_v51  ;;  %v1167_v22 = vor.u32 %v1166_v17, %v1163_v52  ;;  %v1180_v9 = vshll.u32 %v1027_v0, 16 }
  0xa5   : > { %v1172_v23 = vrot.slane %v1170_v2, 5  ;;  %v568_v11 = vsel %vm7319_vm7, %v560_v58, %v567_v16  ;;  %v811_v7 = vsel %vm7289_vm2, %v569_v18, %v810_v5  ;;  %v1176_v4 = vrot.slane %v1174_v10, 4  ;;  %v2086_v5 = vld [vmem:[#allocation2 + $0x78] sm:$0xf] }
  0xa6   : > { %v2264_v28 = vsel %vm7388_vm14, %v2259_v13, %v2263_v54  ;;  %v2274_v30 = vsel %vm7388_vm14, %v2269_v15, %v2273_v56  ;;  %809 = vst [vmem:[#allocation2 + $0x64] sm:$0xf] %v568_v11  ;;  %812 = vst [vmem:[#allocation2 + $0x68] sm:$0x1] %v811_v7  ;;  %v1168_v31 = vrot.slane %v1167_v22, 4  ;;  %v2300_v33 = vshrl.u32 %v2083_v8, 16 }
  0xa7   : > { %v5909_v29 = vcombine.low %v2264_v28, %v2274_v30  ;;  %v2303_v34 = vshll.u32 %v2083_v8, 16  ;;  %v2309_v1 = vshll.u32 %v2084_v53, 16  ;;  %v2313_v35 = vshrl.u32 %v2084_v53, 16  ;;  %v2087_v53 = vld [vmem:[#allocation2 + $0x7c] sm:$0xf] }
  0xa8   : > { %v1177_v36 = vor.u32 %v1176_v4, %v1172_v23  ;;  %v1182_v37 = vrot.slane %v1180_v9, 5  ;;  %v2319_v61 = vshll.u32 %v2085_v19, 16  ;;  %v1185_v20 = vshrl.u32 %v1028_v6, 16  ;;  %v2088_v7 = vld [vmem:[#allocation2 + $0x80] sm:$0x1] }
  0xa9   : > { %3179 = vmatprep.mubr.bf16.mxu0 %v5909_v29  ;;  %v2302_v40 = vrot.slane %v2300_v33, 4  ;;  %v2305_v41 = vrot.slane %v2303_v34, 5  ;;  %v2311_v42 = vrot.slane %v2309_v1, 5  ;;  %v2315_v43 = vrot.slane %v2313_v35, 4  ;;  %v2080_v44 = vld [vmem:[#allocation2 + $0x60] sm:$0xf] }
  0xaa   : > { %3180 = vmatmul.mubr.bf16.gmra.mrb[24].mxu0 %v7069_v21  ;;  %v1173_v14 = vsel %vm7388_vm14, %v1168_v31, %v1172_v23  ;;  %v1178_v45 = vrot.slane %v1177_v36, 4  ;;  %v2321_v47 = vrot.slane %v2319_v61, 5  ;;  %v2276_v48 = vshrl.u32 %v2080_v44, 16  ;;  %v1031_v1 = vld [vmem:[#allocation2 + $0x48] sm:$0xf] }
  0xab   : > { %v2279_v39 = vshll.u32 %v2080_v44, 16  ;;  %v2306_v49 = vor.u32 %v2305_v41, %v2302_v40  ;;  %v2316_v50 = vor.u32 %v2315_v43, %v2311_v42  ;;  %v1187_v55 = vrot.slane %v1185_v20, 4  ;;  %v1032_v20 = vld [vmem:[#allocation2 + $0x4c] sm:$0xf]  ;;  %v7093_v40 = vld [vmem:[%s8477_s1 + $0xb0] sm:$0xff]  }
  0xac   : > { %v1183_v54 = vsel %vm7388_vm14, %v1178_v45, %v1182_v37  ;;  %v1188_v56 = vshll.u32 %v1028_v6, 16  ;;  %v1194_v57 = vshll.u32 %v1029_v25, 16  ;;  %v2278_v51 = vrot.slane %v2276_v48, 4  ;;  %6749 = vmatprep.subr.bf16.mxu1 %v7093_v40 }
  0xad   : > { %v2081_v26 = vld [vmem:[#allocation2 + $0x64] sm:$0xf]  ;;  %v2082_v58 = vld [vmem:[#allocation2 + $0x68] sm:$0x1]  ;;  %v2281_v62 = vrot.slane %v2279_v39, 5  ;;  %v5843_v59 = vcombine.low %v1173_v14, %v1183_v54  ;;  %v2307_v17 = vrot.slane %v2306_v49, 4  ;;  %6750 = vmatpush3.bf16.msra.mxu1 %v7093_v40 }
  0xae   : > { %v2285_v12 = vshll.u32 %v2081_v26, 16  ;;  %v2289_v0 = vshrl.u32 %v2081_v26, 16  ;;  %v2295_v3 = vshll.u32 %v2082_v58, 16  ;;  %v2317_v2 = vrot.slane %v2316_v50, 4  ;;  %v1033_v14 = vld [vmem:[#allocation2 + $0x50] sm:$0x1] }
  0xaf   : > { %v2282_v52 = vor.u32 %v2281_v62, %v2278_v51  ;;  %3629 = vmatprep.mubr.bf16.mxu1 %v5843_v59  ;;  %v1190_v8 = vrot.slane %v1188_v56, 5  ;;  %v1196_v18 = vrot.slane %v1194_v57, 5  ;;  %v2312_v21 = vsel %vm7388_vm14, %v2307_v17, %v2311_v42  ;;  %v7071_v42 = vld [vmem:[#allocation2 + $0x60] sm:$0xff]   ;;  %v2090_v56 = vld [vmem:[#allocation2 + $0x88] sm:$0xf] }
  0xb0   : > { %v2287_v13 = vrot.slane %v2285_v12, 5  ;;  %v2291_v15 = vrot.slane %v2289_v0, 4  ;;  %v2297_v16 = vrot.slane %v2295_v3, 5  ;;  %3630 = vmatmul.mubr.bf16.gmra.mrb[32].mxu1 %v7072_v38  ;;  %v2322_v22 = vsel %vm7388_vm14, %v2317_v2, %v2321_v47  ;;  %v2089_v49 = vld [vmem:[#allocation2 + $0x84] sm:$0xf] }
  0xb1   : > { %v2283_v19 = vrot.slane %v2282_v52, 4  ;;  %v1191_v23 = vor.u32 %v1190_v8, %v1187_v55  ;;  %v5911_v9 = vcombine.low %v2312_v21, %v2322_v22  ;;  %v1198_v24 = vshrl.u32 %v1029_v25, 16  ;;  %v7094_v62 = vld [vmem:[%s8477_s1 + $0x1c0] sm:$0xff]  }
  0xb2   : > { %v2292_v10 = vor.u32 %v2291_v15, %v2287_v13  ;;  %v1204_v28 = vshll.u32 %v1030_v63, 16  ;;  %v2324_v6 = vshrl.u32 %v2086_v5, 16  ;;  %v2327_v29 = vshll.u32 %v2086_v5, 16  ;;  %v7075_v63 = vld [vmem:[#allocation2 + $0x3c] sm:$0xff]   ;;  %6553 = vmatprep.subr.bf16.mxu0 %v7094_v62 }
  0xb3   : > { %v2288_v30 = vsel %vm7388_vm14, %v2283_v19, %v2287_v13  ;;  %v1192_v11 = vrot.slane %v1191_v23, 4  ;;  %v1200_v4 = vrot.slane %v1198_v24, 4  ;;  %v2333_v34 = vshll.u32 %v2087_v53, 16  ;;  %v2091_v13 = vld [vmem:[#allocation2 + $0x8c] sm:$0x1]  ;;  %v7076_v62 = vld [vmem:[#allocation2 + $0x78] sm:$0xff]  }
  0xb4   : > { %v2293_v31 = vrot.slane %v2292_v10, 4  ;;  %v1206_v33 = vrot.slane %v1204_v28, 5  ;;  %v2326_v36 = vrot.slane %v2324_v6, 4  ;;  %v2329_v37 = vrot.slane %v2327_v29, 5  ;;  %v1034_v23 = vld [vmem:[#allocation2 + $0x54] sm:$0xf] }
  0xb5   : > { %v1197_v35 = vsel %vm7388_vm14, %v1192_v11, %v1196_v18  ;;  %v2337_v61 = vshrl.u32 %v2087_v53, 16  ;;  %v1201_v43 = vor.u32 %v1200_v4, %v1196_v18  ;;  %v2335_v25 = vrot.slane %v2333_v34, 5  ;;  %v1035_v10 = vld [vmem:[#allocation2 + $0x58] sm:$0xf] }
  0xb6   : > { %v2298_v41 = vsel %vm7388_vm14, %v2293_v31, %v2297_v16  ;;  %v2343_v44 = vshll.u32 %v2088_v7, 16  ;;  %v2330_v47 = vor.u32 %v2329_v37, %v2326_v36  ;;  %v1209_v39 = vshrl.u32 %v1031_v1, 16  ;;  %v1036_v7 = vld [vmem:[#allocation2 + $0x5c] sm:$0x1]  ;;  %v2093_v37 = vld [vmem:[#allocation2 + $0x94] sm:$0xf] }
  0xb7   : > { %v5910_v45 = vcombine.low %v2288_v30, %v2298_v41  ;;  %v2339_v48 = vrot.slane %v2337_v61, 4  ;;  %v1202_v50 = vrot.slane %v1201_v43, 4  ;;  %v1212_v38 = vshll.u32 %v1031_v1, 16 }
  0xb8   : > { %v2345_v54 = vrot.slane %v2343_v44, 5  ;;  %v1218_v55 = vshll.u32 %v1032_v20, 16  ;;  %v2331_v57 = vrot.slane %v2330_v47, 4  ;;  %v1211_v58 = vrot.slane %v1209_v39, 4 }
  0xb9   : > { %3187 = vmatprep.mubr.bf16.mxu0 %v5910_v45  ;;  %v2340_v26 = vor.u32 %v2339_v48, %v2335_v25  ;;  %v1222_v51 = vshrl.u32 %v1032_v20, 16  ;;  %v1207_v59 = vsel %vm7388_vm14, %v1202_v50, %v1206_v33  ;;  %v1214_v12 = vrot.slane %v1212_v38, 5  ;;  %v2092_v33 = vld [vmem:[#allocation2 + $0x90] sm:$0xf] }
  0xba   : > { %3188 = vmatmul.mubr.bf16.gmra.mrb[28].mxu0 %v7071_v42  ;;  %v1220_v0 = vrot.slane %v1218_v55, 5  ;;  %v1228_v3 = vshll.u32 %v1033_v14, 16  ;;  %v5844_v5 = vcombine.low %v1197_v35, %v1207_v59  ;;  %v2336_v52 = vsel %vm7388_vm14, %v2331_v57, %v2335_v25  ;;  %v7077_v25 = vld [vmem:[#allocation2 + $0x48] sm:$0xff]  }
  0xbb   : > { %3195 = vmatprep.mubr.bf16.mxu0 %v5911_v9  ;;  %v2341_v17 = vrot.slane %v2340_v26, 4  ;;  %v1224_v2 = vrot.slane %v1222_v51, 4  ;;  %v1215_v8 = vor.u32 %v1214_v12, %v1211_v58  ;;  %v2348_v15 = vshrl.u32 %v2089_v49, 16  ;;  %v7074_v9 = vld [vmem:[#allocation2 + $0x6c] sm:$0xff]   ;;  %v1037_v51 = vld [vmem:[#allocation2 + $0x60] sm:$0xf] }
  0xbc   : > { %v1230_v53 = vrot.slane %v1228_v3, 5  ;;  %v2351_v16 = vshll.u32 %v2089_v49, 16  ;;  %3637 = vmatprep.mubr.bf16.mxu1 %v5844_v5  ;;  %v2357_v21 = vshll.u32 %v2090_v56, 16  ;;  %v2361_v22 = vshrl.u32 %v2090_v56, 16  ;;  %v1038_v3 = vld [vmem:[#allocation2 + $0x64] sm:$0xf] }
  0xbd   : > { %v2346_v18 = vsel %vm7388_vm14, %v2341_v17, %v2345_v54  ;;  %v1225_v19 = vor.u32 %v1224_v2, %v1220_v0  ;;  %3638 = vmatmul.mubr.bf16.gmra.mrb[36].mxu1 %v7075_v63  ;;  %v1216_v28 = vrot.slane %v1215_v8, 4  ;;  %v2350_v30 = vrot.slane %v2348_v15, 4  ;;  %v2094_v54 = vld [vmem:[#allocation2 + $0x98] sm:$0x1]  ;;  %v1039_v8 = vld [vmem:[#allocation2 + $0x68] sm:$0x1] }
  0xbe   : > { %v5912_v24 = vcombine.low %v2336_v52, %v2346_v18  ;;  %v2353_v11 = vrot.slane %v2351_v16, 5  ;;  %v2359_v29 = vrot.slane %v2357_v21, 5  ;;  %v2363_v31 = vrot.slane %v2361_v22, 4  ;;  %v2095_v18 = vld [vmem:[#allocation2 + $0x9c] sm:$0xf] }
  0xbf   : > { %v1226_v6 = vrot.slane %v1225_v19, 4  ;;  %v2367_v4 = vshll.u32 %v2091_v13, 16  ;;  %v1221_v34 = vsel %vm7388_vm14, %v1216_v28, %v1220_v0  ;;  %v1233_v35 = vshrl.u32 %v1034_v23, 16 }
  0xc0   : > { %v2354_v1 = vor.u32 %v2353_v11, %v2350_v30  ;;  %v1236_v36 = vshll.u32 %v1034_v23, 16  ;;  %v2364_v20 = vor.u32 %v2363_v31, %v2359_v29  ;;  %v1242_v41 = vshll.u32 %v1035_v10, 16  ;;  %v2096_v31 = vld [vmem:[#allocation2 + $0xa0] sm:$0xf] }
  0xc1   : > { %v1231_v61 = vsel %vm7388_vm14, %v1226_v6, %v1230_v53  ;;  %v2369_v40 = vrot.slane %v2367_v4, 5  ;;  %v1235_v44 = vrot.slane %v1233_v35, 4  ;;  %v1246_v48 = vshrl.u32 %v1035_v10, 16  ;;  %v2097_v35 = vld [vmem:[#allocation2 + $0xa4] sm:$0x1] }
  0xc2   : > { %3196 = vmatmul.mubr.bf16.gmra.mrb[32].mxu0 %v7074_v9  ;;  %v5845_v42 = vcombine.low %v1221_v34, %v1231_v61  ;;  %v2355_v43 = vrot.slane %v2354_v1, 4  ;;  %v1238_v14 = vrot.slane %v1236_v36, 5  ;;  %v2365_v45 = vrot.slane %v2364_v20, 4 }
  0xc3   : > { %3203 = vmatprep.mubr.bf16.mxu0 %v5912_v24  ;;  %v1244_v47 = vrot.slane %v1242_v41, 5  ;;  %v1252_v39 = vshll.u32 %v1036_v7, 16  ;;  %v2372_v38 = vshrl.u32 %v2092_v33, 16  ;;  %v2375_v55 = vshll.u32 %v2092_v33, 16  ;;  %v7080_v7 = vld [vmem:[#allocation2 + $0x54] sm:$0xff]   ;;  %v7079_v41 = vld [vmem:[#allocation2 + $0x84] sm:$0xff]  }
  0xc4   : > { %3645 = vmatprep.mubr.bf16.mxu1 %v5845_v42  ;;  %v2360_v49 = vsel %vm7388_vm14, %v2355_v43, %v2359_v29  ;;  %v1239_v50 = vor.u32 %v1238_v14, %v1235_v44  ;;  %v2370_v56 = vsel %vm7388_vm14, %v2365_v45, %v2369_v40  ;;  %v1248_v57 = vrot.slane %v1246_v48, 4  ;;  %v1040_v40 = vld [vmem:[#allocation2 + $0x6c] sm:$0xf]  ;;  %v1041_v14 = vld [vmem:[#allocation2 + $0x70] sm:$0xf] }
  0xc5   : > { %v1254_v26 = vrot.slane %v1252_v39, 5  ;;  %v2381_v58 = vshll.u32 %v2093_v37, 16  ;;  %v5913_v59 = vcombine.low %v2360_v49, %v2370_v56  ;;  %3646 = vmatmul.mubr.bf16.gmra.mrb[40].mxu1 %v7077_v25  ;;  %v2374_v12 = vrot.slane %v2372_v38, 4  ;;  %v1042_v49 = vld [vmem:[#allocation2 + $0x74] sm:$0x1] }
  0xc6   : > { %v1240_v63 = vrot.slane %v1239_v50, 4  ;;  %v2377_v0 = vrot.slane %v2375_v55, 5  ;;  %v1249_v5 = vor.u32 %v1248_v57, %v1244_v47  ;;  %v2385_v17 = vshrl.u32 %v2093_v37, 16  ;;  %v7104_v50 = vld [vmem:[%s8477_s1 + $0xb8] sm:$0xff]   ;;  %v2098_v57 = vld [vmem:[#allocation2 + $0xa8] sm:$0xf] }
  0xc7   : > { %v2383_v52 = vrot.slane %v2381_v58, 5  ;;  %v2391_v2 = vshll.u32 %v2094_v54, 16  ;;  %v1257_v15 = vshrl.u32 %v1037_v51, 16  ;;  %v1260_v16 = vshll.u32 %v1037_v51, 16  ;;  %6751 = vmatprep.subr.bf16.mxu1 %v7104_v50 }
  0xc8   : > { %v1245_v53 = vsel %vm7388_vm14, %v1240_v63, %v1244_v47  ;;  %v2378_v13 = vor.u32 %v2377_v0, %v2374_v12  ;;  %v1250_v19 = vrot.slane %v1249_v5, 4  ;;  %v2387_v21 = vrot.slane %v2385_v17, 4  ;;  %v7082_v63 = vld [vmem:[#allocation2 + $0x60] sm:$0xff]   ;;  %6752 = vmatpush3.bf16.msra.mxu1 %v7104_v50 }
  0xc9   : > { %v2393_v22 = vrot.slane %v2391_v2, 5  ;;  %v1266_v23 = vshll.u32 %v1038_v3, 16  ;;  %v1259_v9 = vrot.slane %v1257_v15, 4  ;;  %v1262_v24 = vrot.slane %v1260_v16, 5 }
  0xca   : > { %3204 = vmatmul.mubr.bf16.gmra.mrb[36].mxu0 %v7076_v62  ;;  %v2379_v10 = vrot.slane %v2378_v13, 4  ;;  %v1270_v28 = vshrl.u32 %v1038_v3, 16  ;;  %v1255_v30 = vsel %vm7388_vm14, %v1250_v19, %v1254_v26  ;;  %v2388_v11 = vor.u32 %v2387_v21, %v2383_v52 }
  0xcb   : > { %3211 = vmatprep.mubr.bf16.mxu0 %v5913_v59  ;;  %v1268_v6 = vrot.slane %v1266_v23, 5  ;;  %v1276_v29 = vshll.u32 %v1039_v8, 16  ;;  %v5846_v4 = vcombine.low %v1245_v53, %v1255_v30  ;;  %v1263_v34 = vor.u32 %v1262_v24, %v1259_v9  ;;  %v2099_v8 = vld [vmem:[#allocation2 + $0xac] sm:$0xf] }
  0xcc   : > { %v2384_v33 = vsel %vm7388_vm14, %v2379_v10, %v2383_v52  ;;  %v1272_v1 = vrot.slane %v1270_v28, 4  ;;  %v2389_v36 = vrot.slane %v2388_v11, 4  ;;  %v2396_v61 = vshrl.u32 %v2095_v18, 16  ;;  %v2100_v28 = vld [vmem:[#allocation2 + $0xb0] sm:$0x1] }
  0xcd   : > { %v1278_v37 = vrot.slane %v1276_v29, 5  ;;  %v2399_v20 = vshll.u32 %v2095_v18, 16  ;;  %3653 = vmatprep.mubr.bf16.mxu1 %v5846_v4  ;;  %v1264_v42 = vrot.slane %v1263_v34, 4  ;;  %v2405_v25 = vshll.u32 %v2096_v31, 16  ;;  %v7081_v18 = vld [vmem:[#allocation2 + $0x90] sm:$0xff]  }
  0xce   : > { %v1273_v43 = vor.u32 %v1272_v1, %v1268_v6  ;;  %v2409_v44 = vshrl.u32 %v2096_v31, 16  ;;  %v2394_v45 = vsel %vm7388_vm14, %v2389_v36, %v2393_v22  ;;  %3654 = vmatmul.mubr.bf16.gmra.mrb[44].mxu1 %v7080_v7  ;;  %v2398_v47 = vrot.slane %v2396_v61, 4  ;;  %v1043_v11 = vld [vmem:[#allocation2 + $0x78] sm:$0xf]  ;;  %v1044_v4 = vld [vmem:[#allocation2 + $0x7c] sm:$0xf] }
  0xcf   : > { %v2401_v48 = vrot.slane %v2399_v20, 5  ;;  %v2415_v39 = vshll.u32 %v2097_v35, 16  ;;  %v5914_v54 = vcombine.low %v2384_v33, %v2394_v45  ;;  %v1269_v38 = vsel %vm7388_vm14, %v1264_v42, %v1268_v6  ;;  %v1045_v36 = vld [vmem:[#allocation2 + $0x80] sm:$0x1] }
  0xd0   : > { %v1274_v55 = vrot.slane %v1273_v43, 4  ;;  %v2407_v56 = vrot.slane %v2405_v25, 5  ;;  %v2411_v58 = vrot.slane %v2409_v44, 4  ;;  %v1281_v62 = vshrl.u32 %v1040_v40, 16 }
  0xd1   : > { %v2402_v26 = vor.u32 %v2401_v48, %v2398_v47  ;;  %v2417_v51 = vrot.slane %v2415_v39, 5  ;;  %v1284_v12 = vshll.u32 %v1040_v40, 16  ;;  %v1290_v0 = vshll.u32 %v1041_v14, 16  ;;  %v7085_v39 = vld [vmem:[#allocation2 + $0x6c] sm:$0xff]  }
  0xd2   : > { %3212 = vmatmul.mubr.bf16.gmra.mrb[40].mxu0 %v7079_v41  ;;  %v1279_v59 = vsel %vm7388_vm14, %v1274_v55, %v1278_v37  ;;  %v1294_v3 = vshrl.u32 %v1041_v14, 16  ;;  %v2412_v17 = vor.u32 %v2411_v58, %v2407_v56  ;;  %v1283_v2 = vrot.slane %v1281_v62, 4  ;;  %v2101_v37 = vld [vmem:[#allocation2 + $0xb4] sm:$0xf]  ;;  %v2103_v58 = vld [vmem:[#allocation2 + $0xbc] sm:$0x1] }
  0xd3   : > { %3219 = vmatprep.mubr.bf16.mxu0 %v5914_v54  ;;  %v5847_v5 = vcombine.low %v1269_v38, %v1279_v59  ;;  %v2403_v52 = vrot.slane %v2402_v26, 4  ;;  %v1286_v53 = vrot.slane %v1284_v12, 5  ;;  %v1292_v13 = vrot.slane %v1290_v0, 5  ;;  %v7084_v62 = vld [vmem:[#allocation2 + $0x9c] sm:$0xff]  }
  0xd4   : > { %v1296_v15 = vrot.slane %v1294_v3, 4  ;;  %v1300_v16 = vshll.u32 %v1042_v49, 16  ;;  %v2413_v21 = vrot.slane %v2412_v17, 4  ;;  %v2420_v22 = vshrl.u32 %v2098_v57, 16  ;;  %v2102_v49 = vld [vmem:[#allocation2 + $0xb8] sm:$0xf] }
  0xd5   : > { %3661 = vmatprep.mubr.bf16.mxu1 %v5847_v5  ;;  %v2408_v19 = vsel %vm7388_vm14, %v2403_v52, %v2407_v56  ;;  %v2423_v23 = vshll.u32 %v2098_v57, 16  ;;  %v1287_v10 = vor.u32 %v1286_v53, %v1283_v2  ;;  %v2429_v30 = vshll.u32 %v2099_v8, 16  ;;  %v1046_v3 = vld [vmem:[#allocation2 + $0x84] sm:$0xf] }
  0xd6   : > { %v1297_v9 = vor.u32 %v1296_v15, %v1292_v13  ;;  %v1302_v24 = vrot.slane %v1300_v16, 5  ;;  %v2418_v7 = vsel %vm7388_vm14, %v2413_v21, %v2417_v51  ;;  %3662 = vmatmul.mubr.bf16.gmra.mrb[48].mxu1 %v7082_v63  ;;  %v2422_v6 = vrot.slane %v2420_v22, 4 }
  0xd7   : > { %v2425_v29 = vrot.slane %v2423_v23, 5  ;;  %v2433_v31 = vshrl.u32 %v2099_v8, 16  ;;  %v5915_v33 = vcombine.low %v2408_v19, %v2418_v7  ;;  %v1288_v34 = vrot.slane %v1287_v10, 4  ;;  %v1047_v8 = vld [vmem:[#allocation2 + $0x88] sm:$0xf] }
  0xd8   : > { %v1298_v1 = vrot.slane %v1297_v9, 4  ;;  %v2431_v35 = vrot.slane %v2429_v30, 5  ;;  %v2439_v40 = vshll.u32 %v2100_v28, 16  ;;  %v1305_v41 = vshrl.u32 %v1043_v11, 16  ;;  %v2104_v10 = vld [vmem:[#allocation2 + $0xc0] sm:$0xf] }
  0xd9   : > { %v2426_v61 = vor.u32 %v2425_v29, %v2422_v6  ;;  %v2435_v20 = vrot.slane %v2433_v31, 4  ;;  %v1293_v42 = vsel %vm7388_vm14, %v1288_v34, %v1292_v13  ;;  %v1308_v25 = vshll.u32 %v1043_v11, 16  ;;  %v2105_v11 = vld [vmem:[#allocation2 + $0xc4] sm:$0xf] }
  0xda   : > { %3220 = vmatmul.mubr.bf16.gmra.mrb[44].mxu0 %v7081_v18  ;;  %v1303_v43 = vsel %vm7388_vm14, %v1298_v1, %v1302_v24  ;;  %v1314_v44 = vshll.u32 %v1044_v4, 16  ;;  %v2441_v48 = vrot.slane %v2439_v40, 5  ;;  %v1307_v50 = vrot.slane %v1305_v41, 4  ;;  %v1048_v18 = vld [vmem:[#allocation2 + $0x8c] sm:$0x1]  ;;  %v7087_v1 = vld [vmem:[#allocation2 + $0x78] sm:$0xff]  }
  0xdb   : > { %3227 = vmatprep.mubr.bf16.mxu0 %v5915_v33  ;;  %v5848_v14 = vcombine.low %v1293_v42, %v1303_v43  ;;  %v2427_v45 = vrot.slane %v2426_v61, 4  ;;  %v2436_v47 = vor.u32 %v2435_v20, %v2431_v35  ;;  %v1310_v54 = vrot.slane %v1308_v25, 5  ;;  %v7086_v61 = vld [vmem:[#allocation2 + $0xa8] sm:$0xff]   ;;  %v1049_v43 = vld [vmem:[#allocation2 + $0x90] sm:$0xf] }
  0xdc   : > { %v1316_v38 = vrot.slane %v1314_v44, 5  ;;  %v1318_v55 = vshrl.u32 %v1044_v4, 16  ;;  %v1324_v26 = vshll.u32 %v1045_v36, 16  ;;  %v2444_v51 = vshrl.u32 %v2101_v37, 16  ;;  %v7842_v4 = vld [vmem:[%s8477_s1 + $0x200] sm:$0xff]  }
  0xdd   : > { %3669 = vmatprep.mubr.bf16.mxu1 %v5848_v14  ;;  %v2432_v56 = vsel %vm7388_vm14, %v2427_v45, %v2431_v35  ;;  %v2437_v57 = vrot.slane %v2436_v47, 4  ;;  %v1311_v59 = vor.u32 %v1310_v54, %v1307_v50  ;;  %v2447_v12 = vshll.u32 %v2101_v37, 16  ;;  %v2106_v37 = vld [vmem:[#allocation2 + $0xc8] sm:$0x1]  ;;  %6785 = vmatprep.subr.bf16.mxu1 %v7842_v4  ;;  %v1050_v47 = vld [vmem:[#allocation2 + $0x94] sm:$0xf] }
  0xde   : > { %v1320_v63 = vrot.slane %v1318_v55, 4  ;;  %v2453_v0 = vshll.u32 %v2102_v49, 16  ;;  %3670 = vmatmul.mubr.bf16.gmra.mrb[52].mxu1 %v7085_v39  ;;  %v1326_v52 = vrot.slane %v1324_v26, 5  ;;  %v2446_v17 = vrot.slane %v2444_v51, 4 }
  0xdf   : > { %v2442_v5 = vsel %vm7388_vm14, %v2437_v57, %v2441_v48  ;;  %v2457_v2 = vshrl.u32 %v2102_v49, 16  ;;  %v1312_v13 = vrot.slane %v1311_v59, 4  ;;  %v2449_v16 = vrot.slane %v2447_v12, 5 }
  0xe0   : > { %v5916_v53 = vcombine.low %v2432_v56, %v2442_v5  ;;  %v1321_v15 = vor.u32 %v1320_v63, %v1316_v38  ;;  %v2455_v19 = vrot.slane %v2453_v0, 5  ;;  %v2463_v22 = vshll.u32 %v2103_v58, 16 }
  0xe1   : > { %v2459_v21 = vrot.slane %v2457_v2, 4  ;;  %v1329_v23 = vshrl.u32 %v1046_v3, 16  ;;  %v1317_v9 = vsel %vm7388_vm14, %v1312_v13, %v1316_v38  ;;  %v2450_v28 = vor.u32 %v2449_v16, %v2446_v17  ;;  %v2571_v2 = vld [vmem:[#allocation2 + $0xc] sm:$0xe]  ;;  %v7090_v13 = vld [vmem:[#allocation2 + $0x84] sm:$0xff]  }
  0xe2   : > { %3228 = vmatmul.mubr.bf16.gmra.mrb[48].mxu0 %v7084_v62  ;;  %v1322_v24 = vrot.slane %v1321_v15, 4  ;;  %v1332_v30 = vshll.u32 %v1046_v3, 16  ;;  %v2465_v6 = vrot.slane %v2463_v22, 5  ;;  %v1338_v31 = vshll.u32 %v1047_v8, 16  ;;  %v1051_v62 = vld [vmem:[#allocation2 + $0x98] sm:$0x1] }
  0xe3   : > { %3235 = vmatprep.mubr.bf16.mxu0 %v5916_v53  ;;  %v2460_v7 = vor.u32 %v2459_v21, %v2455_v19  ;;  %v1331_v29 = vrot.slane %v1329_v23, 4  ;;  %v2451_v34 = vrot.slane %v2450_v28, 4  ;;  %v1342_v36 = vshrl.u32 %v1047_v8, 16  ;;  %v7089_v8 = vld [vmem:[#allocation2 + $0xb4] sm:$0xff]  }
  0xe4   : > { %v1327_v33 = vsel %vm7388_vm14, %v1322_v24, %v1326_v52  ;;  %v1334_v35 = vrot.slane %v1332_v30, 5  ;;  %v1340_v41 = vrot.slane %v1338_v31, 5  ;;  %v1348_v42 = vshll.u32 %v1048_v18, 16  ;;  %v7855_v24 = vld [vmem:[#allocation2 + $0x1c] sm:$0xf] }
  0xe5   : > { %v5849_v20 = vcombine.low %v1317_v9, %v1327_v33  ;;  %v2461_v40 = vrot.slane %v2460_v7, 4  ;;  %v2456_v25 = vsel %vm7388_vm14, %v2451_v34, %v2455_v19  ;;  %v1344_v14 = vrot.slane %v1342_v36, 4  ;;  %v2572_v19 = vld [vmem:[#allocation2 + $0x10] sm:$0xf]  ;;  %v2573_v9 = vld [vmem:[#allocation2 + $0x14] sm:$0x1] }
  0xe6   : > { %v1335_v44 = vor.u32 %v1334_v35, %v1331_v29  ;;  %v2468_v45 = vshrl.u32 %v2104_v10, 16  ;;  %v1350_v39 = vrot.slane %v1348_v42, 5  ;;  %v2471_v49 = vshll.u32 %v2104_v10, 16  ;;  %v7857_v7 = vld [vmem:[#allocation2 + $0x18] sm:$0xe] }
  0xe7   : > { %3677 = vmatprep.mubr.bf16.mxu1 %v5849_v20  ;;  %v2466_v48 = vsel %vm7388_vm14, %v2461_v40, %v2465_v6  ;;  %v2477_v50 = vshll.u32 %v2105_v11, 16  ;;  %v1345_v55 = vor.u32 %v1344_v14, %v1340_v41  ;;  %v2481_v58 = vshrl.u32 %v2105_v11, 16  ;;  %v7859_v6 = vld [vmem:[#allocation2 + $0x20] sm:$0x1]  ;;  %v1052_v29 = vld [vmem:[#allocation2 + $0x9c] sm:$0xf] }
  0xe8   : > { %v5917_v54 = vcombine.low %v2456_v25, %v2466_v48  ;;  %3678 = vmatmul.mubr.bf16.gmra.mrb[56].mxu1 %v7087_v1  ;;  %v1336_v38 = vrot.slane %v1335_v44, 4  ;;  %v2470_v56 = vrot.slane %v2468_v45, 4  ;;  %v2473_v57 = vrot.slane %v2471_v49, 5  ;;  %v1053_v35 = vld [vmem:[#allocation2 + $0xa0] sm:$0xf] }
  0xe9   : > { %v2479_v26 = vrot.slane %v2477_v50, 5  ;;  %v2487_v51 = vshll.u32 %v2106_v37, 16  ;;  %v1346_v63 = vrot.slane %v1345_v55, 4  ;;  %v1353_v12 = vshrl.u32 %v1049_v43, 16  ;;  %v1054_v42 = vld [vmem:[#allocation2 + $0xa4] sm:$0x1] }
  0xea   : > { %3236 = vmatmul.mubr.bf16.gmra.mrb[52].mxu0 %v7086_v61  ;;  %v1341_v59 = vsel %vm7388_vm14, %v1336_v38, %v1340_v41  ;;  %v1356_v0 = vshll.u32 %v1049_v43, 16  ;;  %v2474_v3 = vor.u32 %v2473_v57, %v2470_v56  ;;  %v2483_v5 = vrot.slane %v2481_v58, 4  ;;  %v2577_v45 = vld [vmem:[#allocation2 + $0x24] sm:$0xe]  ;;  %v2579_v38 = vld [vmem:[#allocation2 + $0x2c] sm:$0x1] }
  0xeb   : > { %3243 = vmatprep.mubr.bf16.mxu0 %v5917_v54  ;;  %v2489_v52 = vrot.slane %v2487_v51, 5  ;;  %v1362_v17 = vshll.u32 %v1050_v47, 16  ;;  %v1351_v53 = vsel %vm7388_vm14, %v1346_v63, %v1350_v39  ;;  %v1355_v15 = vrot.slane %v1353_v12, 4  ;;  %v7092_v39 = vld [vmem:[#allocation2 + $0x90] sm:$0xff]   ;;  %v7091_v55 = vld [vmem:[#allocation2 + $0xc0] sm:$0xff]  }
  0xec   : > { %v1358_v16 = vrot.slane %v1356_v0, 5  ;;  %v1366_v18 = vshrl.u32 %v1050_v47, 16  ;;  %v5850_v21 = vcombine.low %v1341_v59, %v1351_v53  ;;  %v2475_v22 = vrot.slane %v2474_v3, 4  ;;  %v2578_v47 = vld [vmem:[#allocation2 + $0x28] sm:$0xf] }
  0xed   : > { %v2484_v23 = vor.u32 %v2483_v5, %v2479_v26  ;;  %v1364_v10 = vrot.slane %v1362_v17, 5  ;;  %v1372_v11 = vshll.u32 %v1051_v62, 16  ;;  %v5919_v34 = vrot.slane %v2571_v2, 9  ;;  %v7876_v51 = vld [vmem:[#allocation2 + $0x30] sm:$0xe] }
  0xee   : > { %v1359_v28 = vor.u32 %v1358_v16, %v1355_v15  ;;  %v1368_v30 = vrot.slane %v1366_v18, 4  ;;  %3685 = vmatprep.mubr.bf16.mxu1 %v5850_v21  ;;  %v2480_v31 = vsel %vm7388_vm14, %v2475_v22, %v2479_v26  ;;  %v2669_v1 = vrot.slane %v2572_v19, 5  ;;  %v7878_v62 = vld [vmem:[#allocation2 + $0x34] sm:$0xf]  ;;  %v2582_v18 = vld [vmem:[#allocation2 + $0x38] sm:$0x1] }
  0xef   : > { %v2485_v33 = vrot.slane %v2484_v23, 4  ;;  %v1374_v61 = vrot.slane %v1372_v11, 5  ;;  %v2672_v20 = vrot.slane %v2573_v9, 5  ;;  %v2676_v14 = vrot.slane %v7855_v24, 5  ;;  %v1055_v19 = vld [vmem:[#allocation2 + $0xa8] sm:$0xf] }
  0xf0   : > { %3686 = vmatmul.mubr.bf16.gmra.mrb[60].mxu1 %v7090_v13  ;;  %v1360_v36 = vrot.slane %v1359_v28, 4  ;;  %v1369_v37 = vor.u32 %v1368_v30, %v1364_v10  ;;  %v2671_v41 = vrot.slane %v2669_v1, 4  ;;  %v2670_v48 = vsel %vm7367_vm13, %v5919_v34, %v2669_v1  ;;  %v1056_v9 = vld [vmem:[#allocation2 + $0xac] sm:$0xf]  ;;  %v1057_v11 = vld [vmem:[#allocation2 + $0xb0] sm:$0x1] }
  0xf1   : > { %v2490_v40 = vsel %vm7388_vm14, %v2485_v33, %v2489_v52  ;;  %v5920_v49 = vrot.slane %v7857_v7, 9  ;;  %v2679_v50 = vrot.slane %v7859_v6, 5  ;;  %v1377_v54 = vshrl.u32 %v1052_v29, 16  ;;  %v2583_v6 = vld [vmem:[#allocation2 + $0x3c] sm:$0xe] }
  0xf2   : > { %3244 = vmatmul.mubr.bf16.gmra.mrb[56].mxu0 %v7089_v8  ;;  %v5918_v43 = vcombine.low %v2480_v31, %v2490_v40  ;;  %v1365_v25 = vsel %vm7388_vm14, %v1360_v36, %v1364_v10  ;;  %v1370_v44 = vrot.slane %v1369_v37, 4  ;;  %v2673_v57 = vsel %vm7367_vm13, %v2671_v41, %v2672_v20  ;;  %v7098_v33 = vld [vmem:[#allocation2 + $0x9c] sm:$0xff]   ;;  %v2585_v40 = vld [vmem:[#allocation2 + $0x44] sm:$0x1] }
  0xf3   : > { %v1380_v26 = vshll.u32 %v1052_v29, 16  ;;  %v1386_v58 = vshll.u32 %v1053_v35, 16  ;;  %v1379_v63 = vrot.slane %v1377_v54, 4  ;;  %v1390_v12 = vshrl.u32 %v1053_v35, 16  ;;  %v2584_v35 = vld [vmem:[#allocation2 + $0x40] sm:$0xf] }
  0xf4   : > { %3251 = vmatprep.mubr.bf16.mxu0 %v5918_v43  ;;  %v1375_v56 = vsel %vm7388_vm14, %v1370_v44, %v1374_v61  ;;  %v2678_v0 = vrot.slane %v2676_v14, 4  ;;  %v1396_v52 = vshll.u32 %v1054_v42, 16  ;;  %v5935_v17 = vcombine.low %v2670_v48, %v2673_v57  ;;  %v7095_v42 = vld [vmem:[%s8477_s1 + $0x180] sm:$0xff]   ;;  %v7900_v57 = vld [vmem:[#allocation2 + $0x48] sm:$0xe] }
  0xf5   : > { %v5851_v59 = vcombine.low %v1365_v25, %v1375_v56  ;;  %v1382_v3 = vrot.slane %v1380_v26, 5  ;;  %v1388_v5 = vrot.slane %v1386_v58, 5  ;;  %v1392_v2 = vrot.slane %v1390_v12, 4  ;;  %v7902_v26 = vld [vmem:[#allocation2 + $0x4c] sm:$0xf] }
  0xf6   : > { %v5921_v8 = vrot.slane %v2577_v45, 9  ;;  %v2683_v53 = vrot.slane %v2578_v47, 5  ;;  %v1398_v15 = vrot.slane %v1396_v52, 5  ;;  %v2686_v16 = vrot.slane %v2579_v38, 5  ;;  %v7097_v58 = vld [vmem:[%s8477_s1 + $0x188] sm:$0xff]  }
  0xf7   : > { %3693 = vmatprep.mubr.bf16.mxu1 %v5851_v59  ;;  %v1383_v13 = vor.u32 %v1382_v3, %v1379_v63  ;;  %v1393_v21 = vor.u32 %v1392_v2, %v1388_v5  ;;  %v5922_v23 = vrot.slane %v7876_v51, 9  ;;  %v2690_v10 = vrot.slane %v7878_v62, 5  ;;  %v2588_v63 = vld [vmem:[#allocation2 + $0x50] sm:$0x1] }
  0xf8   : > { %3694 = vmatmul.mubr.bf16.gmra.mrb[64].mxu1 %v7092_v39  ;;  %v2685_v22 = vrot.slane %v2683_v53, 4  ;;  %v2677_v24 = vsel %vm7367_vm13, %v5920_v49, %v2676_v14  ;;  %v2680_v28 = vsel %vm7367_vm13, %v2678_v0, %v2679_v50  ;;  %v1401_v7 = vshrl.u32 %v1055_v19, 16  ;;  %v7096_v14 = vld [vmem:[%s8477_s1 + $0x1c8] sm:$0xff]   ;;  %v7099_v0 = vld [vmem:[%s8477_s1 + $0x1d0] sm:$0xff]  }
  0xf9   : > { %v1384_v30 = vrot.slane %v1383_v13, 4  ;;  %v1394_v29 = vrot.slane %v1393_v21, 4  ;;  %v2684_v31 = vsel %vm7367_vm13, %v5921_v8, %v2683_v53  ;;  %v1404_v34 = vshll.u32 %v1055_v19, 16  ;;  %v1058_v19 = vld [vmem:[#allocation2 + $0xb4] sm:$0xf] }
  0xfa   : > { %3252 = vmatmul.mubr.bf16.gmra.mrb[60].mxu0 %v7091_v55  ;;  %v1410_v1 = vshll.u32 %v1056_v9, 16  ;;  %v2687_v37 = vsel %vm7367_vm13, %v2685_v22, %v2686_v16  ;;  %v2693_v61 = vrot.slane %v2582_v18, 5  ;;  %v1403_v20 = vrot.slane %v1401_v7, 4  ;;  %v7103_v16 = vld [vmem:[#allocation2 + $0xa8] sm:$0xff]   ;;  %v7100_v21 = vld [vmem:[%s8477_s1 + $0x190] sm:$0xff]  }
  0xfb   : > { %6705 = vmatprep.mubr.bf16.mxu0 %v5935_v17  ;;  %v1389_v36 = vsel %vm7388_vm14, %v1384_v30, %v1388_v5  ;;  %v5936_v41 = vcombine.low %v2677_v24, %v2680_v28  ;;  %v1399_v43 = vsel %vm7388_vm14, %v1394_v29, %v1398_v15  ;;  %v2692_v25 = vrot.slane %v2690_v10, 4  ;;  %v1059_v22 = vld [vmem:[#allocation2 + $0xb8] sm:$0xf] }
  0xfc   : > { %v1406_v44 = vrot.slane %v1404_v34, 5  ;;  %v5852_v45 = vcombine.low %v1389_v36, %v1399_v43  ;;  %v1412_v47 = vrot.slane %v1410_v1, 5  ;;  %v1414_v48 = vshrl.u32 %v1056_v9, 16  ;;  %v7101_v28 = vld [vmem:[%s8477_s1 + $0x1d8] sm:$0xff]  }
  0xfd   : > { %v1420_v39 = vshll.u32 %v1057_v11, 16  ;;  %v5937_v49 = vcombine.low %v2684_v31, %v2687_v37  ;;  %v5923_v54 = vrot.slane %v2583_v6, 9  ;;  %v2697_v38 = vrot.slane %v2584_v35, 5  ;;  %v2589_v6 = vld [vmem:[#allocation2 + $0x54] sm:$0xe] }
  0xfe   : > { %v1407_v50 = vor.u32 %v1406_v44, %v1403_v20  ;;  %3701 = vmatprep.mubr.bf16.mxu1 %v5852_v45  ;;  %v1416_v55 = vrot.slane %v1414_v48, 4  ;;  %v2700_v56 = vrot.slane %v2585_v40, 5  ;;  %v5924_v12 = vrot.slane %v7900_v57, 9  ;;  %v2590_v29 = vld [vmem:[#allocation2 + $0x58] sm:$0xf] }
  0xff   : > { %v1422_v62 = vrot.slane %v1420_v39, 5  ;;  %v2699_v59 = vrot.slane %v2697_v38, 4  ;;  %v2704_v5 = vrot.slane %v7902_v26, 5  ;;  %v2707_v52 = vrot.slane %v2588_v63, 5  ;;  %v2591_v35 = vld [vmem:[#allocation2 + $0x5c] sm:$0x1] }
 0x100   : > { %3702 = vmatmul.mubr.bf16.gmra.mrb[68].mxu1 %v7098_v33  ;;  %v1408_v51 = vrot.slane %v1407_v50, 4  ;;  %v1417_v3 = vor.u32 %v1416_v55, %v1412_v47  ;;  %v2691_v17 = vsel %vm7367_vm13, %v5922_v23, %v2690_v10  ;;  %v2694_v2 = vsel %vm7367_vm13, %v2692_v25, %v2693_v61  ;;  %v1060_v23 = vld [vmem:[#allocation2 + $0xbc] sm:$0x1]  ;;  %v2592_v44 = vld [vmem:[#allocation2 + $0x60] sm:$0xe] }
 0x101   : > { %v2698_v8 = vsel %vm7367_vm13, %v5923_v54, %v2697_v38  ;;  %v2701_v15 = vsel %vm7367_vm13, %v2699_v59, %v2700_v56  ;;  %v2706_v18 = vrot.slane %v2704_v5, 4  ;;  %v1425_v10 = vshrl.u32 %v1058_v19, 16  ;;  %v7102_v45 = vld [vmem:[%s8477_s1 + $0x198] sm:$0xff]   ;;  %v2594_v54 = vld [vmem:[#allocation2 + $0x68] sm:$0x1] }
 0x102   : > { %6706 = vmatmul.mubr.bf16.vlgmr.msra.gmra.mrb[64].mxu0 %v5936_v41  ;;  %v1413_v53 = vsel %vm7388_vm14, %v1408_v51, %v1412_v47  ;;  %v1418_v13 = vrot.slane %v1417_v3, 4  ;;  %v1428_v9 = vshll.u32 %v1058_v19, 16  ;;  %v5938_v24 = vcombine.low %v2691_v17, %v2694_v2  ;;  %v7105_v47 = vld [vmem:[%s8477_s1 + $0x1e0] sm:$0xff]   ;;  %v7109_v56 = vld [vmem:[#allocation2 + $0xb4] sm:$0xff]   ;;  %v1530_v2 = vld [vmem:[#allocation2 + $0x8] sm:$0x1] }
 0x103   : > { %6554 = vmatpush3.bf16.msra.mxu0 %v7095_v42  ;;  %6709 = vmatprep.mubr.bf16.mxu0 %v5937_v49  ;;  %v1434_v11 = vshll.u32 %v1059_v22, 16  ;;  %v1438_v7 = vshrl.u32 %v1059_v22, 16  ;;  %v5939_v33 = vcombine.low %v2698_v8, %v2701_v15  ;;  %v1427_v34 = vrot.slane %v1425_v10, 4  ;;  %v1529_v17 = vld [vmem:[#allocation2 + $0x4] sm:$0xf]  ;;  %v7107_v8 = vld [vmem:[%s8477_s1 + $0x1e8] sm:$0xff]  }
 0x104   : > { %6555 = vmatprep.subr.bf16.mxu0 %v7096_v14  ;;  %v1423_v30 = vsel %vm7388_vm14, %v1418_v13, %v1422_v62  ;;  %v1430_v1 = vrot.slane %v1428_v9, 5  ;;  %v1444_v61 = vshll.u32 %v1060_v23, 16  ;;  %v5925_v20 = vrot.slane %v2589_v6, 9  ;;  %v2593_v14 = vld [vmem:[#allocation2 + $0x64] sm:$0xf]  ;;  %v7110_v9 = vld [vmem:[%s8477_s1 + $0x1f0] sm:$0xff]  }
 0x105   : > { %v5853_v31 = vcombine.low %v1413_v53, %v1423_v30  ;;  %v1436_v36 = vrot.slane %v1434_v11, 5  ;;  %v1440_v37 = vrot.slane %v1438_v7, 4  ;;  %v2711_v41 = vrot.slane %v2590_v29, 5  ;;  %v1533_v22 = vld [vmem:[#allocation2 + $0x14] sm:$0x1] }
 0x106   : > { %v1431_v40 = vor.u32 %v1430_v1, %v1427_v34  ;;  %v2714_v42 = vrot.slane %v2591_v35, 5  ;;  %v1446_v25 = vrot.slane %v1444_v61, 5  ;;  %v2705_v48 = vsel %vm7367_vm13, %v5924_v12, %v2704_v5  ;;  %v4032_v7 = vld [vmem:[#allocation2 + $0x18] sm:$0xf] }
 0x107   : > { %6556 = vmatpush3.bf16.msra.mxu0 %v7097_v58  ;;  %3709 = vmatprep.mubr.bf16.mxu1 %v5853_v31  ;;  %v1441_v43 = vor.u32 %v1440_v37, %v1436_v36  ;;  %v2708_v39 = vsel %vm7367_vm13, %v2706_v18, %v2707_v52  ;;  %v2713_v50 = vrot.slane %v2711_v41, 4  ;;  %v2712_v55 = vsel %vm7367_vm13, %v5925_v20, %v2711_v41  ;;  %v7106_v58 = vld [vmem:[%s8477_s1 + $0x1a0] sm:$0xff]   ;;  %v7108_v18 = vld [vmem:[%s8477_s1 + $0x1a8] sm:$0xff]   ;;  %v4033_v31 = vld [vmem:[#allocation2 + $0x1c] sm:$0xf] }
 0x108   : > { %6557 = vmatprep.subr.bf16.mxu0 %v7099_v0  ;;  %3710 = vmatmul.mubr.bf16.gmra.mrb[72].mxu1 %v7103_v16  ;;  %v1432_v49 = vrot.slane %v1431_v40, 4  ;;  %v5926_v57 = vrot.slane %v2592_v44, 9  ;;  %v2718_v26 = vrot.slane %v2593_v14, 5  ;;  %v5940_v59 = vcombine.low %v2705_v48, %v2708_v39  ;;  %v1528_v52 = vld [vmem:[#allocation2] sm:$0xe]  ;;  %v7111_v40 = vld [vmem:[%s8477_s1 + $0x1b0] sm:$0xff]  }
 0x109   : > { %v1442_v38 = vrot.slane %v1441_v43, 4  ;;  %v2715_v62 = vsel %vm7367_vm13, %v2713_v50, %v2714_v42  ;;  %v2721_v0 = vrot.slane %v2594_v54, 5  ;;  %v5855_v53 = vrot.slane %v1528_v52, 9  ;;  %v1531_v16 = vld [vmem:[#allocation2 + $0xc] sm:$0xe] }
 0x10a   : > { %6710 = vmatmul.mubr.bf16.gmra.mrb[68].mxu0 %v5938_v24  ;;  %v1437_v51 = vsel %vm7388_vm14, %v1432_v49, %v1436_v36  ;;  %v2720_v12 = vrot.slane %v2718_v26, 4  ;;  %v5941_v5 = vcombine.low %v2712_v55, %v2715_v62  ;;  %v1629_v13 = vrot.slane %v1529_v17, 5  ;;  %v1534_v49 = vld [vmem:[#allocation2 + $0x18] sm:$0xe]  ;;  %v7983_v50 = vld [vmem:[%s8477_s1 + $0x208] sm:$0xff]  }
 0x10b   : > { %6558 = vmatpush3.bf16.msra.mxu0 %v7100_v21  ;;  %6713 = vmatprep.mubr.bf16.mxu0 %v5939_v33  ;;  %v1447_v63 = vsel %vm7388_vm14, %v1442_v38, %v1446_v25  ;;  %v1632_v15 = vrot.slane %v1530_v2, 5  ;;  %v2719_v19 = vsel %vm7367_vm13, %v5926_v57, %v2718_v26  ;;  %v1532_v21 = vld [vmem:[#allocation2 + $0x10] sm:$0xf]  ;;  %v5856_v23 = vrot.slane %v1531_v16, 9  ;;  %v4034_v33 = vld [vmem:[#allocation2 + $0x20] sm:$0x1] }
 0x10c   : > { %6559 = vmatprep.subr.bf16.mxu0 %v7101_v28  ;;  %v5854_v3 = vcombine.low %v1437_v51, %v1447_v63  ;;  %v1630_v24 = vsel %vm7367_vm13, %v5855_v53, %v1629_v13  ;;  %v1631_v28 = vrot.slane %v1629_v13, 4  ;;  %v1636_v30 = vrot.slane %v1532_v21, 5  ;;  %v1536_v57 = vld [vmem:[#allocation2 + $0x20] sm:$0x1]  ;;  %v7113_v2 = vld [vmem:[%s8477_s1 + $0x1b8] sm:$0xff]  }
 0x10d   : > { %v6297_v10 = vpop.f32.mrb[0].mxu0  ;;  %v1639_v11 = vrot.slane %v1533_v22, 5  ;;  %v2722_v29 = vsel %vm7367_vm13, %v2720_v12, %v2721_v0  ;;  %v4081_v34 = vshrl.u32 %v4032_v7, 16  ;;  %v4084_v1 = vshll.u32 %v4032_v7, 16  ;;  %v4035_v16 = vld [vmem:[#allocation2 + $0x24] sm:$0xf] }
 0x10e   : > { %3717 = vmatprep.mubr.bf16.mxu1 %v5854_v3  ;;  %v6298_v6 = vpop.f32.mrb[1].mxu0  ;;  %v1633_v36 = vsel %vm7367_vm13, %v1631_v28, %v1632_v15  ;;  %v1637_v37 = vsel %vm7367_vm13, %v5856_v23, %v1636_v30  ;;  %v1638_v61 = vrot.slane %v1636_v30, 4  ;;  %v4090_v20 = vshll.u32 %v4033_v31, 16  ;;  %v1538_v3 = vld [vmem:[#allocation2 + $0x28] sm:$0xf] }
 0x10f   : > { %6560 = vmatpush3.bf16.msra.mxu0 %v7102_v45  ;;  %v7966_v35 = vadd.f32 %v6298_v6, %v6297_v10  ;;  %v5871_v41 = vcombine.low %v1630_v24, %v1633_v36  ;;  %v4083_v42 = vrot.slane %v4081_v34, 4  ;;  %v4086_v43 = vrot.slane %v4084_v1, 5  ;;  %v6300_v44 = vpop.f32.mrb[2].mxu0  ;;  %v7112_v45 = vld [vmem:[%s8477_s1 + $0x1f8] sm:$0xff]   ;;  %v4036_v21 = vld [vmem:[#allocation2 + $0x28] sm:$0xf] }
 0x110   : > { %6561 = vmatprep.subr.bf16.mxu0 %v7105_v47  ;;  %3718 = vmatmul.mubr.bf16.gmra.mrb[76].mxu1 %v7109_v56  ;;  %v4094_v25 = vshrl.u32 %v4033_v31, 16  ;;  %v5942_v14 = vcombine.low %v2719_v19, %v2722_v29  ;;  %v1640_v47 = vsel %vm7367_vm13, %v1638_v61, %v1639_v11  ;;  %v4092_v48 = vrot.slane %v4090_v20, 5  ;;  %v1535_v56 = vld [vmem:[#allocation2 + $0x1c] sm:$0xf]  ;;  %v6301_v63 = vpop.f32.mrb[3].mxu0  ;;  %v7118_v10 = vld [vmem:[%s8477_s1 + $0x210] sm:$0xff]  }
 0x111   : > { %v4100_v39 = vshll.u32 %v4034_v33, 16  ;;  %6753 = vmatprep.mubr.bf16.mxu1 %v5871_v41  ;;  %v5872_v54 = vcombine.low %v1637_v37, %v1640_v47  ;;  %v4087_v38 = vor.u32 %v4086_v43, %v4083_v42  ;;  %v5857_v26 = vrot.slane %v1534_v49, 9  ;;  %v4037_v22 = vld [vmem:[#allocation2 + $0x2c] sm:$0x1]  ;;  %v1540_v36 = vld [vmem:[#allocation2 + $0x30] sm:$0xe] }
 0x112   : > { %6714 = vmatmul.mubr.bf16.gmra.mrb[72].mxu0 %v5940_v59  ;;  %v4096_v55 = vrot.slane %v4094_v25, 4  ;;  %v1643_v51 = vrot.slane %v1535_v56, 5  ;;  %v1646_v62 = vrot.slane %v1536_v57, 5  ;;  %v1537_v59 = vld [vmem:[#allocation2 + $0x24] sm:$0xe]  ;;  %v7985_v17 = vadd.f32 %v6301_v63, %v6300_v44  ;;  %v7120_v47 = vld [vmem:[%s8477_s1 + $0x218] sm:$0xff]  }
 0x113   : > { %6562 = vmatpush3.bf16.msra.mxu0 %v7106_v58  ;;  %6717 = vmatprep.mubr.bf16.mxu0 %v5941_v5  ;;  %v4102_v58 = vrot.slane %v4100_v39, 5  ;;  %v4088_v12 = vrot.slane %v4087_v38, 4  ;;  %v1539_v5 = vld [vmem:[#allocation2 + $0x2c] sm:$0x1]  ;;  %v5858_v52 = vrot.slane %v1537_v59, 9  ;;  %v1650_v13 = vrot.slane %v1538_v3, 5 }
 0x114   : > { %6563 = vmatprep.subr.bf16.mxu0 %v7107_v8  ;;  %v4097_v0 = vor.u32 %v4096_v55, %v4092_v48  ;;  %v1644_v8 = vsel %vm7367_vm13, %v5857_v26, %v1643_v51  ;;  %v1645_v53 = vrot.slane %v1643_v51, 4  ;;  %v1653_v15 = vrot.slane %v1539_v5, 5  ;;  %v1541_v37 = vld [vmem:[#allocation2 + $0x34] sm:$0xf]  ;;  %v1542_v41 = vld [vmem:[#allocation2 + $0x38] sm:$0x1] }
 0x115   : > { %v4105_v23 = vshrl.u32 %v4035_v16, 16  ;;  %v1651_v28 = vsel %vm7367_vm13, %v5858_v52, %v1650_v13  ;;  %v1652_v30 = vrot.slane %v1650_v13, 4  ;;  %v4108_v11 = vshll.u32 %v4035_v16, 16  ;;  %v1544_v39 = vld [vmem:[#allocation2 + $0x40] sm:$0xf]  ;;  %v7117_v16 = vld [vmem:[#allocation2 + $0x24] sm:$0xff]  }
 0x116   : > { %v4098_v19 = vrot.slane %v4097_v0, 4  ;;  %v1647_v24 = vsel %vm7367_vm13, %v1645_v53, %v1646_v62  ;;  %v4114_v29 = vshll.u32 %v4036_v21, 16  ;;  %v4118_v1 = vshrl.u32 %v4036_v21, 16  ;;  %v1545_v49 = vld [vmem:[#allocation2 + $0x44] sm:$0x1] }
 0x117   : > { %6564 = vmatpush3.bf16.msra.mxu0 %v7108_v18  ;;  %v4093_v18 = vsel %vm7388_vm14, %v4088_v12, %v4092_v48  ;;  %v5873_v7 = vcombine.low %v1644_v8, %v1647_v24  ;;  %v4107_v6 = vrot.slane %v4105_v23, 4  ;;  %v1654_v33 = vsel %vm7367_vm13, %v1652_v30, %v1653_v15  ;;  %v4038_v57 = vld [vmem:[#allocation2 + $0x30] sm:$0xf]  ;;  %v4039_v26 = vld [vmem:[#allocation2 + $0x34] sm:$0xf]  ;;  %v7122_v12 = vld [vmem:[%s8477_s1 + $0x220] sm:$0xff]  }
 0x118   : > { %6565 = vmatprep.subr.bf16.mxu0 %v7110_v9  ;;  %6754 = vmatmul.mubr.bf16.vlgmr.msra.gmra.mrb[80].mxu1 %v5872_v54  ;;  %v7115_v9 = vld [vmem:[#allocation2 + $0x18] sm:$0xff]   ;;  %v4110_v34 = vrot.slane %v4108_v11, 5  ;;  %v5874_v61 = vcombine.low %v1651_v28, %v1654_v33  ;;  %v4116_v20 = vrot.slane %v4114_v29, 5  ;;  %v5859_v42 = vrot.slane %v1540_v36, 9  ;;  %v1547_v24 = vld [vmem:[#allocation2 + $0x4c] sm:$0xf] }
 0x119   : > { %6786 = vmatpush3.bf16.msra.mxu1 %v7842_v4  ;;  %v4103_v4 = vsel %vm7388_vm14, %v4098_v19, %v4102_v58  ;;  %6757 = vmatprep.mubr.bf16.mxu1 %v5873_v7  ;;  %v4120_v25 = vrot.slane %v4118_v1, 4  ;;  %v1657_v44 = vrot.slane %v1541_v37, 5  ;;  %v1664_v58 = vrot.slane %v1544_v39, 5  ;;  %v4040_v62 = vld [vmem:[#allocation2 + $0x38] sm:$0x1]  ;;  %v7124_v11 = vld [vmem:[%s8477_s1 + $0x228] sm:$0xff]  }
 0x11a   : > { %6718 = vmatmul.mubr.bf16.gmra.mrb[76].mxu0 %v5942_v14  ;;  %6787 = vmatprep.subr.bf16.mxu1 %v7983_v50  ;;  %v6015_v31 = vcombine.low %v4093_v18, %v4103_v4  ;;  %v4111_v43 = vor.u32 %v4110_v34, %v4107_v6  ;;  %v1660_v14 = vrot.slane %v1542_v41, 5  ;;  %v1667_v51 = vrot.slane %v1545_v49, 5  ;;  %v1548_v28 = vld [vmem:[#allocation2 + $0x50] sm:$0x1]  ;;  %v1550_v33 = vld [vmem:[#allocation2 + $0x58] sm:$0xf] }
 0x11b   : > { %6566 = vmatpush3.bf16.msra.mxu0 %v7111_v40  ;;  %v4124_v40 = vshll.u32 %v4037_v22, 16  ;;  %v4121_v55 = vor.u32 %v4120_v25, %v4116_v20  ;;  %v1658_v56 = vsel %vm7367_vm13, %v5859_v42, %v1657_v44  ;;  %v4129_v59 = vshrl.u32 %v4038_v57, 16  ;;  %v1546_v22 = vld [vmem:[#allocation2 + $0x48] sm:$0xe]  ;;  %v1551_v36 = vld [vmem:[#allocation2 + $0x5c] sm:$0x1] }
 0x11c   : > { %6567 = vmatprep.subr.bf16.mxu0 %v7112_v45  ;;  %5104 = vmatprep.mubr.bf16.mxu0 %v6015_v31  ;;  %v1543_v45 = vld [vmem:[#allocation2 + $0x3c] sm:$0xe]  ;;  %v4112_v38 = vrot.slane %v4111_v43, 4  ;;  %v4132_v63 = vshll.u32 %v4038_v57, 16  ;;  %v4138_v52 = vshll.u32 %v4039_v26, 16  ;;  %v1666_v53 = vrot.slane %v1664_v58, 4 }
 0x11d   : > { %6788 = vmatpush3.bf16.msra.mxu1 %v7983_v50  ;;  %v4126_v48 = vrot.slane %v4124_v40, 5  ;;  %v5860_v54 = vrot.slane %v1543_v45, 9  ;;  %v1659_v50 = vrot.slane %v1657_v44, 4  ;;  %v4122_v3 = vrot.slane %v4121_v55, 4  ;;  %v1549_v31 = vld [vmem:[#allocation2 + $0x54] sm:$0xe] }
 0x11e   : > { %6789 = vmatprep.subr.bf16.mxu1 %v7118_v10  ;;  %v4117_v0 = vsel %vm7388_vm14, %v4112_v38, %v4116_v20  ;;  %v4131_v13 = vrot.slane %v4129_v59, 4  ;;  %v4134_v18 = vrot.slane %v4132_v63, 5  ;;  %v4140_v19 = vrot.slane %v4138_v52, 5  ;;  %v4041_v43 = vld [vmem:[#allocation2 + $0x3c] sm:$0xf]  ;;  %v7126_v39 = vld [vmem:[%s8477_s1 + $0x230] sm:$0xff]  }
 0x11f   : > { %6568 = vmatpush3.bf16.msra.mxu0 %v7113_v2  ;;  %v1661_v5 = vsel %vm7367_vm13, %v1659_v50, %v1660_v14  ;;  %v1665_v8 = vsel %vm7367_vm13, %v5860_v54, %v1664_v58  ;;  %v4127_v15 = vsel %vm7388_vm14, %v4122_v3, %v4126_v48  ;;  %v4142_v21 = vshrl.u32 %v4039_v26, 16  ;;  %v4042_v25 = vld [vmem:[#allocation2 + $0x40] sm:$0xf]  ;;  %v7119_v55 = vld [vmem:[#allocation2 + $0x30] sm:$0xff]  }
 0x120   : > { %6758 = vmatmul.mubr.bf16.gmra.mrb[84].mxu1 %v5874_v61  ;;  %v5875_v2 = vcombine.low %v1658_v56, %v1661_v5  ;;  %v6016_v23 = vcombine.low %v4117_v0, %v4127_v15  ;;  %v5861_v30 = vrot.slane %v1546_v22, 9  ;;  %v4135_v7 = vor.u32 %v4134_v18, %v4131_v13  ;;  %v1552_v3 = vld [vmem:[#allocation2 + $0x60] sm:$0xe]  ;;  %v1553_v5 = vld [vmem:[#allocation2 + $0x64] sm:$0xf]  ;;  %v7128_v13 = vld [vmem:[%s8477_s1 + $0x238] sm:$0xff]  }
 0x121   : > { %6790 = vmatpush3.bf16.msra.mxu1 %v7118_v10  ;;  %v1668_v10 = vsel %vm7367_vm13, %v1666_v53, %v1667_v51  ;;  %v4144_v6 = vrot.slane %v4142_v21, 4  ;;  %v1671_v29 = vrot.slane %v1547_v24, 5  ;;  %v1674_v1 = vrot.slane %v1548_v28, 5  ;;  %v1555_v22 = vld [vmem:[#allocation2 + $0x6c] sm:$0xe] }
 0x122   : > { %5105 = vmatmul.mubr.bf16.vlgmr.msra.gmra.mrb[80].mxu0 %v7115_v9  ;;  %6791 = vmatprep.subr.bf16.mxu1 %v7120_v47  ;;  %v4148_v9 = vshll.u32 %v4040_v62, 16  ;;  %v5876_v4 = vcombine.low %v1665_v8, %v1668_v10  ;;  %v5862_v37 = vrot.slane %v1549_v31, 9  ;;  %v1678_v61 = vrot.slane %v1550_v33, 5  ;;  %v1557_v24 = vld [vmem:[#allocation2 + $0x74] sm:$0x1] }
 0x123   : > { %6761 = vmatprep.mubr.bf16.mxu1 %v5875_v2  ;;  %5112 = vmatprep.mubr.bf16.mxu0 %v6016_v23  ;;  %v4136_v20 = vrot.slane %v4135_v7, 4  ;;  %v4145_v40 = vor.u32 %v4144_v6, %v4140_v19  ;;  %v1672_v41 = vsel %vm7367_vm13, %v5861_v30, %v1671_v29  ;;  %v1673_v42 = vrot.slane %v1671_v29, 4  ;;  %v4044_v31 = vld [vmem:[#allocation2 + $0x48] sm:$0xf] }
 0x124   : > { %v4150_v34 = vrot.slane %v4148_v9, 5  ;;  %v1679_v44 = vsel %vm7367_vm13, %v5862_v37, %v1678_v61  ;;  %v1680_v14 = vrot.slane %v1678_v61, 4  ;;  %v1681_v45 = vrot.slane %v1551_v36, 5  ;;  %v1556_v9 = vld [vmem:[#allocation2 + $0x70] sm:$0xf] }
 0x125   : > { %6792 = vmatpush3.bf16.msra.mxu1 %v7120_v47  ;;  %v4043_v47 = vld [vmem:[#allocation2 + $0x44] sm:$0x1]  ;;  %v4153_v48 = vshrl.u32 %v4041_v43, 16  ;;  %v4141_v54 = vsel %vm7388_vm14, %v4136_v20, %v4140_v19  ;;  %v4146_v38 = vrot.slane %v4145_v40, 4  ;;  %v1675_v56 = vsel %vm7367_vm13, %v1673_v42, %v1674_v1  ;;  %v4046_v1 = vld [vmem:[#allocation2 + $0x50] sm:$0x1] }
 0x126   : > { %6793 = vmatprep.subr.bf16.mxu1 %v7122_v12  ;;  %v6303_v49 = vpop.f32.mrb[4].mxu0  ;;  %v4156_v50 = vshll.u32 %v4041_v43, 16  ;;  %v5877_v57 = vcombine.low %v1672_v41, %v1675_v56  ;;  %v1682_v26 = vsel %vm7367_vm13, %v1680_v14, %v1681_v45  ;;  %v4162_v51 = vshll.u32 %v4042_v25, 16  ;;  %v7121_v40 = vld [vmem:[#allocation2 + $0x3c] sm:$0xff]  }
 0x127   : > { %v4155_v58 = vrot.slane %v4153_v48, 4  ;;  %v4151_v62 = vsel %vm7388_vm14, %v4146_v38, %v4150_v34  ;;  %v5878_v59 = vcombine.low %v1679_v44, %v1682_v26  ;;  %v4166_v0 = vshrl.u32 %v4042_v25, 16  ;;  %v6304_v15 = vpop.f32.mrb[5].mxu0 }
 0x128   : > { %6762 = vmatmul.mubr.bf16.gmra.mrb[88].mxu1 %v5876_v4  ;;  %v4158_v63 = vrot.slane %v4156_v50, 5  ;;  %v6017_v52 = vcombine.low %v4141_v54, %v4151_v62  ;;  %v4164_v2 = vrot.slane %v4162_v51, 5  ;;  %v4172_v8 = vshll.u32 %v4043_v47, 16  ;;  %v8047_v23 = vpop.f32.mrb[6].mxu0  ;;  %v1558_v54 = vld [vmem:[#allocation2 + $0x78] sm:$0xe] }
 0x129   : > { %6794 = vmatpush3.bf16.msra.mxu1 %v7122_v12  ;;  %6765 = vmatprep.mubr.bf16.mxu1 %v5877_v57  ;;  %v1554_v12 = vld [vmem:[#allocation2 + $0x68] sm:$0x1]  ;;  %v5863_v53 = vrot.slane %v1552_v3, 9  ;;  %v4168_v18 = vrot.slane %v4166_v0, 4  ;;  %v1685_v19 = vrot.slane %v1553_v5, 5  ;;  %v5864_v28 = vrot.slane %v1555_v22, 9 }
 0x12a   : > { %5113 = vmatmul.mubr.bf16.gmra.mrb[84].mxu0 %v7117_v16  ;;  %6795 = vmatprep.subr.bf16.mxu1 %v7124_v11  ;;  %v4159_v16 = vor.u32 %v4158_v63, %v4155_v58  ;;  %v1688_v21 = vrot.slane %v1554_v12, 5  ;;  %v4174_v10 = vrot.slane %v4172_v8, 5  ;;  %v8049_v30 = vadd.f32 %v6304_v15, %v6303_v49  ;;  %v8061_v38 = vpop.f32.mrb[7].mxu0  ;;  %v1559_v50 = vld [vmem:[#allocation2 + $0x7c] sm:$0xf] }
 0x12b   : > { %5120 = vmatprep.mubr.bf16.mxu0 %v6017_v52  ;;  %v4169_v7 = vor.u32 %v4168_v18, %v4164_v2  ;;  %v1686_v6 = vsel %vm7367_vm13, %v5863_v53, %v1685_v19  ;;  %v1687_v29 = vrot.slane %v1685_v19, 4  ;;  %v1692_v33 = vrot.slane %v1556_v9, 5  ;;  %v1560_v57 = vld [vmem:[#allocation2 + $0x80] sm:$0x1]  ;;  %v1561_v63 = vld [vmem:[#allocation2 + $0x84] sm:$0xe] }
 0x12c   : > { %v4160_v4 = vrot.slane %v4159_v16, 4  ;;  %v1695_v34 = vrot.slane %v1557_v24, 5  ;;  %v4177_v36 = vshrl.u32 %v4044_v31, 16  ;;  %v4180_v37 = vshll.u32 %v4044_v31, 16  ;;  %v1562_v0 = vld [vmem:[#allocation2 + $0x88] sm:$0xf] }
 0x12d   : > { %6796 = vmatpush3.bf16.msra.mxu1 %v7124_v11  ;;  %v4045_v11 = vld [vmem:[#allocation2 + $0x4c] sm:$0xf]  ;;  %v4170_v20 = vrot.slane %v4169_v7, 4  ;;  %v1689_v41 = vsel %vm7367_vm13, %v1687_v29, %v1688_v21  ;;  %v1693_v25 = vsel %vm7367_vm13, %v5864_v28, %v1692_v33  ;;  %v1694_v44 = vrot.slane %v1692_v33, 4  ;;  %v4047_v18 = vld [vmem:[#allocation2 + $0x54] sm:$0xf] }
 0x12e   : > { %6797 = vmatprep.subr.bf16.mxu1 %v7126_v39  ;;  %v4165_v61 = vsel %vm7388_vm14, %v4160_v4, %v4164_v2  ;;  %v4186_v42 = vshll.u32 %v4045_v11, 16  ;;  %v5879_v43 = vcombine.low %v1686_v6, %v1689_v41  ;;  %v4179_v14 = vrot.slane %v4177_v36, 4  ;;  %v1563_v52 = vld [vmem:[#allocation2 + $0x8c] sm:$0x1]  ;;  %v4048_v19 = vld [vmem:[#allocation2 + $0x58] sm:$0xf] }
 0x12f   : > { %v4175_v45 = vsel %vm7388_vm14, %v4170_v20, %v4174_v10  ;;  %v4182_v47 = vrot.slane %v4180_v37, 5  ;;  %v4190_v49 = vshrl.u32 %v4045_v11, 16  ;;  %v4196_v56 = vshll.u32 %v4046_v1, 16  ;;  %v4049_v10 = vld [vmem:[#allocation2 + $0x5c] sm:$0x1]  ;;  %v7123_v4 = vld [vmem:[#allocation2 + $0x48] sm:$0xff]  }
 0x130   : > { %6766 = vmatmul.mubr.bf16.gmra.mrb[92].mxu1 %v5878_v59  ;;  %v4188_v48 = vrot.slane %v4186_v42, 5  ;;  %v5865_v26 = vrot.slane %v1558_v54, 9  ;;  %v1699_v59 = vrot.slane %v1559_v50, 5  ;;  %v1702_v5 = vrot.slane %v1560_v57, 5  ;;  %v1565_v20 = vld [vmem:[#allocation2 + $0x94] sm:$0xf] }
 0x131   : > { %6798 = vmatpush3.bf16.msra.mxu1 %v7126_v39  ;;  %6769 = vmatprep.mubr.bf16.mxu1 %v5879_v43  ;;  %v1696_v39 = vsel %vm7367_vm13, %v1694_v44, %v1695_v34  ;;  %v4183_v51 = vor.u32 %v4182_v47, %v4179_v14  ;;  %v4192_v62 = vrot.slane %v4190_v49, 4  ;;  %v4198_v3 = vrot.slane %v4196_v56, 5  ;;  %v1566_v43 = vld [vmem:[#allocation2 + $0x98] sm:$0x1]  ;;  %v1567_v49 = vld [vmem:[#allocation2 + $0x9c] sm:$0xe] }
 0x132   : > { %5121 = vmatmul.mubr.bf16.gmra.mrb[88].mxu0 %v7119_v55  ;;  %6799 = vmatprep.subr.bf16.mxu1 %v7128_v13  ;;  %v6018_v55 = vcombine.low %v4165_v61, %v4175_v45  ;;  %v5880_v58 = vcombine.low %v1693_v25, %v1696_v39  ;;  %v5866_v2 = vrot.slane %v1561_v63, 9  ;;  %v1706_v8 = vrot.slane %v1562_v0, 5  ;;  %v1564_v61 = vld [vmem:[#allocation2 + $0x90] sm:$0xe]  ;;  %v1568_v39 = vld [vmem:[#allocation2 + $0xa0] sm:$0xf] }
 0x133   : > { %v4184_v12 = vrot.slane %v4183_v51, 4  ;;  %v4193_v53 = vor.u32 %v4192_v62, %v4188_v48  ;;  %v1700_v15 = vsel %vm7367_vm13, %v5865_v26, %v1699_v59  ;;  %v1701_v16 = vrot.slane %v1699_v59, 4  ;;  %v1569_v56 = vld [vmem:[#allocation2 + $0xa4] sm:$0x1]  ;;  %v4050_v63 = vld [vmem:[#allocation2 + $0x60] sm:$0xf] }
 0x134   : > { %5128 = vmatprep.mubr.bf16.mxu0 %v6018_v55  ;;  %v1707_v21 = vsel %vm7367_vm13, %v5866_v2, %v1706_v8  ;;  %v1709_v22 = vrot.slane %v1563_v52, 5  ;;  %v4201_v9 = vshrl.u32 %v4047_v18, 16  ;;  %v4204_v6 = vshll.u32 %v4047_v18, 16  ;;  %v4051_v0 = vld [vmem:[#allocation2 + $0x64] sm:$0xf] }
 0x135   : > { %6800 = vmatpush3.bf16.msra.mxu1 %v7128_v13  ;;  %v1708_v13 = vrot.slane %v1706_v8, 4  ;;  %v4189_v24 = vsel %vm7388_vm14, %v4184_v12, %v4188_v48  ;;  %v4194_v28 = vrot.slane %v4193_v53, 4  ;;  %v1703_v7 = vsel %vm7367_vm13, %v1701_v16, %v1702_v5  ;;  %v4052_v52 = vld [vmem:[#allocation2 + $0x68] sm:$0x1]  ;;  %v7125_v12 = vld [vmem:[#allocation2 + $0x54] sm:$0xff]  }
 0x136   : > { %v5881_v29 = vcombine.low %v1700_v15, %v1703_v7  ;;  %v4203_v11 = vrot.slane %v4201_v9, 4  ;;  %v4210_v33 = vshll.u32 %v4048_v19, 16  ;;  %v4206_v36 = vrot.slane %v4204_v6, 5 }
 0x137   : > { %v1710_v31 = vsel %vm7367_vm13, %v1708_v13, %v1709_v22  ;;  %v4199_v34 = vsel %vm7388_vm14, %v4194_v28, %v4198_v3  ;;  %v4214_v37 = vshrl.u32 %v4048_v19, 16  ;;  %v4220_v42 = vshll.u32 %v4049_v10, 16 }
 0x138   : > { %6770 = vmatmul.mubr.bf16.gmra.mrb[0].mxu1 %v5880_v58  ;;  %v5882_v1 = vcombine.low %v1707_v21, %v1710_v31  ;;  %v4212_v41 = vrot.slane %v4210_v33, 5  ;;  %v5867_v25 = vrot.slane %v1564_v61, 9  ;;  %v4207_v14 = vor.u32 %v4206_v36, %v4203_v11  ;;  %v1572_v31 = vld [vmem:[#allocation2 + $0xb0] sm:$0x1]  ;;  %v1574_v61 = vld [vmem:[#allocation2 + $0xb8] sm:$0xf] }
 0x139   : > { %6773 = vmatprep.mubr.bf16.mxu1 %v5881_v29  ;;  %v4216_v45 = vrot.slane %v4214_v37, 4  ;;  %v1713_v47 = vrot.slane %v1565_v20, 5  ;;  %v1716_v48 = vrot.slane %v1566_v43, 5  ;;  %v4222_v55 = vrot.slane %v4220_v42, 5  ;;  %v1571_v29 = vld [vmem:[#allocation2 + $0xac] sm:$0xf] }
 0x13a   : > { %5129 = vmatmul.mubr.bf16.gmra.mrb[92].mxu0 %v7121_v40  ;;  %v6019_v40 = vcombine.low %v4189_v24, %v4199_v34  ;;  %v5868_v50 = vrot.slane %v1567_v49, 9  ;;  %v8079_v57 = vadd.f32 %v8061_v38, %v8047_v23  ;;  %v4208_v58 = vrot.slane %v4207_v14, 4  ;;  %v1570_v24 = vld [vmem:[#allocation2 + $0xa8] sm:$0xe]  ;;  %v1573_v37 = vld [vmem:[#allocation2 + $0xb4] sm:$0xe] }
 0x13b   : > { %v6309_v44 = vpop.f32.mrb[8].mxu0  ;;  %v4217_v51 = vor.u32 %v4216_v45, %v4212_v41  ;;  %v1714_v62 = vsel %vm7367_vm13, %v5867_v25, %v1713_v47  ;;  %v1715_v59 = vrot.slane %v1713_v47, 4  ;;  %v1720_v3 = vrot.slane %v1568_v39, 5  ;;  %v4053_v47 = vld [vmem:[#allocation2 + $0x6c] sm:$0xf] }
 0x13c   : > { %v6310_v54 = vpop.f32.mrb[9].mxu0  ;;  %5136 = vmatprep.mubr.bf16.mxu0 %v6019_v40  ;;  %v1723_v5 = vrot.slane %v1569_v56, 5  ;;  %v4225_v2 = vshrl.u32 %v4050_v63, 16  ;;  %v4228_v8 = vshll.u32 %v4050_v63, 16  ;;  %v4213_v23 = vsel %vm7388_vm14, %v4208_v58, %v4212_v41  ;;  %v1575_v41 = vld [vmem:[#allocation2 + $0xbc] sm:$0x1] }
 0x13d   : > { %v8081_v26 = vadd.f32 %v6310_v54, %v6309_v44  ;;  %v4218_v38 = vrot.slane %v4217_v51, 4  ;;  %v1717_v53 = vsel %vm7367_vm13, %v1715_v59, %v1716_v48  ;;  %v4234_v15 = vshll.u32 %v4051_v0, 16  ;;  %v8093_v28 = vpop.f32.mrb[10].mxu0  ;;  %v4054_v48 = vld [vmem:[#allocation2 + $0x70] sm:$0xf] }
 0x13e   : > { %v5883_v16 = vcombine.low %v1714_v62, %v1717_v53  ;;  %v1721_v18 = vsel %vm7367_vm13, %v5868_v50, %v1720_v3  ;;  %v1722_v19 = vrot.slane %v1720_v3, 4  ;;  %v4227_v21 = vrot.slane %v4225_v2, 4  ;;  %v4055_v39 = vld [vmem:[#allocation2 + $0x74] sm:$0x1]  ;;  %v6313_v50 = vpop.f32.mrb[11].mxu0  ;;  %v7127_v62 = vld [vmem:[#allocation2 + $0x60] sm:$0xff]  }
 0x13f   : > { %v4223_v13 = vsel %vm7388_vm14, %v4218_v38, %v4222_v55  ;;  %v4230_v22 = vrot.slane %v4228_v8, 5  ;;  %v4236_v10 = vrot.slane %v4234_v15, 5  ;;  %v4238_v9 = vshrl.u32 %v4051_v0, 16  ;;  %v4545_v53 = vld [vmem:[#allocation2 + $0x1c] sm:$0xf] }
 0x140   : > { %6774 = vmatmul.mubr.bf16.gmra.mrb[4].mxu1 %v5882_v1  ;;  %v1724_v7 = vsel %vm7367_vm13, %v1722_v19, %v1723_v5  ;;  %v4244_v6 = vshll.u32 %v4052_v52, 16  ;;  %v5869_v11 = vrot.slane %v1570_v24, 9  ;;  %v1727_v36 = vrot.slane %v1571_v29, 5  ;;  %v4546_v19 = vld [vmem:[#allocation2 + $0x20] sm:$0x1] }
 0x141   : > { %6777 = vmatprep.mubr.bf16.mxu1 %v5883_v16  ;;  %v5884_v33 = vcombine.low %v1721_v18, %v1724_v7  ;;  %v4231_v34 = vor.u32 %v4230_v22, %v4227_v21  ;;  %v4240_v1 = vrot.slane %v4238_v9, 4  ;;  %v1730_v40 = vrot.slane %v1572_v31, 5  ;;  %v4056_v24 = vld [vmem:[#allocation2 + $0x78] sm:$0xf]  ;;  %v4058_v29 = vld [vmem:[#allocation2 + $0x80] sm:$0x1] }
 0x142   : > { %5137 = vmatmul.mubr.bf16.gmra.mrb[96].mxu0 %v7123_v4  ;;  %v6020_v4 = vcombine.low %v4213_v23, %v4223_v13  ;;  %v4246_v20 = vrot.slane %v4244_v6, 5  ;;  %v5870_v42 = vrot.slane %v1573_v37, 9  ;;  %v1734_v43 = vrot.slane %v1574_v61, 5  ;;  %v4057_v6 = vld [vmem:[#allocation2 + $0x7c] sm:$0xf] }
 0x143   : > { %v4232_v25 = vrot.slane %v4231_v34, 4  ;;  %v4241_v44 = vor.u32 %v4240_v1, %v4236_v10  ;;  %v1728_v14 = vsel %vm7367_vm13, %v5869_v11, %v1727_v36  ;;  %v1729_v45 = vrot.slane %v1727_v36, 4  ;;  %v4547_v37 = vld [vmem:[#allocation2 + $0x24] sm:$0xe]  ;;  %v4548_v61 = vld [vmem:[#allocation2 + $0x28] sm:$0xf] }
 0x144   : > { %5144 = vmatprep.mubr.bf16.mxu0 %v6020_v4  ;;  %v1735_v49 = vsel %vm7367_vm13, %v5870_v42, %v1734_v43  ;;  %v1736_v54 = vrot.slane %v1734_v43, 4  ;;  %v1737_v55 = vrot.slane %v1575_v41, 5  ;;  %v4249_v56 = vshrl.u32 %v4053_v47, 16  ;;  %v4549_v43 = vld [vmem:[#allocation2 + $0x2c] sm:$0x1] }
 0x145   : > { %v4237_v58 = vsel %vm7388_vm14, %v4232_v25, %v4236_v10  ;;  %v4242_v51 = vrot.slane %v4241_v44, 4  ;;  %v1731_v59 = vsel %vm7367_vm13, %v1729_v45, %v1730_v40  ;;  %v4252_v63 = vshll.u32 %v4053_v47, 16  ;;  %v7129_v44 = vld [vmem:[#allocation2 + $0x6c] sm:$0xff]  }
 0x146   : > { %v5885_v0 = vcombine.low %v1728_v14, %v1731_v59  ;;  %v1738_v3 = vsel %vm7367_vm13, %v1736_v54, %v1737_v55  ;;  %v4251_v5 = vrot.slane %v4249_v56, 4  ;;  %v4258_v52 = vshll.u32 %v4054_v48, 16  ;;  %v4550_v55 = vld [vmem:[#allocation2 + $0x30] sm:$0xe] }
 0x147   : > { %v4247_v2 = vsel %vm7388_vm14, %v4242_v51, %v4246_v20  ;;  %v5886_v8 = vcombine.low %v1735_v49, %v1738_v3  ;;  %v4254_v23 = vrot.slane %v4252_v63, 5  ;;  %v4262_v38 = vshrl.u32 %v4054_v48, 16 }
 0x148   : > { %6778 = vmatmul.mubr.bf16.gmra.mrb[8].mxu1 %v5884_v33  ;;  %v6021_v15 = vcombine.low %v4237_v58, %v4247_v2  ;;  %v4260_v16 = vrot.slane %v4258_v52, 5  ;;  %v4268_v18 = vshll.u32 %v4055_v39, 16  ;;  %v4642_v10 = vrot.slane %v4545_v53, 5  ;;  %v4552_v52 = vld [vmem:[#allocation2 + $0x38] sm:$0x1] }
 0x149   : > { %6781 = vmatprep.mubr.bf16.mxu1 %v5885_v0  ;;  %v4255_v13 = vor.u32 %v4254_v23, %v4251_v5  ;;  %v4264_v22 = vrot.slane %v4262_v38, 4  ;;  %v4645_v9 = vrot.slane %v4546_v19, 5  ;;  %v4273_v31 = vshrl.u32 %v4056_v24, 16  ;;  %v4059_v2 = vld [vmem:[#allocation2 + $0x84] sm:$0xf] }
 0x14a   : > { %5145 = vmatmul.mubr.bf16.gmra.mrb[100].mxu0 %v7125_v12  ;;  %v4544_v12 = vld [vmem:[#allocation2 + $0x18] sm:$0xe]  ;;  %v4270_v7 = vrot.slane %v4268_v18, 5  ;;  %v8112_v11 = vadd.f32 %v6313_v50, %v8093_v28  ;;  %v4644_v36 = vrot.slane %v4642_v10, 4  ;;  %v4276_v40 = vshll.u32 %v4056_v24, 16 }
 0x14b   : > { %v6031_v21 = vrot.slane %v4544_v12, 9  ;;  %5152 = vmatprep.mubr.bf16.mxu0 %v6021_v15  ;;  %v4256_v33 = vrot.slane %v4255_v13, 4  ;;  %v4265_v34 = vor.u32 %v4264_v22, %v4260_v16  ;;  %v4275_v20 = vrot.slane %v4273_v31, 4  ;;  %v4060_v15 = vld [vmem:[#allocation2 + $0x88] sm:$0xf] }
 0x14c   : > { %v4282_v41 = vshll.u32 %v4057_v6, 16  ;;  %v4286_v42 = vshrl.u32 %v4057_v6, 16  ;;  %v4646_v14 = vsel %vm7367_vm13, %v4644_v36, %v4645_v9  ;;  %v4292_v45 = vshll.u32 %v4058_v29, 16  ;;  %v4554_v6 = vld [vmem:[#allocation2 + $0x40] sm:$0xf] }
 0x14d   : > { %v4643_v1 = vsel %vm7367_vm13, %v6031_v21, %v4642_v10  ;;  %v4261_v25 = vsel %vm7388_vm14, %v4256_v33, %v4260_v16  ;;  %v4266_v28 = vrot.slane %v4265_v34, 4  ;;  %v4278_v48 = vrot.slane %v4276_v40, 5  ;;  %v4061_v21 = vld [vmem:[#allocation2 + $0x8c] sm:$0x1] }
 0x14e   : > { %v6047_v47 = vcombine.low %v4643_v1, %v4646_v14  ;;  %v4284_v49 = vrot.slane %v4282_v41, 5  ;;  %v4288_v54 = vrot.slane %v4286_v42, 4  ;;  %v4294_v50 = vrot.slane %v4292_v45, 5  ;;  %v4555_v1 = vld [vmem:[#allocation2 + $0x44] sm:$0x1] }
 0x14f   : > { %v4271_v56 = vsel %vm7388_vm14, %v4266_v28, %v4270_v7  ;;  %v6032_v58 = vrot.slane %v4547_v37, 9  ;;  %v4649_v51 = vrot.slane %v4548_v61, 5  ;;  %v4279_v0 = vor.u32 %v4278_v48, %v4275_v20  ;;  %v4553_v7 = vld [vmem:[#allocation2 + $0x3c] sm:$0xe]  ;;  %v4556_v42 = vld [vmem:[#allocation2 + $0x48] sm:$0xe] }
 0x150   : > { %6782 = vmatmul.mubr.bf16.gmra.mrb[12].mxu1 %v5886_v8  ;;  %v6022_v63 = vcombine.low %v4261_v25, %v4271_v56  ;;  %v4289_v3 = vor.u32 %v4288_v54, %v4284_v49  ;;  %v4652_v5 = vrot.slane %v4549_v43, 5  ;;  %v6033_v12 = vrot.slane %v4550_v55, 9  ;;  %v7130_v61 = vld [vmem:[#allocation2 + $0x78] sm:$0xff]   ;;  %v4557_v14 = vld [vmem:[#allocation2 + $0x4c] sm:$0xf] }
 0x151   : > { %v8109_v4 = vpop.f32.mrb[12].mxu0  ;;  %6801 = vmatprep.mubr.bf16.mxu1 %v6047_v47  ;;  %v4650_v23 = vsel %vm7367_vm13, %v6032_v58, %v4649_v51  ;;  %v4651_v38 = vrot.slane %v4649_v51, 4  ;;  %v4280_v16 = vrot.slane %v4279_v0, 4  ;;  %v4659_v19 = vrot.slane %v4552_v52, 5  ;;  %v4558_v55 = vld [vmem:[#allocation2 + $0x50] sm:$0x1] }
 0x152   : > { %5153 = vmatmul.mubr.bf16.gmra.mrb[104].mxu0 %v7127_v62  ;;  %v6316_v39 = vpop.f32.mrb[13].mxu0  ;;  %v4551_v62 = vld [vmem:[#allocation2 + $0x34] sm:$0xf]  ;;  %v4290_v18 = vrot.slane %v4289_v3, 4  ;;  %v4297_v13 = vshrl.u32 %v4059_v2, 16  ;;  %v4300_v24 = vshll.u32 %v4059_v2, 16 }
 0x153   : > { %v6318_v59 = vpop.f32.mrb[14].mxu0  ;;  %v4656_v53 = vrot.slane %v4551_v62, 5  ;;  %5160 = vmatprep.mubr.bf16.mxu0 %v6022_v63  ;;  %v4653_v22 = vsel %vm7367_vm13, %v4651_v38, %v4652_v5  ;;  %v4285_v29 = vsel %vm7388_vm14, %v4280_v16, %v4284_v49  ;;  %v4306_v41 = vshll.u32 %v4060_v15, 16  ;;  %v4062_v63 = vld [vmem:[#allocation2 + $0x90] sm:$0xf] }
 0x154   : > { %v6319_v8 = vpop.f32.mrb[15].mxu0  ;;  %v4295_v31 = vsel %vm7388_vm14, %v4290_v18, %v4294_v50  ;;  %v6048_v33 = vcombine.low %v4650_v23, %v4653_v22  ;;  %v4299_v34 = vrot.slane %v4297_v13, 4  ;;  %v4302_v40 = vrot.slane %v4300_v24, 5  ;;  %v4063_v0 = vld [vmem:[#allocation2 + $0x94] sm:$0xf] }
 0x155   : > { %v4657_v10 = vsel %vm7367_vm13, %v6033_v12, %v4656_v53  ;;  %v4658_v9 = vrot.slane %v4656_v53, 4  ;;  %v6023_v37 = vcombine.low %v4285_v29, %v4295_v31  ;;  %v4310_v25 = vshrl.u32 %v4060_v15, 16  ;;  %v4064_v15 = vld [vmem:[#allocation2 + $0x98] sm:$0x1]  ;;  %v4561_v31 = vld [vmem:[#allocation2 + $0x5c] sm:$0x1] }
 0x156   : > { %v4316_v28 = vshll.u32 %v4061_v21, 16  ;;  %v4303_v47 = vor.u32 %v4302_v40, %v4299_v34  ;;  %v4308_v48 = vrot.slane %v4306_v41, 5  ;;  %v4663_v49 = vrot.slane %v4554_v6, 5  ;;  %v4560_v21 = vld [vmem:[#allocation2 + $0x58] sm:$0xf]  ;;  %v7131_v34 = vld [vmem:[#allocation2 + $0x84] sm:$0xff]  }
 0x157   : > { %v4660_v20 = vsel %vm7367_vm13, %v4658_v9, %v4659_v19  ;;  %v4666_v54 = vrot.slane %v4555_v1, 5  ;;  %v4312_v50 = vrot.slane %v4310_v25, 4  ;;  %v8137_v51 = vadd.f32 %v6316_v39, %v8109_v4  ;;  %v4559_v19 = vld [vmem:[#allocation2 + $0x54] sm:$0xe]  ;;  %v4562_v25 = vld [vmem:[#allocation2 + $0x60] sm:$0xe] }
 0x158   : > { %6802 = vmatmul.mubr.bf16.vlgmr.msra.gmra.mrb[80].mxu1 %v6048_v33  ;;  %v6049_v43 = vcombine.low %v4657_v10, %v4660_v20  ;;  %v4318_v58 = vrot.slane %v4316_v28, 5  ;;  %v8139_v62 = vadd.f32 %v6319_v8, %v6318_v59  ;;  %v4304_v3 = vrot.slane %v4303_v47, 4  ;;  %v4563_v28 = vld [vmem:[#allocation2 + $0x64] sm:$0xf] }
 0x159   : > { %v4665_v52 = vrot.slane %v4663_v49, 4  ;;  %v6035_v2 = vrot.slane %v4556_v42, 9  ;;  %v4313_v38 = vor.u32 %v4312_v50, %v4308_v48  ;;  %v4670_v12 = vrot.slane %v4557_v14, 5 }
 0x15a   : > { %5161 = vmatmul.mubr.bf16.gmra.mrb[108].mxu0 %v7129_v44  ;;  %v8132_v36 = vpop.f32.mrb[16].mxu1  ;;  %v6034_v44 = vrot.slane %v4553_v7, 9  ;;  %6805 = vmatprep.mubr.bf16.mxu1 %v6049_v43  ;;  %v4673_v53 = vrot.slane %v4558_v55, 5  ;;  %v4321_v16 = vshrl.u32 %v4062_v63, 16  ;;  %v4309_v4 = vsel %vm7388_vm14, %v4304_v3, %v4308_v48  ;;  %v4065_v3 = vld [vmem:[#allocation2 + $0x9c] sm:$0xf] }
 0x15b   : > { %v6434_v45 = vpop.f32.mrb[17].mxu1  ;;  %5168 = vmatprep.mubr.bf16.mxu0 %v6023_v37  ;;  %v4667_v39 = vsel %vm7367_vm13, %v4665_v52, %v4666_v54  ;;  %v4324_v59 = vshll.u32 %v4062_v63, 16  ;;  %v4330_v8 = vshll.u32 %v4063_v0, 16  ;;  %v4314_v13 = vrot.slane %v4313_v38, 4  ;;  %v4564_v54 = vld [vmem:[#allocation2 + $0x68] sm:$0x1] }
 0x15c   : > { %v6436_v56 = vpop.f32.mrb[18].mxu1  ;;  %v4664_v5 = vsel %vm7367_vm13, %v6034_v44, %v4663_v49  ;;  %v4671_v10 = vsel %vm7367_vm13, %v6035_v2, %v4670_v12  ;;  %v4672_v9 = vrot.slane %v4670_v12, 4  ;;  %v4323_v24 = vrot.slane %v4321_v16, 4  ;;  %v4067_v12 = vld [vmem:[#allocation2 + $0xa4] sm:$0x1] }
 0x15d   : > { %v6437_v23 = vpop.f32.mrb[19].mxu1  ;;  %v6050_v22 = vcombine.low %v4664_v5, %v4667_v39  ;;  %v4326_v7 = vrot.slane %v4324_v59, 5  ;;  %v4332_v6 = vrot.slane %v4330_v8, 5  ;;  %v4334_v29 = vshrl.u32 %v4063_v0, 16  ;;  %v4066_v5 = vld [vmem:[#allocation2 + $0xa0] sm:$0xf] }
 0x15e   : > { %v4319_v33 = vsel %vm7388_vm14, %v4314_v13, %v4318_v58  ;;  %v4674_v1 = vsel %vm7367_vm13, %v4672_v9, %v4673_v53  ;;  %v4340_v37 = vshll.u32 %v4064_v15, 16  ;;  %v4677_v14 = vrot.slane %v4560_v21, 5 }
 0x15f   : > { %v6024_v20 = vcombine.low %v4309_v4, %v4319_v33  ;;  %v6051_v40 = vcombine.low %v4671_v10, %v4674_v1  ;;  %v4327_v41 = vor.u32 %v4326_v7, %v4323_v24  ;;  %v4336_v42 = vrot.slane %v4334_v29, 4  ;;  %v4567_v24 = vld [vmem:[#allocation2 + $0x74] sm:$0x1] }
 0x160   : > { %6806 = vmatmul.mubr.bf16.gmra.mrb[84].mxu1 %v6050_v22  ;;  %v4342_v44 = vrot.slane %v4340_v37, 5  ;;  %v4680_v47 = vrot.slane %v4561_v31, 5  ;;  %v8156_v48 = vadd.f32 %v6434_v45, %v8132_v36  ;;  %v8160_v0 = vadd.f32 %v6437_v23, %v6436_v56  ;;  %v4565_v56 = vld [vmem:[#allocation2 + $0x6c] sm:$0xe]  ;;  %v7132_v29 = vld [vmem:[#allocation2 + $0x90] sm:$0xff]  }
 0x161   : > { %6809 = vmatprep.mubr.bf16.mxu1 %v6051_v40  ;;  %v4328_v55 = vrot.slane %v4327_v41, 4  ;;  %v4337_v50 = vor.u32 %v4336_v42, %v4332_v6  ;;  %v4679_v2 = vrot.slane %v4677_v14, 4  ;;  %v6037_v36 = vrot.slane %v4562_v25, 9  ;;  %v4568_v37 = vld [vmem:[#allocation2 + $0x78] sm:$0xe] }
 0x162   : > { %v8143_v18 = vpop.f32.mrb[20].mxu1  ;;  %5169 = vmatmul.mubr.bf16.gmra.mrb[112].mxu0 %v7130_v61  ;;  %v6036_v61 = vrot.slane %v4559_v19, 9  ;;  %v4684_v45 = vrot.slane %v4563_v28, 5  ;;  %v4687_v4 = vrot.slane %v4564_v54, 5  ;;  %v4345_v8 = vshrl.u32 %v4065_v3, 16 }
 0x163   : > { %5176 = vmatprep.mubr.bf16.mxu0 %v6024_v20  ;;  %v4333_v53 = vsel %vm7388_vm14, %v4328_v55, %v4332_v6  ;;  %v4338_v15 = vrot.slane %v4337_v50, 4  ;;  %v4681_v23 = vsel %vm7367_vm13, %v4679_v2, %v4680_v47  ;;  %v4566_v19 = vld [vmem:[#allocation2 + $0x70] sm:$0xf]  ;;  %v6440_v21 = vpop.f32.mrb[21].mxu1  ;;  %v4348_v10 = vshll.u32 %v4065_v3, 16 }
 0x164   : > { %v4678_v52 = vsel %vm7367_vm13, %v6036_v61, %v4677_v14  ;;  %v4685_v39 = vsel %vm7367_vm13, %v6037_v36, %v4684_v45  ;;  %v4686_v59 = vrot.slane %v4684_v45, 4  ;;  %v4354_v9 = vshll.u32 %v4066_v5, 16  ;;  %v6442_v7 = vpop.f32.mrb[22].mxu1  ;;  %v4569_v42 = vld [vmem:[#allocation2 + $0x7c] sm:$0xf] }
 0x165   : > { %v4343_v13 = vsel %vm7388_vm14, %v4338_v15, %v4342_v44  ;;  %v6052_v22 = vcombine.low %v4678_v52, %v4681_v23  ;;  %v4347_v33 = vrot.slane %v4345_v8, 4  ;;  %v6443_v1 = vpop.f32.mrb[23].mxu1  ;;  %v4350_v20 = vrot.slane %v4348_v10, 5  ;;  %v4570_v47 = vld [vmem:[#allocation2 + $0x80] sm:$0x1] }
 0x166   : > { %v6025_v6 = vcombine.low %v4333_v53, %v4343_v13  ;;  %v4688_v31 = vsel %vm7367_vm13, %v4686_v59, %v4687_v4  ;;  %v4356_v40 = vrot.slane %v4354_v9, 5  ;;  %v4364_v41 = vshll.u32 %v4067_v12, 16  ;;  %v4068_v3 = vld [vmem:[#allocation2 + $0xa8] sm:$0xf]  ;;  %v4069_v45 = vld [vmem:[#allocation2 + $0xac] sm:$0xf] }
 0x167   : > { %v6321_v43 = vpop.f32.mrb[16].mxu0  ;;  %v6053_v61 = vcombine.low %v4685_v39, %v4688_v31  ;;  %v6038_v28 = vrot.slane %v4565_v56, 9  ;;  %v4691_v44 = vrot.slane %v4566_v19, 5  ;;  %v4694_v14 = vrot.slane %v4567_v24, 5  ;;  %v4070_v12 = vld [vmem:[#allocation2 + $0xb0] sm:$0x1] }
 0x168   : > { %v6322_v49 = vpop.f32.mrb[17].mxu0  ;;  %6810 = vmatmul.mubr.bf16.gmra.mrb[88].mxu1 %v6052_v22  ;;  %v4366_v54 = vrot.slane %v4364_v41, 5  ;;  %v8179_v50 = vadd.f32 %v6440_v21, %v8143_v18  ;;  %v6039_v36 = vrot.slane %v4568_v37, 9  ;;  %v4698_v18 = vrot.slane %v4569_v42, 5  ;;  %v4571_v39 = vld [vmem:[#allocation2 + $0x84] sm:$0xe] }
 0x169   : > { %v8158_v58 = vadd.f32 %v6322_v49, %v6321_v43  ;;  %v6324_v63 = vpop.f32.mrb[18].mxu0  ;;  %6813 = vmatprep.mubr.bf16.mxu1 %v6053_v61  ;;  %v4351_v49 = vor.u32 %v4350_v20, %v4347_v33  ;;  %v4692_v52 = vsel %vm7367_vm13, %v6038_v28, %v4691_v44  ;;  %v4693_v2 = vrot.slane %v4691_v44, 4  ;;  %v7133_v61 = vld [vmem:[#allocation2 + $0x9c] sm:$0xff]   ;;  %v4573_v42 = vld [vmem:[#allocation2 + $0x8c] sm:$0x1] }
 0x16a   : > { %v6325_v38 = vpop.f32.mrb[19].mxu0  ;;  %5177 = vmatmul.mubr.bf16.gmra.mrb[116].mxu0 %v7131_v34  ;;  %v4358_v34 = vshrl.u32 %v4066_v5, 16  ;;  %v4701_v23 = vrot.slane %v4570_v47, 5  ;;  %v4369_v21 = vshrl.u32 %v4068_v3, 16  ;;  %v4372_v13 = vshll.u32 %v4068_v3, 16 }
 0x16b   : > { %v8166_v16 = vadd.f32 %v6325_v38, %v6324_v63  ;;  %5184 = vmatprep.mubr.bf16.mxu0 %v6025_v6  ;;  %v8181_v63 = vadd.f32 %v6443_v1, %v6442_v7  ;;  %v4352_v15 = vrot.slane %v4351_v49, 4  ;;  %v4695_v8 = vsel %vm7367_vm13, %v4693_v2, %v4694_v14  ;;  %v4572_v7 = vld [vmem:[#allocation2 + $0x88] sm:$0xf]  ;;  %v4574_v47 = vld [vmem:[#allocation2 + $0x90] sm:$0xe] }
 0x16c   : > { %v8176_v43 = vpop.f32.mrb[24].mxu1  ;;  %v4360_v25 = vrot.slane %v4358_v34, 4  ;;  %v6054_v10 = vcombine.low %v4692_v52, %v4695_v8  ;;  %v4699_v24 = vsel %vm7367_vm13, %v6039_v36, %v4698_v18  ;;  %v4700_v31 = vrot.slane %v4698_v18, 4  ;;  %v4575_v49 = vld [vmem:[#allocation2 + $0x94] sm:$0xf] }
 0x16d   : > { %v6446_v53 = vpop.f32.mrb[25].mxu1  ;;  %v4357_v22 = vsel %vm7388_vm14, %v4352_v15, %v4356_v40  ;;  %v4371_v33 = vrot.slane %v4369_v21, 4  ;;  %v4374_v34 = vrot.slane %v4372_v13, 5  ;;  %v4378_v20 = vshll.u32 %v4069_v45, 16  ;;  %v4576_v52 = vld [vmem:[#allocation2 + $0x98] sm:$0x1] }
 0x16e   : > { %v4361_v5 = vor.u32 %v4360_v25, %v4356_v40  ;;  %v6448_v6 = vpop.f32.mrb[26].mxu1  ;;  %v4382_v40 = vshrl.u32 %v4069_v45, 16  ;;  %v4388_v41 = vshll.u32 %v4070_v12, 16  ;;  %v4702_v25 = vsel %vm7367_vm13, %v4700_v31, %v4701_v23  ;;  %v4071_v15 = vld [vmem:[#allocation2 + $0xb4] sm:$0xf] }
 0x16f   : > { %v6449_v1 = vpop.f32.mrb[27].mxu1  ;;  %v4375_v28 = vor.u32 %v4374_v34, %v4371_v33  ;;  %v6040_v44 = vrot.slane %v4571_v39, 9  ;;  %v4705_v14 = vrot.slane %v4572_v7, 5  ;;  %v4708_v12 = vrot.slane %v4573_v42, 5  ;;  %v4072_v8 = vld [vmem:[#allocation2 + $0xb8] sm:$0xf] }
 0x170   : > { %v4362_v59 = vrot.slane %v4361_v5, 4  ;;  %6814 = vmatmul.mubr.bf16.gmra.mrb[92].mxu1 %v6054_v10  ;;  %v4384_v3 = vrot.slane %v4382_v40, 4  ;;  %v4390_v5 = vrot.slane %v4388_v41, 5  ;;  %v8204_v23 = vadd.f32 %v6446_v53, %v8176_v43  ;;  %v4577_v53 = vld [vmem:[#allocation2 + $0x9c] sm:$0xe]  ;;  %v7134_v42 = vld [vmem:[#allocation2 + $0xa8] sm:$0xff]  }
 0x171   : > { %v6327_v55 = vpop.f32.mrb[20].mxu0  ;;  %v4706_v36 = vsel %vm7367_vm13, %v6040_v44, %v4705_v14  ;;  %v4707_v45 = vrot.slane %v4705_v14, 4  ;;  %v8206_v39 = vadd.f32 %v6449_v1, %v6448_v6  ;;  %v4715_v10 = vrot.slane %v4576_v52, 5  ;;  %v4578_v40 = vld [vmem:[#allocation2 + $0xa0] sm:$0xf] }
 0x172   : > { %v6328_v38 = vpop.f32.mrb[21].mxu0  ;;  %5185 = vmatmul.mubr.bf16.gmra.mrb[120].mxu0 %v7132_v29  ;;  %v4367_v29 = vsel %vm7388_vm14, %v4362_v59, %v4366_v54  ;;  %v6055_v54 = vcombine.low %v4699_v24, %v4702_v25  ;;  %v6041_v59 = vrot.slane %v4574_v47, 9  ;;  %v4073_v24 = vld [vmem:[#allocation2 + $0xbc] sm:$0x1]  ;;  %v4393_v33 = vshrl.u32 %v4071_v15, 16 }
 0x173   : > { %v8185_v4 = vadd.f32 %v6328_v38, %v6327_v55  ;;  %v6330_v56 = vpop.f32.mrb[22].mxu0  ;;  %v6026_v37 = vcombine.low %v4357_v22, %v4367_v29  ;;  %v4380_v55 = vrot.slane %v4378_v20, 5  ;;  %v4376_v38 = vrot.slane %v4375_v28, 4  ;;  %v4579_v47 = vld [vmem:[#allocation2 + $0xa4] sm:$0x1] }
 0x174   : > { %v6331_v19 = vpop.f32.mrb[23].mxu0  ;;  %6817 = vmatprep.mubr.bf16.mxu1 %v6055_v54  ;;  %v4709_v13 = vsel %vm7367_vm13, %v4707_v45, %v4708_v12  ;;  %v4712_v22 = vrot.slane %v4575_v49, 5  ;;  %v4396_v43 = vshll.u32 %v4071_v15, 16  ;;  %v4406_v20 = vshrl.u32 %v4072_v8, 16  ;;  %v4581_v15 = vld [vmem:[#allocation2 + $0xac] sm:$0xf] }
 0x175   : > { %v8191_v9 = vadd.f32 %v6331_v19, %v6330_v56  ;;  %5192 = vmatprep.mubr.bf16.mxu0 %v6026_v37  ;;  %v4385_v18 = vor.u32 %v4384_v3, %v4380_v55  ;;  %v4381_v21 = vsel %vm7388_vm14, %v4376_v38, %v4380_v55  ;;  %v6056_v29 = vcombine.low %v4706_v36, %v4709_v13  ;;  %v4580_v38 = vld [vmem:[#allocation2 + $0xa8] sm:$0xe] }
 0x176   : > { %v4713_v1 = vsel %vm7367_vm13, %v6041_v59, %v4712_v22  ;;  %v4714_v37 = vrot.slane %v4712_v22, 4  ;;  %v4395_v44 = vrot.slane %v4393_v33, 4  ;;  %v4398_v14 = vrot.slane %v4396_v43, 5  ;;  %v4075_v33 = vld [vmem:[#allocation2 + $0xc4] sm:$0xf] }
 0x177   : > { %v8199_v2 = vpop.f32.mrb[28].mxu1  ;;  %v4386_v7 = vrot.slane %v4385_v18, 4  ;;  %v4408_v52 = vrot.slane %v4406_v20, 4  ;;  %v4412_v12 = vshll.u32 %v4073_v24, 16  ;;  %v4582_v18 = vld [vmem:[#allocation2 + $0xb0] sm:$0x1] }
 0x178   : > { %v6452_v56 = vpop.f32.mrb[29].mxu1  ;;  %6818 = vmatmul.mubr.bf16.gmra.mrb[0].mxu1 %v6056_v29  ;;  %v4716_v55 = vsel %vm7367_vm13, %v4714_v37, %v4715_v10  ;;  %v4719_v13 = vrot.slane %v4578_v40, 5  ;;  %v4722_v22 = vrot.slane %v4579_v47, 5  ;;  %v4583_v37 = vld [vmem:[#allocation2 + $0xb4] sm:$0xe] }
 0x179   : > { %v6454_v19 = vpop.f32.mrb[30].mxu1  ;;  %v4391_v41 = vsel %vm7388_vm14, %v4386_v7, %v4390_v5  ;;  %v6057_v45 = vcombine.low %v4713_v1, %v4716_v55  ;;  %v4399_v5 = vor.u32 %v4398_v14, %v4395_v44  ;;  %v4414_v10 = vrot.slane %v4412_v12, 5 }
 0x17a   : > { %5193 = vmatmul.mubr.bf16.gmra.mrb[124].mxu0 %v7133_v61  ;;  %v6455_v6 = vpop.f32.mrb[31].mxu1  ;;  %v4402_v61 = vshll.u32 %v4072_v8, 16  ;;  %v6027_v49 = vcombine.low %v4381_v21, %v4391_v41  ;;  %v6042_v8 = vrot.slane %v4577_v53, 9  ;;  %v4074_v21 = vld [vmem:[#allocation2 + $0xc0] sm:$0xf]  ;;  %v8223_v29 = vadd.f32 %v6452_v56, %v8199_v2 }
 0x17b   : > { %6821 = vmatprep.mubr.bf16.mxu1 %v6057_v45  ;;  %v4400_v7 = vrot.slane %v4399_v5, 4  ;;  %v6043_v1 = vrot.slane %v4580_v38, 9  ;;  %v4076_v53 = vld [vmem:[#allocation2 + $0xc8] sm:$0x1]  ;;  %v4726_v41 = vrot.slane %v4581_v15, 5  ;;  %v4417_v2 = vshrl.u32 %v4074_v21, 16 }
 0x17c   : > { %v4404_v3 = vrot.slane %v4402_v61, 5  ;;  %5200 = vmatprep.mubr.bf16.mxu0 %v6027_v49  ;;  %v4720_v24 = vsel %vm7367_vm13, %v6042_v8, %v4719_v13  ;;  %v4584_v61 = vld [vmem:[#allocation2 + $0xb8] sm:$0xf]  ;;  %v4426_v44 = vshll.u32 %v4075_v33, 16  ;;  %v4430_v15 = vshrl.u32 %v4075_v33, 16 }
 0x17d   : > { %v6333_v31 = vpop.f32.mrb[24].mxu0  ;;  %v4727_v55 = vsel %vm7367_vm13, %v6043_v1, %v4726_v41  ;;  %v4419_v45 = vrot.slane %v4417_v2, 4  ;;  %v4436_v8 = vshll.u32 %v4076_v53, 16  ;;  %v293_v1 = vld [vmem:[#allocation2 + $0xcc] sm:$0x1] }
 0x17e   : > { %v6334_v34 = vpop.f32.mrb[25].mxu0  ;;  %v4409_v59 = vor.u32 %v4408_v52, %v4404_v3  ;;  %v4405_v40 = vsel %vm7388_vm14, %v4400_v7, %v4404_v3  ;;  %v4728_v3 = vrot.slane %v4726_v41, 4  ;;  %v4585_v52 = vld [vmem:[#allocation2 + $0xbc] sm:$0x1]  ;;  %v4428_v12 = vrot.slane %v4426_v44, 5 }
 0x17f   : > { %v8216_v25 = vadd.f32 %v6334_v34, %v6333_v31  ;;  %v6336_v28 = vpop.f32.mrb[26].mxu0  ;;  %v8225_v31 = vadd.f32 %v6455_v6, %v6454_v19  ;;  %v4721_v34 = vrot.slane %v4719_v13, 4  ;;  %v6044_v13 = vrot.slane %v4583_v37, 9 }
 0x180   : > { %v6337_v54 = vpop.f32.mrb[27].mxu0  ;;  %v4410_v43 = vrot.slane %v4409_v59, 4 }
 0x181   : > { %v8220_v36 = vadd.f32 %v6337_v54, %v6336_v28  ;;  %v4723_v6 = vsel %vm7367_vm13, %v4721_v34, %v4722_v22  ;;  %v4420_v28 = vshll.u32 %v4074_v21, 16  ;;  %v7135_v54 = vld [vmem:[#allocation2 + $0xb4] sm:$0xff]   ;;  %v4733_v22 = vrot.slane %v4584_v61, 5  ;;  %v4587_v21 = vld [vmem:[#allocation2 + $0xc4] sm:$0xf] }
 0x182   : > { %5201 = vmatmul.mubr.bf16.gmra.mrb[128].mxu0 %v7134_v42  ;;  %v4729_v42 = vrot.slane %v4582_v18, 5  ;;  %v4415_v19 = vsel %vm7388_vm14, %v4410_v43, %v4414_v10  ;;  %v6058_v49 = vcombine.low %v4720_v24, %v4723_v6  ;;  %v4586_v18 = vld [vmem:[#allocation2 + $0xc0] sm:$0xe]  ;;  %v4432_v43 = vrot.slane %v4430_v15, 4  ;;  %v4588_v34 = vld [vmem:[#allocation2 + $0xc8] sm:$0x1] }
 0x183   : > { %v6457_v20 = vpop.f32.mrb[32].mxu1  ;;  %v6028_v47 = vcombine.low %v4405_v40, %v4415_v19  ;;  %v4422_v5 = vrot.slane %v4420_v28, 5  ;;  %v4736_v24 = vrot.slane %v4585_v52, 5  ;;  %v4438_v40 = vrot.slane %v4436_v8, 5  ;;  %v349_v19 = vld [vmem:[#allocation2 + $0xd4] sm:$0x1] }
 0x184   : > { %v6458_v56 = vpop.f32.mrb[33].mxu1  ;;  %6822 = vmatmul.mubr.bf16.gmra.mrb[4].mxu1 %v6058_v49  ;;  %v4730_v59 = vsel %vm7367_vm13, %v4728_v3, %v4729_v42  ;;  %v4734_v33 = vsel %vm7367_vm13, %v6044_v13, %v4733_v22  ;;  %v4735_v41 = vrot.slane %v4733_v22, 4  ;;  %v4433_v37 = vor.u32 %v4432_v43, %v4428_v12  ;;  %v4078_v6 = vld [vmem:[#allocation2 + $0xd0] sm:$0xf]  ;;  %v4589_v8 = vld [vmem:[#allocation2 + $0xcc] sm:$0xe] }
 0x185   : > { %v6460_v14 = vpop.f32.mrb[34].mxu1  ;;  %5208 = vmatprep.mubr.bf16.mxu0 %v6028_v47  ;;  %v6059_v7 = vcombine.low %v4727_v55, %v4730_v59  ;;  %v4423_v10 = vor.u32 %v4422_v5, %v4419_v45  ;;  %v8241_v2 = vadd.f32 %v6458_v56, %v6457_v20  ;;  %v6045_v42 = vrot.slane %v4586_v18, 9  ;;  %v7136_v59 = vld [vmem:[#allocation2 + $0xc0] sm:$0xff]  }
 0x186   : > { %v6461_v38 = vpop.f32.mrb[35].mxu1  ;;  %v4737_v28 = vsel %vm7367_vm13, %v4735_v41, %v4736_v24  ;;  %v4740_v44 = vrot.slane %v4587_v21, 5  ;;  %v4743_v47 = vrot.slane %v4588_v34, 5  ;;  %v294_v49 = vsel %vm7289_vm2, 0, %v293_v1 }
 0x187   : > { %6825 = vmatprep.mubr.bf16.mxu1 %v6059_v7  ;;  %v4424_v53 = vrot.slane %v4423_v10, 4  ;;  %v8243_v61 = vadd.f32 %v6461_v38, %v6460_v14  ;;  %v4434_v56 = vrot.slane %v4433_v37, 4  ;;  %v6060_v3 = vcombine.low %v4734_v33, %v4737_v28  ;;  %295 = vst [vmem:[#allocation2 + $0xcc] sm:$0x1] %v294_v49 }
 0x188   : > { %v350_v14 = vsel %vm7297_vm4, 0, %v349_v19  ;;  %v4741_v38 = vsel %vm7367_vm13, %v6045_v42, %v4740_v44  ;;  %v4742_v45 = vrot.slane %v4740_v44, 4  ;;  %v4450_v5 = vshll.u32 %v4078_v6, 16 }
 0x189   : > { %v4429_v20 = vsel %vm7388_vm14, %v4424_v53, %v4428_v12  ;;  %351 = vst [vmem:[#allocation2 + $0xd4] sm:$0x1] %v350_v14  ;;  %v4454_v27 = vshrl.u32 %v4078_v6, 16  ;;  %v4439_v12 = vsel %vm7388_vm14, %v4434_v56, %v4438_v40  ;;  %v6046_v33 = vrot.slane %v4589_v8, 9 }
 0x18a   : > { %5209 = vmatmul.mubr.bf16.gmra.mrb[132].mxu0 %v7135_v54  ;;  %v4590_v54 = vld [vmem:[#allocation2 + $0xd0] sm:$0xf]  ;;  %v6029_v32 = vcombine.low %v4429_v20, %v4439_v12  ;;  %v4744_v21 = vsel %vm7367_vm13, %v4742_v45, %v4743_v47  ;;  %v4452_v7 = vrot.slane %v4450_v5, 5 }
 0x18b   : > { %v4747_v13 = vrot.slane %v4590_v54, 5  ;;  %v4456_v10 = vrot.slane %v4454_v27, 4  ;;  %v6061_v24 = vcombine.low %v4741_v38, %v4744_v21 }
 0x18c   : > { %6826 = vmatmul.mubr.bf16.gmra.mrb[8].mxu1 %v6060_v3  ;;  %5216 = vmatprep.mubr.bf16.mxu0 %v6029_v32 }
 0x18d   : > { %v6339_v55 = vpop.f32.mrb[28].mxu0  ;;  %v4457_v1 = vor.u32 %v4456_v10, %v4452_v7  ;;  %6829 = vmatprep.mubr.bf16.mxu1 %v6061_v24  ;;  %v4749_v37 = vrot.slane %v4747_v13, 4  ;;  %v4748_v56 = vsel %vm7367_vm13, %v6046_v33, %v4747_v13 }
 0x18e   : > { %v6340_v52 = vpop.f32.mrb[29].mxu0  ;;  %v4077_v53 = vld [vmem:[#allocation2 + $0xcc] sm:$0xf] }
 0x18f   : > { %v8255_v15 = vadd.f32 %v6340_v52, %v6339_v55  ;;  %v6342_v18 = vpop.f32.mrb[30].mxu0  ;;  %v4441_v28 = vshrl.u32 %v4077_v53, 16  ;;  %v4444_v44 = vshll.u32 %v4077_v53, 16  ;;  %v4458_v54 = vrot.slane %v4457_v1, 4 }
 0x190   : > { %v6343_v22 = vpop.f32.mrb[31].mxu0  ;;  %v6463_v34 = vpop.f32.mrb[36].mxu1  ;;  %v4079_v6 = vld [vmem:[#allocation2 + $0xd4] sm:$0x1] }
 0x191   : > { %v8261_v43 = vadd.f32 %v6343_v22, %v6342_v18  ;;  %v6464_v41 = vpop.f32.mrb[37].mxu1  ;;  %v4460_v55 = vshll.u32 %v4079_v6, 16  ;;  %v4591_v20 = vld [vmem:[#allocation2 + $0xd4] sm:$0x1]  ;;  %v4443_v38 = vrot.slane %v4441_v28, 4  ;;  %v4446_v45 = vrot.slane %v4444_v44, 5 }
 0x192   : > { %5217 = vmatmul.mubr.bf16.gmra.mrb[136].mxu0 %v7136_v59  ;;  %v8263_v40 = vadd.f32 %v6464_v41, %v6463_v34  ;;  %v6466_v19 = vpop.f32.mrb[38].mxu1  ;;  %v4750_v5 = vrot.slane %v4591_v20, 5  ;;  %v7137_v41 = vld [vmem:[#allocation2 + $0xcc] sm:$0xff]  }
 0x193   : > { %v6467_v47 = vpop.f32.mrb[39].mxu1  ;;  %v4462_v18 = vrot.slane %v4460_v55, 5  ;;  %v4447_v59 = vor.u32 %v4446_v45, %v4443_v38 }
 0x194   : > { %v8267_v3 = vadd.f32 %v6467_v47, %v6466_v19  ;;  %v4751_v8 = vsel %vm7367_vm13, %v4749_v37, %v4750_v5 }
 0x195   : > { %v6345_v42 = vpop.f32.mrb[32].mxu0  ;;  %v6062_v32 = vcombine.low %v4748_v56, %v4751_v8  ;;  %v4448_v10 = vrot.slane %v4447_v59, 4  ;;  %v4463_v13 = vsel %vm7388_vm14, %v4458_v54, %v4462_v18 }
 0x196   : > { %v6346_v49 = vpop.f32.mrb[33].mxu0 }
 0x197   : > { %v6347_v14 = vadd.f32 %v6346_v49, %v6345_v42  ;;  %v6348_v52 = vpop.f32.mrb[34].mxu0  ;;  %6830 = vmatmul.mubr.bf16.gmra.mrb[12].mxu1 %v6062_v32  ;;  %v4453_v33 = vsel %vm7388_vm14, %v4448_v10, %v4452_v7 }
 0x198   : > { %v6349_v27 = vpop.f32.mrb[35].mxu0  ;;  %v6469_v22 = vpop.f32.mrb[40].mxu1  ;;  %v6030_v60 = vcombine.low %v4453_v33, %v4463_v13 }
 0x199   : > { %v6350_v12 = vadd.f32 %v6349_v27, %v6348_v52  ;;  %v6470_v21 = vpop.f32.mrb[41].mxu1 }
 0x19a   : > { %v8273_v24 = vadd.f32 %v6470_v21, %v6469_v22  ;;  %v6472_v34 = vpop.f32.mrb[42].mxu1  ;;  %5224 = vmatprep.mubr.bf16.mxu0 %v6030_v60 }
 0x19b   : > { %v6473_v1 = vpop.f32.mrb[43].mxu1  ;;  %5225 = vmatmul.mubr.bf16.gmra.mrb[140].mxu0 %v7137_v41 }
 0x19c   : > { %v8277_v53 = vadd.f32 %v6473_v1, %v6472_v34 }
 0x19d   : > { %v6351_v19 = vpop.f32.mrb[36].mxu0 }
 0x19e   : > { %v6352_v37 = vpop.f32.mrb[37].mxu0 }
 0x19f   : > { %v6353_v42 = vadd.f32 %v6352_v37, %v6351_v19  ;;  %v6354_v6 = vpop.f32.mrb[38].mxu0 }
 0x1a0   : > { %v6355_v28 = vpop.f32.mrb[39].mxu0 }
 0x1a1   : > { %v6356_v44 = vadd.f32 %v6355_v28, %v6354_v6  ;;  %v6475_v47 = vpop.f32.mrb[44].mxu1 }
 0x1a2   : > { %v6476_v49 = vpop.f32.mrb[45].mxu1 }
 0x1a3   : > { %v8279_v54 = vadd.f32 %v6476_v49, %v6475_v47  ;;  %v6478_v55 = vpop.f32.mrb[46].mxu1 }
 0x1a4   : > { %v6479_v46 = vpop.f32.mrb[47].mxu1 }
 0x1a5   : > { %v6357_v20 = vpop.f32.mrb[40].mxu0  ;;  %v8281_v56 = vadd.f32 %v6479_v46, %v6478_v55 }
 0x1a6   : > { %v6358_v7 = vpop.f32.mrb[41].mxu0 }
 0x1a7   : > { %v6359_v52 = vadd.f32 %v6358_v7, %v6357_v20  ;;  %v6360_v38 = vpop.f32.mrb[42].mxu0 }
 0x1a8   : > { %v6361_v45 = vpop.f32.mrb[43].mxu0 }
 0x1a9   : > { %v6362_v5 = vadd.f32 %v6361_v45, %v6360_v38  ;;  %v6481_v27 = vpop.f32.mrb[48].mxu1 }
 0x1aa   : > { %v6482_v18 = vpop.f32.mrb[49].mxu1 }
 0x1ab   : > { %v6483_v59 = vadd.f32 %v6482_v18, %v6481_v27  ;;  %v6484_v8 = vpop.f32.mrb[50].mxu1 }
 0x1ac   : > { %v6485_v32 = vpop.f32.mrb[51].mxu1 }
 0x1ad   : > { %v6363_v22 = vpop.f32.mrb[44].mxu0  ;;  %v8283_v10 = vadd.f32 %v6483_v59, %v6347_v14  ;;  %v6486_v13 = vadd.f32 %v6485_v32, %v6484_v8 }
 0x1ae   : > { %v6364_v21 = vpop.f32.mrb[45].mxu0 }
 0x1af   : > { %v6365_v34 = vadd.f32 %v6364_v21, %v6363_v22  ;;  %v6366_v1 = vpop.f32.mrb[46].mxu0  ;;  %v8285_v41 = vadd.f32 %v6486_v13, %v6350_v12 }
 0x1b0   : > { %v6367_v33 = vpop.f32.mrb[47].mxu0 }
 0x1b1   : > { %v6368_v19 = vadd.f32 %v6367_v33, %v6366_v1  ;;  %v6487_v60 = vpop.f32.mrb[52].mxu1 }
 0x1b2   : > { %v6488_v37 = vpop.f32.mrb[53].mxu1 }
 0x1b3   : > { %v6489_v6 = vadd.f32 %v6488_v37, %v6487_v60  ;;  %v6490_v28 = vpop.f32.mrb[54].mxu1 }
 0x1b4   : > { %v6491_v49 = vpop.f32.mrb[55].mxu1 }
 0x1b5   : > { %v6369_v47 = vpop.f32.mrb[48].mxu0  ;;  %v8287_v20 = vadd.f32 %v6489_v6, %v6353_v42  ;;  %v6492_v46 = vadd.f32 %v6491_v49, %v6490_v28 }
 0x1b6   : > { %v6370_v55 = vpop.f32.mrb[49].mxu0 }
 0x1b7   : > { %v6371_v7 = vadd.f32 %v6370_v55, %v6369_v47  ;;  %v6372_v14 = vpop.f32.mrb[50].mxu0  ;;  %v8289_v45 = vadd.f32 %v6492_v46, %v6356_v44 }
 0x1b8   : > { %v6373_v38 = vpop.f32.mrb[51].mxu0 }
 0x1b9   : > { %v6374_v27 = vadd.f32 %v6373_v38, %v6372_v14 }
 0x1bb   : > { %v6493_v18 = vpop.f32.mrb[56].mxu1 }
 0x1bc   : > { %v6494_v12 = vpop.f32.mrb[57].mxu1 }
 0x1bd   : > { %v6375_v59 = vpop.f32.mrb[52].mxu0  ;;  %v6495_v8 = vadd.f32 %v6494_v12, %v6493_v18  ;;  %v6496_v22 = vpop.f32.mrb[58].mxu1 }
 0x1be   : > { %v6376_v32 = vpop.f32.mrb[53].mxu0  ;;  %v6497_v21 = vpop.f32.mrb[59].mxu1 }
 0x1bf   : > { %v6377_v13 = vadd.f32 %v6376_v32, %v6375_v59  ;;  %v6378_v1 = vpop.f32.mrb[54].mxu0  ;;  %v8291_v33 = vadd.f32 %v6495_v8, %v6359_v52  ;;  %v6498_v42 = vadd.f32 %v6497_v21, %v6496_v22 }
 0x1c0   : > { %v6379_v60 = vpop.f32.mrb[55].mxu0 }
 0x1c1   : > { %8492 = vst [vmem:[#allocation4_spill] sm:$0xff] %v8291_v33  ;;  %v6380_v37 = vadd.f32 %v6379_v60, %v6378_v1  ;;  %v8293_v6 = vadd.f32 %v6498_v42, %v6362_v5 }
 0x1c3   : > { %8493 = vst [vmem:[#allocation5_spill] sm:$0xff] %v8293_v6  ;;  %v6499_v28 = vpop.f32.mrb[60].mxu1 }
 0x1c4   : > { %v6500_v44 = vpop.f32.mrb[61].mxu1 }
 0x1c5   : > { %v6381_v47 = vpop.f32.mrb[56].mxu0  ;;  %v6501_v49 = vadd.f32 %v6500_v44, %v6499_v28  ;;  %v6502_v55 = vpop.f32.mrb[62].mxu1 }
 0x1c6   : > { %v6382_v46 = vpop.f32.mrb[57].mxu0  ;;  %v6503_v14 = vpop.f32.mrb[63].mxu1 }
 0x1c7   : > { %v6383_v38 = vadd.f32 %v6382_v46, %v6381_v47  ;;  %v6384_v18 = vpop.f32.mrb[58].mxu0  ;;  %v8295_v12 = vadd.f32 %v6501_v49, %v6365_v34  ;;  %v6504_v59 = vadd.f32 %v6503_v14, %v6502_v55 }
 0x1c8   : > { %v6385_v32 = vpop.f32.mrb[59].mxu0 }
 0x1c9   : > { %v6386_v52 = vadd.f32 %v6385_v32, %v6384_v18  ;;  %v8297_v8 = vadd.f32 %v6504_v59, %v6368_v19 }
 0x1cb   : > { %8494 = vst [vmem:[#allocation6_spill] sm:$0xff] %v8297_v8  ;;  %v6505_v22 = vpop.f32.mrb[64].mxu1 }
 0x1cc   : > { %v6506_v21 = vpop.f32.mrb[65].mxu1 }
 0x1cd   : > { %v6387_v5 = vpop.f32.mrb[60].mxu0  ;;  %v6507_v1 = vadd.f32 %v6506_v21, %v6505_v22  ;;  %v6508_v42 = vpop.f32.mrb[66].mxu1 }
 0x1ce   : > { %v6388_v60 = vpop.f32.mrb[61].mxu0  ;;  %v6509_v6 = vpop.f32.mrb[67].mxu1 }
 0x1cf   : > { %v6389_v28 = vadd.f32 %v6388_v60, %v6387_v5  ;;  %v6390_v44 = vpop.f32.mrb[62].mxu0  ;;  %v8299_v33 = vadd.f32 %v6507_v1, %v6371_v7  ;;  %v6510_v47 = vadd.f32 %v6509_v6, %v6508_v42 }
 0x1d0   : > { %v6391_v46 = vpop.f32.mrb[63].mxu0 }
 0x1d1   : > { %v6392_v34 = vadd.f32 %v6391_v46, %v6390_v44  ;;  %v8301_v49 = vadd.f32 %v6510_v47, %v6374_v27 }
 0x1d3   : > { %v6511_v55 = vpop.f32.mrb[68].mxu1 }
 0x1d4   : > { %v6512_v19 = vpop.f32.mrb[69].mxu1 }
 0x1d5   : > { %v6707_v14 = vpop.f32.mrb[64].mxu0  ;;  %v6513_v32 = vadd.f32 %v6512_v19, %v6511_v55  ;;  %v6514_v22 = vpop.f32.mrb[70].mxu1 }
 0x1d6   : > { %v3303_v18 = vadd.f32 %v6707_v14, %v8049_v30  ;;  %v3294_v59 = vpop.f32.mrb[65].mxu0  ;;  %v6515_v5 = vpop.f32.mrb[71].mxu1 }
 0x1d7   : > { %v3295_v21 = vadd.f32 %v7966_v35, %v3294_v59  ;;  %v6708_v8 = vpop.f32.mrb[66].mxu0  ;;  %v8309_v27 = vadd.f32 %v6513_v32, %v6377_v13  ;;  %v6516_v42 = vadd.f32 %v6515_v5, %v6514_v22 }
 0x1d8   : > { %v8306_v7 = vadd.f32 %v8179_v50, %v3303_v18  ;;  %v3306_v6 = vadd.f32 %v6708_v8, %v8079_v57  ;;  %v3297_v1 = vpop.f32.mrb[67].mxu0 }
 0x1d9   : > { %v8312_v60 = vadd.f32 %v8156_v48, %v3295_v21  ;;  %v3298_v30 = vadd.f32 %v7985_v17, %v3297_v1  ;;  %v8318_v35 = vadd.f32 %v6516_v42, %v6380_v37 }
 0x1da   : > { %v8316_v44 = vadd.f32 %v8181_v63, %v3306_v6 }
 0x1db   : > { %v3603_v47 = vadd.f32 %v8160_v0, %v3298_v30  ;;  %v6517_v46 = vpop.f32.mrb[72].mxu1 }
 0x1dc   : > { %v6518_v13 = vpop.f32.mrb[73].mxu1 }
 0x1dd   : > { %v6711_v50 = vpop.f32.mrb[68].mxu0  ;;  %v6519_v48 = vadd.f32 %v6518_v13, %v6517_v46  ;;  %v6520_v19 = vpop.f32.mrb[74].mxu1 }
 0x1de   : > { %v3319_v57 = vadd.f32 %v6711_v50, %v8137_v51  ;;  %v3310_v8 = vpop.f32.mrb[69].mxu0  ;;  %v6521_v18 = vpop.f32.mrb[75].mxu1 }
 0x1df   : > { %v3311_v55 = vadd.f32 %v8081_v26, %v3310_v8  ;;  %v6712_v14 = vpop.f32.mrb[70].mxu0  ;;  %v8329_v32 = vadd.f32 %v6519_v48, %v6383_v38  ;;  %v6522_v51 = vadd.f32 %v6521_v18, %v6520_v19 }
 0x1e0   : > { %v8324_v17 = vadd.f32 %v8223_v29, %v3319_v57  ;;  %v3322_v63 = vadd.f32 %v6712_v14, %v8139_v62  ;;  %v3313_v37 = vpop.f32.mrb[71].mxu0 }
 0x1e1   : > { %v3616_v0 = vadd.f32 %v8204_v23, %v3311_v55  ;;  %v3314_v59 = vadd.f32 %v8112_v11, %v3313_v37  ;;  %v8335_v21 = vadd.f32 %v6522_v51, %v6386_v52 }
 0x1e2   : > { %v8332_v22 = vadd.f32 %v8225_v31, %v3322_v63 }
 0x1e3   : > { %v3619_v26 = vadd.f32 %v8206_v39, %v3314_v59  ;;  %v6523_v5 = vpop.f32.mrb[76].mxu1 }
 0x1e4   : > { %v6524_v1 = vpop.f32.mrb[77].mxu1 }
 0x1e5   : > { %v6715_v29 = vpop.f32.mrb[72].mxu0  ;;  %v6525_v11 = vadd.f32 %v6524_v1, %v6523_v5  ;;  %v6526_v38 = vpop.f32.mrb[78].mxu1 }
 0x1e6   : > { %v3335_v62 = vadd.f32 %v6715_v29, %v8185_v4  ;;  %v3326_v6 = vpop.f32.mrb[73].mxu0  ;;  %v6527_v39 = vpop.f32.mrb[79].mxu1 }
 0x1e7   : > { %v3327_v23 = vadd.f32 %v8158_v58, %v3326_v6  ;;  %v6716_v42 = vpop.f32.mrb[74].mxu0  ;;  %v8345_v57 = vadd.f32 %v6525_v11, %v6389_v28  ;;  %v6528_v4 = vadd.f32 %v6527_v39, %v6526_v38 }
 0x1e8   : > { %v8340_v30 = vadd.f32 %v8263_v40, %v3335_v62  ;;  %v3338_v31 = vadd.f32 %v6716_v42, %v8191_v9  ;;  %v3329_v50 = vpop.f32.mrb[75].mxu0 }
 0x1e9   : > { %v3632_v52 = vadd.f32 %v8241_v2, %v3327_v23  ;;  %v3330_v46 = vadd.f32 %v8166_v16, %v3329_v50  ;;  %v8349_v13 = vadd.f32 %v6528_v4, %v6392_v34 }
 0x1ea   : > { %v3643_v8 = vadd.f32 %v8267_v3, %v3338_v31 }
 0x1eb   : > { %v3635_v58 = vadd.f32 %v8243_v61, %v3330_v46 }
 0x1ed   : > { %v6719_v55 = vpop.f32.mrb[76].mxu0 }
 0x1ee   : > { %v3351_v40 = vadd.f32 %v6719_v55, %v8255_v15  ;;  %v3342_v14 = vpop.f32.mrb[77].mxu0 }
 0x1ef   : > { %v3343_v9 = vadd.f32 %v8216_v25, %v3342_v14  ;;  %v6720_v48 = vpop.f32.mrb[78].mxu0 }
 0x1f0   : > { %v8354_v2 = vadd.f32 %v8279_v54, %v3351_v40  ;;  %v3354_v16 = vadd.f32 %v6720_v48, %v8261_v43  ;;  %v3345_v28 = vpop.f32.mrb[79].mxu0 }
 0x1f1   : > { %v3648_v19 = vadd.f32 %v8273_v24, %v3343_v9  ;;  %v3346_v3 = vadd.f32 %v8220_v36, %v3345_v28 }
 0x1f2   : > { %v8360_v61 = vadd.f32 %v8281_v56, %v3354_v16 }
 0x1f3   : > { %v3651_v34 = vadd.f32 %v8277_v53, %v3346_v3 }
 0x1f5   : > { %v6569_v15 = vpop.f32.mrb[80].mxu0 }
 0x1f6   : > { %v6570_v63 = vpop.f32.mrb[81].mxu0 }
 0x1f7   : > { %v6571_v37 = vadd.f32 %v6570_v63, %v6569_v15  ;;  %v6572_v25 = vpop.f32.mrb[82].mxu0 }
 0x1f8   : > { %v6573_v18 = vpop.f32.mrb[83].mxu0 }
 0x1f9   : > { %v6574_v59 = vadd.f32 %v6573_v18, %v6572_v25  ;;  %v8364_v54 = vadd.f32 %v6571_v37, %v8312_v60 }
 0x1fb   : > { %v8366_v43 = vadd.f32 %v6574_v59, %v3603_v47 }
 0x1fd   : > { %v6575_v51 = vpop.f32.mrb[84].mxu0 }
 0x1fe   : > { %v6576_v24 = vpop.f32.mrb[85].mxu0 }
 0x1ff   : > { %v6577_v29 = vadd.f32 %v6576_v24, %v6575_v51  ;;  %v6578_v36 = vpop.f32.mrb[86].mxu0 }
 0x200   : > { %v6579_v5 = vpop.f32.mrb[87].mxu0 }
 0x201   : > { %v6580_v56 = vadd.f32 %v6579_v5, %v6578_v36  ;;  %v6851_v62 = vadd.f32 %v6577_v29, %v8306_v7 }
 0x203   : > { %v6859_v53 = vadd.f32 %v6580_v56, %v8316_v44 }
 0x205   : > { %v6581_v6 = vpop.f32.mrb[88].mxu0 }
 0x206   : > { %v6582_v1 = vpop.f32.mrb[89].mxu0 }
 0x207   : > { %v6583_v23 = vadd.f32 %v6582_v1, %v6581_v6  ;;  %v6584_v42 = vpop.f32.mrb[90].mxu0 }
 0x208   : > { %v6585_v11 = vpop.f32.mrb[91].mxu0 }
 0x209   : > { %v6586_v38 = vadd.f32 %v6585_v11, %v6584_v42  ;;  %v8370_v60 = vadd.f32 %v6583_v23, %v3616_v0 }
 0x20b   : > { %v8372_v47 = vadd.f32 %v6586_v38, %v3619_v26 }
 0x20d   : > { %v6587_v31 = vpop.f32.mrb[92].mxu0 }
 0x20e   : > { %v6588_v50 = vpop.f32.mrb[93].mxu0 }
 0x20f   : > { %v6589_v39 = vadd.f32 %v6588_v50, %v6587_v31  ;;  %v6590_v46 = vpop.f32.mrb[94].mxu0 }
 0x210   : > { %v6591_v4 = vpop.f32.mrb[95].mxu0 }
 0x211   : > { %v6592_v55 = vadd.f32 %v6591_v4, %v6590_v46  ;;  %v8375_v7 = vadd.f32 %v6589_v39, %v8324_v17 }
 0x213   : > { %v8378_v44 = vadd.f32 %v6592_v55, %v8332_v22 }
 0x215   : > { %v6593_v40 = vpop.f32.mrb[96].mxu0 }
 0x216   : > { %v6594_v14 = vpop.f32.mrb[97].mxu0 }
 0x217   : > { %v6595_v9 = vadd.f32 %v6594_v14, %v6593_v40  ;;  %v6596_v0 = vpop.f32.mrb[98].mxu0 }
 0x218   : > { %v6597_v48 = vpop.f32.mrb[99].mxu0 }
 0x219   : > { %v6598_v26 = vadd.f32 %v6597_v48, %v6596_v0  ;;  %v8380_v16 = vadd.f32 %v6595_v9, %v3632_v52 }
 0x21b   : > { %v8382_v28 = vadd.f32 %v6598_v26, %v3635_v58 }
 0x21d   : > { %v6599_v3 = vpop.f32.mrb[100].mxu0 }
 0x21e   : > { %v6600_v15 = vpop.f32.mrb[101].mxu0 }
 0x21f   : > { %v6601_v63 = vadd.f32 %v6600_v15, %v6599_v3  ;;  %v6602_v37 = vpop.f32.mrb[102].mxu0 }
 0x220   : > { %v6603_v17 = vpop.f32.mrb[103].mxu0 }
 0x221   : > { %v6604_v25 = vadd.f32 %v6603_v17, %v6602_v37  ;;  %v8385_v22 = vadd.f32 %v6601_v63, %v8340_v30 }
 0x223   : > { %v8387_v18 = vadd.f32 %v6604_v25, %v3643_v8 }
 0x225   : > { %v6605_v59 = vpop.f32.mrb[104].mxu0 }
 0x226   : > { %v6606_v51 = vpop.f32.mrb[105].mxu0 }
 0x227   : > { %v6607_v24 = vadd.f32 %v6606_v51, %v6605_v59  ;;  %v6608_v29 = vpop.f32.mrb[106].mxu0 }
 0x228   : > { %v6609_v52 = vpop.f32.mrb[107].mxu0 }
 0x229   : > { %v6610_v36 = vadd.f32 %v6609_v52, %v6608_v29  ;;  %v8390_v58 = vadd.f32 %v6607_v24, %v3648_v19 }
 0x22b   : > { %v8392_v5 = vadd.f32 %v6610_v36, %v3651_v34  ;;  %v6803_v8 = vpop.f32.mrb[80].mxu1 }
 0x22c   : > { %v6852_v11 = vadd.f32 %v6851_v62, %v6803_v8  ;;  %v5267_v38 = vpop.f32.mrb[81].mxu1 }
 0x22d   : > { %v6611_v56 = vpop.f32.mrb[108].mxu0  ;;  %v6856_v50 = vadd.f32 %v8364_v54, %v5267_v38  ;;  %v6804_v19 = vpop.f32.mrb[82].mxu1 }
 0x22e   : > { %v6612_v6 = vpop.f32.mrb[109].mxu0  ;;  %v6860_v39 = vadd.f32 %v6859_v53, %v6804_v19  ;;  %v5270_v34 = vpop.f32.mrb[83].mxu1  ;;  %v5625_v0 = vmul.f32 %v6852_v11, %v6852_v11 }
 0x22f   : > { %v6613_v1 = vadd.f32 %v6612_v6, %v6611_v56  ;;  %v6614_v30 = vpop.f32.mrb[110].mxu0  ;;  %v6864_v62 = vadd.f32 %v8366_v43, %v5270_v34  ;;  %v5623_v55 = vmul.f32 %v6856_v50, %v6856_v50 }
 0x230   : > { %v6615_v23 = vpop.f32.mrb[111].mxu0  ;;  %v5626_v25 = vmul.f32 %v6860_v39, %v6860_v39 }
 0x231   : > { %v6616_v42 = vadd.f32 %v6615_v23, %v6614_v30  ;;  %v8395_v31 = vadd.f32 %v6613_v1, %v8354_v2  ;;  %v6194_v2 = vpack.c.bf16 %v6860_v39, %v6852_v11  ;;  %v6189_v54 = vpack.c.bf16 %v6864_v62, %v6856_v50 }
 0x232   : > { %v5586_v14 = vadd.f32 %v6864_v62, %v6856_v50  ;;  %v5624_v53 = vmul.f32 %v6864_v62, %v6864_v62 }
 0x233   : > { %v8399_v46 = vadd.f32 %v6616_v42, %v8360_v61  ;;  %6266 = vst [vmem:[%s8404_s22 + $0x8] sm:$0xff] %v6194_v2   ;;  %6190 = vst [vmem:[%s8404_s22] sm:$0xff] %v6189_v54   ;;  %v6807_v15 = vpop.f32.mrb[84].mxu1 }
 0x234   : > { %v5587_v48 = vadd.f32 %v6852_v11, %v5586_v14  ;;  %v5655_v26 = vadd.f32 %v5624_v53, %v5623_v55  ;;  %v6868_v37 = vadd.f32 %v8375_v7, %v6807_v15  ;;  %v5283_v43 = vpop.f32.mrb[85].mxu1 }
 0x235   : > { %v6617_v4 = vpop.f32.mrb[112].mxu0  ;;  %v6872_v51 = vadd.f32 %v8370_v60, %v5283_v43  ;;  %v6808_v29 = vpop.f32.mrb[86].mxu1 }
 0x236   : > { %v6618_v40 = vpop.f32.mrb[113].mxu0  ;;  %v5656_v59 = vadd.f32 %v5655_v26, %v5625_v0  ;;  %v5588_v24 = vadd.f32 %v6860_v39, %v5587_v48  ;;  %v6876_v52 = vadd.f32 %v8378_v44, %v6808_v29  ;;  %v5286_v36 = vpop.f32.mrb[87].mxu1  ;;  %v5629_v19 = vmul.f32 %v6868_v37, %v6868_v37 }
 0x237   : > { %v6619_v9 = vadd.f32 %v6618_v40, %v6617_v4  ;;  %v6620_v61 = vpop.f32.mrb[114].mxu0  ;;  %v5627_v7 = vmul.f32 %v6872_v51, %v6872_v51 }
 0x238   : > { %v6621_v3 = vpop.f32.mrb[115].mxu0  ;;  %v5589_v6 = vadd.f32 %v6872_v51, %v5588_v24  ;;  %v5657_v1 = vadd.f32 %v5656_v59, %v5626_v25  ;;  %v6204_v23 = vpack.c.bf16 %v6876_v52, %v6868_v37 }
 0x239   : > { %v6622_v63 = vadd.f32 %v6621_v3, %v6620_v61  ;;  %v8411_v17 = vadd.f32 %v8283_v10, %v6619_v9  ;;  %v6880_v10 = vadd.f32 %v8372_v47, %v5286_v36  ;;  %v5630_v47 = vmul.f32 %v6876_v52, %v6876_v52  ;;  %v8495_v36 = vld [vmem:[#allocation4_spill] sm:$0xff] }
 0x23a   : > { %v5658_v8 = vadd.f32 %v5657_v1, %v5627_v7  ;;  %6268 = vst [vmem:[%s8404_s22 + $0x18] sm:$0xff] %v6204_v23  }
 0x23b   : > { %v8416_v56 = vadd.f32 %v8285_v41, %v6622_v63  ;;  %v6199_v60 = vpack.c.bf16 %v6880_v10, %v6872_v51  ;;  %v5590_v11 = vadd.f32 %v6880_v10, %v5589_v6  ;;  %v5628_v38 = vmul.f32 %v6880_v10, %v6880_v10  ;;  %v6811_v4 = vpop.f32.mrb[88].mxu1 }
 0x23c   : > { %v6884_v40 = vadd.f32 %v8385_v22, %v6811_v4  ;;  %v5299_v54 = vpop.f32.mrb[89].mxu1 }
 0x23d   : > { %v6623_v30 = vpop.f32.mrb[116].mxu0  ;;  %6267 = vst [vmem:[%s8404_s22 + $0x10] sm:$0xff] %v6199_v60   ;;  %v5591_v41 = vadd.f32 %v6868_v37, %v5590_v11  ;;  %v5659_v39 = vadd.f32 %v5658_v8, %v5628_v38  ;;  %v6888_v53 = vadd.f32 %v8380_v16, %v5299_v54  ;;  %v6812_v9 = vpop.f32.mrb[90].mxu1 }
 0x23e   : > { %v6624_v42 = vpop.f32.mrb[117].mxu0  ;;  %v6892_v48 = vadd.f32 %v8387_v18, %v6812_v9  ;;  %v5302_v26 = vpop.f32.mrb[91].mxu1  ;;  %v5633_v7 = vmul.f32 %v6884_v40, %v6884_v40 }
 0x23f   : > { %v6625_v50 = vadd.f32 %v6624_v42, %v6623_v30  ;;  %v6626_v44 = vpop.f32.mrb[118].mxu0  ;;  %v5660_v55 = vadd.f32 %v5659_v39, %v5629_v19  ;;  %v5592_v14 = vadd.f32 %v6876_v52, %v5591_v41  ;;  %v5631_v15 = vmul.f32 %v6888_v53, %v6888_v53  ;;  %v8496_v42 = vld [vmem:[#allocation5_spill] sm:$0xff] }
 0x240   : > { %v6627_v34 = vpop.f32.mrb[119].mxu0  ;;  %v6896_v63 = vadd.f32 %v8382_v28, %v5302_v26  ;;  %v6214_v37 = vpack.c.bf16 %v6892_v48, %v6884_v40  ;;  %v5634_v11 = vmul.f32 %v6892_v48, %v6892_v48 }
 0x241   : > { %v6628_v62 = vadd.f32 %v6627_v34, %v6626_v44  ;;  %v8422_v2 = vadd.f32 %v8287_v20, %v6625_v50  ;;  %v5661_v0 = vadd.f32 %v5660_v55, %v5630_v47  ;;  %v5593_v3 = vadd.f32 %v6888_v53, %v5592_v14 }
 0x242   : > { %v6209_v59 = vpack.c.bf16 %v6896_v63, %v6888_v53  ;;  %6270 = vst [vmem:[%s8404_s22 + $0x28] sm:$0xff] %v6214_v37   ;;  %v8497_v37 = vld [vmem:[#allocation6_spill] sm:$0xff] }
 0x243   : > { %v8427_v61 = vadd.f32 %v8289_v45, %v6628_v62  ;;  %v5662_v43 = vadd.f32 %v5661_v0, %v5631_v15  ;;  %v5594_v51 = vadd.f32 %v6896_v63, %v5593_v3  ;;  %v5632_v45 = vmul.f32 %v6896_v63, %v6896_v63  ;;  %v6815_v52 = vpop.f32.mrb[92].mxu1 }
 0x244   : > { %6269 = vst [vmem:[%s8404_s22 + $0x20] sm:$0xff] %v6209_v59   ;;  %v6900_v28 = vadd.f32 %v8395_v31, %v6815_v52  ;;  %v5315_v10 = vpop.f32.mrb[93].mxu1 }
 0x245   : > { %v6629_v20 = vpop.f32.mrb[120].mxu0  ;;  %v5595_v29 = vadd.f32 %v6884_v40, %v5594_v51  ;;  %v5663_v1 = vadd.f32 %v5662_v43, %v5632_v45  ;;  %v6904_v30 = vadd.f32 %v8390_v58, %v5315_v10  ;;  %v6816_v8 = vpop.f32.mrb[94].mxu1 }
 0x246   : > { %v6630_v22 = vpop.f32.mrb[121].mxu0  ;;  %v6908_v50 = vadd.f32 %v8399_v46, %v6816_v8  ;;  %v5318_v44 = vpop.f32.mrb[95].mxu1  ;;  %v5637_v26 = vmul.f32 %v6900_v28, %v6900_v28 }
 0x247   : > { %v6631_v25 = vadd.f32 %v6630_v22, %v6629_v20  ;;  %v6632_v16 = vpop.f32.mrb[122].mxu0  ;;  %v5596_v23 = vadd.f32 %v6892_v48, %v5595_v29  ;;  %v5664_v38 = vadd.f32 %v5663_v1, %v5633_v7  ;;  %v5635_v39 = vmul.f32 %v6904_v30, %v6904_v30 }
 0x248   : > { %v6633_v24 = vpop.f32.mrb[123].mxu0  ;;  %v6912_v31 = vadd.f32 %v8392_v5, %v5318_v44  ;;  %v6224_v58 = vpack.c.bf16 %v6908_v50, %v6900_v28 }
 0x249   : > { %v6634_v18 = vadd.f32 %v6633_v24, %v6632_v16  ;;  %v8434_v6 = vadd.f32 %v8495_v36, %v6631_v25  ;;  %v5597_v41 = vadd.f32 %v6904_v30, %v5596_v23  ;;  %v5665_v34 = vadd.f32 %v5664_v38, %v5634_v11 }
 0x24a   : > { %v6219_v55 = vpack.c.bf16 %v6912_v31, %v6904_v30  ;;  %v5636_v54 = vmul.f32 %v6912_v31, %v6912_v31  ;;  %6272 = vst [vmem:[%s8404_s22 + $0x38] sm:$0xff] %v6224_v58   ;;  %v5638_v25 = vmul.f32 %v6908_v50, %v6908_v50 }
 0x24b   : > { %v8439_v60 = vadd.f32 %v8496_v42, %v6634_v18  ;;  %v5598_v40 = vadd.f32 %v6912_v31, %v5597_v41  ;;  %v5666_v14 = vadd.f32 %v5665_v34, %v5635_v39  ;;  %v6819_v0 = vpop.f32.mrb[0].mxu1 }
 0x24c   : > { %6271 = vst [vmem:[%s8404_s22 + $0x30] sm:$0xff] %v6219_v55   ;;  %v6915_v5 = vadd.f32 %v8422_v2, %v6819_v0  ;;  %v5331_v3 = vpop.f32.mrb[1].mxu1 }
 0x24d   : > { %v6635_v19 = vpop.f32.mrb[124].mxu0  ;;  %v5599_v46 = vadd.f32 %v6900_v28, %v5598_v40  ;;  %v5667_v20 = vadd.f32 %v5666_v14, %v5636_v54  ;;  %v6918_v15 = vadd.f32 %v8411_v17, %v5331_v3  ;;  %v6820_v22 = vpop.f32.mrb[2].mxu1 }
 0x24e   : > { %v6636_v62 = vpop.f32.mrb[125].mxu0  ;;  %v6921_v59 = vadd.f32 %v8427_v61, %v6820_v22  ;;  %v5334_v51 = vpop.f32.mrb[3].mxu1  ;;  %v5641_v42 = vmul.f32 %v6915_v5, %v6915_v5 }
 0x24f   : > { %v6637_v4 = vadd.f32 %v6636_v62, %v6635_v19  ;;  %v6638_v47 = vpop.f32.mrb[126].mxu0  ;;  %v5600_v63 = vadd.f32 %v6908_v50, %v5599_v46  ;;  %v5668_v16 = vadd.f32 %v5667_v20, %v5637_v26  ;;  %v5639_v24 = vmul.f32 %v6918_v15, %v6918_v15 }
 0x250   : > { %v6639_v53 = vpop.f32.mrb[127].mxu0  ;;  %v6924_v29 = vadd.f32 %v8416_v56, %v5334_v51  ;;  %v6234_v52 = vpack.c.bf16 %v6921_v59, %v6915_v5  ;;  %v5642_v44 = vmul.f32 %v6921_v59, %v6921_v59 }
 0x251   : > { %v6640_v9 = vadd.f32 %v6639_v53, %v6638_v47  ;;  %v6926_v48 = vadd.f32 %v8295_v12, %v6637_v4  ;;  %v5601_v12 = vadd.f32 %v6918_v15, %v5600_v63  ;;  %v5669_v2 = vadd.f32 %v5668_v16, %v5638_v25 }
 0x252   : > { %v6229_v7 = vpack.c.bf16 %v6924_v29, %v6918_v15  ;;  %v5640_v28 = vmul.f32 %v6924_v29, %v6924_v29  ;;  %6274 = vst [vmem:[%s8404_s22 + $0x48] sm:$0xff] %v6234_v52  }
 0x253   : > { %v6932_v43 = vadd.f32 %v8497_v37, %v6640_v9  ;;  %v5602_v1 = vadd.f32 %v6924_v29, %v5601_v12  ;;  %v5670_v10 = vadd.f32 %v5669_v2, %v5639_v24 }
 0x254   : > { %6273 = vst [vmem:[%s8404_s22 + $0x40] sm:$0xff] %v6229_v7  }
 0x255   : > { %v6641_v45 = vpop.f32.mrb[128].mxu0  ;;  %v5603_v61 = vadd.f32 %v6915_v5, %v5602_v1  ;;  %v5671_v11 = vadd.f32 %v5670_v10, %v5640_v28 }
 0x256   : > { %v6642_v18 = vpop.f32.mrb[129].mxu0 }
 0x257   : > { %v6643_v17 = vadd.f32 %v6642_v18, %v6641_v45  ;;  %v6644_v36 = vpop.f32.mrb[130].mxu0  ;;  %v6823_v38 = vpop.f32.mrb[4].mxu1  ;;  %v5604_v56 = vadd.f32 %v6921_v59, %v5603_v61  ;;  %v5672_v19 = vadd.f32 %v5671_v11, %v5641_v42 }
 0x258   : > { %v6645_v30 = vpop.f32.mrb[131].mxu0  ;;  %v6927_v41 = vadd.f32 %v6926_v48, %v6823_v38  ;;  %v5347_v39 = vpop.f32.mrb[5].mxu1 }
 0x259   : > { %v6646_v23 = vadd.f32 %v6645_v30, %v6644_v36  ;;  %v6941_v8 = vadd.f32 %v8299_v33, %v6643_v17  ;;  %v6930_v34 = vadd.f32 %v8434_v6, %v5347_v39  ;;  %v6824_v62 = vpop.f32.mrb[6].mxu1  ;;  %v5673_v58 = vadd.f32 %v5672_v19, %v5642_v44 }
 0x25a   : > { %v6933_v47 = vadd.f32 %v6932_v43, %v6824_v62  ;;  %v5350_v55 = vpop.f32.mrb[7].mxu1  ;;  %v5645_v5 = vmul.f32 %v6927_v41, %v6927_v41 }
 0x25b   : > { %v6947_v50 = vadd.f32 %v8301_v49, %v6646_v23  ;;  %v5605_v33 = vadd.f32 %v6930_v34, %v5604_v56  ;;  %v5643_v40 = vmul.f32 %v6930_v34, %v6930_v34  ;;  %v6936_v49 = vadd.f32 %v8439_v60, %v5350_v55 }
 0x25c   : > { %v6244_v53 = vpack.c.bf16 %v6933_v47, %v6927_v41  ;;  %v5646_v60 = vmul.f32 %v6933_v47, %v6933_v47 }
 0x25d   : > { %v6647_v31 = vpop.f32.mrb[132].mxu0  ;;  %v5674_v9 = vadd.f32 %v5673_v58, %v5643_v40  ;;  %v6239_v0 = vpack.c.bf16 %v6936_v49, %v6930_v34  ;;  %v5606_v48 = vadd.f32 %v6936_v49, %v5605_v33  ;;  %v5644_v26 = vmul.f32 %v6936_v49, %v6936_v49 }
 0x25e   : > { %v6648_v4 = vpop.f32.mrb[133].mxu0  ;;  %6276 = vst [vmem:[%s8404_s22 + $0x58] sm:$0xff] %v6244_v53  }
 0x25f   : > { %v6649_v54 = vadd.f32 %v6648_v4, %v6647_v31  ;;  %v6650_v14 = vpop.f32.mrb[134].mxu0  ;;  %6275 = vst [vmem:[%s8404_s22 + $0x50] sm:$0xff] %v6239_v0   ;;  %v5607_v3 = vadd.f32 %v6927_v41, %v5606_v48  ;;  %v5675_v15 = vadd.f32 %v5674_v9, %v5644_v26  ;;  %v6827_v63 = vpop.f32.mrb[8].mxu1 }
 0x260   : > { %v6651_v46 = vpop.f32.mrb[135].mxu0  ;;  %v5363_v37 = vpop.f32.mrb[9].mxu1 }
 0x261   : > { %v6652_v6 = vadd.f32 %v6651_v46, %v6650_v14  ;;  %v6938_v20 = vadd.f32 %v8309_v27, %v6649_v54  ;;  %v5676_v25 = vadd.f32 %v5675_v15, %v5645_v5  ;;  %v6942_v16 = vadd.f32 %v6941_v8, %v5363_v37  ;;  %v6828_v51 = vpop.f32.mrb[10].mxu1 }
 0x262   : > { %v5608_v59 = vadd.f32 %v6933_v47, %v5607_v3  ;;  %v5366_v24 = vpop.f32.mrb[11].mxu1 }
 0x263   : > { %v6939_v22 = vadd.f32 %v6938_v20, %v6827_v63  ;;  %v6944_v43 = vadd.f32 %v8318_v35, %v6652_v6  ;;  %v5647_v27 = vmul.f32 %v6942_v16, %v6942_v16  ;;  %v5677_v2 = vadd.f32 %v5676_v25, %v5646_v60 }
 0x264   : > { %v5609_v29 = vadd.f32 %v6942_v16, %v5608_v59  ;;  %v6948_v52 = vadd.f32 %v6947_v50, %v5366_v24 }
 0x265   : > { %v6653_v45 = vpop.f32.mrb[136].mxu0  ;;  %v6945_v12 = vadd.f32 %v6944_v43, %v6828_v51  ;;  %v5678_v1 = vadd.f32 %v5677_v2, %v5647_v27  ;;  %v5649_v8 = vmul.f32 %v6939_v22, %v6939_v22 }
 0x266   : > { %v6654_v18 = vpop.f32.mrb[137].mxu0  ;;  %v6249_v35 = vpack.c.bf16 %v6948_v52, %v6942_v16  ;;  %v5610_v28 = vadd.f32 %v6948_v52, %v5609_v29  ;;  %v5648_v10 = vmul.f32 %v6948_v52, %v6948_v52 }
 0x267   : > { %v6655_v17 = vadd.f32 %v6654_v18, %v6653_v45  ;;  %v6254_v36 = vpack.c.bf16 %v6945_v12, %v6939_v22  ;;  %v6656_v7 = vpop.f32.mrb[138].mxu0  ;;  %v5650_v56 = vmul.f32 %v6945_v12, %v6945_v12 }
 0x268   : > { %v6657_v30 = vpop.f32.mrb[139].mxu0  ;;  %6277 = vst [vmem:[%s8404_s22 + $0x60] sm:$0xff] %v6249_v35   ;;  %v5611_v42 = vadd.f32 %v6939_v22, %v5610_v28  ;;  %v5679_v11 = vadd.f32 %v5678_v1, %v5648_v10 }
 0x269   : > { %6278 = vst [vmem:[%s8404_s22 + $0x68] sm:$0xff] %v6254_v36   ;;  %v6658_v61 = vadd.f32 %v6657_v30, %v6656_v7  ;;  %v6953_v23 = vadd.f32 %v8329_v32, %v6655_v17 }
 0x26a   : > { %v5680_v50 = vadd.f32 %v5679_v11, %v5649_v8  ;;  %v5612_v44 = vadd.f32 %v6945_v12, %v5611_v42  ;;  %v6831_v19 = vpop.f32.mrb[12].mxu1 }
 0x26b   : > { %v6959_v38 = vadd.f32 %v8335_v21, %v6658_v61  ;;  %v5379_v39 = vpop.f32.mrb[13].mxu1 }
 0x26c   : > { %v5681_v41 = vadd.f32 %v5680_v50, %v5650_v56  ;;  %v6954_v31 = vadd.f32 %v6953_v23, %v5379_v39  ;;  %v6832_v34 = vpop.f32.mrb[14].mxu1 }
 0x26d   : > { %v5382_v62 = vpop.f32.mrb[15].mxu1 }
 0x26e   : > { %v5613_v58 = vadd.f32 %v6954_v31, %v5612_v44  ;;  %v5651_v4 = vmul.f32 %v6954_v31, %v6954_v31  ;;  %v6960_v47 = vadd.f32 %v6959_v38, %v5382_v62  ;;  %v6659_v32 = vpop.f32.mrb[140].mxu0 }
 0x26f   : > { %v6660_v33 = vpop.f32.mrb[141].mxu0 }
 0x270   : > { %v5682_v55 = vadd.f32 %v5681_v41, %v5651_v4  ;;  %v6259_v40 = vpack.c.bf16 %v6960_v47, %v6954_v31  ;;  %v5614_v54 = vadd.f32 %v6960_v47, %v5613_v58  ;;  %v5652_v14 = vmul.f32 %v6960_v47, %v6960_v47  ;;  %v6662_v49 = vpop.f32.mrb[142].mxu0 }
 0x271   : > { %v6661_v21 = vadd.f32 %v6660_v33, %v6659_v32  ;;  %v6663_v46 = vpop.f32.mrb[143].mxu0 }
 0x272   : > { %6279 = vst [vmem:[%s8404_s22 + $0x70] sm:$0xff] %v6259_v40   ;;  %v5683_v53 = vadd.f32 %v5682_v55, %v5652_v14  ;;  %v6664_v0 = vadd.f32 %v6663_v46, %v6662_v49 }
 0x273   : > { %v6950_v9 = vadd.f32 %v8345_v57, %v6661_v21 }
 0x274   : > { %v6956_v26 = vadd.f32 %v8349_v13, %v6664_v0 }
 0x275   : > { %v6951_v48 = vadd.f32 %v6950_v9, %v6831_v19 }
 0x276   : > { %v6957_v5 = vadd.f32 %v6956_v26, %v6832_v34 }
 0x277   : > { %v5653_v6 = vmul.f32 %v6951_v48, %v6951_v48  ;;  %v5615_v20 = vadd.f32 %v6951_v48, %v5614_v54 }
 0x278   : > { %v6264_v15 = vpack.c.bf16 %v6957_v5, %v6951_v48  ;;  %v5654_v22 = vmul.f32 %v6957_v5, %v6957_v5 }
 0x279   : > { %v5684_v3 = vadd.f32 %v5683_v53, %v5653_v6  ;;  %v5616_v63 = vadd.f32 %v6957_v5, %v5615_v20 }
 0x27a   : > { %6280 = vst [vmem:[%s8404_s22 + $0x78] sm:$0xff] %v6264_v15  }
 0x27b   : > { %v5617_v37 = vrot.slane %v5616_v63, 4  ;;  %v5685_v43 = vadd.f32 %v5684_v3, %v5654_v22 }
 0x27d   : > { %v5618_v60 = vadd.f32 %v5617_v37, %v5616_v63  ;;  %v5686_v25 = vrot.slane %v5685_v43, 4 }
 0x27f   : > { %v5619_v16 = vrot.slane %v5618_v60, 2  ;;  %v5687_v59 = vadd.f32 %v5686_v25, %v5685_v43 }
 0x281   : > { %v5620_v57 = vadd.f32 %v5619_v16, %v5618_v60  ;;  %v5688_v51 = vrot.slane %v5687_v59, 2 }
 0x283   : > { %v5621_v45 = vrot.slane %v5620_v57, 1  ;;  %v5689_v12 = vadd.f32 %v5688_v51, %v5687_v59 }
 0x285   : > { %v5622_v13 = vadd.f32 %v5621_v45, %v5620_v57  ;;  %v5690_v24 = vrot.slane %v5689_v12, 1 }
 0x287   : > { %v5691_v29 = vadd.f32 %v5690_v24, %v5689_v12  ;;  %5692 = vst [vmem:[%s182_s26] sm:$0x1] %v5622_v13 }
 0x289   : > { %5693 = vst [vmem:[%s182_s26 + $0x1] sm:$0x1] %v5691_v29 }
 0x28a PF: > { %s14_s12 = sadd.s32 1, %s7144_s12  }
 0x28b   : > { %p11_p5 = scmp.ge.s32.totalorder %s14_s12, 4  }
 0x28d   :  { %13 = sbr.rel (!%p11_p5) target bundleno = 1 (0x1), region = 73 }

</bundles_post_ra>
